<compile_context>
chip_gen: v7x
topology: tpu7x:2x2x1
jax: 0.10.0
libtpu: 0.0.40
codegen_flags: <defaults>
</compile_context>

<pallas_src>
import math

import numpy as np
import jax
import jax.numpy as jnp
from jax.experimental import pallas as pl
from jax.experimental.pallas import tpu as pltpu


# ----------------------------------------------------------------------------
# Fused Pallas kernel (one stacked slab of B_tile images per grid step)
# ----------------------------------------------------------------------------
def _make_kernel(h3):
    def kernel(p3_ref, p4_ref, p5_ref,                               # stacked features
               ra0_ref, rb0_ref, ra1_ref, rb1_ref, ra2_ref, rb2_ref,  # refine convs
               uk4_ref, uh4_ref, uk5_ref, uh5_ref,                    # bilinear matrices
               ta0_ref, tb0_ref, ta1_ref, tb1_ref,                    # tower convs
               okm_ref, obt_ref,                                      # final 1x1
               o_ref,                                                 # (1, M3-2, W3*CO)
               xs_ref):                                               # (M3, W3*CH) scratch
        cdt = ra0_ref.dtype            # bf16 compute dtype (from the host-cast weights)

        def conv3x3(s_ref, a_ref, b_ref):
            """3x3 'same' conv + bias + ReLU on a stacked (M, W*Cin) slab.

            s_ref rows are [sep, img rows..., sep] per image, separator rows are
            zero: they supply the H padding.  W padding is folded into the banded
            weights (out-of-range taps simply have no band entry).  Returns the
            stacked rows 1..M-2 (everything except the two global boundary rows).
            """
            m = s_ref.shape[0]
            acc = jnp.dot(s_ref[0:m - 2, :].astype(cdt), a_ref[0],
                          preferred_element_type=jnp.float32)
            acc = acc + jnp.dot(s_ref[1:m - 1, :].astype(cdt), a_ref[1],
                                preferred_element_type=jnp.float32)
            acc = acc + jnp.dot(s_ref[2:m, :].astype(cdt), a_ref[2],
                                preferred_element_type=jnp.float32)
            return jnp.maximum(acc + b_ref[...], 0.0)

        m3 = xs_ref.shape[0]
        lanes = xs_ref.shape[1]

        # Row mask over stacked rows 1..m3-2: 1 on real image rows, 0 on the
        # per-image zero-separator rows (keeps them zero without full memsets).
        g = jax.lax.broadcasted_iota(jnp.int32, (m3 - 2, 1), 0) + 1
        loc = g % (h3 + 2)
        interior = jnp.logical_and(loc >= 1, loc <= h3).astype(jnp.float32)

        # --- refine p3 -------------------------------------------------------
        x = conv3x3(p3_ref.at[0], ra0_ref, rb0_ref)                  # (M3-2, W3*CH)

        # --- refine p4, aligned_bilinear x2 (lane interp first: fewer MACs) ---
        r4 = conv3x3(p4_ref.at[0], ra1_ref, rb1_ref)                 # (M4-2, W4*CH)
        t4 = jnp.dot(r4.astype(cdt), uk4_ref[...],
                     preferred_element_type=jnp.float32)             # (M4-2, W3*CH)
        x = x + jnp.dot(uh4_ref[...], t4.astype(cdt),
                        preferred_element_type=jnp.float32)          # (M3-2, W3*CH)

        # --- refine p5, aligned_bilinear x4 -----------------------------------
        r5 = conv3x3(p5_ref.at[0], ra2_ref, rb2_ref)
        t5 = jnp.dot(r5.astype(cdt), uk5_ref[...],
                     preferred_element_type=jnp.float32)
        x = x + jnp.dot(uh5_ref[...], t5.astype(cdt),
                        preferred_element_type=jnp.float32)

        # --- tower: 2 x (3x3 conv + ReLU); activation stays resident in VMEM --
        # Only the two global boundary rows are zeroed explicitly (2 row stores);
        # interior separator rows are re-zeroed by the `interior` mask on store.
        zero_row = jnp.zeros((1, lanes), jnp.float32)
        xs_ref[0:1, :] = zero_row
        xs_ref[m3 - 1:m3, :] = zero_row
        xs_ref[pl.ds(1, m3 - 2), :] = x * interior

        y = conv3x3(xs_ref, ta0_ref, tb0_ref)
        xs_ref[pl.ds(1, m3 - 2), :] = y * interior

        y = conv3x3(xs_ref, ta1_ref, tb1_ref)    # separator rows never read again

        # --- final 1x1 conv fused in; lane-dense full store (W3*CO lanes) -----
        out = jnp.dot(y.astype(cdt), okm_ref[...],
                      preferred_element_type=jnp.float32)
        o_ref[0] = (out + obt_ref[...]).astype(o_ref.dtype)

    return kernel


# ----------------------------------------------------------------------------
# Host-side weight preparation (precomputed once per (batch, spatial) config)
# ----------------------------------------------------------------------------
def _aligned_bilinear_matrix(size, factor):
    """(factor*size, size) matrix reproducing adet's aligned_bilinear on one axis."""
    m = np.zeros((factor * size, size), np.float32)
    shift = factor // 2
    for i in range(factor * size):
        d = max(i - shift, 0)                 # index on the align_corners grid
        lo = d // factor
        frac = (d % factor) / float(factor)
        lo_x = min(lo, size - 1)              # replicate right/bottom padding
        hi_x = min(lo + 1, size - 1)
        m[i, lo_x] += 1.0 - frac
        m[i, hi_x] += frac
    return m


def _expand_conv3x3(w, width):
    """Expand (3,3,Cin,Cout) conv weights into 3 banded matrices.

    Returns A of shape (3, width*Cin, width*Cout) such that, with `rows` the
    zero-row-padded activation in (H+2, width*Cin) lane-flattened layout,
        out[h, :] = sum_kh rows[h + kh, :] @ A[kh]
    equals the 3x3 stride-1 pad-1 convolution in (H, width*Cout) layout.
    NOTE: the bands are ~81% structural zeros; fine at W=16 but O(W^2) in HBM
    if spatial sizes grow (switch to an im2col/row-strip formulation then).
    """
    cin, cout = int(w.shape[2]), int(w.shape[3])
    mats = []
    for kh in range(3):
        a = jnp.zeros((width * cin, width * cout), jnp.float32)
        for kw in range(3):
            # band[w_in, w_out] = 1  iff  w_in == w_out - 1 + kw (in-bounds taps only)
            band = np.eye(width, width, k=1 - kw, dtype=np.float32)
            a = a + jnp.kron(jnp.asarray(band), w[kh, kw])
        mats.append(a)
    return jnp.stack(mats)


def _tiled_bias(b, width):
    return jnp.tile(b, width).reshape(1, width * b.shape[0])


def _stacked_row_interp(h_dst, h_src, b_tile):
    """Row-axis aligned_bilinear for the batch-stacked layout.

    Maps stacked source rows 1..B*(h_src+2)-2 to stacked destination rows
    1..B*(h_dst+2)-2; separator rows map to / from exact zeros.
    """
    blk = _aligned_bilinear_matrix(h_src, h_dst // h_src)      # (h_dst, h_src)
    m_dst, m_src = b_tile * (h_dst + 2), b_tile * (h_src + 2)
    full = np.zeros((m_dst, m_src), np.float32)
    for b in range(b_tile):
        r0, c0 = b * (h_dst + 2) + 1, b * (h_src + 2) + 1
        full[r0:r0 + h_dst, c0:c0 + h_src] = blk
    return full[1:-1, 1:-1]


def _pick_b_tile(n, h3):
    """Largest divisor of n such that one stacked slab is <= ~128 sublane rows."""
    cap = max(1, 128 // (h3 + 2))
    best = 1
    for b in range(1, min(n, cap) + 1):
        if n % b == 0:
            best = b
    return best


# ----------------------------------------------------------------------------
# MaskBranch module (parameters + fused forward)
# ----------------------------------------------------------------------------
class MaskBranchPallas:
    """CondInst MaskBranch forward (eval mode) backed by one fused Pallas kernel."""

    def __init__(self, key, feature_channels=(16, 16, 16), channels=16,
                 num_convs=2, num_outputs=8, compute_dtype=jnp.bfloat16):
        assert len(feature_channels) == 3, "documented config uses p3/p4/p5"
        assert num_convs == 2, "documented config uses NUM_CONVS = 2"
        self.feature_channels = tuple(int(c) for c in feature_channels)
        self.channels = channels
        self.num_convs = num_convs
        self.num_outputs = num_outputs
        self.compute_dtype = compute_dtype

        def kaiming_uniform(k, shape, fan_in):
            # nn.init.kaiming_uniform_(w, a=1): bound = sqrt(3 / fan_in)
            bound = math.sqrt(3.0 / fan_in)
            return jax.random.uniform(k, shape, jnp.float32, -bound, bound)

        keys = jax.random.split(key, 3 + num_convs + 1)
        ki = 0
        self.refine_w, self.refine_b = [], []
        for cin in self.feature_channels:
            self.refine_w.append(
                kaiming_uniform(keys[ki], (3, 3, cin, channels), 9 * cin))
            self.refine_b.append(jnp.zeros((channels,), jnp.float32))
            ki += 1
        self.tower_w, self.tower_b = [], []
        for _ in range(num_convs):
            self.tower_w.append(
                kaiming_uniform(keys[ki], (3, 3, channels, channels), 9 * channels))
            self.tower_b.append(jnp.zeros((channels,), jnp.float32))
            ki += 1
        cout = max(num_outputs, 1)
        self.out_w = kaiming_uniform(keys[ki], (channels, cout), channels)
        self.out_b = jnp.zeros((cout,), jnp.float32)

        self._cache = {}   # (batch, spatial) -> dict(b_tile, weights, make_fn, fn)

        # TODO(synk): training-only semantic-segmentation focal-loss branch
        # (SEMANTIC_LOSS_ON) is omitted; in eval mode the reference returns {}.

    def _build(self, batch, spatial):
        key = (batch, spatial)
        if key in self._cache:
            return self._cache[key]
        (h3, w3), (h4, w4), (h5, w5) = spatial
        c0, c1, c2 = self.feature_channels
        ch, co = self.channels, max(self.num_outputs, 1)
        for h, w in ((h4, w4), (h5, w5)):
            assert h3 % h == 0 and w3 % w == 0 and h3 // h == w3 // w

        b_tile = _pick_b_tile(batch, h3)
        num_tiles = batch // b_tile
        m3, m4, m5 = b_tile * (h3 + 2), b_tile * (h4 + 2), b_tile * (h5 + 2)
        wdt = self.compute_dtype

        def lane_interp(w_src, factor):
            return jnp.asarray(
                np.kron(_aligned_bilinear_matrix(w_src, factor).T,
                        np.eye(ch, dtype=np.float32))).astype(wdt)

        # All large matrices cast to bf16 on the host; biases stay f32.
        weights = [
            _expand_conv3x3(self.refine_w[0], w3).astype(wdt), _tiled_bias(self.refine_b[0], w3),
            _expand_conv3x3(self.refine_w[1], w4).astype(wdt), _tiled_bias(self.refine_b[1], w4),
            _expand_conv3x3(self.refine_w[2], w5).astype(wdt), _tiled_bias(self.refine_b[2], w5),
            lane_interp(w4, w3 // w4),
            jnp.asarray(_stacked_row_interp(h3, h4, b_tile)).astype(wdt),
            lane_interp(w5, w3 // w5),
            jnp.asarray(_stacked_row_interp(h3, h5, b_tile)).astype(wdt),
            _expand_conv3x3(self.tower_w[0], w3).astype(wdt), _tiled_bias(self.tower_b[0], w3),
            _expand_conv3x3(self.tower_w[1], w3).astype(wdt), _tiled_bias(self.tower_b[1], w3),
            jnp.kron(jnp.eye(w3, dtype=jnp.float32), self.out_w).astype(wdt),
            _tiled_bias(self.out_b, w3),
        ]

        kernel = _make_kernel(h3)

        def img_spec(m, lanes):
            return pl.BlockSpec((1, m, lanes), lambda n: (n, 0, 0))

        def const_idx(nd):
            return lambda n: (0,) * nd

        def make_fn(single_buffer):
            if single_buffer:
                try:
                    pm = pl.Buffered(1)            # constant block -> 1 buffer suffices
                    w_specs = [pl.BlockSpec(w.shape, const_idx(w.ndim), pipeline_mode=pm)
                               for w in weights]
                except Exception:
                    return None                    # pipeline_mode unavailable here
            else:
                w_specs = [pl.BlockSpec(w.shape, const_idx(w.ndim)) for w in weights]
            return pl.pallas_call(
                kernel,
                out_shape=jax.ShapeDtypeStruct((num_tiles, m3 - 2, w3 * co), jnp.float32),
                grid=(num_tiles,),
                in_specs=[img_spec(m3, w3 * c0),
                          img_spec(m4, w4 * c1),
                          img_spec(m5, w5 * c2)] + w_specs,
                out_specs=pl.BlockSpec((1, m3 - 2, w3 * co), lambda n: (n, 0, 0)),
                scratch_shapes=[pltpu.VMEM((m3, w3 * ch), jnp.float32)],  # stacked tower act
                compiler_params=pltpu.CompilerParams(
                    dimension_semantics=("parallel",),   # shard batch tiles over TCs
                    vmem_limit_bytes=32 * 1024 * 1024),  # fits v7x's 64 MiB/TC too
            )

        entry = {"b_tile": b_tile, "weights": weights, "make_fn": make_fn, "fn": None}
        self._cache[key] = entry
        return entry

    def __call__(self, features):
        p3, p4, p5 = features
        n = int(p3.shape[0])
        c0, c1, c2 = self.feature_channels
        assert p3.shape[-1] == c0 and p4.shape[-1] == c1 and p5.shape[-1] == c2
        spatial = (tuple(p3.shape[1:3]), tuple(p4.shape[1:3]), tuple(p5.shape[1:3]))
        entry = self._build(n, spatial)
        b_tile = entry["b_tile"]

        def stack(f):
            # layout plumbing only: (N,H,W,C) -> (tiles, B*(H+2), W*C) with zero
            # separator rows; the lane axis is W*C (C minor).
            nn, h, w, c = f.shape
            x = f.reshape(nn, h, w * c)
            x = jnp.pad(x, ((0, 0), (1, 1), (0, 0)))
            return x.reshape(nn // b_tile, b_tile * (h + 2), w * c)

        args = (stack(p3), stack(p4), stack(p5), *entry["weights"])

        if entry["fn"] is None:
            out = None
            fn = entry["make_fn"](True)            # try single-buffered weights
            if fn is not None:
                try:
                    out = fn(*args)
                except Exception:
                    fn = None
            if fn is None:                         # pl.Buffered(1) rejected -> default
                fn = entry["make_fn"](False)
                out = fn(*args)
            entry["fn"] = fn
        else:
            out = entry["fn"](*args)

        (h3, w3) = spatial[0]
        co = max(self.num_outputs, 1)
        # unstack: re-insert the 2 global boundary rows, drop separator rows
        out = jnp.pad(out, ((0, 0), (1, 1), (0, 0)))
        out = out.reshape(n // b_tile, b_tile, h3 + 2, w3, co)[:, :, 1:h3 + 1]
        mask_feats = out.reshape(n, h3, w3, co)
        if self.num_outputs == 0:
            # match the reference: computed with 1 channel, then sliced to width 0
            mask_feats = mask_feats[..., :self.num_outputs]
        return mask_feats, {}


# ----------------------------------------------------------------------------
# Pure-XLA reference of the same forward pass (validation only)
# ----------------------------------------------------------------------------
def _reference_forward(branch, features):
    hi_prec = jax.lax.Precision.HIGHEST

    def conv3x3_ref(x, w, b):
        hh, ww = x.shape[1], x.shape[2]
        xp = jnp.pad(x, ((0, 0), (1, 1), (1, 1), (0, 0)))
        acc = jnp.zeros(x.shape[:3] + (w.shape[-1],), jnp.float32) + b
        for kh in range(3):
            for kw in range(3):
                acc = acc + jnp.einsum("nhwc,cd->nhwd",
                                       xp[:, kh:kh + hh, kw:kw + ww, :],
                                       w[kh, kw], precision=hi_prec)
        return jnp.maximum(acc, 0.0)

    def aligned_bilinear_ref(x, factor):
        if factor == 1:
            return x
        x = jnp.pad(x, ((0, 0), (0, 1), (0, 1), (0, 0)), mode="edge")
        hh, ww = x.shape[1] - 1, x.shape[2] - 1
        oh, ow = factor * hh + 1, factor * ww + 1

        def interp(arr, out_size, axis):
            dst = jnp.arange(out_size)
            lo = dst // factor
            hi = jnp.minimum(lo + 1, arr.shape[axis] - 1)
            frac = (dst / factor - lo).astype(arr.dtype)
            shp = [1] * arr.ndim
            shp[axis] = out_size
            frac = frac.reshape(shp)
            return (jnp.take(arr, lo, axis=axis) * (1 - frac)
                    + jnp.take(arr, hi, axis=axis) * frac)

        x = interp(x, oh, 1)
        x = interp(x, ow, 2)
        p = factor // 2
        x = jnp.pad(x, ((0, 0), (p, 0), (p, 0), (0, 0)), mode="edge")
        return x[:, :oh - 1, :ow - 1, :]

    x = conv3x3_ref(features[0], branch.refine_w[0], branch.refine_b[0])
    for i in (1, 2):
        xp = conv3x3_ref(features[i], branch.refine_w[i], branch.refine_b[i])
        x = x + aligned_bilinear_ref(xp, x.shape[1] // xp.shape[1])
    for j in range(branch.num_convs):
        x = conv3x3_ref(x, branch.tower_w[j], branch.tower_b[j])
    return jnp.einsum("nhwc,cd->nhwd", x, branch.out_w,
                      precision=hi_prec) + branch.out_b


# ----------------------------------------------------------------------------
# Exact structural checks of the two reformulation pieces (host / NumPy)
# ----------------------------------------------------------------------------
def _check_aligned_bilinear_matrix():
    rng = np.random.default_rng(0)
    for size, factor in ((8, 2), (4, 4), (5, 3)):
        v = rng.standard_normal(size).astype(np.float32)
        # direct 1-D transcription of adet's aligned_bilinear along one axis
        vp = np.concatenate([v, v[-1:]])                       # replicate-pad right
        oh = factor * size + 1
        interp = np.empty(oh, np.float32)
        for i in range(oh):
            lo = i // factor
            frac = (i % factor) / factor
            hi = min(lo + 1, size)
            interp[i] = (1.0 - frac) * vp[lo] + frac * vp[hi]
        padded = np.concatenate([np.full(factor // 2, interp[0], np.float32), interp])
        want = padded[:factor * size]
        got = _aligned_bilinear_matrix(size, factor) @ v
        assert float(np.max(np.abs(got - want))) < 1e-5, "aligned_bilinear matrix mismatch"


def _check_band_expansion():
    rng = np.random.default_rng(1)
    h, w, cin, cout = 5, 7, 3, 2
    x = rng.standard_normal((h, w, cin)).astype(np.float32)
    wgt = rng.standard_normal((3, 3, cin, cout)).astype(np.float32)
    a = np.asarray(_expand_conv3x3(jnp.asarray(wgt), w))        # (3, w*cin, w*cout)
    xs = np.zeros((h + 2, w * cin), np.float32)
    xs[1:h + 1] = x.reshape(h, w * cin)
    got = sum(xs[k:k + h] @ a[k] for k in range(3)).reshape(h, w, cout)
    xp = np.pad(x, ((1, 1), (1, 1), (0, 0)))
    want = np.zeros((h, w, cout), np.float32)
    for kh in range(3):
        for kw in range(3):
            want = want + xp[kh:kh + h, kw:kw + w] @ wgt[kh, kw]
    assert float(np.max(np.abs(got - want))) < 1e-4, "banded conv expansion mismatch"


# ----------------------------------------------------------------------------
# Demo
# ----------------------------------------------------------------------------
if __name__ == "__main__":
    key = jax.random.PRNGKey(0)
    k_p3, k_p4, k_p5, k_params = jax.random.split(key, 4)

    N, C = 2, 16
    # NHWC feature pyramid (PyTorch reference is NCHW; layout is wrapper glue)
    features = [
        jax.random.normal(k_p3, (N, 16, 16, C), jnp.float32),   # p3, stride 8
        jax.random.normal(k_p4, (N, 8, 8, C), jnp.float32),     # p4, stride 16
        jax.random.normal(k_p5, (N, 4, 4, C), jnp.float32),     # p5, stride 32
    ]

    branch = MaskBranchPallas(k_params, feature_channels=(C, C, C),
                              channels=16, num_convs=2, num_outputs=8)

    # exact (1e-5) checks of the reformulation pieces the review flagged
    _check_aligned_bilinear_matrix()
    _check_band_expansion()

    mask_feats, losses = branch(features)
    mask_feats = jax.block_until_ready(mask_feats)

    assert mask_feats.shape == (N, 16, 16, 8)
    assert mask_feats.dtype == jnp.float32
    assert losses == {}

    # end-to-end check against a HIGHEST-precision XLA reference; tolerance is
    # sized for bf16 MXU compute (~1% expected), far below structural-bug errors.
    ref = jax.block_until_ready(_reference_forward(branch, features))
    err = float(jnp.max(jnp.abs(mask_feats - ref)))
    scale = float(jnp.max(jnp.abs(ref)))
    assert err <= 4e-2 * scale + 1e-3, f"kernel/reference mismatch: {err} (scale {scale})"

    print("KERNEL_OK")
</pallas_src>

<mosaic_0001>
module attributes {stable_mosaic.version = 11 : i64} {
  func.func @kernel(%arg0: i32, %arg1: memref<1x36x256xf32, #tpu.memory_space<vmem>>, %arg2: memref<1x20x128xf32, #tpu.memory_space<vmem>>, %arg3: memref<1x12x64xf32, #tpu.memory_space<vmem>>, %arg4: memref<3x256x256xbf16, #tpu.memory_space<vmem>>, %arg5: memref<1x256xf32, #tpu.memory_space<vmem>>, %arg6: memref<3x128x128xbf16, #tpu.memory_space<vmem>>, %arg7: memref<1x128xf32, #tpu.memory_space<vmem>>, %arg8: memref<3x64x64xbf16, #tpu.memory_space<vmem>>, %arg9: memref<1x64xf32, #tpu.memory_space<vmem>>, %arg10: memref<128x256xbf16, #tpu.memory_space<vmem>>, %arg11: memref<34x18xbf16, #tpu.memory_space<vmem>>, %arg12: memref<64x256xbf16, #tpu.memory_space<vmem>>, %arg13: memref<34x10xbf16, #tpu.memory_space<vmem>>, %arg14: memref<3x256x256xbf16, #tpu.memory_space<vmem>>, %arg15: memref<1x256xf32, #tpu.memory_space<vmem>>, %arg16: memref<3x256x256xbf16, #tpu.memory_space<vmem>>, %arg17: memref<1x256xf32, #tpu.memory_space<vmem>>, %arg18: memref<256x128xbf16, #tpu.memory_space<vmem>>, %arg19: memref<1x128xf32, #tpu.memory_space<vmem>>, %arg20: memref<1x34x128xf32, #tpu.memory_space<vmem>>, %arg21: memref<36x256xf32, #tpu.memory_space<vmem>>) attributes {dimension_semantics = [#tpu.dimension_semantics<parallel>], iteration_bounds = array<i64: 1>, scalar_prefetch = 0 : i64, scratch_operands = 1 : i64, tpu.core_type = #tpu.core_type<tc>, window_params = [{transform_indices = @transform_0, window_bounds = array<i64: 1, 36, 256>}, {transform_indices = @transform_1, window_bounds = array<i64: 1, 20, 128>}, {transform_indices = @transform_2, window_bounds = array<i64: 1, 12, 64>}, {pipeline_mode = #tpu.pipeline_mode<synchronous>, transform_indices = @transform_3, window_bounds = array<i64: 3, 256, 256>}, {pipeline_mode = #tpu.pipeline_mode<synchronous>, transform_indices = @transform_4, window_bounds = array<i64: 1, 256>}, {pipeline_mode = #tpu.pipeline_mode<synchronous>, transform_indices = @transform_5, window_bounds = array<i64: 3, 128, 128>}, {pipeline_mode = #tpu.pipeline_mode<synchronous>, transform_indices = @transform_6, window_bounds = array<i64: 1, 128>}, {pipeline_mode = #tpu.pipeline_mode<synchronous>, transform_indices = @transform_7, window_bounds = array<i64: 3, 64, 64>}, {pipeline_mode = #tpu.pipeline_mode<synchronous>, transform_indices = @transform_8, window_bounds = array<i64: 1, 64>}, {pipeline_mode = #tpu.pipeline_mode<synchronous>, transform_indices = @transform_9, window_bounds = array<i64: 128, 256>}, {pipeline_mode = #tpu.pipeline_mode<synchronous>, transform_indices = @transform_10, window_bounds = array<i64: 34, 18>}, {pipeline_mode = #tpu.pipeline_mode<synchronous>, transform_indices = @transform_11, window_bounds = array<i64: 64, 256>}, {pipeline_mode = #tpu.pipeline_mode<synchronous>, transform_indices = @transform_12, window_bounds = array<i64: 34, 10>}, {pipeline_mode = #tpu.pipeline_mode<synchronous>, transform_indices = @transform_13, window_bounds = array<i64: 3, 256, 256>}, {pipeline_mode = #tpu.pipeline_mode<synchronous>, transform_indices = @transform_14, window_bounds = array<i64: 1, 256>}, {pipeline_mode = #tpu.pipeline_mode<synchronous>, transform_indices = @transform_15, window_bounds = array<i64: 3, 256, 256>}, {pipeline_mode = #tpu.pipeline_mode<synchronous>, transform_indices = @transform_16, window_bounds = array<i64: 1, 256>}, {pipeline_mode = #tpu.pipeline_mode<synchronous>, transform_indices = @transform_17, window_bounds = array<i64: 256, 128>}, {pipeline_mode = #tpu.pipeline_mode<synchronous>, transform_indices = @transform_18, window_bounds = array<i64: 1, 128>}, {transform_indices = @transform_19, window_bounds = array<i64: 1, 34, 128>}]} {
    %0 = tpu.iota {dimensions = array<i32: 0>} : vector<34x1xi32>
    %c1_i32 = arith.constant 1 : i32
    %1 = vector.broadcast %c1_i32 : i32 to vector<34x1xi32>
    %2 = arith.addi %0, %1 : vector<34x1xi32>
    %c18_i32 = arith.constant 18 : i32
    %c0_i32 = arith.constant 0 : i32
    %3 = arith.cmpi eq, %c18_i32, %c0_i32 : i32
    %c1_i32_0 = arith.constant 1 : i32
    %4 = arith.select %3, %c1_i32_0, %c18_i32 : i32
    %5 = vector.broadcast %4 : i32 to vector<34x1xi32>
    %6 = arith.remsi %2, %5 : vector<34x1xi32>
    %c0_i32_1 = arith.constant 0 : i32
    %7 = vector.broadcast %c0_i32_1 : i32 to vector<34x1xi32>
    %8 = arith.cmpi ne, %6, %7 : vector<34x1xi32>
    %c0_i32_2 = arith.constant 0 : i32
    %9 = vector.broadcast %c0_i32_2 : i32 to vector<34x1xi32>
    %10 = arith.cmpi slt, %6, %9 : vector<34x1xi32>
    %c0_i32_3 = arith.constant 0 : i32
    %11 = arith.cmpi slt, %4, %c0_i32_3 : i32
    %12 = vector.broadcast %11 : i1 to vector<34x1xi1>
    %13 = vector.broadcast %12 : vector<34x1xi1> to vector<34x1xi1>
    %14 = arith.xori %10, %13 : vector<34x1xi1>
    %15 = arith.andi %14, %8 : vector<34x1xi1>
    %16 = vector.broadcast %4 : i32 to vector<34x1xi32>
    %17 = arith.addi %6, %16 : vector<34x1xi32>
    %18 = arith.select %15, %17, %6 : vector<34x1xi1>, vector<34x1xi32>
    %c1_i32_4 = arith.constant 1 : i32
    %19 = vector.broadcast %c1_i32_4 : i32 to vector<34x1xi32>
    %20 = arith.cmpi sge, %18, %19 : vector<34x1xi32>
    %c16_i32 = arith.constant 16 : i32
    %21 = vector.broadcast %c16_i32 : i32 to vector<34x1xi32>
    %22 = arith.cmpi sle, %18, %21 : vector<34x1xi32>
    %23 = arith.andi %20, %22 : vector<34x1xi1>
    %24 = arith.extui %23 : vector<34x1xi1> to vector<34x1xi32>
    %25 = arith.sitofp %24 : vector<34x1xi32> to vector<34x1xf32>
    %c0_i32_5 = arith.constant 0 : i32
    %c0_i32_6 = arith.constant 0 : i32
    %c0_i32_7 = arith.constant 0 : i32
    %26 = tpu.memref_slice %arg1[%c0_i32_5, %c0_i32_6, %c0_i32_7] : memref<1x36x256xf32, #tpu.memory_space<vmem>> -> memref<1x36x256xf32, #tpu.memory_space<vmem>>
    %27 = tpu.memref_squeeze %26 : memref<1x36x256xf32, #tpu.memory_space<vmem>> -> memref<36x256xf32, #tpu.memory_space<vmem>>
    %c0 = arith.constant 0 : index
    %c0_8 = arith.constant 0 : index
    %28 = vector.load %27[%c0, %c0_8] : memref<36x256xf32, #tpu.memory_space<vmem>>, vector<34x256xf32>
    %29 = arith.truncf %28 : vector<34x256xf32> to vector<34x256xbf16>
    %c0_9 = arith.constant 0 : index
    %c0_10 = arith.constant 0 : index
    %c0_11 = arith.constant 0 : index
    %30 = vector.load %arg4[%c0_9, %c0_10, %c0_11] : memref<3x256x256xbf16, #tpu.memory_space<vmem>>, vector<1x256x256xbf16>
    %31 = vector.shape_cast %30 : vector<1x256x256xbf16> to vector<256x256xbf16>
    %cst = arith.constant dense<0.000000e+00> : vector<34x256xf32>
    %32 = tpu.matmul %29, %31, %cst {dimension_numbers = #tpu.dot_dimension_numbers<[1], [0], [0], [1], [0, 0, 1, 1], [], []>} : vector<34x256xbf16>, vector<256x256xbf16>, vector<34x256xf32> -> vector<34x256xf32>
    %c0_i32_12 = arith.constant 0 : i32
    %c0_i32_13 = arith.constant 0 : i32
    %c0_i32_14 = arith.constant 0 : i32
    %33 = tpu.memref_slice %arg1[%c0_i32_12, %c0_i32_13, %c0_i32_14] : memref<1x36x256xf32, #tpu.memory_space<vmem>> -> memref<1x36x256xf32, #tpu.memory_space<vmem>>
    %34 = tpu.memref_squeeze %33 : memref<1x36x256xf32, #tpu.memory_space<vmem>> -> memref<36x256xf32, #tpu.memory_space<vmem>>
    %c1 = arith.constant 1 : index
    %c0_15 = arith.constant 0 : index
    %35 = vector.load %34[%c1, %c0_15] : memref<36x256xf32, #tpu.memory_space<vmem>>, vector<34x256xf32>
    %36 = arith.truncf %35 : vector<34x256xf32> to vector<34x256xbf16>
    %c1_16 = arith.constant 1 : index
    %c0_17 = arith.constant 0 : index
    %c0_18 = arith.constant 0 : index
    %37 = vector.load %arg4[%c1_16, %c0_17, %c0_18] : memref<3x256x256xbf16, #tpu.memory_space<vmem>>, vector<1x256x256xbf16>
    %38 = vector.shape_cast %37 : vector<1x256x256xbf16> to vector<256x256xbf16>
    %cst_19 = arith.constant dense<0.000000e+00> : vector<34x256xf32>
    %39 = tpu.matmul %36, %38, %cst_19 {dimension_numbers = #tpu.dot_dimension_numbers<[1], [0], [0], [1], [0, 0, 1, 1], [], []>} : vector<34x256xbf16>, vector<256x256xbf16>, vector<34x256xf32> -> vector<34x256xf32>
    %40 = arith.addf %32, %39 : vector<34x256xf32>
    %c0_i32_20 = arith.constant 0 : i32
    %c0_i32_21 = arith.constant 0 : i32
    %c0_i32_22 = arith.constant 0 : i32
    %41 = tpu.memref_slice %arg1[%c0_i32_20, %c0_i32_21, %c0_i32_22] : memref<1x36x256xf32, #tpu.memory_space<vmem>> -> memref<1x36x256xf32, #tpu.memory_space<vmem>>
    %42 = tpu.memref_squeeze %41 : memref<1x36x256xf32, #tpu.memory_space<vmem>> -> memref<36x256xf32, #tpu.memory_space<vmem>>
    %c2 = arith.constant 2 : index
    %c0_23 = arith.constant 0 : index
    %43 = vector.load %42[%c2, %c0_23] : memref<36x256xf32, #tpu.memory_space<vmem>>, vector<34x256xf32>
    %44 = arith.truncf %43 : vector<34x256xf32> to vector<34x256xbf16>
    %c2_24 = arith.constant 2 : index
    %c0_25 = arith.constant 0 : index
    %c0_26 = arith.constant 0 : index
    %45 = vector.load %arg4[%c2_24, %c0_25, %c0_26] : memref<3x256x256xbf16, #tpu.memory_space<vmem>>, vector<1x256x256xbf16>
    %46 = vector.shape_cast %45 : vector<1x256x256xbf16> to vector<256x256xbf16>
    %cst_27 = arith.constant dense<0.000000e+00> : vector<34x256xf32>
    %47 = tpu.matmul %44, %46, %cst_27 {dimension_numbers = #tpu.dot_dimension_numbers<[1], [0], [0], [1], [0, 0, 1, 1], [], []>} : vector<34x256xbf16>, vector<256x256xbf16>, vector<34x256xf32> -> vector<34x256xf32>
    %48 = arith.addf %40, %47 : vector<34x256xf32>
    %c0_28 = arith.constant 0 : index
    %c0_29 = arith.constant 0 : index
    %49 = vector.load %arg5[%c0_28, %c0_29] : memref<1x256xf32, #tpu.memory_space<vmem>>, vector<1x256xf32>
    %50 = vector.broadcast %49 : vector<1x256xf32> to vector<34x256xf32>
    %51 = arith.addf %48, %50 : vector<34x256xf32>
    %cst_30 = arith.constant 0.000000e+00 : f32
    %52 = vector.broadcast %cst_30 : f32 to vector<34x256xf32>
    %53 = arith.maximumf %51, %52 : vector<34x256xf32>
    %c0_i32_31 = arith.constant 0 : i32
    %c0_i32_32 = arith.constant 0 : i32
    %c0_i32_33 = arith.constant 0 : i32
    %54 = tpu.memref_slice %arg2[%c0_i32_31, %c0_i32_32, %c0_i32_33] : memref<1x20x128xf32, #tpu.memory_space<vmem>> -> memref<1x20x128xf32, #tpu.memory_space<vmem>>
    %55 = tpu.memref_squeeze %54 : memref<1x20x128xf32, #tpu.memory_space<vmem>> -> memref<20x128xf32, #tpu.memory_space<vmem>>
    %c0_34 = arith.constant 0 : index
    %c0_35 = arith.constant 0 : index
    %56 = vector.load %55[%c0_34, %c0_35] : memref<20x128xf32, #tpu.memory_space<vmem>>, vector<18x128xf32>
    %57 = arith.truncf %56 : vector<18x128xf32> to vector<18x128xbf16>
    %c0_36 = arith.constant 0 : index
    %c0_37 = arith.constant 0 : index
    %c0_38 = arith.constant 0 : index
    %58 = vector.load %arg6[%c0_36, %c0_37, %c0_38] : memref<3x128x128xbf16, #tpu.memory_space<vmem>>, vector<1x128x128xbf16>
    %59 = vector.shape_cast %58 : vector<1x128x128xbf16> to vector<128x128xbf16>
    %cst_39 = arith.constant dense<0.000000e+00> : vector<18x128xf32>
    %60 = tpu.matmul %57, %59, %cst_39 {dimension_numbers = #tpu.dot_dimension_numbers<[1], [0], [0], [1], [0, 0, 1, 1], [], []>} : vector<18x128xbf16>, vector<128x128xbf16>, vector<18x128xf32> -> vector<18x128xf32>
    %c0_i32_40 = arith.constant 0 : i32
    %c0_i32_41 = arith.constant 0 : i32
    %c0_i32_42 = arith.constant 0 : i32
    %61 = tpu.memref_slice %arg2[%c0_i32_40, %c0_i32_41, %c0_i32_42] : memref<1x20x128xf32, #tpu.memory_space<vmem>> -> memref<1x20x128xf32, #tpu.memory_space<vmem>>
    %62 = tpu.memref_squeeze %61 : memref<1x20x128xf32, #tpu.memory_space<vmem>> -> memref<20x128xf32, #tpu.memory_space<vmem>>
    %c1_43 = arith.constant 1 : index
    %c0_44 = arith.constant 0 : index
    %63 = vector.load %62[%c1_43, %c0_44] : memref<20x128xf32, #tpu.memory_space<vmem>>, vector<18x128xf32>
    %64 = arith.truncf %63 : vector<18x128xf32> to vector<18x128xbf16>
    %c1_45 = arith.constant 1 : index
    %c0_46 = arith.constant 0 : index
    %c0_47 = arith.constant 0 : index
    %65 = vector.load %arg6[%c1_45, %c0_46, %c0_47] : memref<3x128x128xbf16, #tpu.memory_space<vmem>>, vector<1x128x128xbf16>
    %66 = vector.shape_cast %65 : vector<1x128x128xbf16> to vector<128x128xbf16>
    %cst_48 = arith.constant dense<0.000000e+00> : vector<18x128xf32>
    %67 = tpu.matmul %64, %66, %cst_48 {dimension_numbers = #tpu.dot_dimension_numbers<[1], [0], [0], [1], [0, 0, 1, 1], [], []>} : vector<18x128xbf16>, vector<128x128xbf16>, vector<18x128xf32> -> vector<18x128xf32>
    %68 = arith.addf %60, %67 : vector<18x128xf32>
    %c0_i32_49 = arith.constant 0 : i32
    %c0_i32_50 = arith.constant 0 : i32
    %c0_i32_51 = arith.constant 0 : i32
    %69 = tpu.memref_slice %arg2[%c0_i32_49, %c0_i32_50, %c0_i32_51] : memref<1x20x128xf32, #tpu.memory_space<vmem>> -> memref<1x20x128xf32, #tpu.memory_space<vmem>>
    %70 = tpu.memref_squeeze %69 : memref<1x20x128xf32, #tpu.memory_space<vmem>> -> memref<20x128xf32, #tpu.memory_space<vmem>>
    %c2_52 = arith.constant 2 : index
    %c0_53 = arith.constant 0 : index
    %71 = vector.load %70[%c2_52, %c0_53] : memref<20x128xf32, #tpu.memory_space<vmem>>, vector<18x128xf32>
    %72 = arith.truncf %71 : vector<18x128xf32> to vector<18x128xbf16>
    %c2_54 = arith.constant 2 : index
    %c0_55 = arith.constant 0 : index
    %c0_56 = arith.constant 0 : index
    %73 = vector.load %arg6[%c2_54, %c0_55, %c0_56] : memref<3x128x128xbf16, #tpu.memory_space<vmem>>, vector<1x128x128xbf16>
    %74 = vector.shape_cast %73 : vector<1x128x128xbf16> to vector<128x128xbf16>
    %cst_57 = arith.constant dense<0.000000e+00> : vector<18x128xf32>
    %75 = tpu.matmul %72, %74, %cst_57 {dimension_numbers = #tpu.dot_dimension_numbers<[1], [0], [0], [1], [0, 0, 1, 1], [], []>} : vector<18x128xbf16>, vector<128x128xbf16>, vector<18x128xf32> -> vector<18x128xf32>
    %76 = arith.addf %68, %75 : vector<18x128xf32>
    %c0_58 = arith.constant 0 : index
    %c0_59 = arith.constant 0 : index
    %77 = vector.load %arg7[%c0_58, %c0_59] : memref<1x128xf32, #tpu.memory_space<vmem>>, vector<1x128xf32>
    %78 = vector.broadcast %77 : vector<1x128xf32> to vector<18x128xf32>
    %79 = arith.addf %76, %78 : vector<18x128xf32>
    %cst_60 = arith.constant 0.000000e+00 : f32
    %80 = vector.broadcast %cst_60 : f32 to vector<18x128xf32>
    %81 = arith.maximumf %79, %80 : vector<18x128xf32>
    %82 = arith.truncf %81 : vector<18x128xf32> to vector<18x128xbf16>
    %c0_61 = arith.constant 0 : index
    %c0_62 = arith.constant 0 : index
    %83 = vector.load %arg10[%c0_61, %c0_62] : memref<128x256xbf16, #tpu.memory_space<vmem>>, vector<128x256xbf16>
    %cst_63 = arith.constant dense<0.000000e+00> : vector<18x256xf32>
    %84 = tpu.matmul %82, %83, %cst_63 {dimension_numbers = #tpu.dot_dimension_numbers<[1], [0], [0], [1], [0, 0, 1, 1], [], []>} : vector<18x128xbf16>, vector<128x256xbf16>, vector<18x256xf32> -> vector<18x256xf32>
    %c0_64 = arith.constant 0 : index
    %c0_65 = arith.constant 0 : index
    %85 = vector.load %arg11[%c0_64, %c0_65] : memref<34x18xbf16, #tpu.memory_space<vmem>>, vector<34x18xbf16>
    %86 = arith.truncf %84 : vector<18x256xf32> to vector<18x256xbf16>
    %cst_66 = arith.constant dense<0.000000e+00> : vector<34x256xf32>
    %87 = tpu.matmul %85, %86, %cst_66 {dimension_numbers = #tpu.dot_dimension_numbers<[1], [0], [0], [1], [0, 0, 1, 1], [], []>} : vector<34x18xbf16>, vector<18x256xbf16>, vector<34x256xf32> -> vector<34x256xf32>
    %88 = arith.addf %53, %87 : vector<34x256xf32>
    %c0_i32_67 = arith.constant 0 : i32
    %c0_i32_68 = arith.constant 0 : i32
    %c0_i32_69 = arith.constant 0 : i32
    %89 = tpu.memref_slice %arg3[%c0_i32_67, %c0_i32_68, %c0_i32_69] : memref<1x12x64xf32, #tpu.memory_space<vmem>> -> memref<1x12x64xf32, #tpu.memory_space<vmem>>
    %90 = tpu.memref_squeeze %89 : memref<1x12x64xf32, #tpu.memory_space<vmem>> -> memref<12x64xf32, #tpu.memory_space<vmem>>
    %c0_70 = arith.constant 0 : index
    %c0_71 = arith.constant 0 : index
    %91 = vector.load %90[%c0_70, %c0_71] : memref<12x64xf32, #tpu.memory_space<vmem>>, vector<10x64xf32>
    %92 = arith.truncf %91 : vector<10x64xf32> to vector<10x64xbf16>
    %c0_72 = arith.constant 0 : index
    %c0_73 = arith.constant 0 : index
    %c0_74 = arith.constant 0 : index
    %93 = vector.load %arg8[%c0_72, %c0_73, %c0_74] : memref<3x64x64xbf16, #tpu.memory_space<vmem>>, vector<1x64x64xbf16>
    %94 = vector.shape_cast %93 : vector<1x64x64xbf16> to vector<64x64xbf16>
    %cst_75 = arith.constant dense<0.000000e+00> : vector<10x64xf32>
    %95 = tpu.matmul %92, %94, %cst_75 {dimension_numbers = #tpu.dot_dimension_numbers<[1], [0], [0], [1], [0, 0, 1, 1], [], []>} : vector<10x64xbf16>, vector<64x64xbf16>, vector<10x64xf32> -> vector<10x64xf32>
    %c0_i32_76 = arith.constant 0 : i32
    %c0_i32_77 = arith.constant 0 : i32
    %c0_i32_78 = arith.constant 0 : i32
    %96 = tpu.memref_slice %arg3[%c0_i32_76, %c0_i32_77, %c0_i32_78] : memref<1x12x64xf32, #tpu.memory_space<vmem>> -> memref<1x12x64xf32, #tpu.memory_space<vmem>>
    %97 = tpu.memref_squeeze %96 : memref<1x12x64xf32, #tpu.memory_space<vmem>> -> memref<12x64xf32, #tpu.memory_space<vmem>>
    %c1_79 = arith.constant 1 : index
    %c0_80 = arith.constant 0 : index
    %98 = vector.load %97[%c1_79, %c0_80] : memref<12x64xf32, #tpu.memory_space<vmem>>, vector<10x64xf32>
    %99 = arith.truncf %98 : vector<10x64xf32> to vector<10x64xbf16>
    %c1_81 = arith.constant 1 : index
    %c0_82 = arith.constant 0 : index
    %c0_83 = arith.constant 0 : index
    %100 = vector.load %arg8[%c1_81, %c0_82, %c0_83] : memref<3x64x64xbf16, #tpu.memory_space<vmem>>, vector<1x64x64xbf16>
    %101 = vector.shape_cast %100 : vector<1x64x64xbf16> to vector<64x64xbf16>
    %cst_84 = arith.constant dense<0.000000e+00> : vector<10x64xf32>
    %102 = tpu.matmul %99, %101, %cst_84 {dimension_numbers = #tpu.dot_dimension_numbers<[1], [0], [0], [1], [0, 0, 1, 1], [], []>} : vector<10x64xbf16>, vector<64x64xbf16>, vector<10x64xf32> -> vector<10x64xf32>
    %103 = arith.addf %95, %102 : vector<10x64xf32>
    %c0_i32_85 = arith.constant 0 : i32
    %c0_i32_86 = arith.constant 0 : i32
    %c0_i32_87 = arith.constant 0 : i32
    %104 = tpu.memref_slice %arg3[%c0_i32_85, %c0_i32_86, %c0_i32_87] : memref<1x12x64xf32, #tpu.memory_space<vmem>> -> memref<1x12x64xf32, #tpu.memory_space<vmem>>
    %105 = tpu.memref_squeeze %104 : memref<1x12x64xf32, #tpu.memory_space<vmem>> -> memref<12x64xf32, #tpu.memory_space<vmem>>
    %c2_88 = arith.constant 2 : index
    %c0_89 = arith.constant 0 : index
    %106 = vector.load %105[%c2_88, %c0_89] : memref<12x64xf32, #tpu.memory_space<vmem>>, vector<10x64xf32>
    %107 = arith.truncf %106 : vector<10x64xf32> to vector<10x64xbf16>
    %c2_90 = arith.constant 2 : index
    %c0_91 = arith.constant 0 : index
    %c0_92 = arith.constant 0 : index
    %108 = vector.load %arg8[%c2_90, %c0_91, %c0_92] : memref<3x64x64xbf16, #tpu.memory_space<vmem>>, vector<1x64x64xbf16>
    %109 = vector.shape_cast %108 : vector<1x64x64xbf16> to vector<64x64xbf16>
    %cst_93 = arith.constant dense<0.000000e+00> : vector<10x64xf32>
    %110 = tpu.matmul %107, %109, %cst_93 {dimension_numbers = #tpu.dot_dimension_numbers<[1], [0], [0], [1], [0, 0, 1, 1], [], []>} : vector<10x64xbf16>, vector<64x64xbf16>, vector<10x64xf32> -> vector<10x64xf32>
    %111 = arith.addf %103, %110 : vector<10x64xf32>
    %c0_94 = arith.constant 0 : index
    %c0_95 = arith.constant 0 : index
    %112 = vector.load %arg9[%c0_94, %c0_95] : memref<1x64xf32, #tpu.memory_space<vmem>>, vector<1x64xf32>
    %113 = vector.broadcast %112 : vector<1x64xf32> to vector<10x64xf32>
    %114 = arith.addf %111, %113 : vector<10x64xf32>
    %cst_96 = arith.constant 0.000000e+00 : f32
    %115 = vector.broadcast %cst_96 : f32 to vector<10x64xf32>
    %116 = arith.maximumf %114, %115 : vector<10x64xf32>
    %117 = arith.truncf %116 : vector<10x64xf32> to vector<10x64xbf16>
    %c0_97 = arith.constant 0 : index
    %c0_98 = arith.constant 0 : index
    %118 = vector.load %arg12[%c0_97, %c0_98] : memref<64x256xbf16, #tpu.memory_space<vmem>>, vector<64x256xbf16>
    %cst_99 = arith.constant dense<0.000000e+00> : vector<10x256xf32>
    %119 = tpu.matmul %117, %118, %cst_99 {dimension_numbers = #tpu.dot_dimension_numbers<[1], [0], [0], [1], [0, 0, 1, 1], [], []>} : vector<10x64xbf16>, vector<64x256xbf16>, vector<10x256xf32> -> vector<10x256xf32>
    %c0_100 = arith.constant 0 : index
    %c0_101 = arith.constant 0 : index
    %120 = vector.load %arg13[%c0_100, %c0_101] : memref<34x10xbf16, #tpu.memory_space<vmem>>, vector<34x10xbf16>
    %121 = arith.truncf %119 : vector<10x256xf32> to vector<10x256xbf16>
    %cst_102 = arith.constant dense<0.000000e+00> : vector<34x256xf32>
    %122 = tpu.matmul %120, %121, %cst_102 {dimension_numbers = #tpu.dot_dimension_numbers<[1], [0], [0], [1], [0, 0, 1, 1], [], []>} : vector<34x10xbf16>, vector<10x256xbf16>, vector<34x256xf32> -> vector<34x256xf32>
    %123 = arith.addf %88, %122 : vector<34x256xf32>
    %cst_103 = arith.constant 0.000000e+00 : f32
    %124 = vector.broadcast %cst_103 : f32 to vector<1x256xf32>
    %c0_104 = arith.constant 0 : index
    %c0_105 = arith.constant 0 : index
    %125 = vector.load %arg21[%c0_104, %c0_105] : memref<36x256xf32, #tpu.memory_space<vmem>>, vector<1x256xf32>
    tpu.vector_store %arg21[%c0_104, %c0_105], %124 {strides = array<i32>} : memref<36x256xf32, #tpu.memory_space<vmem>>, vector<1x256xf32>,
    %c35 = arith.constant 35 : index
    %c0_106 = arith.constant 0 : index
    %126 = vector.load %arg21[%c35, %c0_106] : memref<36x256xf32, #tpu.memory_space<vmem>>, vector<1x256xf32>
    tpu.vector_store %arg21[%c35, %c0_106], %124 {strides = array<i32>} : memref<36x256xf32, #tpu.memory_space<vmem>>, vector<1x256xf32>,
    %127 = vector.broadcast %25 : vector<34x1xf32> to vector<34x256xf32>
    %128 = arith.mulf %123, %127 : vector<34x256xf32>
    %c1_107 = arith.constant 1 : index
    %c0_108 = arith.constant 0 : index
    %129 = vector.load %arg21[%c1_107, %c0_108] : memref<36x256xf32, #tpu.memory_space<vmem>>, vector<34x256xf32>
    tpu.vector_store %arg21[%c1_107, %c0_108], %128 {strides = array<i32>} : memref<36x256xf32, #tpu.memory_space<vmem>>, vector<34x256xf32>,
    %c0_109 = arith.constant 0 : index
    %c0_110 = arith.constant 0 : index
    %130 = vector.load %arg21[%c0_109, %c0_110] : memref<36x256xf32, #tpu.memory_space<vmem>>, vector<34x256xf32>
    %131 = arith.truncf %130 : vector<34x256xf32> to vector<34x256xbf16>
    %c0_111 = arith.constant 0 : index
    %c0_112 = arith.constant 0 : index
    %c0_113 = arith.constant 0 : index
    %132 = vector.load %arg14[%c0_111, %c0_112, %c0_113] : memref<3x256x256xbf16, #tpu.memory_space<vmem>>, vector<1x256x256xbf16>
    %133 = vector.shape_cast %132 : vector<1x256x256xbf16> to vector<256x256xbf16>
    %cst_114 = arith.constant dense<0.000000e+00> : vector<34x256xf32>
    %134 = tpu.matmul %131, %133, %cst_114 {dimension_numbers = #tpu.dot_dimension_numbers<[1], [0], [0], [1], [0, 0, 1, 1], [], []>} : vector<34x256xbf16>, vector<256x256xbf16>, vector<34x256xf32> -> vector<34x256xf32>
    %c1_115 = arith.constant 1 : index
    %c0_116 = arith.constant 0 : index
    %135 = vector.load %arg21[%c1_115, %c0_116] : memref<36x256xf32, #tpu.memory_space<vmem>>, vector<34x256xf32>
    %136 = arith.truncf %135 : vector<34x256xf32> to vector<34x256xbf16>
    %c1_117 = arith.constant 1 : index
    %c0_118 = arith.constant 0 : index
    %c0_119 = arith.constant 0 : index
    %137 = vector.load %arg14[%c1_117, %c0_118, %c0_119] : memref<3x256x256xbf16, #tpu.memory_space<vmem>>, vector<1x256x256xbf16>
    %138 = vector.shape_cast %137 : vector<1x256x256xbf16> to vector<256x256xbf16>
    %cst_120 = arith.constant dense<0.000000e+00> : vector<34x256xf32>
    %139 = tpu.matmul %136, %138, %cst_120 {dimension_numbers = #tpu.dot_dimension_numbers<[1], [0], [0], [1], [0, 0, 1, 1], [], []>} : vector<34x256xbf16>, vector<256x256xbf16>, vector<34x256xf32> -> vector<34x256xf32>
    %140 = arith.addf %134, %139 : vector<34x256xf32>
    %c2_121 = arith.constant 2 : index
    %c0_122 = arith.constant 0 : index
    %141 = vector.load %arg21[%c2_121, %c0_122] : memref<36x256xf32, #tpu.memory_space<vmem>>, vector<34x256xf32>
    %142 = arith.truncf %141 : vector<34x256xf32> to vector<34x256xbf16>
    %c2_123 = arith.constant 2 : index
    %c0_124 = arith.constant 0 : index
    %c0_125 = arith.constant 0 : index
    %143 = vector.load %arg14[%c2_123, %c0_124, %c0_125] : memref<3x256x256xbf16, #tpu.memory_space<vmem>>, vector<1x256x256xbf16>
    %144 = vector.shape_cast %143 : vector<1x256x256xbf16> to vector<256x256xbf16>
    %cst_126 = arith.constant dense<0.000000e+00> : vector<34x256xf32>
    %145 = tpu.matmul %142, %144, %cst_126 {dimension_numbers = #tpu.dot_dimension_numbers<[1], [0], [0], [1], [0, 0, 1, 1], [], []>} : vector<34x256xbf16>, vector<256x256xbf16>, vector<34x256xf32> -> vector<34x256xf32>
    %146 = arith.addf %140, %145 : vector<34x256xf32>
    %c0_127 = arith.constant 0 : index
    %c0_128 = arith.constant 0 : index
    %147 = vector.load %arg15[%c0_127, %c0_128] : memref<1x256xf32, #tpu.memory_space<vmem>>, vector<1x256xf32>
    %148 = vector.broadcast %147 : vector<1x256xf32> to vector<34x256xf32>
    %149 = arith.addf %146, %148 : vector<34x256xf32>
    %cst_129 = arith.constant 0.000000e+00 : f32
    %150 = vector.broadcast %cst_129 : f32 to vector<34x256xf32>
    %151 = arith.maximumf %149, %150 : vector<34x256xf32>
    %152 = vector.broadcast %25 : vector<34x1xf32> to vector<34x256xf32>
    %153 = arith.mulf %151, %152 : vector<34x256xf32>
    %c1_130 = arith.constant 1 : index
    %c0_131 = arith.constant 0 : index
    %154 = vector.load %arg21[%c1_130, %c0_131] : memref<36x256xf32, #tpu.memory_space<vmem>>, vector<34x256xf32>
    tpu.vector_store %arg21[%c1_130, %c0_131], %153 {strides = array<i32>} : memref<36x256xf32, #tpu.memory_space<vmem>>, vector<34x256xf32>,
    %c0_132 = arith.constant 0 : index
    %c0_133 = arith.constant 0 : index
    %155 = vector.load %arg21[%c0_132, %c0_133] : memref<36x256xf32, #tpu.memory_space<vmem>>, vector<34x256xf32>
    %156 = arith.truncf %155 : vector<34x256xf32> to vector<34x256xbf16>
    %c0_134 = arith.constant 0 : index
    %c0_135 = arith.constant 0 : index
    %c0_136 = arith.constant 0 : index
    %157 = vector.load %arg16[%c0_134, %c0_135, %c0_136] : memref<3x256x256xbf16, #tpu.memory_space<vmem>>, vector<1x256x256xbf16>
    %158 = vector.shape_cast %157 : vector<1x256x256xbf16> to vector<256x256xbf16>
    %cst_137 = arith.constant dense<0.000000e+00> : vector<34x256xf32>
    %159 = tpu.matmul %156, %158, %cst_137 {dimension_numbers = #tpu.dot_dimension_numbers<[1], [0], [0], [1], [0, 0, 1, 1], [], []>} : vector<34x256xbf16>, vector<256x256xbf16>, vector<34x256xf32> -> vector<34x256xf32>
    %c1_138 = arith.constant 1 : index
    %c0_139 = arith.constant 0 : index
    %160 = vector.load %arg21[%c1_138, %c0_139] : memref<36x256xf32, #tpu.memory_space<vmem>>, vector<34x256xf32>
    %161 = arith.truncf %160 : vector<34x256xf32> to vector<34x256xbf16>
    %c1_140 = arith.constant 1 : index
    %c0_141 = arith.constant 0 : index
    %c0_142 = arith.constant 0 : index
    %162 = vector.load %arg16[%c1_140, %c0_141, %c0_142] : memref<3x256x256xbf16, #tpu.memory_space<vmem>>, vector<1x256x256xbf16>
    %163 = vector.shape_cast %162 : vector<1x256x256xbf16> to vector<256x256xbf16>
    %cst_143 = arith.constant dense<0.000000e+00> : vector<34x256xf32>
    %164 = tpu.matmul %161, %163, %cst_143 {dimension_numbers = #tpu.dot_dimension_numbers<[1], [0], [0], [1], [0, 0, 1, 1], [], []>} : vector<34x256xbf16>, vector<256x256xbf16>, vector<34x256xf32> -> vector<34x256xf32>
    %165 = arith.addf %159, %164 : vector<34x256xf32>
    %c2_144 = arith.constant 2 : index
    %c0_145 = arith.constant 0 : index
    %166 = vector.load %arg21[%c2_144, %c0_145] : memref<36x256xf32, #tpu.memory_space<vmem>>, vector<34x256xf32>
    %167 = arith.truncf %166 : vector<34x256xf32> to vector<34x256xbf16>
    %c2_146 = arith.constant 2 : index
    %c0_147 = arith.constant 0 : index
    %c0_148 = arith.constant 0 : index
    %168 = vector.load %arg16[%c2_146, %c0_147, %c0_148] : memref<3x256x256xbf16, #tpu.memory_space<vmem>>, vector<1x256x256xbf16>
    %169 = vector.shape_cast %168 : vector<1x256x256xbf16> to vector<256x256xbf16>
    %cst_149 = arith.constant dense<0.000000e+00> : vector<34x256xf32>
    %170 = tpu.matmul %167, %169, %cst_149 {dimension_numbers = #tpu.dot_dimension_numbers<[1], [0], [0], [1], [0, 0, 1, 1], [], []>} : vector<34x256xbf16>, vector<256x256xbf16>, vector<34x256xf32> -> vector<34x256xf32>
    %171 = arith.addf %165, %170 : vector<34x256xf32>
    %c0_150 = arith.constant 0 : index
    %c0_151 = arith.constant 0 : index
    %172 = vector.load %arg17[%c0_150, %c0_151] : memref<1x256xf32, #tpu.memory_space<vmem>>, vector<1x256xf32>
    %173 = vector.broadcast %172 : vector<1x256xf32> to vector<34x256xf32>
    %174 = arith.addf %171, %173 : vector<34x256xf32>
    %cst_152 = arith.constant 0.000000e+00 : f32
    %175 = vector.broadcast %cst_152 : f32 to vector<34x256xf32>
    %176 = arith.maximumf %174, %175 : vector<34x256xf32>
    %177 = arith.truncf %176 : vector<34x256xf32> to vector<34x256xbf16>
    %c0_153 = arith.constant 0 : index
    %c0_154 = arith.constant 0 : index
    %178 = vector.load %arg18[%c0_153, %c0_154] : memref<256x128xbf16, #tpu.memory_space<vmem>>, vector<256x128xbf16>
    %cst_155 = arith.constant dense<0.000000e+00> : vector<34x128xf32>
    %179 = tpu.matmul %177, %178, %cst_155 {dimension_numbers = #tpu.dot_dimension_numbers<[1], [0], [0], [1], [0, 0, 1, 1], [], []>} : vector<34x256xbf16>, vector<256x128xbf16>, vector<34x128xf32> -> vector<34x128xf32>
    %c0_156 = arith.constant 0 : index
    %c0_157 = arith.constant 0 : index
    %180 = vector.load %arg19[%c0_156, %c0_157] : memref<1x128xf32, #tpu.memory_space<vmem>>, vector<1x128xf32>
    %181 = vector.broadcast %180 : vector<1x128xf32> to vector<34x128xf32>
    %182 = arith.addf %179, %181 : vector<34x128xf32>
    %c0_158 = arith.constant 0 : index
    %c0_159 = arith.constant 0 : index
    %c0_160 = arith.constant 0 : index
    %183 = vector.load %arg20[%c0_158, %c0_159, %c0_160] : memref<1x34x128xf32, #tpu.memory_space<vmem>>, vector<1x34x128xf32>
    %184 = vector.shape_cast %183 : vector<1x34x128xf32> to vector<34x128xf32>
    %185 = vector.shape_cast %182 : vector<34x128xf32> to vector<1x34x128xf32>
    tpu.vector_store %arg20[%c0_158, %c0_159, %c0_160], %185 {strides = array<i32>} : memref<1x34x128xf32, #tpu.memory_space<vmem>>, vector<1x34x128xf32>,
    return
  }
  func.func @transform_0(%arg0: i32) -> (i32, i32, i32) {
    %c0_i32 = arith.constant 0 : i32
    %c0_i32_0 = arith.constant 0 : i32
    %c0_i32_1 = arith.constant 0 : i32
    return %arg0, %c0_i32, %c0_i32_0 : i32, i32, i32
  }
  func.func @transform_1(%arg0: i32) -> (i32, i32, i32) {
    %c0_i32 = arith.constant 0 : i32
    %c0_i32_0 = arith.constant 0 : i32
    %c0_i32_1 = arith.constant 0 : i32
    return %arg0, %c0_i32, %c0_i32_0 : i32, i32, i32
  }
  func.func @transform_2(%arg0: i32) -> (i32, i32, i32) {
    %c0_i32 = arith.constant 0 : i32
    %c0_i32_0 = arith.constant 0 : i32
    %c0_i32_1 = arith.constant 0 : i32
    return %arg0, %c0_i32, %c0_i32_0 : i32, i32, i32
  }
  func.func @transform_3(%arg0: i32) -> (i32, i32, i32) {
    %c0_i32 = arith.constant 0 : i32
    %c0_i32_0 = arith.constant 0 : i32
    %c0_i32_1 = arith.constant 0 : i32
    %c0_i32_2 = arith.constant 0 : i32
    return %c0_i32, %c0_i32_0, %c0_i32_1 : i32, i32, i32
  }
  func.func @transform_4(%arg0: i32) -> (i32, i32) {
    %c0_i32 = arith.constant 0 : i32
    %c0_i32_0 = arith.constant 0 : i32
    %c0_i32_1 = arith.constant 0 : i32
    return %c0_i32, %c0_i32_0 : i32, i32
  }
  func.func @transform_5(%arg0: i32) -> (i32, i32, i32) {
    %c0_i32 = arith.constant 0 : i32
    %c0_i32_0 = arith.constant 0 : i32
    %c0_i32_1 = arith.constant 0 : i32
    %c0_i32_2 = arith.constant 0 : i32
    return %c0_i32, %c0_i32_0, %c0_i32_1 : i32, i32, i32
  }
  func.func @transform_6(%arg0: i32) -> (i32, i32) {
    %c0_i32 = arith.constant 0 : i32
    %c0_i32_0 = arith.constant 0 : i32
    %c0_i32_1 = arith.constant 0 : i32
    return %c0_i32, %c0_i32_0 : i32, i32
  }
  func.func @transform_7(%arg0: i32) -> (i32, i32, i32) {
    %c0_i32 = arith.constant 0 : i32
    %c0_i32_0 = arith.constant 0 : i32
    %c0_i32_1 = arith.constant 0 : i32
    %c0_i32_2 = arith.constant 0 : i32
    return %c0_i32, %c0_i32_0, %c0_i32_1 : i32, i32, i32
  }
  func.func @transform_8(%arg0: i32) -> (i32, i32) {
    %c0_i32 = arith.constant 0 : i32
    %c0_i32_0 = arith.constant 0 : i32
    %c0_i32_1 = arith.constant 0 : i32
    return %c0_i32, %c0_i32_0 : i32, i32
  }
  func.func @transform_9(%arg0: i32) -> (i32, i32) {
    %c0_i32 = arith.constant 0 : i32
    %c0_i32_0 = arith.constant 0 : i32
    %c0_i32_1 = arith.constant 0 : i32
    return %c0_i32, %c0_i32_0 : i32, i32
  }
  func.func @transform_10(%arg0: i32) -> (i32, i32) {
    %c0_i32 = arith.constant 0 : i32
    %c0_i32_0 = arith.constant 0 : i32
    %c0_i32_1 = arith.constant 0 : i32
    return %c0_i32, %c0_i32_0 : i32, i32
  }
  func.func @transform_11(%arg0: i32) -> (i32, i32) {
    %c0_i32 = arith.constant 0 : i32
    %c0_i32_0 = arith.constant 0 : i32
    %c0_i32_1 = arith.constant 0 : i32
    return %c0_i32, %c0_i32_0 : i32, i32
  }
  func.func @transform_12(%arg0: i32) -> (i32, i32) {
    %c0_i32 = arith.constant 0 : i32
    %c0_i32_0 = arith.constant 0 : i32
    %c0_i32_1 = arith.constant 0 : i32
    return %c0_i32, %c0_i32_0 : i32, i32
  }
  func.func @transform_13(%arg0: i32) -> (i32, i32, i32) {
    %c0_i32 = arith.constant 0 : i32
    %c0_i32_0 = arith.constant 0 : i32
    %c0_i32_1 = arith.constant 0 : i32
    %c0_i32_2 = arith.constant 0 : i32
    return %c0_i32, %c0_i32_0, %c0_i32_1 : i32, i32, i32
  }
  func.func @transform_14(%arg0: i32) -> (i32, i32) {
    %c0_i32 = arith.constant 0 : i32
    %c0_i32_0 = arith.constant 0 : i32
    %c0_i32_1 = arith.constant 0 : i32
    return %c0_i32, %c0_i32_0 : i32, i32
  }
  func.func @transform_15(%arg0: i32) -> (i32, i32, i32) {
    %c0_i32 = arith.constant 0 : i32
    %c0_i32_0 = arith.constant 0 : i32
    %c0_i32_1 = arith.constant 0 : i32
    %c0_i32_2 = arith.constant 0 : i32
    return %c0_i32, %c0_i32_0, %c0_i32_1 : i32, i32, i32
  }
  func.func @transform_16(%arg0: i32) -> (i32, i32) {
    %c0_i32 = arith.constant 0 : i32
    %c0_i32_0 = arith.constant 0 : i32
    %c0_i32_1 = arith.constant 0 : i32
    return %c0_i32, %c0_i32_0 : i32, i32
  }
  func.func @transform_17(%arg0: i32) -> (i32, i32) {
    %c0_i32 = arith.constant 0 : i32
    %c0_i32_0 = arith.constant 0 : i32
    %c0_i32_1 = arith.constant 0 : i32
    return %c0_i32, %c0_i32_0 : i32, i32
  }
  func.func @transform_18(%arg0: i32) -> (i32, i32) {
    %c0_i32 = arith.constant 0 : i32
    %c0_i32_0 = arith.constant 0 : i32
    %c0_i32_1 = arith.constant 0 : i32
    return %c0_i32, %c0_i32_0 : i32, i32
  }
  func.func @transform_19(%arg0: i32) -> (i32, i32, i32) {
    %c0_i32 = arith.constant 0 : i32
    %c0_i32_0 = arith.constant 0 : i32
    %c0_i32_1 = arith.constant 0 : i32
    return %arg0, %c0_i32, %c0_i32_0 : i32, i32, i32
  }
}

module attributes {stable_mosaic.version = 11 : i64} {
  func.func @kernel(%arg0: i32, %arg1: memref<1x36x256xf32, #tpu.memory_space<vmem>>, %arg2: memref<1x20x128xf32, #tpu.memory_space<vmem>>, %arg3: memref<1x12x64xf32, #tpu.memory_space<vmem>>, %arg4: memref<3x256x256xbf16, #tpu.memory_space<vmem>>, %arg5: memref<1x256xf32, #tpu.memory_space<vmem>>, %arg6: memref<3x128x128xbf16, #tpu.memory_space<vmem>>, %arg7: memref<1x128xf32, #tpu.memory_space<vmem>>, %arg8: memref<3x64x64xbf16, #tpu.memory_space<vmem>>, %arg9: memref<1x64xf32, #tpu.memory_space<vmem>>, %arg10: memref<128x256xbf16, #tpu.memory_space<vmem>>, %arg11: memref<34x18xbf16, #tpu.memory_space<vmem>>, %arg12: memref<64x256xbf16, #tpu.memory_space<vmem>>, %arg13: memref<34x10xbf16, #tpu.memory_space<vmem>>, %arg14: memref<3x256x256xbf16, #tpu.memory_space<vmem>>, %arg15: memref<1x256xf32, #tpu.memory_space<vmem>>, %arg16: memref<3x256x256xbf16, #tpu.memory_space<vmem>>, %arg17: memref<1x256xf32, #tpu.memory_space<vmem>>, %arg18: memref<256x128xbf16, #tpu.memory_space<vmem>>, %arg19: memref<1x128xf32, #tpu.memory_space<vmem>>, %arg20: memref<1x34x128xf32, #tpu.memory_space<vmem>>, %arg21: memref<36x256xf32, #tpu.memory_space<vmem>>) attributes {dimension_semantics = [#tpu.dimension_semantics<parallel>], iteration_bounds = array<i64: 1>, scalar_prefetch = 0 : i64, scratch_operands = 1 : i64, tpu.core_type = #tpu.core_type<tc>, window_params = [{transform_indices = @transform_0, window_bounds = array<i64: 1, 36, 256>}, {transform_indices = @transform_1, window_bounds = array<i64: 1, 20, 128>}, {transform_indices = @transform_2, window_bounds = array<i64: 1, 12, 64>}, {pipeline_mode = #tpu.pipeline_mode<synchronous>, transform_indices = @transform_3, window_bounds = array<i64: 3, 256, 256>}, {pipeline_mode = #tpu.pipeline_mode<synchronous>, transform_indices = @transform_4, window_bounds = array<i64: 1, 256>}, {pipeline_mode = #tpu.pipeline_mode<synchronous>, transform_indices = @transform_5, window_bounds = array<i64: 3, 128, 128>}, {pipeline_mode = #tpu.pipeline_mode<synchronous>, transform_indices = @transform_6, window_bounds = array<i64: 1, 128>}, {pipeline_mode = #tpu.pipeline_mode<synchronous>, transform_indices = @transform_7, window_bounds = array<i64: 3, 64, 64>}, {pipeline_mode = #tpu.pipeline_mode<synchronous>, transform_indices = @transform_8, window_bounds = array<i64: 1, 64>}, {pipeline_mode = #tpu.pipeline_mode<synchronous>, transform_indices = @transform_9, window_bounds = array<i64: 128, 256>}, {pipeline_mode = #tpu.pipeline_mode<synchronous>, transform_indices = @transform_10, window_bounds = array<i64: 34, 18>}, {pipeline_mode = #tpu.pipeline_mode<synchronous>, transform_indices = @transform_11, window_bounds = array<i64: 64, 256>}, {pipeline_mode = #tpu.pipeline_mode<synchronous>, transform_indices = @transform_12, window_bounds = array<i64: 34, 10>}, {pipeline_mode = #tpu.pipeline_mode<synchronous>, transform_indices = @transform_13, window_bounds = array<i64: 3, 256, 256>}, {pipeline_mode = #tpu.pipeline_mode<synchronous>, transform_indices = @transform_14, window_bounds = array<i64: 1, 256>}, {pipeline_mode = #tpu.pipeline_mode<synchronous>, transform_indices = @transform_15, window_bounds = array<i64: 3, 256, 256>}, {pipeline_mode = #tpu.pipeline_mode<synchronous>, transform_indices = @transform_16, window_bounds = array<i64: 1, 256>}, {pipeline_mode = #tpu.pipeline_mode<synchronous>, transform_indices = @transform_17, window_bounds = array<i64: 256, 128>}, {pipeline_mode = #tpu.pipeline_mode<synchronous>, transform_indices = @transform_18, window_bounds = array<i64: 1, 128>}, {transform_indices = @transform_19, window_bounds = array<i64: 1, 34, 128>}]} {
    %0 = tpu.iota {dimensions = array<i32: 0>} : vector<34x1xi32>
    %c1_i32 = arith.constant 1 : i32
    %1 = vector.broadcast %c1_i32 : i32 to vector<34x1xi32>
    %2 = arith.addi %0, %1 : vector<34x1xi32>
    %c18_i32 = arith.constant 18 : i32
    %c0_i32 = arith.constant 0 : i32
    %3 = arith.cmpi eq, %c18_i32, %c0_i32 : i32
    %c1_i32_0 = arith.constant 1 : i32
    %4 = arith.select %3, %c1_i32_0, %c18_i32 : i32
    %5 = vector.broadcast %4 : i32 to vector<34x1xi32>
    %6 = arith.remsi %2, %5 : vector<34x1xi32>
    %c0_i32_1 = arith.constant 0 : i32
    %7 = vector.broadcast %c0_i32_1 : i32 to vector<34x1xi32>
    %8 = arith.cmpi ne, %6, %7 : vector<34x1xi32>
    %c0_i32_2 = arith.constant 0 : i32
    %9 = vector.broadcast %c0_i32_2 : i32 to vector<34x1xi32>
    %10 = arith.cmpi slt, %6, %9 : vector<34x1xi32>
    %c0_i32_3 = arith.constant 0 : i32
    %11 = arith.cmpi slt, %4, %c0_i32_3 : i32
    %12 = vector.broadcast %11 : i1 to vector<34x1xi1>
    %13 = vector.broadcast %12 : vector<34x1xi1> to vector<34x1xi1>
    %14 = arith.xori %10, %13 : vector<34x1xi1>
    %15 = arith.andi %14, %8 : vector<34x1xi1>
    %16 = vector.broadcast %4 : i32 to vector<34x1xi32>
    %17 = arith.addi %6, %16 : vector<34x1xi32>
    %18 = arith.select %15, %17, %6 : vector<34x1xi1>, vector<34x1xi32>
    %c1_i32_4 = arith.constant 1 : i32
    %19 = vector.broadcast %c1_i32_4 : i32 to vector<34x1xi32>
    %20 = arith.cmpi sge, %18, %19 : vector<34x1xi32>
    %c16_i32 = arith.constant 16 : i32
    %21 = vector.broadcast %c16_i32 : i32 to vector<34x1xi32>
    %22 = arith.cmpi sle, %18, %21 : vector<34x1xi32>
    %23 = arith.andi %20, %22 : vector<34x1xi1>
    %24 = arith.extui %23 : vector<34x1xi1> to vector<34x1xi32>
    %25 = arith.sitofp %24 : vector<34x1xi32> to vector<34x1xf32>
    %c0_i32_5 = arith.constant 0 : i32
    %c0_i32_6 = arith.constant 0 : i32
    %c0_i32_7 = arith.constant 0 : i32
    %26 = tpu.memref_slice %arg1[%c0_i32_5, %c0_i32_6, %c0_i32_7] : memref<1x36x256xf32, #tpu.memory_space<vmem>> -> memref<1x36x256xf32, #tpu.memory_space<vmem>>
    %27 = tpu.memref_squeeze %26 : memref<1x36x256xf32, #tpu.memory_space<vmem>> -> memref<36x256xf32, #tpu.memory_space<vmem>>
    %c0 = arith.constant 0 : index
    %c0_8 = arith.constant 0 : index
    %28 = vector.load %27[%c0, %c0_8] : memref<36x256xf32, #tpu.memory_space<vmem>>, vector<34x256xf32>
    %29 = arith.truncf %28 : vector<34x256xf32> to vector<34x256xbf16>
    %c0_9 = arith.constant 0 : index
    %c0_10 = arith.constant 0 : index
    %c0_11 = arith.constant 0 : index
    %30 = vector.load %arg4[%c0_9, %c0_10, %c0_11] : memref<3x256x256xbf16, #tpu.memory_space<vmem>>, vector<1x256x256xbf16>
    %31 = vector.shape_cast %30 : vector<1x256x256xbf16> to vector<256x256xbf16>
    %cst = arith.constant dense<0.000000e+00> : vector<34x256xf32>
    %32 = tpu.matmul %29, %31, %cst {dimension_numbers = #tpu.dot_dimension_numbers<[1], [0], [0], [1], [0, 0, 1, 1], [], []>} : vector<34x256xbf16>, vector<256x256xbf16>, vector<34x256xf32> -> vector<34x256xf32>
    %c0_i32_12 = arith.constant 0 : i32
    %c0_i32_13 = arith.constant 0 : i32
    %c0_i32_14 = arith.constant 0 : i32
    %33 = tpu.memref_slice %arg1[%c0_i32_12, %c0_i32_13, %c0_i32_14] : memref<1x36x256xf32, #tpu.memory_space<vmem>> -> memref<1x36x256xf32, #tpu.memory_space<vmem>>
    %34 = tpu.memref_squeeze %33 : memref<1x36x256xf32, #tpu.memory_space<vmem>> -> memref<36x256xf32, #tpu.memory_space<vmem>>
    %c1 = arith.constant 1 : index
    %c0_15 = arith.constant 0 : index
    %35 = vector.load %34[%c1, %c0_15] : memref<36x256xf32, #tpu.memory_space<vmem>>, vector<34x256xf32>
    %36 = arith.truncf %35 : vector<34x256xf32> to vector<34x256xbf16>
    %c1_16 = arith.constant 1 : index
    %c0_17 = arith.constant 0 : index
    %c0_18 = arith.constant 0 : index
    %37 = vector.load %arg4[%c1_16, %c0_17, %c0_18] : memref<3x256x256xbf16, #tpu.memory_space<vmem>>, vector<1x256x256xbf16>
    %38 = vector.shape_cast %37 : vector<1x256x256xbf16> to vector<256x256xbf16>
    %cst_19 = arith.constant dense<0.000000e+00> : vector<34x256xf32>
    %39 = tpu.matmul %36, %38, %cst_19 {dimension_numbers = #tpu.dot_dimension_numbers<[1], [0], [0], [1], [0, 0, 1, 1], [], []>} : vector<34x256xbf16>, vector<256x256xbf16>, vector<34x256xf32> -> vector<34x256xf32>
    %40 = arith.addf %32, %39 : vector<34x256xf32>
    %c0_i32_20 = arith.constant 0 : i32
    %c0_i32_21 = arith.constant 0 : i32
    %c0_i32_22 = arith.constant 0 : i32
    %41 = tpu.memref_slice %arg1[%c0_i32_20, %c0_i32_21, %c0_i32_22] : memref<1x36x256xf32, #tpu.memory_space<vmem>> -> memref<1x36x256xf32, #tpu.memory_space<vmem>>
    %42 = tpu.memref_squeeze %41 : memref<1x36x256xf32, #tpu.memory_space<vmem>> -> memref<36x256xf32, #tpu.memory_space<vmem>>
    %c2 = arith.constant 2 : index
    %c0_23 = arith.constant 0 : index
    %43 = vector.load %42[%c2, %c0_23] : memref<36x256xf32, #tpu.memory_space<vmem>>, vector<34x256xf32>
    %44 = arith.truncf %43 : vector<34x256xf32> to vector<34x256xbf16>
    %c2_24 = arith.constant 2 : index
    %c0_25 = arith.constant 0 : index
    %c0_26 = arith.constant 0 : index
    %45 = vector.load %arg4[%c2_24, %c0_25, %c0_26] : memref<3x256x256xbf16, #tpu.memory_space<vmem>>, vector<1x256x256xbf16>
    %46 = vector.shape_cast %45 : vector<1x256x256xbf16> to vector<256x256xbf16>
    %cst_27 = arith.constant dense<0.000000e+00> : vector<34x256xf32>
    %47 = tpu.matmul %44, %46, %cst_27 {dimension_numbers = #tpu.dot_dimension_numbers<[1], [0], [0], [1], [0, 0, 1, 1], [], []>} : vector<34x256xbf16>, vector<256x256xbf16>, vector<34x256xf32> -> vector<34x256xf32>
    %48 = arith.addf %40, %47 : vector<34x256xf32>
    %c0_28 = arith.constant 0 : index
    %c0_29 = arith.constant 0 : index
    %49 = vector.load %arg5[%c0_28, %c0_29] : memref<1x256xf32, #tpu.memory_space<vmem>>, vector<1x256xf32>
    %50 = vector.broadcast %49 : vector<1x256xf32> to vector<34x256xf32>
    %51 = arith.addf %48, %50 : vector<34x256xf32>
    %cst_30 = arith.constant 0.000000e+00 : f32
    %52 = vector.broadcast %cst_30 : f32 to vector<34x256xf32>
    %53 = arith.maximumf %51, %52 : vector<34x256xf32>
    %c0_i32_31 = arith.constant 0 : i32
    %c0_i32_32 = arith.constant 0 : i32
    %c0_i32_33 = arith.constant 0 : i32
    %54 = tpu.memref_slice %arg2[%c0_i32_31, %c0_i32_32, %c0_i32_33] : memref<1x20x128xf32, #tpu.memory_space<vmem>> -> memref<1x20x128xf32, #tpu.memory_space<vmem>>
    %55 = tpu.memref_squeeze %54 : memref<1x20x128xf32, #tpu.memory_space<vmem>> -> memref<20x128xf32, #tpu.memory_space<vmem>>
    %c0_34 = arith.constant 0 : index
    %c0_35 = arith.constant 0 : index
    %56 = vector.load %55[%c0_34, %c0_35] : memref<20x128xf32, #tpu.memory_space<vmem>>, vector<18x128xf32>
    %57 = arith.truncf %56 : vector<18x128xf32> to vector<18x128xbf16>
    %c0_36 = arith.constant 0 : index
    %c0_37 = arith.constant 0 : index
    %c0_38 = arith.constant 0 : index
    %58 = vector.load %arg6[%c0_36, %c0_37, %c0_38] : memref<3x128x128xbf16, #tpu.memory_space<vmem>>, vector<1x128x128xbf16>
    %59 = vector.shape_cast %58 : vector<1x128x128xbf16> to vector<128x128xbf16>
    %cst_39 = arith.constant dense<0.000000e+00> : vector<18x128xf32>
    %60 = tpu.matmul %57, %59, %cst_39 {dimension_numbers = #tpu.dot_dimension_numbers<[1], [0], [0], [1], [0, 0, 1, 1], [], []>} : vector<18x128xbf16>, vector<128x128xbf16>, vector<18x128xf32> -> vector<18x128xf32>
    %c0_i32_40 = arith.constant 0 : i32
    %c0_i32_41 = arith.constant 0 : i32
    %c0_i32_42 = arith.constant 0 : i32
    %61 = tpu.memref_slice %arg2[%c0_i32_40, %c0_i32_41, %c0_i32_42] : memref<1x20x128xf32, #tpu.memory_space<vmem>> -> memref<1x20x128xf32, #tpu.memory_space<vmem>>
    %62 = tpu.memref_squeeze %61 : memref<1x20x128xf32, #tpu.memory_space<vmem>> -> memref<20x128xf32, #tpu.memory_space<vmem>>
    %c1_43 = arith.constant 1 : index
    %c0_44 = arith.constant 0 : index
    %63 = vector.load %62[%c1_43, %c0_44] : memref<20x128xf32, #tpu.memory_space<vmem>>, vector<18x128xf32>
    %64 = arith.truncf %63 : vector<18x128xf32> to vector<18x128xbf16>
    %c1_45 = arith.constant 1 : index
    %c0_46 = arith.constant 0 : index
    %c0_47 = arith.constant 0 : index
    %65 = vector.load %arg6[%c1_45, %c0_46, %c0_47] : memref<3x128x128xbf16, #tpu.memory_space<vmem>>, vector<1x128x128xbf16>
    %66 = vector.shape_cast %65 : vector<1x128x128xbf16> to vector<128x128xbf16>
    %cst_48 = arith.constant dense<0.000000e+00> : vector<18x128xf32>
    %67 = tpu.matmul %64, %66, %cst_48 {dimension_numbers = #tpu.dot_dimension_numbers<[1], [0], [0], [1], [0, 0, 1, 1], [], []>} : vector<18x128xbf16>, vector<128x128xbf16>, vector<18x128xf32> -> vector<18x128xf32>
    %68 = arith.addf %60, %67 : vector<18x128xf32>
    %c0_i32_49 = arith.constant 0 : i32
    %c0_i32_50 = arith.constant 0 : i32
    %c0_i32_51 = arith.constant 0 : i32
    %69 = tpu.memref_slice %arg2[%c0_i32_49, %c0_i32_50, %c0_i32_51] : memref<1x20x128xf32, #tpu.memory_space<vmem>> -> memref<1x20x128xf32, #tpu.memory_space<vmem>>
    %70 = tpu.memref_squeeze %69 : memref<1x20x128xf32, #tpu.memory_space<vmem>> -> memref<20x128xf32, #tpu.memory_space<vmem>>
    %c2_52 = arith.constant 2 : index
    %c0_53 = arith.constant 0 : index
    %71 = vector.load %70[%c2_52, %c0_53] : memref<20x128xf32, #tpu.memory_space<vmem>>, vector<18x128xf32>
    %72 = arith.truncf %71 : vector<18x128xf32> to vector<18x128xbf16>
    %c2_54 = arith.constant 2 : index
    %c0_55 = arith.constant 0 : index
    %c0_56 = arith.constant 0 : index
    %73 = vector.load %arg6[%c2_54, %c0_55, %c0_56] : memref<3x128x128xbf16, #tpu.memory_space<vmem>>, vector<1x128x128xbf16>
    %74 = vector.shape_cast %73 : vector<1x128x128xbf16> to vector<128x128xbf16>
    %cst_57 = arith.constant dense<0.000000e+00> : vector<18x128xf32>
    %75 = tpu.matmul %72, %74, %cst_57 {dimension_numbers = #tpu.dot_dimension_numbers<[1], [0], [0], [1], [0, 0, 1, 1], [], []>} : vector<18x128xbf16>, vector<128x128xbf16>, vector<18x128xf32> -> vector<18x128xf32>
    %76 = arith.addf %68, %75 : vector<18x128xf32>
    %c0_58 = arith.constant 0 : index
    %c0_59 = arith.constant 0 : index
    %77 = vector.load %arg7[%c0_58, %c0_59] : memref<1x128xf32, #tpu.memory_space<vmem>>, vector<1x128xf32>
    %78 = vector.broadcast %77 : vector<1x128xf32> to vector<18x128xf32>
    %79 = arith.addf %76, %78 : vector<18x128xf32>
    %cst_60 = arith.constant 0.000000e+00 : f32
    %80 = vector.broadcast %cst_60 : f32 to vector<18x128xf32>
    %81 = arith.maximumf %79, %80 : vector<18x128xf32>
    %82 = arith.truncf %81 : vector<18x128xf32> to vector<18x128xbf16>
    %c0_61 = arith.constant 0 : index
    %c0_62 = arith.constant 0 : index
    %83 = vector.load %arg10[%c0_61, %c0_62] : memref<128x256xbf16, #tpu.memory_space<vmem>>, vector<128x256xbf16>
    %cst_63 = arith.constant dense<0.000000e+00> : vector<18x256xf32>
    %84 = tpu.matmul %82, %83, %cst_63 {dimension_numbers = #tpu.dot_dimension_numbers<[1], [0], [0], [1], [0, 0, 1, 1], [], []>} : vector<18x128xbf16>, vector<128x256xbf16>, vector<18x256xf32> -> vector<18x256xf32>
    %c0_64 = arith.constant 0 : index
    %c0_65 = arith.constant 0 : index
    %85 = vector.load %arg11[%c0_64, %c0_65] : memref<34x18xbf16, #tpu.memory_space<vmem>>, vector<34x18xbf16>
    %86 = arith.truncf %84 : vector<18x256xf32> to vector<18x256xbf16>
    %cst_66 = arith.constant dense<0.000000e+00> : vector<34x256xf32>
    %87 = tpu.matmul %85, %86, %cst_66 {dimension_numbers = #tpu.dot_dimension_numbers<[1], [0], [0], [1], [0, 0, 1, 1], [], []>} : vector<34x18xbf16>, vector<18x256xbf16>, vector<34x256xf32> -> vector<34x256xf32>
    %88 = arith.addf %53, %87 : vector<34x256xf32>
    %c0_i32_67 = arith.constant 0 : i32
    %c0_i32_68 = arith.constant 0 : i32
    %c0_i32_69 = arith.constant 0 : i32
    %89 = tpu.memref_slice %arg3[%c0_i32_67, %c0_i32_68, %c0_i32_69] : memref<1x12x64xf32, #tpu.memory_space<vmem>> -> memref<1x12x64xf32, #tpu.memory_space<vmem>>
    %90 = tpu.memref_squeeze %89 : memref<1x12x64xf32, #tpu.memory_space<vmem>> -> memref<12x64xf32, #tpu.memory_space<vmem>>
    %c0_70 = arith.constant 0 : index
    %c0_71 = arith.constant 0 : index
    %91 = vector.load %90[%c0_70, %c0_71] : memref<12x64xf32, #tpu.memory_space<vmem>>, vector<10x64xf32>
    %92 = arith.truncf %91 : vector<10x64xf32> to vector<10x64xbf16>
    %c0_72 = arith.constant 0 : index
    %c0_73 = arith.constant 0 : index
    %c0_74 = arith.constant 0 : index
    %93 = vector.load %arg8[%c0_72, %c0_73, %c0_74] : memref<3x64x64xbf16, #tpu.memory_space<vmem>>, vector<1x64x64xbf16>
    %94 = vector.shape_cast %93 : vector<1x64x64xbf16> to vector<64x64xbf16>
    %cst_75 = arith.constant dense<0.000000e+00> : vector<10x64xf32>
    %95 = tpu.matmul %92, %94, %cst_75 {dimension_numbers = #tpu.dot_dimension_numbers<[1], [0], [0], [1], [0, 0, 1, 1], [], []>} : vector<10x64xbf16>, vector<64x64xbf16>, vector<10x64xf32> -> vector<10x64xf32>
    %c0_i32_76 = arith.constant 0 : i32
    %c0_i32_77 = arith.constant 0 : i32
    %c0_i32_78 = arith.constant 0 : i32
    %96 = tpu.memref_slice %arg3[%c0_i32_76, %c0_i32_77, %c0_i32_78] : memref<1x12x64xf32, #tpu.memory_space<vmem>> -> memref<1x12x64xf32, #tpu.memory_space<vmem>>
    %97 = tpu.memref_squeeze %96 : memref<1x12x64xf32, #tpu.memory_space<vmem>> -> memref<12x64xf32, #tpu.memory_space<vmem>>
    %c1_79 = arith.constant 1 : index
    %c0_80 = arith.constant 0 : index
    %98 = vector.load %97[%c1_79, %c0_80] : memref<12x64xf32, #tpu.memory_space<vmem>>, vector<10x64xf32>
    %99 = arith.truncf %98 : vector<10x64xf32> to vector<10x64xbf16>
    %c1_81 = arith.constant 1 : index
    %c0_82 = arith.constant 0 : index
    %c0_83 = arith.constant 0 : index
    %100 = vector.load %arg8[%c1_81, %c0_82, %c0_83] : memref<3x64x64xbf16, #tpu.memory_space<vmem>>, vector<1x64x64xbf16>
    %101 = vector.shape_cast %100 : vector<1x64x64xbf16> to vector<64x64xbf16>
    %cst_84 = arith.constant dense<0.000000e+00> : vector<10x64xf32>
    %102 = tpu.matmul %99, %101, %cst_84 {dimension_numbers = #tpu.dot_dimension_numbers<[1], [0], [0], [1], [0, 0, 1, 1], [], []>} : vector<10x64xbf16>, vector<64x64xbf16>, vector<10x64xf32> -> vector<10x64xf32>
    %103 = arith.addf %95, %102 : vector<10x64xf32>
    %c0_i32_85 = arith.constant 0 : i32
    %c0_i32_86 = arith.constant 0 : i32
    %c0_i32_87 = arith.constant 0 : i32
    %104 = tpu.memref_slice %arg3[%c0_i32_85, %c0_i32_86, %c0_i32_87] : memref<1x12x64xf32, #tpu.memory_space<vmem>> -> memref<1x12x64xf32, #tpu.memory_space<vmem>>
    %105 = tpu.memref_squeeze %104 : memref<1x12x64xf32, #tpu.memory_space<vmem>> -> memref<12x64xf32, #tpu.memory_space<vmem>>
    %c2_88 = arith.constant 2 : index
    %c0_89 = arith.constant 0 : index
    %106 = vector.load %105[%c2_88, %c0_89] : memref<12x64xf32, #tpu.memory_space<vmem>>, vector<10x64xf32>
    %107 = arith.truncf %106 : vector<10x64xf32> to vector<10x64xbf16>
    %c2_90 = arith.constant 2 : index
    %c0_91 = arith.constant 0 : index
    %c0_92 = arith.constant 0 : index
    %108 = vector.load %arg8[%c2_90, %c0_91, %c0_92] : memref<3x64x64xbf16, #tpu.memory_space<vmem>>, vector<1x64x64xbf16>
    %109 = vector.shape_cast %108 : vector<1x64x64xbf16> to vector<64x64xbf16>
    %cst_93 = arith.constant dense<0.000000e+00> : vector<10x64xf32>
    %110 = tpu.matmul %107, %109, %cst_93 {dimension_numbers = #tpu.dot_dimension_numbers<[1], [0], [0], [1], [0, 0, 1, 1], [], []>} : vector<10x64xbf16>, vector<64x64xbf16>, vector<10x64xf32> -> vector<10x64xf32>
    %111 = arith.addf %103, %110 : vector<10x64xf32>
    %c0_94 = arith.constant 0 : index
    %c0_95 = arith.constant 0 : index
    %112 = vector.load %arg9[%c0_94, %c0_95] : memref<1x64xf32, #tpu.memory_space<vmem>>, vector<1x64xf32>
    %113 = vector.broadcast %112 : vector<1x64xf32> to vector<10x64xf32>
    %114 = arith.addf %111, %113 : vector<10x64xf32>
    %cst_96 = arith.constant 0.000000e+00 : f32
    %115 = vector.broadcast %cst_96 : f32 to vector<10x64xf32>
    %116 = arith.maximumf %114, %115 : vector<10x64xf32>
    %117 = arith.truncf %116 : vector<10x64xf32> to vector<10x64xbf16>
    %c0_97 = arith.constant 0 : index
    %c0_98 = arith.constant 0 : index
    %118 = vector.load %arg12[%c0_97, %c0_98] : memref<64x256xbf16, #tpu.memory_space<vmem>>, vector<64x256xbf16>
    %cst_99 = arith.constant dense<0.000000e+00> : vector<10x256xf32>
    %119 = tpu.matmul %117, %118, %cst_99 {dimension_numbers = #tpu.dot_dimension_numbers<[1], [0], [0], [1], [0, 0, 1, 1], [], []>} : vector<10x64xbf16>, vector<64x256xbf16>, vector<10x256xf32> -> vector<10x256xf32>
    %c0_100 = arith.constant 0 : index
    %c0_101 = arith.constant 0 : index
    %120 = vector.load %arg13[%c0_100, %c0_101] : memref<34x10xbf16, #tpu.memory_space<vmem>>, vector<34x10xbf16>
    %121 = arith.truncf %119 : vector<10x256xf32> to vector<10x256xbf16>
    %cst_102 = arith.constant dense<0.000000e+00> : vector<34x256xf32>
    %122 = tpu.matmul %120, %121, %cst_102 {dimension_numbers = #tpu.dot_dimension_numbers<[1], [0], [0], [1], [0, 0, 1, 1], [], []>} : vector<34x10xbf16>, vector<10x256xbf16>, vector<34x256xf32> -> vector<34x256xf32>
    %123 = arith.addf %88, %122 : vector<34x256xf32>
    %cst_103 = arith.constant 0.000000e+00 : f32
    %124 = vector.broadcast %cst_103 : f32 to vector<1x256xf32>
    %c0_104 = arith.constant 0 : index
    %c0_105 = arith.constant 0 : index
    %125 = vector.load %arg21[%c0_104, %c0_105] : memref<36x256xf32, #tpu.memory_space<vmem>>, vector<1x256xf32>
    tpu.vector_store %arg21[%c0_104, %c0_105], %124 {strides = array<i32>} : memref<36x256xf32, #tpu.memory_space<vmem>>, vector<1x256xf32>,
    %c35 = arith.constant 35 : index
    %c0_106 = arith.constant 0 : index
    %126 = vector.load %arg21[%c35, %c0_106] : memref<36x256xf32, #tpu.memory_space<vmem>>, vector<1x256xf32>
    tpu.vector_store %arg21[%c35, %c0_106], %124 {strides = array<i32>} : memref<36x256xf32, #tpu.memory_space<vmem>>, vector<1x256xf32>,
    %127 = vector.broadcast %25 : vector<34x1xf32> to vector<34x256xf32>
    %128 = arith.mulf %123, %127 : vector<34x256xf32>
    %c1_107 = arith.constant 1 : index
    %c0_108 = arith.constant 0 : index
    %129 = vector.load %arg21[%c1_107, %c0_108] : memref<36x256xf32, #tpu.memory_space<vmem>>, vector<34x256xf32>
    tpu.vector_store %arg21[%c1_107, %c0_108], %128 {strides = array<i32>} : memref<36x256xf32, #tpu.memory_space<vmem>>, vector<34x256xf32>,
    %c0_109 = arith.constant 0 : index
    %c0_110 = arith.constant 0 : index
    %130 = vector.load %arg21[%c0_109, %c0_110] : memref<36x256xf32, #tpu.memory_space<vmem>>, vector<34x256xf32>
    %131 = arith.truncf %130 : vector<34x256xf32> to vector<34x256xbf16>
    %c0_111 = arith.constant 0 : index
    %c0_112 = arith.constant 0 : index
    %c0_113 = arith.constant 0 : index
    %132 = vector.load %arg14[%c0_111, %c0_112, %c0_113] : memref<3x256x256xbf16, #tpu.memory_space<vmem>>, vector<1x256x256xbf16>
    %133 = vector.shape_cast %132 : vector<1x256x256xbf16> to vector<256x256xbf16>
    %cst_114 = arith.constant dense<0.000000e+00> : vector<34x256xf32>
    %134 = tpu.matmul %131, %133, %cst_114 {dimension_numbers = #tpu.dot_dimension_numbers<[1], [0], [0], [1], [0, 0, 1, 1], [], []>} : vector<34x256xbf16>, vector<256x256xbf16>, vector<34x256xf32> -> vector<34x256xf32>
    %c1_115 = arith.constant 1 : index
    %c0_116 = arith.constant 0 : index
    %135 = vector.load %arg21[%c1_115, %c0_116] : memref<36x256xf32, #tpu.memory_space<vmem>>, vector<34x256xf32>
    %136 = arith.truncf %135 : vector<34x256xf32> to vector<34x256xbf16>
    %c1_117 = arith.constant 1 : index
    %c0_118 = arith.constant 0 : index
    %c0_119 = arith.constant 0 : index
    %137 = vector.load %arg14[%c1_117, %c0_118, %c0_119] : memref<3x256x256xbf16, #tpu.memory_space<vmem>>, vector<1x256x256xbf16>
    %138 = vector.shape_cast %137 : vector<1x256x256xbf16> to vector<256x256xbf16>
    %cst_120 = arith.constant dense<0.000000e+00> : vector<34x256xf32>
    %139 = tpu.matmul %136, %138, %cst_120 {dimension_numbers = #tpu.dot_dimension_numbers<[1], [0], [0], [1], [0, 0, 1, 1], [], []>} : vector<34x256xbf16>, vector<256x256xbf16>, vector<34x256xf32> -> vector<34x256xf32>
    %140 = arith.addf %134, %139 : vector<34x256xf32>
    %c2_121 = arith.constant 2 : index
    %c0_122 = arith.constant 0 : index
    %141 = vector.load %arg21[%c2_121, %c0_122] : memref<36x256xf32, #tpu.memory_space<vmem>>, vector<34x256xf32>
    %142 = arith.truncf %141 : vector<34x256xf32> to vector<34x256xbf16>
    %c2_123 = arith.constant 2 : index
    %c0_124 = arith.constant 0 : index
    %c0_125 = arith.constant 0 : index
    %143 = vector.load %arg14[%c2_123, %c0_124, %c0_125] : memref<3x256x256xbf16, #tpu.memory_space<vmem>>, vector<1x256x256xbf16>
    %144 = vector.shape_cast %143 : vector<1x256x256xbf16> to vector<256x256xbf16>
    %cst_126 = arith.constant dense<0.000000e+00> : vector<34x256xf32>
    %145 = tpu.matmul %142, %144, %cst_126 {dimension_numbers = #tpu.dot_dimension_numbers<[1], [0], [0], [1], [0, 0, 1, 1], [], []>} : vector<34x256xbf16>, vector<256x256xbf16>, vector<34x256xf32> -> vector<34x256xf32>
    %146 = arith.addf %140, %145 : vector<34x256xf32>
    %c0_127 = arith.constant 0 : index
    %c0_128 = arith.constant 0 : index
    %147 = vector.load %arg15[%c0_127, %c0_128] : memref<1x256xf32, #tpu.memory_space<vmem>>, vector<1x256xf32>
    %148 = vector.broadcast %147 : vector<1x256xf32> to vector<34x256xf32>
    %149 = arith.addf %146, %148 : vector<34x256xf32>
    %cst_129 = arith.constant 0.000000e+00 : f32
    %150 = vector.broadcast %cst_129 : f32 to vector<34x256xf32>
    %151 = arith.maximumf %149, %150 : vector<34x256xf32>
    %152 = vector.broadcast %25 : vector<34x1xf32> to vector<34x256xf32>
    %153 = arith.mulf %151, %152 : vector<34x256xf32>
    %c1_130 = arith.constant 1 : index
    %c0_131 = arith.constant 0 : index
    %154 = vector.load %arg21[%c1_130, %c0_131] : memref<36x256xf32, #tpu.memory_space<vmem>>, vector<34x256xf32>
    tpu.vector_store %arg21[%c1_130, %c0_131], %153 {strides = array<i32>} : memref<36x256xf32, #tpu.memory_space<vmem>>, vector<34x256xf32>,
    %c0_132 = arith.constant 0 : index
    %c0_133 = arith.constant 0 : index
    %155 = vector.load %arg21[%c0_132, %c0_133] : memref<36x256xf32, #tpu.memory_space<vmem>>, vector<34x256xf32>
    %156 = arith.truncf %155 : vector<34x256xf32> to vector<34x256xbf16>
    %c0_134 = arith.constant 0 : index
    %c0_135 = arith.constant 0 : index
    %c0_136 = arith.constant 0 : index
    %157 = vector.load %arg16[%c0_134, %c0_135, %c0_136] : memref<3x256x256xbf16, #tpu.memory_space<vmem>>, vector<1x256x256xbf16>
    %158 = vector.shape_cast %157 : vector<1x256x256xbf16> to vector<256x256xbf16>
    %cst_137 = arith.constant dense<0.000000e+00> : vector<34x256xf32>
    %159 = tpu.matmul %156, %158, %cst_137 {dimension_numbers = #tpu.dot_dimension_numbers<[1], [0], [0], [1], [0, 0, 1, 1], [], []>} : vector<34x256xbf16>, vector<256x256xbf16>, vector<34x256xf32> -> vector<34x256xf32>
    %c1_138 = arith.constant 1 : index
    %c0_139 = arith.constant 0 : index
    %160 = vector.load %arg21[%c1_138, %c0_139] : memref<36x256xf32, #tpu.memory_space<vmem>>, vector<34x256xf32>
    %161 = arith.truncf %160 : vector<34x256xf32> to vector<34x256xbf16>
    %c1_140 = arith.constant 1 : index
    %c0_141 = arith.constant 0 : index
    %c0_142 = arith.constant 0 : index
    %162 = vector.load %arg16[%c1_140, %c0_141, %c0_142] : memref<3x256x256xbf16, #tpu.memory_space<vmem>>, vector<1x256x256xbf16>
    %163 = vector.shape_cast %162 : vector<1x256x256xbf16> to vector<256x256xbf16>
    %cst_143 = arith.constant dense<0.000000e+00> : vector<34x256xf32>
    %164 = tpu.matmul %161, %163, %cst_143 {dimension_numbers = #tpu.dot_dimension_numbers<[1], [0], [0], [1], [0, 0, 1, 1], [], []>} : vector<34x256xbf16>, vector<256x256xbf16>, vector<34x256xf32> -> vector<34x256xf32>
    %165 = arith.addf %159, %164 : vector<34x256xf32>
    %c2_144 = arith.constant 2 : index
    %c0_145 = arith.constant 0 : index
    %166 = vector.load %arg21[%c2_144, %c0_145] : memref<36x256xf32, #tpu.memory_space<vmem>>, vector<34x256xf32>
    %167 = arith.truncf %166 : vector<34x256xf32> to vector<34x256xbf16>
    %c2_146 = arith.constant 2 : index
    %c0_147 = arith.constant 0 : index
    %c0_148 = arith.constant 0 : index
    %168 = vector.load %arg16[%c2_146, %c0_147, %c0_148] : memref<3x256x256xbf16, #tpu.memory_space<vmem>>, vector<1x256x256xbf16>
    %169 = vector.shape_cast %168 : vector<1x256x256xbf16> to vector<256x256xbf16>
    %cst_149 = arith.constant dense<0.000000e+00> : vector<34x256xf32>
    %170 = tpu.matmul %167, %169, %cst_149 {dimension_numbers = #tpu.dot_dimension_numbers<[1], [0], [0], [1], [0, 0, 1, 1], [], []>} : vector<34x256xbf16>, vector<256x256xbf16>, vector<34x256xf32> -> vector<34x256xf32>
    %171 = arith.addf %165, %170 : vector<34x256xf32>
    %c0_150 = arith.constant 0 : index
    %c0_151 = arith.constant 0 : index
    %172 = vector.load %arg17[%c0_150, %c0_151] : memref<1x256xf32, #tpu.memory_space<vmem>>, vector<1x256xf32>
    %173 = vector.broadcast %172 : vector<1x256xf32> to vector<34x256xf32>
    %174 = arith.addf %171, %173 : vector<34x256xf32>
    %cst_152 = arith.constant 0.000000e+00 : f32
    %175 = vector.broadcast %cst_152 : f32 to vector<34x256xf32>
    %176 = arith.maximumf %174, %175 : vector<34x256xf32>
    %177 = arith.truncf %176 : vector<34x256xf32> to vector<34x256xbf16>
    %c0_153 = arith.constant 0 : index
    %c0_154 = arith.constant 0 : index
    %178 = vector.load %arg18[%c0_153, %c0_154] : memref<256x128xbf16, #tpu.memory_space<vmem>>, vector<256x128xbf16>
    %cst_155 = arith.constant dense<0.000000e+00> : vector<34x128xf32>
    %179 = tpu.matmul %177, %178, %cst_155 {dimension_numbers = #tpu.dot_dimension_numbers<[1], [0], [0], [1], [0, 0, 1, 1], [], []>} : vector<34x256xbf16>, vector<256x128xbf16>, vector<34x128xf32> -> vector<34x128xf32>
    %c0_156 = arith.constant 0 : index
    %c0_157 = arith.constant 0 : index
    %180 = vector.load %arg19[%c0_156, %c0_157] : memref<1x128xf32, #tpu.memory_space<vmem>>, vector<1x128xf32>
    %181 = vector.broadcast %180 : vector<1x128xf32> to vector<34x128xf32>
    %182 = arith.addf %179, %181 : vector<34x128xf32>
    %c0_158 = arith.constant 0 : index
    %c0_159 = arith.constant 0 : index
    %c0_160 = arith.constant 0 : index
    %183 = vector.load %arg20[%c0_158, %c0_159, %c0_160] : memref<1x34x128xf32, #tpu.memory_space<vmem>>, vector<1x34x128xf32>
    %184 = vector.shape_cast %183 : vector<1x34x128xf32> to vector<34x128xf32>
    %185 = vector.shape_cast %182 : vector<34x128xf32> to vector<1x34x128xf32>
    tpu.vector_store %arg20[%c0_158, %c0_159, %c0_160], %185 {strides = array<i32>} : memref<1x34x128xf32, #tpu.memory_space<vmem>>, vector<1x34x128xf32>,
    return
  }
  func.func @transform_0(%arg0: i32) -> (i32, i32, i32) {
    %c0_i32 = arith.constant 0 : i32
    %c0_i32_0 = arith.constant 0 : i32
    %c0_i32_1 = arith.constant 0 : i32
    return %arg0, %c0_i32, %c0_i32_0 : i32, i32, i32
  }
  func.func @transform_1(%arg0: i32) -> (i32, i32, i32) {
    %c0_i32 = arith.constant 0 : i32
    %c0_i32_0 = arith.constant 0 : i32
    %c0_i32_1 = arith.constant 0 : i32
    return %arg0, %c0_i32, %c0_i32_0 : i32, i32, i32
  }
  func.func @transform_2(%arg0: i32) -> (i32, i32, i32) {
    %c0_i32 = arith.constant 0 : i32
    %c0_i32_0 = arith.constant 0 : i32
    %c0_i32_1 = arith.constant 0 : i32
    return %arg0, %c0_i32, %c0_i32_0 : i32, i32, i32
  }
  func.func @transform_3(%arg0: i32) -> (i32, i32, i32) {
    %c0_i32 = arith.constant 0 : i32
    %c0_i32_0 = arith.constant 0 : i32
    %c0_i32_1 = arith.constant 0 : i32
    %c0_i32_2 = arith.constant 0 : i32
    return %c0_i32, %c0_i32_0, %c0_i32_1 : i32, i32, i32
  }
  func.func @transform_4(%arg0: i32) -> (i32, i32) {
    %c0_i32 = arith.constant 0 : i32
    %c0_i32_0 = arith.constant 0 : i32
    %c0_i32_1 = arith.constant 0 : i32
    return %c0_i32, %c0_i32_0 : i32, i32
  }
  func.func @transform_5(%arg0: i32) -> (i32, i32, i32) {
    %c0_i32 = arith.constant 0 : i32
    %c0_i32_0 = arith.constant 0 : i32
    %c0_i32_1 = arith.constant 0 : i32
    %c0_i32_2 = arith.constant 0 : i32
    return %c0_i32, %c0_i32_0, %c0_i32_1 : i32, i32, i32
  }
  func.func @transform_6(%arg0: i32) -> (i32, i32) {
    %c0_i32 = arith.constant 0 : i32
    %c0_i32_0 = arith.constant 0 : i32
    %c0_i32_1 = arith.constant 0 : i32
    return %c0_i32, %c0_i32_0 : i32, i32
  }
  func.func @transform_7(%arg0: i32) -> (i32, i32, i32) {
    %c0_i32 = arith.constant 0 : i32
    %c0_i32_0 = arith.constant 0 : i32
    %c0_i32_1 = arith.constant 0 : i32
    %c0_i32_2 = arith.constant 0 : i32
    return %c0_i32, %c0_i32_0, %c0_i32_1 : i32, i32, i32
  }
  func.func @transform_8(%arg0: i32) -> (i32, i32) {
    %c0_i32 = arith.constant 0 : i32
    %c0_i32_0 = arith.constant 0 : i32
    %c0_i32_1 = arith.constant 0 : i32
    return %c0_i32, %c0_i32_0 : i32, i32
  }
  func.func @transform_9(%arg0: i32) -> (i32, i32) {
    %c0_i32 = arith.constant 0 : i32
    %c0_i32_0 = arith.constant 0 : i32
    %c0_i32_1 = arith.constant 0 : i32
    return %c0_i32, %c0_i32_0 : i32, i32
  }
  func.func @transform_10(%arg0: i32) -> (i32, i32) {
    %c0_i32 = arith.constant 0 : i32
    %c0_i32_0 = arith.constant 0 : i32
    %c0_i32_1 = arith.constant 0 : i32
    return %c0_i32, %c0_i32_0 : i32, i32
  }
  func.func @transform_11(%arg0: i32) -> (i32, i32) {
    %c0_i32 = arith.constant 0 : i32
    %c0_i32_0 = arith.constant 0 : i32
    %c0_i32_1 = arith.constant 0 : i32
    return %c0_i32, %c0_i32_0 : i32, i32
  }
  func.func @transform_12(%arg0: i32) -> (i32, i32) {
    %c0_i32 = arith.constant 0 : i32
    %c0_i32_0 = arith.constant 0 : i32
    %c0_i32_1 = arith.constant 0 : i32
    return %c0_i32, %c0_i32_0 : i32, i32
  }
  func.func @transform_13(%arg0: i32) -> (i32, i32, i32) {
    %c0_i32 = arith.constant 0 : i32
    %c0_i32_0 = arith.constant 0 : i32
    %c0_i32_1 = arith.constant 0 : i32
    %c0_i32_2 = arith.constant 0 : i32
    return %c0_i32, %c0_i32_0, %c0_i32_1 : i32, i32, i32
  }
  func.func @transform_14(%arg0: i32) -> (i32, i32) {
    %c0_i32 = arith.constant 0 : i32
    %c0_i32_0 = arith.constant 0 : i32
    %c0_i32_1 = arith.constant 0 : i32
    return %c0_i32, %c0_i32_0 : i32, i32
  }
  func.func @transform_15(%arg0: i32) -> (i32, i32, i32) {
    %c0_i32 = arith.constant 0 : i32
    %c0_i32_0 = arith.constant 0 : i32
    %c0_i32_1 = arith.constant 0 : i32
    %c0_i32_2 = arith.constant 0 : i32
    return %c0_i32, %c0_i32_0, %c0_i32_1 : i32, i32, i32
  }
  func.func @transform_16(%arg0: i32) -> (i32, i32) {
    %c0_i32 = arith.constant 0 : i32
    %c0_i32_0 = arith.constant 0 : i32
    %c0_i32_1 = arith.constant 0 : i32
    return %c0_i32, %c0_i32_0 : i32, i32
  }
  func.func @transform_17(%arg0: i32) -> (i32, i32) {
    %c0_i32 = arith.constant 0 : i32
    %c0_i32_0 = arith.constant 0 : i32
    %c0_i32_1 = arith.constant 0 : i32
    return %c0_i32, %c0_i32_0 : i32, i32
  }
  func.func @transform_18(%arg0: i32) -> (i32, i32) {
    %c0_i32 = arith.constant 0 : i32
    %c0_i32_0 = arith.constant 0 : i32
    %c0_i32_1 = arith.constant 0 : i32
    return %c0_i32, %c0_i32_0 : i32, i32
  }
  func.func @transform_19(%arg0: i32) -> (i32, i32, i32) {
    %c0_i32 = arith.constant 0 : i32
    %c0_i32_0 = arith.constant 0 : i32
    %c0_i32_1 = arith.constant 0 : i32
    return %arg0, %c0_i32, %c0_i32_0 : i32, i32, i32
  }
}

</mosaic_0001>

<bundles_post_ra>
// kernel: tpu_custom_call.1
= control target key start
LH: loop header
LB: loop body
LE: loop exit
PB: predicated region body
PF: predicated region fallthrough
CT: control target
= control target key end

     0   :  { %s6634_s0 = inlined_call_operand.vmem [shape: f32[1,36,256], index: 0, kind: input, shape index: {}]   ;;  %s6635_s1 = inlined_call_operand.vmem [shape: f32[1,20,128], index: 1, kind: input, shape index: {}]   ;;  %s6636_s2 = inlined_call_operand.vmem [shape: f32[1,12,64], index: 2, kind: input, shape index: {}]   ;;  %s6637_s3 = inlined_call_operand.hbm [shape: bf16[3,256,256], index: 3, kind: input, shape index: {}]   ;;  %s6638_s4 = inlined_call_operand.hbm [shape: f32[1,256], index: 4, kind: input, shape index: {}]   ;;  %s6639_s5 = inlined_call_operand.vmem [shape: bf16[3,128,128], index: 5, kind: input, shape index: {}]   ;;  %s6640_s6 = inlined_call_operand.vmem [shape: f32[1,128], index: 6, kind: input, shape index: {}]   ;;  %s6641_s7 = inlined_call_operand.hbm [shape: bf16[3,64,64], index: 7, kind: input, shape index: {}]   ;;  %s6642_s8 = inlined_call_operand.hbm [shape: f32[1,64], index: 8, kind: input, shape index: {}]   ;;  %s6643_s9 = inlined_call_operand.hbm [shape: bf16[128,256], index: 9, kind: input, shape index: {}]   ;;  %s6644_s10 = inlined_call_operand.vmem [shape: bf16[34,18], index: 10, kind: input, shape index: {}]   ;;  %s6645_s11 = inlined_call_operand.hbm [shape: bf16[64,256], index: 11, kind: input, shape index: {}]   ;;  %s6646_s12 = inlined_call_operand.vmem [shape: bf16[34,10], index: 12, kind: input, shape index: {}]   ;;  %s6647_s13 = inlined_call_operand.hbm [shape: bf16[3,256,256], index: 13, kind: input, shape index: {}]   ;;  %s6648_s14 = inlined_call_operand.vmem [shape: f32[1,256], index: 14, kind: input, shape index: {}]   ;;  %s6649_s15 = inlined_call_operand.hbm [shape: bf16[3,256,256], index: 15, kind: input, shape index: {}]   ;;  %s6650_s16 = inlined_call_operand.vmem [shape: f32[1,256], index: 16, kind: input, shape index: {}]   ;;  %s6651_s17 = inlined_call_operand.vmem [shape: bf16[256,128], index: 17, kind: input, shape index: {}]   ;;  %s6652_s18 = inlined_call_operand.vmem [shape: f32[1,128], index: 18, kind: input, shape index: {}]   ;;  %s6653_s19 = inlined_call_operand.vmem [shape: f32[1,34,128], index: 19, kind: output, shape index: {}]  }
   0x1   :  { %6660 = sst [smem:[#allocation21_spill]] %s6634_s0 }
   0x2   :  { %6661 = sst [smem:[#allocation22_spill]] %s6635_s1 }
   0x3   :  { %6662 = sst [smem:[#allocation23_spill]] %s6636_s2 }
   0x4   :  { %6663 = sst [smem:[#allocation24_spill]] %s6637_s3 }
   0x5   :  { %24 = vsyncpa [#allocation4], 0 }
   0x6   :  { %25 = vsyncpa [#allocation6], 0 }
   0x7   :  { %26 = vsyncpa [#allocation9], 0 }
   0x8   :  { %27 = vsyncpa [#allocation12], 0 }
   0x9   :  { %28 = vsyncpa [#allocation15], 0  ;;  %s5841_s0 = smov [#allocation5]   ;;  %s5842_s20 = smov [#allocation8]  }
   0xa   :  { %s53_s30 = sshll.u32 %s5841_s0, 4  ;;  %s79_s21 = sshll.u32 %s5842_s20, 4  ;;  %s54_s30 = int_to_ptr.vmem [resolvable:$true] %s53_s30  ;;  %s80_s21 = int_to_ptr.vmem [resolvable:$true] %s79_s21 }
   0xb   :  { %s5655_s2 = scalar_lea.hbm %s6638_s4, 32 }
   0xc   :  { %p5656_p0 = scmp.ne.s32.totalorder %s6638_s4, %s5655_s2  ;;  %p5659_p1 = scmp.lt.u32.totalorder %s5655_s2, %s6638_s4 }
   0xe   :  { %p5661_p2 = pnand %p5659_p1, %p5656_p0 }
  0x10   :  { %5664 = shalt.err (!%p5661_p2)
}
  0x11   :  { %s5665_s26 = scalar_lea.vmem %s54_s30, 32  ;;  %p5670_p4 = scmp.lt.s32.totalorder %s54_s30, %s54_s30 }
  0x12   :  { %p5666_p3 = scmp.ne.s32.totalorder %s54_s30, %s5665_s26  ;;  %p5671_p5 = scmp.lt.s32.totalorder %s5665_s26, %s5665_s26 }
  0x14   :  { %p5672_p6 = por %p5671_p5, %p5670_p4 }
  0x16   :  { %p5673_p7 = pnand %p5672_p6, %p5666_p3 }
  0x18   :  { %5676 = shalt.err (!%p5673_p7)
}
  0x19   :  { %56 = dma.hbm_to_vmem [thread:$0]  %s6638_s4, 32, %s54_s30, [#allocation6]  }
  0x1a   :  { %s5677_s20 = scalar_lea.hbm %s6642_s8, 16 }
  0x1b   :  { %p5678_p8 = scmp.ne.s32.totalorder %s6642_s8, %s5677_s20  ;;  %p5681_p9 = scmp.lt.u32.totalorder %s5677_s20, %s6642_s8 }
  0x1d   :  { %p5683_p10 = pnand %p5681_p9, %p5678_p8 }
  0x1f   :  { %5686 = shalt.err (!%p5683_p10)
}
  0x20   :  { %s5687_s24 = scalar_lea.vmem %s80_s21, 16  ;;  %s5691_s25 = scalar_lea.vmem %s80_s21, 32 }
  0x21   :  { %p5688_p11 = scmp.ne.s32.totalorder %s80_s21, %s5687_s24  ;;  %p5692_p12 = scmp.lt.s32.totalorder %s80_s21, %s80_s21 }
  0x22   :  { %p5693_p13 = scmp.lt.s32.totalorder %s5691_s25, %s5687_s24 }
  0x24   :  { %p5694_p0 = por %p5693_p13, %p5692_p12 }
  0x26   :  { %p5695_p1 = pnand %p5694_p0, %p5688_p11 }
  0x28   :  { %5698 = shalt.err (!%p5695_p1)
}
  0x29   :  { %82 = dma.hbm_to_vmem [thread:$0]  %s6642_s8, 16, %s80_s21, [#allocation9]  }
  0x2a   :  { %s5843_s3 = smov [#allocation11]   ;;  %s5844_s27 = smov [#allocation3]  }
  0x2b   :  { %s102_s26 = sshll.u32 %s5843_s3, 4  ;;  %s40_s28 = sshll.u32 %s5844_s27, 4  ;;  %s103_s26 = int_to_ptr.vmem [resolvable:$true] %s102_s26  ;;  %s5980_s28 = int_to_ptr.vmem [resolvable:$true] %s40_s28 }
  0x2c   :  { %s5699_s20 = scalar_lea.hbm %s6645_s11, 1024 }
  0x2d   :  { %p5700_p2 = scmp.ne.s32.totalorder %s6645_s11, %s5699_s20  ;;  %p5703_p3 = scmp.lt.u32.totalorder %s5699_s20, %s6645_s11 }
  0x2f   :  { %p5705_p4 = pnand %p5703_p3, %p5700_p2 }
  0x31   :  { %5708 = shalt.err (!%p5705_p4)
}
  0x32   :  { %s5709_s8 = scalar_lea.vmem %s103_s26, 1024  ;;  %p5714_p6 = scmp.lt.s32.totalorder %s103_s26, %s103_s26 }
  0x33   :  { %p5710_p5 = scmp.ne.s32.totalorder %s103_s26, %s5709_s8  ;;  %p5715_p7 = scmp.lt.s32.totalorder %s5709_s8, %s5709_s8 }
  0x35   :  { %p5716_p8 = por %p5715_p7, %p5714_p6 }
  0x37   :  { %p5717_p9 = pnand %p5716_p8, %p5710_p5 }
  0x39   :  { %5720 = shalt.err (!%p5717_p9)
}
  0x3a   :  { %s5845_s21 = smov 128   ;;  %s5846_s24 = smov 8  }
  0x3b   :  { %108 = dma.hbm_to_vmem [thread:$0]  %s6645_s11, 1024, %s103_s26, [#allocation12], %s5845_s21, %s5845_s21, %s5846_s24  }
  0x3c   :  { %s6664_s27 = sld [smem:[#allocation24_spill]] }
  0x42   :  { %s5721_s29 = scalar_lea.hbm %s6664_s27, 12288 }
  0x43   :  { %p5722_p10 = scmp.ne.s32.totalorder %s6664_s27, %s5721_s29  ;;  %p5725_p11 = scmp.lt.u32.totalorder %s5721_s29, %s6664_s27 }
  0x45   :  { %p5727_p12 = pnand %p5725_p11, %p5722_p10 }
  0x47   :  { %5730 = shalt.err (!%p5727_p12)
}
  0x48   :  { %s5731_s2 = scalar_lea.vmem %s5980_s28, 12288  ;;  %p5736_p0 = scmp.lt.s32.totalorder %s5980_s28, %s5980_s28 }
  0x49   :  { %p5732_p13 = scmp.ne.s32.totalorder %s5980_s28, %s5731_s2  ;;  %p5737_p1 = scmp.lt.s32.totalorder %s5731_s2, %s5731_s2 }
  0x4b   :  { %p5738_p2 = por %p5737_p1, %p5736_p0 }
  0x4d   :  { %p5739_p3 = pnand %p5738_p2, %p5732_p13 }
  0x4f   :  { %5742 = shalt.err (!%p5739_p3)
}
  0x50   :  { %46 = dma.hbm_to_vmem [thread:$0]  %s6664_s27, 12288, %s5980_s28, [#allocation4], %s5845_s21, %s5845_s21, %s5846_s24  }
  0x51   :  { %s5847_s23 = smov [#allocation7]   ;;  %s5743_s30 = scalar_lea.hbm %s6641_s7, 1536 }
  0x52   :  { %s66_s8 = sshll.u32 %s5847_s23, 4  ;;  %p5744_p4 = scmp.ne.s32.totalorder %s6641_s7, %s5743_s30  ;;  %s67_s8 = int_to_ptr.vmem [resolvable:$true] %s66_s8 }
  0x53   :  { %p5747_p5 = scmp.lt.u32.totalorder %s5743_s30, %s6641_s7 }
  0x55   :  { %p5749_p6 = pnand %p5747_p5, %p5744_p4 }
  0x57   :  { %5752 = shalt.err (!%p5749_p6)
}
  0x58   :  { %s5753_s1 = scalar_lea.vmem %s67_s8, 1536  ;;  %p5758_p8 = scmp.lt.s32.totalorder %s67_s8, %s67_s8 }
  0x59   :  { %p5754_p7 = scmp.ne.s32.totalorder %s67_s8, %s5753_s1  ;;  %p5759_p9 = scmp.lt.s32.totalorder %s5753_s1, %s5753_s1 }
  0x5b   :  { %p5760_p10 = por %p5759_p9, %p5758_p8 }
  0x5d   :  { %p5761_p11 = pnand %p5760_p10, %p5754_p7 }
  0x5f   :  { %5764 = shalt.err (!%p5761_p11)
}
  0x60   :  { %s5848_s28 = smov 64   ;;  %s5849_s27 = smov 4  }
  0x61   :  { %72 = dma.hbm_to_vmem [thread:$0]  %s6641_s7, 1536, %s67_s8, [#allocation6], %s5848_s28, %s5848_s28, %s5849_s27  }
  0x62   :  { %s5850_s11 = smov [#allocation10]   ;;  %s5851_s23 = smov [#allocation13]  }
  0x63   :  { %s88_s26 = sshll.u32 %s5850_s11, 4  ;;  %s116_s25 = sshll.u32 %s5851_s23, 4  ;;  %s89_s26 = int_to_ptr.vmem [resolvable:$true] %s88_s26  ;;  %s117_s25 = int_to_ptr.vmem [resolvable:$true] %s116_s25 }
  0x64   :  { %s5765_s3 = scalar_lea.hbm %s6643_s9, 2048 }
  0x65   :  { %p5766_p12 = scmp.ne.s32.totalorder %s6643_s9, %s5765_s3  ;;  %p5769_p13 = scmp.lt.u32.totalorder %s5765_s3, %s6643_s9 }
  0x67   :  { %p5771_p0 = pnand %p5769_p13, %p5766_p12 }
  0x69   :  { %5774 = shalt.err (!%p5771_p0)
}
  0x6a   :  { %s5775_s7 = scalar_lea.vmem %s89_s26, 2048  ;;  %p5780_p2 = scmp.lt.s32.totalorder %s89_s26, %s89_s26 }
  0x6b   :  { %p5776_p1 = scmp.ne.s32.totalorder %s89_s26, %s5775_s7  ;;  %p5781_p3 = scmp.lt.s32.totalorder %s5775_s7, %s5775_s7 }
  0x6d   :  { %p5782_p4 = por %p5781_p3, %p5780_p2 }
  0x6f   :  { %p5783_p5 = pnand %p5782_p4, %p5776_p1 }
  0x71   :  { %5786 = shalt.err (!%p5783_p5)
}
  0x72   :  { %94 = dma.hbm_to_vmem [thread:$0]  %s6643_s9, 2048, %s89_s26, [#allocation9], %s5845_s21, %s5845_s21, %s5846_s24  }
  0x73   :  { %s5787_s2 = scalar_lea.hbm %s6647_s13, 12288 }
  0x74   :  { %p5788_p6 = scmp.ne.s32.totalorder %s6647_s13, %s5787_s2  ;;  %p5791_p7 = scmp.lt.u32.totalorder %s5787_s2, %s6647_s13 }
  0x76   :  { %p5793_p8 = pnand %p5791_p7, %p5788_p6 }
  0x78   :  { %5796 = shalt.err (!%p5793_p8)
}
  0x79   :  { %s5797_s3 = scalar_lea.vmem %s117_s25, 12288  ;;  %p5802_p10 = scmp.lt.s32.totalorder %s117_s25, %s117_s25 }
  0x7a   :  { %p5798_p9 = scmp.ne.s32.totalorder %s117_s25, %s5797_s3  ;;  %p5803_p11 = scmp.lt.s32.totalorder %s5797_s3, %s5797_s3 }
  0x7c   :  { %p5804_p12 = por %p5803_p11, %p5802_p10 }
  0x7e   :  { %p5805_p13 = pnand %p5804_p12, %p5798_p9 }
  0x80   :  { %5808 = shalt.err (!%p5805_p13)
}
  0x81   :  { %122 = dma.hbm_to_vmem [thread:$0]  %s6647_s13, 12288, %s117_s25, [#allocation12], %s5845_s21, %s5845_s21, %s5846_s24  }
  0x82   :  { %s5852_s29 = smov [#allocation14]   ;;  %s5809_s7 = scalar_lea.hbm %s6649_s15, 12288 }
  0x83   :  { %s130_s0 = sshll.u32 %s5852_s29, 4  ;;  %p5810_p0 = scmp.ne.s32.totalorder %s6649_s15, %s5809_s7  ;;  %s131_s0 = int_to_ptr.vmem [resolvable:$true] %s130_s0 }
  0x84   :  { %p5813_p1 = scmp.lt.u32.totalorder %s5809_s7, %s6649_s15 }
  0x86   :  { %p5815_p2 = pnand %p5813_p1, %p5810_p0 }
  0x88   :  { %5818 = shalt.err (!%p5815_p2)
}
  0x89   :  { %s5819_s2 = scalar_lea.vmem %s131_s0, 12288  ;;  %p5824_p4 = scmp.lt.s32.totalorder %s131_s0, %s131_s0 }
  0x8a   :  { %p5820_p3 = scmp.ne.s32.totalorder %s131_s0, %s5819_s2  ;;  %p5825_p5 = scmp.lt.s32.totalorder %s5819_s2, %s5819_s2 }
  0x8c   :  { %p5826_p6 = por %p5825_p5, %p5824_p4 }
  0x8e   :  { %p5827_p7 = pnand %p5826_p6, %p5820_p3 }
  0x90   :  { %5830 = shalt.err (!%p5827_p7)
}
  0x91   :  { %136 = dma.hbm_to_vmem [thread:$0]  %s6649_s15, 12288, %s131_s0, [#allocation15], %s5845_s21, %s5845_s21, %s5846_s24  }
  0x92   :  { %5831 = dma.done.wait [#allocation4], 12288  }
  0x93   :  { %5832 = vsyncadd [#allocation4], 4294955008 }
  0x94   :  { %5833 = dma.done.wait [#allocation6], 1568  }
  0x95   :  { %5834 = vsyncadd [#allocation6], 4294965728 }
  0x96   :  { %5835 = dma.done.wait [#allocation9], 2064  }
  0x97   :  { %5836 = vsyncadd [#allocation9], 4294965232 }
  0x98   :  { %5837 = dma.done.wait [#allocation12], 13312  }
  0x99   :  { %5838 = vsyncadd [#allocation12], 4294953984 }
  0x9a   :  { %5839 = dma.done.wait [#allocation15], 12288  }
  0x9b   :  { %5840 = vsyncadd [#allocation15], 4294955008  ;;  %v5129_v0 = vld [vmem:[%s6639_s5 + $0x40] sm:$0xff]   ;;  %v5130_v1 = vld [vmem:[%s6639_s5 + $0x48] sm:$0xff]   ;;  %s6665_s29 = sld [smem:[#allocation22_spill]]  ;;  %v5853_v55 = vmov 0  }
  0x9c   :  { %4934 = vmatprep.subr.bf16.mxu1 %v5129_v0  ;;  %v5131_v2 = vld [vmem:[%s6639_s5 + $0x50] sm:$0xff]   ;;  %v5132_v3 = vld [vmem:[%s6639_s5 + $0x58] sm:$0xff]   ;;  %v5133_v7 = vld [vmem:[%s6639_s5 + $0x60] sm:$0xff]   ;;  %s6666_s30 = sld [smem:[#allocation21_spill]]  ;;  %vm6659_vm0 = vsmask.f32 7424 }
  0x9d   :  { %4935 = vmatpush3.bf16.msra.mxu1 %v5129_v0  ;;  %v5134_v8 = vld [vmem:[%s6639_s5 + $0x68] sm:$0xff]   ;;  %v5135_v9 = vld [vmem:[%s6639_s5 + $0x70] sm:$0xff]   ;;  %v5136_v10 = vld [vmem:[%s6639_s5 + $0x78] sm:$0xff]   ;;  %vm6658_vm1 = vcmask 1046528   ;;  %vm1745_vm2 = vcmask 1040384   ;;  %vm1735_vm3 = vcmask 146432  }
  0x9e   :  { %4936 = vmatprep.subr.bf16.mxu1 %v5130_v1  ;;  %v5137_v12 = vld [vmem:[%s6639_s5] sm:$0xff]   ;;  %v5138_v16 = vld [vmem:[%s6639_s5 + $0x8] sm:$0xff]   ;;  %v5139_v18 = vld [vmem:[%s6639_s5 + $0x10] sm:$0xff]   ;;  %vm5855_vm4 = vmmov 0   ;;  %vm1870_vm5 = vcmask 523264   ;;  %vm2201_vm6 = vcmask 1044480  }
  0x9f   :  { %v5140_v19 = vld [vmem:[%s6639_s5 + $0x18] sm:$0xff]   ;;  %v5141_v20 = vld [vmem:[%s6639_s5 + $0x20] sm:$0xff]   ;;  %v5142_v21 = vld [vmem:[%s6639_s5 + $0x28] sm:$0xff]   ;;  %vm2191_vm7 = vcmask 80896  }
  0xa0   :  { %v5143_v22 = vld [vmem:[%s6639_s5 + $0x30] sm:$0xff]   ;;  %v5144_v23 = vld [vmem:[%s6639_s5 + $0x38] sm:$0xff]   ;;  %v5145_v25 = vld [vmem:[%s6639_s5 + $0x80] sm:$0xff]  }
  0xa1   :  { %4937 = vmatpush3.bf16.msra.mxu1 %v5130_v1  ;;  %v1216_v4 = vld [vmem:[%s6665_s29 + $0x1] sm:$0xff]  ;;  %v1217_v5 = vld [vmem:[%s6665_s29 + $0x9] sm:$0xff]  ;;  %v1218_v11 = vld [vmem:[%s6665_s29 + $0x11] sm:$0x3] }
  0xa2   :  { %4938 = vmatprep.subr.bf16.mxu1 %v5131_v2  ;;  %v1219_v6 = vpack.c.bf16 %v1217_v5, %v1216_v4  ;;  %v1195_v13 = vld [vmem:[%s6665_s29] sm:$0xff]  ;;  %v1196_v14 = vld [vmem:[%s6665_s29 + $0x8] sm:$0xff]  ;;  %v1220_v15 = vpack.c.bf16 %v1218_v11, %v1218_v11  ;;  %v1197_v24 = vld [vmem:[%s6665_s29 + $0x10] sm:$0x3] }
  0xa3   :  { %v1198_v17 = vpack.c.bf16 %v1196_v14, %v1195_v13  ;;  %v1430_v26 = vld [vmem:[%s6665_s29 + $0x2] sm:$0xff]  ;;  %v1431_v27 = vld [vmem:[%s6665_s29 + $0xa] sm:$0xff]  ;;  %v1199_v28 = vpack.c.bf16 %v1197_v24, %v1197_v24  ;;  %v5148_v32 = vld [vmem:[%s6639_s5 + $0x98] sm:$0xff]  }
  0xa4   :  { %4950 = vmatprep.mubr.bf16.mxu1 %v1219_v6  ;;  %v5146_v29 = vld [vmem:[%s6639_s5 + $0x88] sm:$0xff]   ;;  %v1433_v30 = vpack.c.bf16 %v1431_v27, %v1430_v26  ;;  %v5147_v31 = vld [vmem:[%s6639_s5 + $0x90] sm:$0xff]   ;;  %v5149_v33 = vld [vmem:[%s6639_s5 + $0xa0] sm:$0xff]  }
  0xa5   :  { %4939 = vmatpush3.bf16.msra.mxu1 %v5131_v2  ;;  %v5150_v34 = vld [vmem:[%s6639_s5 + $0xa8] sm:$0xff]   ;;  %v5151_v35 = vld [vmem:[%s6639_s5 + $0xb0] sm:$0xff]   ;;  %v5152_v36 = vld [vmem:[%s6639_s5 + $0xb8] sm:$0xff]   ;;  %s6667_s5 = sld [smem:[#allocation23_spill]] }
  0xa6   :  { %4940 = vmatprep.subr.bf16.mxu1 %v5132_v3  ;;  %v1432_v37 = vld [vmem:[%s6665_s29 + $0x12] sm:$0x3]  ;;  %v5153_v39 = vld [vmem:[#allocation10] ss:$8 sps:$4 sm:$0xff]   ;;  %v5155_v40 = vld [vmem:[#allocation10 + $0x4] ss:$8 sps:$4 sm:$0xff]  }
  0xa7   :  { %v1434_v38 = vpack.c.bf16 %v1432_v37, %v1432_v37  ;;  %v5158_v41 = vld [vmem:[#allocation10 + $0x14] ss:$8 sps:$4 sm:$0xff]   ;;  %v5156_v42 = vld [vmem:[#allocation10 + $0x10] ss:$8 sps:$4 sm:$0xff]   ;;  %v5161_v43 = vld [vmem:[#allocation10 + $0x24] ss:$8 sps:$4 sm:$0xff]  }
  0xa8   :  { %v5159_v44 = vld [vmem:[#allocation10 + $0x20] ss:$8 sps:$4 sm:$0xff]   ;;  %v5164_v45 = vld [vmem:[#allocation10 + $0x34] ss:$8 sps:$4 sm:$0xff]   ;;  %v5162_v46 = vld [vmem:[#allocation10 + $0x30] ss:$8 sps:$4 sm:$0xff]  }
  0xa9   :  { %4941 = vmatpush3.bf16.msra.mxu1 %v5132_v3  ;;  %v5167_v47 = vld [vmem:[#allocation10 + $0x44] ss:$8 sps:$4 sm:$0xff]   ;;  %v5165_v48 = vld [vmem:[#allocation10 + $0x40] ss:$8 sps:$4 sm:$0xff]   ;;  %v5170_v49 = vld [vmem:[#allocation10 + $0x54] ss:$8 sps:$4 sm:$0xff]  }
  0xaa   :  { %4942 = vmatprep.subr.bf16.mxu1 %v5133_v7  ;;  %v5168_v50 = vld [vmem:[#allocation10 + $0x50] ss:$8 sps:$4 sm:$0xff]   ;;  %v5173_v51 = vld [vmem:[#allocation10 + $0x64] ss:$8 sps:$4 sm:$0xff]   ;;  %v5171_v52 = vld [vmem:[#allocation10 + $0x60] ss:$8 sps:$4 sm:$0xff]  }
  0xab   :  { %v5176_v53 = vld [vmem:[#allocation10 + $0x74] ss:$8 sps:$4 sm:$0xff]   ;;  %v5174_v54 = vld [vmem:[#allocation10 + $0x70] ss:$8 sps:$4 sm:$0xff]   ;;  %v5177_v56 = vld [vmem:[#allocation3 + $0x104] ss:$8 sps:$4 sm:$0xff]  }
  0xac   :  { %v5179_v57 = vld [vmem:[#allocation3 + $0x100] ss:$8 sps:$4 sm:$0xff]   ;;  %v5180_v58 = vld [vmem:[#allocation3 + $0x114] ss:$8 sps:$4 sm:$0xff]   ;;  %586 = vmatprep.subr.bf16.mxu0 %v5177_v56  ;;  %v5182_v59 = vld [vmem:[#allocation3 + $0x110] ss:$8 sps:$4 sm:$0xff]  }
  0xad   :  { %4943 = vmatpush3.bf16.msra.mxu1 %v5133_v7  ;;  %587 = vmatpush1.bf16.msra.mxu0 %v5179_v57  ;;  %v5183_v60 = vld [vmem:[#allocation3 + $0x124] ss:$8 sps:$4 sm:$0xff]   ;;  %v5185_v61 = vld [vmem:[#allocation3 + $0x120] ss:$8 sps:$4 sm:$0xff]   ;;  %v5186_v62 = vld [vmem:[#allocation3 + $0x134] ss:$8 sps:$4 sm:$0xff]  }
  0xae   :  { %4944 = vmatprep.subr.bf16.mxu1 %v5134_v8  ;;  %588 = vmatprep.subr.bf16.mxu0 %v5180_v58  ;;  %v5188_v63 = vld [vmem:[#allocation3 + $0x130] ss:$8 sps:$4 sm:$0xff]   ;;  %v6177_v0 = vld [vmem:[%s6666_s30 + $0x18] sm:$0xff]  ;;  %v5192_v11 = vld [vmem:[#allocation3 + $0x154] ss:$8 sps:$4 sm:$0xff]  }
  0xaf   :  { %v289_v1 = vld [vmem:[%s6666_s30 + $0x28] sm:$0xff]  ;;  %v291_v2 = vld [vmem:[%s6666_s30 + $0x38] sm:$0xff] }
  0xb0   :  { %v333_v3 = vld [vmem:[%s6666_s30 + $0x8] sm:$0xfe]  ;;  %v5189_v4 = vld [vmem:[#allocation3 + $0x144] ss:$8 sps:$4 sm:$0xff]   ;;  %v6188_v5 = vpack.c.bf16 %v291_v2, %v289_v1  ;;  %v5209_v26 = vld [vmem:[#allocation3 + $0x1a0] ss:$8 sps:$4 sm:$0xff]  }
  0xb1   :  { %4945 = vmatpush3.bf16.msra.mxu1 %v5134_v8  ;;  %589 = vmatpush1.bf16.msra.mxu0 %v5182_v59  ;;  %v337_v6 = vpack.c.bf16 %v6177_v0, %v333_v3  ;;  %v5206_v24 = vld [vmem:[#allocation3 + $0x190] ss:$8 sps:$4 sm:$0xff]   ;;  %v5210_v27 = vld [vmem:[#allocation3 + $0x1b4] ss:$8 sps:$4 sm:$0xff]  }
  0xb2   :  { %4946 = vmatprep.subr.bf16.mxu1 %v5135_v9  ;;  %590 = vmatprep.subr.bf16.mxu0 %v5183_v60  ;;  %v5224_v56 = vld [vmem:[#allocation3 + $0x1f0] ss:$8 sps:$4 sm:$0xff]   ;;  %v5227_v60 = vld [vmem:[#allocation3 + $0x4] ss:$8 sps:$4 sm:$0xff]  }
  0xb3   :  { %v387_v7 = vshrl.u32 %v337_v6, 16  ;;  %v389_v8 = vshll.u32 %v337_v6, 16 }
  0xb5   :  { %4947 = vmatpush3.bf16.msra.mxu1 %v5135_v9  ;;  %591 = vmatpush1.bf16.msra.mxu0 %v5185_v61  ;;  %v394_v9 = vshll.u32 %v6188_v5, 16 }
  0xb6   :  { %4948 = vmatprep.subr.bf16.mxu1 %v5136_v10  ;;  %592 = vmatprep.subr.bf16.mxu0 %v5186_v62 }
  0xb7   :  { %v6192_v13 = vrot.slane %v394_v9, 1 }
  0xb9   :  { %4949 = vmatpush3.bf16.msra.mxu1 %v5136_v10  ;;  %593 = vmatpush1.bf16.msra.mxu0 %v5188_v63  ;;  %v5191_v10 = vld [vmem:[#allocation3 + $0x140] ss:$8 sps:$4 sm:$0xff]  }
  0xba   :  { %4954 = vmatprep.subr.bf16.mxu1 %v5137_v12  ;;  %594 = vmatprep.subr.bf16.mxu0 %v5189_v4  ;;  %v5225_v63 = vld [vmem:[#allocation3] ss:$8 sps:$4 sm:$0xff]   ;;  %v5230_v4 = vld [vmem:[#allocation3 + $0x14] ss:$8 sps:$4 sm:$0xff]  }
  0xbc   :  { %4951 = vmatmul.mubr.bf16.vlgmr.msra.gmra.mrb[0].mxu1 %v1220_v15  ;;  %v5194_v15 = vld [vmem:[#allocation3 + $0x150] ss:$8 sps:$4 sm:$0xff]  }
  0xbd   :  { %4955 = vmatpush3.bf16.msra.mxu1 %v5137_v12  ;;  %4970 = vmatprep.mubr.bf16.mxu1 %v1198_v17  ;;  %v391_v12 = vrot.slane %v389_v8, 1 }
  0xbe   :  { %4956 = vmatprep.subr.bf16.mxu1 %v5138_v16  ;;  %595 = vmatpush1.bf16.msra.mxu0 %v5191_v10 }
  0xbf   :  { %v392_v14 = vor.u32 %v391_v12, %v387_v7  ;;  %596 = vmatprep.subr.bf16.mxu0 %v5192_v11  ;;  %v5228_v7 = vld [vmem:[#allocation3 + $0x10] ss:$8 sps:$4 sm:$0xff]   ;;  %v5233_v11 = vld [vmem:[#allocation3 + $0x24] ss:$8 sps:$4 sm:$0xff]   ;;  %v5231_v12 = vld [vmem:[#allocation3 + $0x20] ss:$8 sps:$4 sm:$0xff]  }
  0xc1   :  { %4957 = vmatpush3.bf16.msra.mxu1 %v5138_v16  ;;  %v5195_v16 = vld [vmem:[#allocation3 + $0x164] ss:$8 sps:$4 sm:$0xff]   ;;  %v397_v17 = vsel %vm6659_vm0, %v392_v14, %v6192_v13 }
  0xc2   :  { %4958 = vmatprep.subr.bf16.mxu1 %v5139_v18  ;;  %618 = vmatprep.mubr.bf16.mxu0 %v397_v17  ;;  %v5234_v17 = vld [vmem:[#allocation3 + $0x30] ss:$8 sps:$4 sm:$0xff]  }
  0xc3   :  { %597 = vmatpush1.bf16.msra.mxu0 %v5194_v15  ;;  %v5236_v15 = vld [vmem:[#allocation3 + $0x34] ss:$8 sps:$4 sm:$0xff]  }
  0xc4   :  { %598 = vmatprep.subr.bf16.mxu0 %v5195_v16 }
  0xc5   :  { %4959 = vmatpush3.bf16.msra.mxu1 %v5139_v18  ;;  %v5197_v18 = vld [vmem:[#allocation3 + $0x160] ss:$8 sps:$4 sm:$0xff]  }
  0xc6   :  { %4960 = vmatprep.subr.bf16.mxu1 %v5140_v19 }
  0xc7   :  { %599 = vmatpush1.bf16.msra.mxu0 %v5197_v18 }
  0xc9   :  { %4961 = vmatpush3.bf16.msra.mxu1 %v5140_v19  ;;  %v5198_v19 = vld [vmem:[#allocation3 + $0x174] ss:$8 sps:$4 sm:$0xff]  }
  0xca   :  { %4962 = vmatprep.subr.bf16.mxu1 %v5141_v20  ;;  %600 = vmatprep.subr.bf16.mxu0 %v5198_v19  ;;  %v5239_v19 = vld [vmem:[#allocation3 + $0x44] ss:$8 sps:$4 sm:$0xff]  }
  0xcd   :  { %4963 = vmatpush3.bf16.msra.mxu1 %v5141_v20  ;;  %v5200_v20 = vld [vmem:[#allocation3 + $0x170] ss:$8 sps:$4 sm:$0xff]  }
  0xce   :  { %4964 = vmatprep.subr.bf16.mxu1 %v5142_v21  ;;  %601 = vmatpush1.bf16.msra.mxu0 %v5200_v20  ;;  %v285_v20 = vld [vmem:[%s6666_s30 + $0x8] sm:$0xff] }
  0xd1   :  { %4965 = vmatpush3.bf16.msra.mxu1 %v5142_v21  ;;  %v5201_v21 = vld [vmem:[#allocation3 + $0x184] ss:$8 sps:$4 sm:$0xff]  }
  0xd2   :  { %4966 = vmatprep.subr.bf16.mxu1 %v5143_v22  ;;  %602 = vmatprep.subr.bf16.mxu0 %v5201_v21 }
  0xd5   :  { %4967 = vmatpush3.bf16.msra.mxu1 %v5143_v22  ;;  %v5203_v22 = vld [vmem:[#allocation3 + $0x180] ss:$8 sps:$4 sm:$0xff]  }
  0xd6   :  { %4968 = vmatprep.subr.bf16.mxu1 %v5144_v23  ;;  %603 = vmatpush1.bf16.msra.mxu0 %v5203_v22 }
  0xd9   :  { %4969 = vmatpush3.bf16.msra.mxu1 %v5144_v23  ;;  %v5204_v23 = vld [vmem:[#allocation3 + $0x194] ss:$8 sps:$4 sm:$0xff]  }
  0xda   :  { %4974 = vmatprep.subr.bf16.mxu1 %v5145_v25  ;;  %604 = vmatprep.subr.bf16.mxu0 %v5204_v23 }
  0xdb   :  { %605 = vmatpush1.bf16.msra.mxu0 %v5206_v24 }
  0xdc   :  { %4971 = vmatmul.mubr.bf16.vlgmr.msra.gmra.mrb[4].mxu1 %v1199_v28  ;;  %v5212_v28 = vld [vmem:[#allocation3 + $0x1b0] ss:$8 sps:$4 sm:$0xff]  }
  0xdd   :  { %4975 = vmatpush3.bf16.msra.mxu1 %v5145_v25  ;;  %4990 = vmatprep.mubr.bf16.mxu1 %v1433_v30  ;;  %v5207_v25 = vld [vmem:[#allocation3 + $0x1a4] ss:$8 sps:$4 sm:$0xff]  }
  0xde   :  { %4976 = vmatprep.subr.bf16.mxu1 %v5146_v29  ;;  %606 = vmatprep.subr.bf16.mxu0 %v5207_v25  ;;  %v5213_v30 = vld [vmem:[#allocation3 + $0x1c4] ss:$8 sps:$4 sm:$0xff]  }
  0xdf   :  { %607 = vmatpush1.bf16.msra.mxu0 %v5209_v26 }
  0xe0   :  { %608 = vmatprep.subr.bf16.mxu0 %v5210_v27  ;;  %v5237_v27 = vld [vmem:[#allocation3 + $0x40] ss:$8 sps:$4 sm:$0xff]  }
  0xe1   :  { %4977 = vmatpush3.bf16.msra.mxu1 %v5146_v29 }
  0xe2   :  { %4978 = vmatprep.subr.bf16.mxu1 %v5147_v31 }
  0xe3   :  { %609 = vmatpush1.bf16.msra.mxu0 %v5212_v28  ;;  %v295_v28 = vpack.c.bf16 %v6177_v0, %v285_v20  ;;  %v5282_v20 = vld [vmem:[#allocation3 + $0x230] ss:$8 sps:$4 sm:$0xff]  }
  0xe4   :  { %610 = vmatprep.subr.bf16.mxu0 %v5213_v30 }
  0xe5   :  { %4979 = vmatpush3.bf16.msra.mxu1 %v5147_v31  ;;  %v6201_v31 = vld [vmem:[%s6666_s30 + $0x10] sm:$0xff] }
  0xe6   :  { %4980 = vmatprep.subr.bf16.mxu1 %v5148_v32 }
  0xe9   :  { %4981 = vmatpush3.bf16.msra.mxu1 %v5148_v32  ;;  %v332_v32 = vld [vmem:[%s6666_s30] sm:$0xfe] }
  0xea   :  { %4982 = vmatprep.subr.bf16.mxu1 %v5149_v33  ;;  %v336_v37 = vpack.c.bf16 %v6201_v31, %v332_v32  ;;  %v5242_v32 = vld [vmem:[#allocation3 + $0x54] ss:$8 sps:$4 sm:$0xff]  }
  0xed   :  { %4983 = vmatpush3.bf16.msra.mxu1 %v5149_v33 }
  0xee   :  { %4984 = vmatprep.subr.bf16.mxu1 %v5150_v34 }
  0xf1   :  { %4985 = vmatpush3.bf16.msra.mxu1 %v5150_v34 }
  0xf2   :  { %4986 = vmatprep.subr.bf16.mxu1 %v5151_v35 }
  0xf5   :  { %4987 = vmatpush3.bf16.msra.mxu1 %v5151_v35 }
  0xf6   :  { %4988 = vmatprep.subr.bf16.mxu1 %v5152_v36 }
  0xf9   :  { %4989 = vmatpush3.bf16.msra.mxu1 %v5152_v36  ;;  %v5215_v36 = vld [vmem:[#allocation3 + $0x1c0] ss:$8 sps:$4 sm:$0xff]  }
  0xfa   :  { %1662 = vmatprep.subr.bf16.mxu1 %v5155_v40  ;;  %v290_v40 = vld [vmem:[%s6666_s30 + $0x30] sm:$0xff]  ;;  %611 = vmatpush1.bf16.msra.mxu0 %v5215_v36 }
  0xfb   :  { %v5243_v36 = vld [vmem:[#allocation3 + $0x60] ss:$8 sps:$4 sm:$0xff]  }
  0xfc   :  { %4991 = vmatmul.mubr.bf16.vlgmr.msra.gmra.mrb[8].mxu1 %v1434_v38  ;;  %v5216_v38 = vld [vmem:[#allocation3 + $0x1d4] ss:$8 sps:$4 sm:$0xff]  }
  0xfd   :  { %1663 = vmatpush1.bf16.msra.mxu1 %v5153_v39  ;;  %1694 = vmatprep.mubr.bf16.mxu1 %v5853_v55  ;;  %v288_v39 = vld [vmem:[%s6666_s30 + $0x20] sm:$0xff] }
  0xfe   :  { %1664 = vmatprep.subr.bf16.mxu1 %v5158_v41  ;;  %v335_v41 = vld [vmem:[%s6666_s30 + $0x48] sm:$0x7]  ;;  %612 = vmatprep.subr.bf16.mxu0 %v5216_v38  ;;  %v5251_v38 = vld [vmem:[#allocation3 + $0x84] ss:$8 sps:$4 sm:$0xff]  }
 0x101   :  { %1665 = vmatpush1.bf16.msra.mxu1 %v5156_v42  ;;  %v5218_v42 = vld [vmem:[#allocation3 + $0x1d0] ss:$8 sps:$4 sm:$0xff]  }
 0x102   :  { %1666 = vmatprep.subr.bf16.mxu1 %v5161_v43  ;;  %v6220_v43 = vpack.c.bf16 %v290_v40, %v288_v39  ;;  %613 = vmatpush1.bf16.msra.mxu0 %v5218_v42  ;;  %v5249_v39 = vld [vmem:[#allocation3 + $0x80] ss:$8 sps:$4 sm:$0xff]   ;;  %v5252_v40 = vld [vmem:[#allocation3 + $0x90] ss:$8 sps:$4 sm:$0xff]  }
 0x103   :  { %v5255_v42 = vld [vmem:[#allocation3 + $0xa0] ss:$8 sps:$4 sm:$0xff]  }
 0x104   :  { %v398_v2 = vshrl.u32 %v6220_v43, 16 }
 0x105   :  { %1667 = vmatpush1.bf16.msra.mxu1 %v5159_v44  ;;  %v377_v44 = vshll.u32 %v336_v37, 16 }
 0x106   :  { %1668 = vmatprep.subr.bf16.mxu1 %v5164_v45  ;;  %v5219_v45 = vld [vmem:[#allocation3 + $0x1e4] ss:$8 sps:$4 sm:$0xff]  }
 0x107   :  { %614 = vmatprep.subr.bf16.mxu0 %v5219_v45  ;;  %v5258_v45 = vld [vmem:[#allocation3 + $0xb0] ss:$8 sps:$4 sm:$0xff]  }
 0x109   :  { %1669 = vmatpush1.bf16.msra.mxu1 %v5162_v46  ;;  %v339_v46 = vpack.c.bf16 %v335_v41, %v335_v41  ;;  %v5257_v41 = vld [vmem:[#allocation3 + $0xa4] ss:$8 sps:$4 sm:$0xff]  }
 0x10a   :  { %1670 = vmatprep.subr.bf16.mxu1 %v5167_v47  ;;  %v5221_v47 = vld [vmem:[#allocation3 + $0x1e0] ss:$8 sps:$4 sm:$0xff]  }
 0x10b   :  { %615 = vmatpush1.bf16.msra.mxu0 %v5221_v47  ;;  %v417_v10 = vshrl.u32 %v339_v46, 16  ;;  %v5263_v47 = vld [vmem:[#allocation3 + $0xc4] ss:$8 sps:$4 sm:$0xff]  }
 0x10d   :  { %1671 = vmatpush1.bf16.msra.mxu1 %v5165_v48  ;;  %v375_v48 = vshrl.u32 %v336_v37, 16  ;;  %v5246_v37 = vld [vmem:[#allocation3 + $0x70] ss:$8 sps:$4 sm:$0xff]  }
 0x10e   :  { %1672 = vmatprep.subr.bf16.mxu1 %v5170_v49  ;;  %v379_v49 = vrot.slane %v377_v44, 1  ;;  %v5260_v44 = vld [vmem:[#allocation3 + $0xb4] ss:$8 sps:$4 sm:$0xff]  }
 0x110   :  { %v380_v57 = vor.u32 %v379_v49, %v375_v48  ;;  %v4590_v49 = vld [vmem:[%s6640_s6] ss:$0 sm:$0xff] }
 0x111   :  { %1673 = vmatpush1.bf16.msra.mxu1 %v5168_v50  ;;  %v382_v50 = vshll.u32 %v6220_v43, 16 }
 0x112   :  { %1674 = vmatprep.subr.bf16.mxu1 %v5173_v51  ;;  %v5222_v51 = vld [vmem:[#allocation3 + $0x1f4] ss:$8 sps:$4 sm:$0xff]  }
 0x113   :  { %v384_v58 = vrot.slane %v382_v50, 1  ;;  %616 = vmatprep.subr.bf16.mxu0 %v5222_v51 }
 0x114   :  { %617 = vmatpush1.bf16.msra.mxu0 %v5224_v56 }
 0x115   :  { %1675 = vmatpush1.bf16.msra.mxu1 %v5171_v52  ;;  %v406_v52 = vshrl.u32 %v6188_v5, 16  ;;  %v385_v1 = vsel %vm6659_vm0, %v380_v57, %v384_v58  ;;  %807 = vmatprep.subr.bf16.mxu0 %v5227_v60  ;;  %v400_v8 = vor.u32 %v398_v2, %v384_v58  ;;  %v5266_v58 = vld [vmem:[#allocation3 + $0xd4] ss:$8 sps:$4 sm:$0xff]   ;;  %v5264_v60 = vld [vmem:[#allocation3 + $0xd0] ss:$8 sps:$4 sm:$0xff]  }
 0x116   :  { %1676 = vmatprep.subr.bf16.mxu1 %v5176_v53  ;;  %v410_v53 = vshll.u32 %v339_v46, 16 }
 0x117   :  { %v408_v61 = vor.u32 %v406_v52, %v6192_v13  ;;  %619 = vmatmul.mubr.bf16.vlgmr.msra.gmra.mrb[0].mxu0 %v385_v1 }
 0x118   :  { %v412_v62 = vrot.slane %v410_v53, 1  ;;  %808 = vmatpush1.bf16.msra.mxu0 %v5225_v63  ;;  %v5269_v63 = vld [vmem:[#allocation3 + $0xe4] ss:$8 sps:$4 sm:$0xff]  }
 0x119   :  { %1677 = vmatpush1.bf16.msra.mxu1 %v5174_v54  ;;  %v334_v54 = vld [vmem:[%s6666_s30 + $0x40] sm:$0x7]  ;;  %809 = vmatprep.subr.bf16.mxu0 %v5230_v4  ;;  %v5272_v4 = vld [vmem:[#allocation3 + $0xf4] ss:$8 sps:$4 sm:$0xff]  }
 0x11a   :  { %v338_v59 = vpack.c.bf16 %v334_v54, %v334_v54  ;;  %v413_v6 = vsel %vm6659_vm0, %v408_v61, %v412_v62  ;;  %v419_v14 = vor.u32 %v417_v10, %v412_v62  ;;  %v5261_v54 = vld [vmem:[#allocation3 + $0xc0] ss:$8 sps:$4 sm:$0xff]  }
 0x11b   :  { %628 = vmatprep.mubr.bf16.mxu0 %v413_v6 }
 0x11c   :  { %v402_v3 = vshll.u32 %v338_v59, 16  ;;  %810 = vmatpush1.bf16.msra.mxu0 %v5228_v7  ;;  %v414_v16 = vshrl.u32 %v338_v59, 16  ;;  %v5270_v7 = vld [vmem:[#allocation3 + $0xf0] ss:$8 sps:$4 sm:$0xff]  }
 0x11d   :  { %811 = vmatprep.subr.bf16.mxu0 %v5233_v11 }
 0x11e   :  { %v404_v9 = vrot.slane %v402_v3, 1  ;;  %v5267_v3 = vld [vmem:[#allocation3 + $0xe0] ss:$8 sps:$4 sm:$0xff]  }
 0x120   :  { %v405_v13 = vsel %vm6659_vm0, %v400_v8, %v404_v9  ;;  %812 = vmatpush1.bf16.msra.mxu0 %v5231_v12  ;;  %v416_v25 = vor.u32 %v414_v16, %v404_v9  ;;  %v284_v8 = vld [vmem:[%s6666_s30] sm:$0xff]  ;;  %v5275_v9 = vld [vmem:[#allocation3 + $0x204] ss:$8 sps:$4 sm:$0xff]   ;;  %v5273_v12 = vld [vmem:[#allocation3 + $0x200] ss:$8 sps:$4 sm:$0xff]  }
 0x121   :  { %629 = vmatmul.mubr.bf16.gmra.mrb[4].mxu0 %v405_v13  ;;  %813 = vmatprep.subr.bf16.mxu0 %v5236_v15  ;;  %v294_v11 = vpack.c.bf16 %v6201_v31, %v284_v8  ;;  %v5278_v13 = vld [vmem:[#allocation3 + $0x214] ss:$8 sps:$4 sm:$0xff]   ;;  %v5281_v15 = vld [vmem:[#allocation3 + $0x224] ss:$8 sps:$4 sm:$0xff]   ;;  %v293_v16 = vld [vmem:[%s6666_s30 + $0x48] sm:$0x3] }
 0x122   :  { %638 = vmatprep.mubr.bf16.mxu0 %v419_v14  ;;  %v5276_v14 = vld [vmem:[#allocation3 + $0x210] ss:$8 sps:$4 sm:$0xff]  }
 0x124   :  { %814 = vmatpush1.bf16.msra.mxu0 %v5234_v17  ;;  %v5279_v17 = vld [vmem:[#allocation3 + $0x220] ss:$8 sps:$4 sm:$0xff]  }
 0x125   :  { %815 = vmatprep.subr.bf16.mxu0 %v5239_v19  ;;  %v5284_v19 = vld [vmem:[#allocation3 + $0x234] ss:$8 sps:$4 sm:$0xff]  }
 0x128   :  { %816 = vmatpush1.bf16.msra.mxu0 %v5237_v27  ;;  %v5293_v27 = vld [vmem:[#allocation3 + $0x264] ss:$8 sps:$4 sm:$0xff]  }
 0x129   :  { %639 = vmatmul.mubr.bf16.gmra.mrb[8].mxu0 %v416_v25  ;;  %817 = vmatprep.subr.bf16.mxu0 %v5242_v32  ;;  %v5290_v25 = vld [vmem:[#allocation3 + $0x254] ss:$8 sps:$4 sm:$0xff]   ;;  %v5294_v32 = vld [vmem:[#allocation3 + $0x270] ss:$8 sps:$4 sm:$0xff]  }
 0x12a   :  { %839 = vmatprep.mubr.bf16.mxu0 %v295_v28  ;;  %v5291_v28 = vld [vmem:[#allocation3 + $0x260] ss:$8 sps:$4 sm:$0xff]  }
 0x18f   :  { %v6196_v29 = vpop.f32.mrb[0].mxu1 }
 0x190   :  { %v6206_v33 = vpop.f32.mrb[1].mxu1 }
 0x191   :  { %v4953_v34 = vpop.f32.mrb[2].mxu1 }
 0x192   :  { %v6208_v35 = vpop.f32.mrb[3].mxu1  ;;  %v5240_v34 = vld [vmem:[#allocation3 + $0x50] ss:$8 sps:$4 sm:$0xff]  }
 0x193   :  { %818 = vmatpush1.bf16.msra.mxu0 %v5240_v34  ;;  %v5299_v34 = vld [vmem:[#allocation3 + $0x284] ss:$8 sps:$4 sm:$0xff]  }
 0x1af   :  { %v4972_v18 = vpop.f32.mrb[4].mxu1 }
 0x1b0   :  { %v1425_v21 = vadd.f32 %v4972_v18, %v6196_v29  ;;  %v1416_v22 = vpop.f32.mrb[5].mxu1  ;;  %v5245_v29 = vld [vmem:[#allocation3 + $0x64] ss:$8 sps:$4 sm:$0xff]   ;;  %v299_v18 = vpack.c.bf16 %v293_v16, %v293_v16  ;;  %v5335_v16 = vld [vmem:[%s6644_s10] sm:$0xff]  }
 0x1b1   :  { %v1417_v23 = vadd.f32 %v1416_v22, %v6206_v33  ;;  %v4973_v24 = vpop.f32.mrb[6].mxu1  ;;  %819 = vmatprep.subr.bf16.mxu0 %v5245_v29  ;;  %v5248_v33 = vld [vmem:[#allocation3 + $0x74] ss:$8 sps:$4 sm:$0xff]   ;;  %v5287_v22 = vld [vmem:[#allocation3 + $0x244] ss:$8 sps:$4 sm:$0xff]  }
 0x1b2   :  { %v1419_v26 = vpop.f32.mrb[7].mxu1  ;;  %820 = vmatpush1.bf16.msra.mxu0 %v5243_v36  ;;  %v5285_v24 = vld [vmem:[#allocation3 + $0x240] ss:$8 sps:$4 sm:$0xff]   ;;  %v5302_v36 = vld [vmem:[#allocation3 + $0x294] ss:$8 sps:$4 sm:$0xff]  }
 0x1b3   :  { %v1420_v30 = vadd.f32 %v1419_v26, %v6208_v35  ;;  %821 = vmatprep.subr.bf16.mxu0 %v5248_v33  ;;  %v5254_v35 = vld [vmem:[#allocation3 + $0x94] ss:$8 sps:$4 sm:$0xff]   ;;  %v5288_v26 = vld [vmem:[#allocation3 + $0x250] ss:$8 sps:$4 sm:$0xff]   ;;  %v5297_v29 = vld [vmem:[#allocation3 + $0x280] ss:$8 sps:$4 sm:$0xff]  }
 0x1b4   :  { %v5300_v33 = vld [vmem:[#allocation3 + $0x290] ss:$8 sps:$4 sm:$0xff]  }
 0x1b6   :  { %822 = vmatpush1.bf16.msra.mxu0 %v5246_v37  ;;  %v5305_v37 = vld [vmem:[#allocation3 + $0x2a4] ss:$8 sps:$4 sm:$0xff]  }
 0x1b7   :  { %823 = vmatprep.subr.bf16.mxu0 %v5251_v38  ;;  %v5303_v38 = vld [vmem:[#allocation3 + $0x2a0] ss:$8 sps:$4 sm:$0xff]  }
 0x1ba   :  { %824 = vmatpush1.bf16.msra.mxu0 %v5249_v39  ;;  %v5308_v39 = vld [vmem:[#allocation3 + $0x2b4] ss:$8 sps:$4 sm:$0xff]  }
 0x1bb   :  { %825 = vmatprep.subr.bf16.mxu0 %v5254_v35  ;;  %v5306_v35 = vld [vmem:[#allocation3 + $0x2b0] ss:$8 sps:$4 sm:$0xff]  }
 0x1be   :  { %826 = vmatpush1.bf16.msra.mxu0 %v5252_v40  ;;  %v5311_v40 = vld [vmem:[#allocation3 + $0x2c4] ss:$8 sps:$4 sm:$0xff]  }
 0x1bf   :  { %827 = vmatprep.subr.bf16.mxu0 %v5257_v41  ;;  %v5309_v41 = vld [vmem:[#allocation3 + $0x2c0] ss:$8 sps:$4 sm:$0xff]  }
 0x1c2   :  { %828 = vmatpush1.bf16.msra.mxu0 %v5255_v42  ;;  %v5314_v42 = vld [vmem:[#allocation3 + $0x2d4] ss:$8 sps:$4 sm:$0xff]  }
 0x1c3   :  { %829 = vmatprep.subr.bf16.mxu0 %v5260_v44  ;;  %v5312_v44 = vld [vmem:[#allocation3 + $0x2d0] ss:$8 sps:$4 sm:$0xff]  }
 0x1c6   :  { %830 = vmatpush1.bf16.msra.mxu0 %v5258_v45  ;;  %v5317_v45 = vld [vmem:[#allocation3 + $0x2e4] ss:$8 sps:$4 sm:$0xff]  }
 0x1c7   :  { %831 = vmatprep.subr.bf16.mxu0 %v5263_v47  ;;  %v5320_v47 = vld [vmem:[#allocation3 + $0x2f4] ss:$8 sps:$4 sm:$0xff]  }
 0x1ca   :  { %832 = vmatpush1.bf16.msra.mxu0 %v5261_v54  ;;  %v920_v54 = vrot.slane %v6188_v5, 1 }
 0x1cb   :  { %833 = vmatprep.subr.bf16.mxu0 %v5266_v58 }
 0x1ce   :  { %834 = vmatpush1.bf16.msra.mxu0 %v5264_v60 }
 0x1cf   :  { %v4992_v46 = vpop.f32.mrb[8].mxu1  ;;  %835 = vmatprep.subr.bf16.mxu0 %v5269_v63 }
 0x1d0   :  { %v1550_v48 = vadd.f32 %v4992_v46, %v1425_v21  ;;  %v1534_v50 = vpop.f32.mrb[9].mxu1  ;;  %v292_v21 = vld [vmem:[%s6666_s30 + $0x40] sm:$0x3]  ;;  %v5315_v46 = vld [vmem:[#allocation3 + $0x2e0] ss:$8 sps:$4 sm:$0xff]  }
 0x1d1   :  { %v1548_v51 = vadd.f32 %v1534_v50, %v1417_v23  ;;  %v4993_v52 = vpop.f32.mrb[10].mxu1  ;;  %v298_v23 = vpack.c.bf16 %v292_v21, %v292_v21  ;;  %v5325_v21 = vld [vmem:[#allocation7 + $0x30] sm:$0xff]  }
 0x1d2   :  { %v1537_v53 = vpop.f32.mrb[11].mxu1  ;;  %v1560_v1 = vadd.f32 %v4590_v49, %v1550_v48  ;;  %836 = vmatpush1.bf16.msra.mxu0 %v5267_v3  ;;  %v869_v48 = vld [vmem:[%s6666_s30 + $0x8] sm:$0xfc] }
 0x1d3   :  { %v1558_v56 = vadd.f32 %v4590_v49, %v1548_v51  ;;  %v1549_v57 = vadd.f32 %v1537_v53, %v1420_v30  ;;  %837 = vmatprep.subr.bf16.mxu0 %v5272_v4  ;;  %v5296_v30 = vld [vmem:[#allocation3 + $0x274] ss:$8 sps:$4 sm:$0xff]   ;;  %v873_v50 = vpack.c.bf16 %v6177_v0, %v869_v48  ;;  %v5347_v48 = vld [vmem:[#allocation11 + $0x34] ss:$8 sps:$4 sm:$0xff]  }
 0x1d4   :  { %v1563_v6 = vmax.f32 %v1560_v1, 0.0  ;;  %v868_v51 = vld [vmem:[%s6666_s30] sm:$0xfc] }
 0x1d5   :  { %v1559_v59 = vadd.f32 %v4590_v49, %v1549_v57  ;;  %v1561_v61 = vmax.f32 %v1558_v56, 0.0  ;;  %v5318_v49 = vld [vmem:[#allocation3 + $0x2f0] ss:$8 sps:$4 sm:$0xff]   ;;  %v872_v52 = vpack.c.bf16 %v6201_v31, %v868_v51  ;;  %v919_v53 = vrot.slane %v873_v50, 1 }
 0x1d6   :  { %v1565_v10 = vpack.c.bf16 %v1563_v6, %v1563_v6  ;;  %838 = vmatpush1.bf16.msra.mxu0 %v5270_v7  ;;  %v917_v57 = vrot.slane %v6220_v43, 1  ;;  %v870_v31 = vld [vmem:[%s6666_s30 + $0x40] sm:$0xf] }
 0x1d7   :  { %v1562_v62 = vmax.f32 %v1559_v59, 0.0  ;;  %1092 = vmatprep.subr.bf16.mxu0 %v5275_v9  ;;  %v916_v56 = vrot.slane %v872_v52, 1  ;;  %v921_v58 = vsel %vm6658_vm1, %v919_v53, %v920_v54  ;;  %v871_v59 = vld [vmem:[%s6666_s30 + $0x48] sm:$0xf] }
 0x1d8   :  { %v875_v60 = vpack.c.bf16 %v871_v59, %v871_v59 }
 0x1d9   :  { %v1564_v2 = vpack.c.bf16 %v1562_v62, %v1561_v61  ;;  %840 = vmatmul.mubr.bf16.vlgmr.msra.gmra.mrb[0].mxu0 %v294_v11  ;;  %v918_v0 = vsel %vm6658_vm1, %v916_v56, %v917_v57 }
 0x1da   :  { %1093 = vmatpush1.bf16.msra.mxu0 %v5273_v12  ;;  %849 = vmatprep.mubr.bf16.mxu0 %v6188_v5  ;;  %v874_v5 = vpack.c.bf16 %v870_v31, %v870_v31  ;;  %v924_v61 = vrot.slane %v875_v60, 1 }
 0x1db   :  { %1695 = vmatmul.mubr.bf16.vlgmr.msra.gmra.mrb[12].mxu1 %v1564_v2  ;;  %1094 = vmatprep.subr.bf16.mxu0 %v5278_v13 }
 0x1dc   :  { %1704 = vmatprep.mubr.bf16.mxu1 %v5853_v55  ;;  %v922_v62 = vrot.slane %v874_v5, 1 }
 0x1de   :  { %1095 = vmatpush1.bf16.msra.mxu0 %v5276_v14  ;;  %v923_v63 = vsel %vm6658_vm1, %v917_v57, %v922_v62 }
 0x1df   :  { %1096 = vmatprep.subr.bf16.mxu0 %v5281_v15  ;;  %v5321_v15 = vld [vmem:[%s6644_s10 + $0x8] sm:$0xff]  }
 0x1e1   :  { %850 = vmatmul.mubr.bf16.gmra.mrb[4].mxu0 %v6220_v43  ;;  %v925_v43 = vsel %vm6658_vm1, %v920_v54, %v924_v61 }
 0x1e2   :  { %1097 = vmatpush1.bf16.msra.mxu0 %v5279_v17  ;;  %859 = vmatprep.mubr.bf16.mxu0 %v299_v18  ;;  %v5322_v17 = vld [vmem:[#allocation7 + $0x20] sm:$0xff]   ;;  %v5854_v18 = vmov 0.0  }
 0x1e3   :  { %1705 = vmatmul.mubr.bf16.gmra.mrb[16].mxu1 %v1565_v10  ;;  %1098 = vmatprep.subr.bf16.mxu0 %v5284_v19  ;;  %v5323_v19 = vld [vmem:[#allocation7 + $0x28] sm:$0xff]  }
 0x1e4   :  { %1794 = vmatprep.mubr.bf16.mxu1 %v5853_v55 }
 0x1e6   :  { %1099 = vmatpush1.bf16.msra.mxu0 %v5282_v20  ;;  %v5324_v20 = vld [vmem:[%s6644_s10 + $0x10] ss:$0 sps:$4 sm:$0x11]  }
 0x1e7   :  { %1100 = vmatprep.subr.bf16.mxu0 %v5287_v22  ;;  %v5326_v22 = vld [vmem:[#allocation7 + $0x38] sm:$0xff]  }
 0x1e9   :  { %860 = vmatmul.mubr.bf16.gmra.mrb[12].mxu0 %v298_v23  ;;  %v1834_v23 = vld [vmem:[%s6667_s5 + $0x1] sm:$0xff] }
 0x1ea   :  { %1101 = vmatpush1.bf16.msra.mxu0 %v5285_v24  ;;  %1124 = vmatprep.mubr.bf16.mxu0 %v921_v58  ;;  %v1835_v24 = vld [vmem:[%s6667_s5 + $0x9] sm:$0x3] }
 0x1eb   :  { %1102 = vmatprep.subr.bf16.mxu0 %v5290_v25  ;;  %v1836_v25 = vpack.c.bf16 %v1835_v24, %v1834_v23 }
 0x1ee   :  { %1103 = vmatpush1.bf16.msra.mxu0 %v5288_v26  ;;  %v5327_v26 = vld [vmem:[#allocation7] sm:$0xff]  }
 0x1ef   :  { %1104 = vmatprep.subr.bf16.mxu0 %v5293_v27  ;;  %v5328_v27 = vld [vmem:[#allocation7 + $0x8] sm:$0xff]  }
 0x1f2   :  { %1105 = vmatpush1.bf16.msra.mxu0 %v5291_v28  ;;  %v5329_v28 = vld [vmem:[#allocation7 + $0x10] sm:$0xff]  }
 0x1f3   :  { %1106 = vmatprep.subr.bf16.mxu0 %v5296_v30  ;;  %v5330_v30 = vld [vmem:[#allocation7 + $0x18] sm:$0xff]  }
 0x1f6   :  { %1107 = vmatpush1.bf16.msra.mxu0 %v5294_v32  ;;  %v1823_v32 = vld [vmem:[%s6667_s5] sm:$0xff] }
 0x1f7   :  { %1108 = vmatprep.subr.bf16.mxu0 %v5299_v34  ;;  %v1824_v34 = vld [vmem:[%s6667_s5 + $0x8] sm:$0x3] }
 0x1fa   :  { %1109 = vmatpush1.bf16.msra.mxu0 %v5297_v29  ;;  %v1825_v29 = vpack.c.bf16 %v1824_v34, %v1823_v32 }
 0x1fb   :  { %1110 = vmatprep.subr.bf16.mxu0 %v5302_v36  ;;  %v5331_v36 = vld [vmem:[#allocation7 + $0x40] sm:$0xff]  }
 0x1fc   :  { %v640_v50 = vpop.f32.mrb[8].mxu0 }
 0x1fd   :  { %v642_v51 = vpop.f32.mrb[9].mxu0 }
 0x1fe   :  { %1111 = vmatpush1.bf16.msra.mxu0 %v5300_v33  ;;  %v5332_v33 = vld [vmem:[#allocation7 + $0x48] sm:$0xff]   ;;  %v644_v52 = vpop.f32.mrb[10].mxu0 }
 0x1ff   :  { %1112 = vmatprep.subr.bf16.mxu0 %v5305_v37  ;;  %v5333_v37 = vld [vmem:[#allocation7 + $0x50] sm:$0xff]   ;;  %v645_v53 = vpop.f32.mrb[11].mxu0 }
 0x202   :  { %1113 = vmatpush1.bf16.msra.mxu0 %v5303_v38  ;;  %v5334_v38 = vld [vmem:[#allocation7 + $0x58] sm:$0xff]  }
 0x203   :  { %1114 = vmatprep.subr.bf16.mxu0 %v5308_v39  ;;  %v1983_v39 = vld [vmem:[%s6667_s5 + $0x2] sm:$0xff] }
 0x206   :  { %1115 = vmatpush1.bf16.msra.mxu0 %v5306_v35  ;;  %v1984_v35 = vld [vmem:[%s6667_s5 + $0xa] sm:$0x3] }
 0x207   :  { %1116 = vmatprep.subr.bf16.mxu0 %v5311_v40  ;;  %v1985_v40 = vpack.c.bf16 %v1984_v35, %v1983_v39 }
 0x20a   :  { %1117 = vmatpush1.bf16.msra.mxu0 %v5309_v41  ;;  %v5336_v41 = vld [vmem:[#allocation11] ss:$8 sps:$4 sm:$0xff]  }
 0x20b   :  { %1118 = vmatprep.subr.bf16.mxu0 %v5314_v42  ;;  %v5338_v42 = vld [vmem:[#allocation11 + $0x4] ss:$8 sps:$4 sm:$0xff]  }
 0x20e   :  { %1119 = vmatpush1.bf16.msra.mxu0 %v5312_v44  ;;  %v5341_v44 = vld [vmem:[#allocation11 + $0x14] ss:$8 sps:$4 sm:$0xff]  }
 0x20f   :  { %1120 = vmatprep.subr.bf16.mxu0 %v5317_v45  ;;  %v5339_v45 = vld [vmem:[#allocation11 + $0x10] ss:$8 sps:$4 sm:$0xff]  }
 0x212   :  { %1121 = vmatpush1.bf16.msra.mxu0 %v5315_v46  ;;  %v5344_v46 = vld [vmem:[#allocation11 + $0x24] ss:$8 sps:$4 sm:$0xff]  }
 0x213   :  { %1122 = vmatprep.subr.bf16.mxu0 %v5320_v47  ;;  %v5342_v47 = vld [vmem:[#allocation11 + $0x20] ss:$8 sps:$4 sm:$0xff]  }
 0x216   :  { %1123 = vmatpush1.bf16.msra.mxu0 %v5318_v49  ;;  %v5345_v49 = vld [vmem:[#allocation11 + $0x30] ss:$8 sps:$4 sm:$0xff]  }
 0x219   :  { %1125 = vmatmul.mubr.bf16.vlgmr.msra.gmra.mrb[0].mxu0 %v918_v0 }
 0x21a   :  { %1134 = vmatprep.mubr.bf16.mxu0 %v925_v43 }
 0x221   :  { %1135 = vmatmul.mubr.bf16.gmra.mrb[4].mxu0 %v923_v63 }
 0x222   :  { %1144 = vmatprep.mubr.bf16.mxu0 %v924_v61 }
 0x229   :  { %1145 = vmatmul.mubr.bf16.gmra.mrb[16].mxu0 %v922_v62 }
 0x22a   :  { %1784 = vmatprep.mubr.bf16.mxu0 %v5853_v55 }
 0x2ae   :  { %v1696_v1 = vpop.f32.mrb[12].mxu1 }
 0x2af   :  { %v1698_v2 = vpop.f32.mrb[13].mxu1 }
 0x2b0   :  { %v1700_v3 = vpop.f32.mrb[14].mxu1 }
 0x2b1   :  { %v1718_v4 = vpack.c.bf16 %v1700_v3, %v1696_v1  ;;  %v1702_v6 = vpop.f32.mrb[15].mxu1 }
 0x2b2   :  { %v1719_v7 = vpack.c.bf16 %v1702_v6, %v1698_v2 }
 0x2b4   :  { %1752 = vmatprep.subr.bf16.mxu0 %v1719_v7  ;;  %5030 = vmatprep.subr.bf16.mxu1 %v1719_v7 }
 0x2b5   :  { %1753 = vmatpush1.bf16.msra.mxu0 %v1718_v4  ;;  %5032 = vmatpush1.bf16.msra.mxu1 %v1718_v4 }
 0x2b6   :  { %v1706_v8 = vpop.f32.mrb[16].mxu1 }
 0x2b7   :  { %v1720_v9 = vpack.c.bf16 %v1706_v8, %v1706_v8  ;;  %v1708_v10 = vpop.f32.mrb[17].mxu1 }
 0x2b8   :  { %v1721_v11 = vpack.c.bf16 %v1708_v10, %v1708_v10  ;;  %v1710_v12 = vpop.f32.mrb[18].mxu1 }
 0x2b9   :  { %v1747_v13 = vsel %vm1745_vm2, %v1720_v9, 0  ;;  %v1711_v14 = vpop.f32.mrb[19].mxu1  ;;  %v168_v9 = vlaneseq  ;;  %v1163_v12 = vld [vmem:[#allocation5] sm:$0x3] }
 0x2ba   :  { %4610 = vmatprep.subr.msk.bf16.mxu0 %vm1745_vm2, %v1721_v11  ;;  %5031 = vmatprep.subr.msk.bf16.mxu1 %vm1745_vm2, %v1721_v11 }
 0x2bb   :  { %1755 = vmatpush1.bf16.msra.mxu0 %v1747_v13  ;;  %5033 = vmatpush1.bf16.msra.mxu1 %v1747_v13  ;;  %v6344_v10 = vshrl.u32 %v168_v9, 7  ;;  %vm2281_vm8 = vcmp.lt.s32.totalorder %v168_v9, 256  ;;  %v5401_v9 = vld [vmem:[#allocation13 + $0x4] ss:$8 sps:$4 sm:$0xff]  }
 0x2bc   :  { %4994 = vmatprep.subr.bf16.mxu1 %v5854_v18  ;;  %2128 = vmatprep.subr.bf16.mxu0 %v5338_v42  ;;  %v861_v54 = vpop.f32.mrb[12].mxu0  ;;  %2283 = vst.msk [vmem:[#allocation2] ss:$8 sm:$0x3] %vm2281_vm8, %v5854_v18 }
 0x2bd   :  { %v862_v56 = vadd.f32 %v861_v54, %v640_v50  ;;  %v863_v57 = vpop.f32.mrb[13].mxu0  ;;  %v6347_v11 = vsub.s32 0, %v6344_v10  ;;  %v6350_v13 = vsub.s32 1, %v6344_v10  ;;  %2286 = vst.msk [vmem:[#allocation2 + $0x43] ss:$8 sm:$0x3] %vm2281_vm8, %v5854_v18 }
 0x2be   :  { %4612 = vmatmul.mubr.msk.bf16.vlgmr.msra.gmra.mrb[20].mxu1 %vm1735_vm3, %v5321_v15  ;;  %4611 = vmatmul.mubr.msk.bf16.vlgmr.msra.gmra.mrb[20].mxu0 %vm1735_vm3, %v5335_v16  ;;  %v864_v58 = vadd.f32 %v863_v57, %v642_v51  ;;  %v865_v0 = vpop.f32.mrb[14].mxu0 }
 0x2bf   :  { %4995 = vmatpush3.bf16.msra.mxu1 %v5322_v17  ;;  %1804 = vmatprep.mubr.bf16.mxu1 %v5853_v55  ;;  %v866_v59 = vpop.f32.mrb[15].mxu0  ;;  %v6353_v14 = vrot.slane %v1163_v12, %v6347_v11  ;;  %v6356_v15 = vrot.slane %v1163_v12, %v6350_v13  ;;  %v5354_v12 = vld [vmem:[#allocation13 + $0x110] ss:$8 sps:$4 sm:$0xff]  }
 0x2c0   :  { %4996 = vmatprep.subr.bf16.mxu1 %v5854_v18  ;;  %2160 = vmatprep.mubr.bf16.mxu0 %v5853_v55 }
 0x2c1   :  { %2129 = vmatpush1.bf16.msra.mxu0 %v5336_v41 }
 0x2c2   :  { %2130 = vmatprep.subr.bf16.mxu0 %v5341_v44 }
 0x2c3   :  { %4997 = vmatpush3.bf16.msra.mxu1 %v5323_v19 }
 0x2c4   :  { %4998 = vmatprep.subr.bf16.mxu1 %v5854_v18 }
 0x2c5   :  { %2131 = vmatpush1.bf16.msra.mxu0 %v5339_v45 }
 0x2c6   :  { %4613 = vmatmul.mubr.msk.bf16.gmra.mrb[24].mxu1 %vm1735_vm3, %v5324_v20  ;;  %2132 = vmatprep.subr.bf16.mxu0 %v5344_v46  ;;  %v4629_v46 = vld [vmem:[#allocation8] ss:$0 sm:$0xff] }
 0x2c7   :  { %4999 = vmatpush3.bf16.msra.mxu1 %v5325_v21  ;;  %5002 = vmatprep.mubr.msk.bf16.mxu1 %vm5855_vm4, %v5854_v18 }
 0x2c8   :  { %5000 = vmatprep.subr.bf16.mxu1 %v5854_v18 }
 0x2c9   :  { %2133 = vmatpush1.bf16.msra.mxu0 %v5342_v47 }
 0x2ca   :  { %2134 = vmatprep.subr.bf16.mxu0 %v5347_v48 }
 0x2cb   :  { %5001 = vmatpush3.bf16.msra.mxu1 %v5326_v22 }
 0x2cc   :  { %5006 = vmatprep.subr.bf16.mxu1 %v5854_v18 }
 0x2cd   :  { %2135 = vmatpush1.bf16.msra.mxu0 %v5345_v49 }
 0x2ce   :  { %5003 = vmatmul.mubr.msk.bf16.vlgmr.msra.gmra.mrb[28].mxu1 %vm1870_vm5, %v1836_v25 }
 0x2cf   :  { %5007 = vmatpush3.bf16.msra.mxu1 %v5327_v26  ;;  %5014 = vmatprep.mubr.msk.bf16.mxu1 %vm5855_vm4, %v5854_v18 }
 0x2d0   :  { %5008 = vmatprep.subr.bf16.mxu1 %v5854_v18 }
 0x2d3   :  { %5009 = vmatpush3.bf16.msra.mxu1 %v5328_v27 }
 0x2d4   :  { %5010 = vmatprep.subr.bf16.mxu1 %v5854_v18 }
 0x2d7   :  { %5011 = vmatpush3.bf16.msra.mxu1 %v5329_v28 }
 0x2d8   :  { %5012 = vmatprep.subr.bf16.mxu1 %v5854_v18 }
 0x2db   :  { %5013 = vmatpush3.bf16.msra.mxu1 %v5330_v30 }
 0x2dc   :  { %5018 = vmatprep.subr.bf16.mxu1 %v5854_v18 }
 0x2de   :  { %5015 = vmatmul.mubr.msk.bf16.vlgmr.msra.gmra.mrb[32].mxu1 %vm1870_vm5, %v1825_v29 }
 0x2df   :  { %5019 = vmatpush3.bf16.msra.mxu1 %v5331_v36  ;;  %5026 = vmatprep.mubr.msk.bf16.mxu1 %vm5855_vm4, %v5854_v18 }
 0x2e0   :  { %5020 = vmatprep.subr.bf16.mxu1 %v5854_v18 }
 0x2e3   :  { %5021 = vmatpush3.bf16.msra.mxu1 %v5332_v33 }
 0x2e4   :  { %5022 = vmatprep.subr.bf16.mxu1 %v5854_v18 }
 0x2e7   :  { %5023 = vmatpush3.bf16.msra.mxu1 %v5333_v37 }
 0x2e8   :  { %5024 = vmatprep.subr.bf16.mxu1 %v5854_v18 }
 0x2eb   :  { %5025 = vmatpush3.bf16.msra.mxu1 %v5334_v38 }
 0x2ec   :  { %v1126_v31 = vpop.f32.mrb[0].mxu0 }
 0x2ed   :  { %v1128_v60 = vpop.f32.mrb[1].mxu0  ;;  %v1175_v16 = vadd.f32 %v6353_v14, %v1126_v31 }
 0x2ee   :  { %5027 = vmatmul.mubr.msk.bf16.vlgmr.msra.gmra.mrb[36].mxu1 %vm1870_vm5, %v1985_v40  ;;  %v1130_v5 = vpop.f32.mrb[2].mxu0  ;;  %v1176_v17 = vadd.f32 %v6356_v15, %v1128_v60 }
 0x2ef   :  { %2240 = vmatprep.mubr.bf16.mxu1 %v5853_v55  ;;  %v1132_v61 = vpop.f32.mrb[3].mxu0  ;;  %v1177_v19 = vadd.f32 %v6353_v14, %v1130_v5  ;;  %v1185_v21 = vmax.f32 %v1175_v16, 0.0  ;;  %v5359_v16 = vld [vmem:[#allocation13 + $0x124] ss:$8 sps:$4 sm:$0xff]  }
 0x2f0   :  { %v1178_v20 = vadd.f32 %v6356_v15, %v1132_v61  ;;  %v1186_v22 = vmax.f32 %v1176_v17, 0.0  ;;  %v5353_v61 = vld [vmem:[#allocation13 + $0x104] ss:$8 sps:$4 sm:$0xff]   ;;  %v5349_v17 = vld [vmem:[%s6646_s12 + $0x8] sm:$0xff]  }
 0x2f1   :  { %v1187_v23 = vmax.f32 %v1177_v19, 0.0  ;;  %v5357_v19 = vld [vmem:[#allocation13 + $0x120] ss:$8 sps:$4 sm:$0xff]  }
 0x2f2   :  { %v1188_v24 = vmax.f32 %v1178_v20, 0.0  ;;  %v5362_v20 = vld [vmem:[#allocation13 + $0x134] ss:$8 sps:$4 sm:$0xff]  }
 0x2f4   :  { %v6331_v62 = vpop.f32.mrb[4].mxu0 }
 0x2f5   :  { %v6333_v43 = vpop.f32.mrb[5].mxu0 }
 0x2f6   :  { %v6335_v63 = vpop.f32.mrb[6].mxu0 }
 0x2f7   :  { %v6337_v1 = vpop.f32.mrb[7].mxu0 }
 0x2fc   :  { %v1146_v2 = vpop.f32.mrb[16].mxu0 }
 0x2fd   :  { %v6339_v3 = vadd.f32 %v1146_v2, %v862_v56  ;;  %v1148_v4 = vpop.f32.mrb[17].mxu0 }
 0x2fe   :  { %v6341_v6 = vadd.f32 %v1148_v4, %v864_v58  ;;  %v1150_v7 = vpop.f32.mrb[18].mxu0  ;;  %v5348_v4 = vld [vmem:[%s6646_s12] sm:$0xff]  }
 0x2ff   :  { %v1151_v8 = vpop.f32.mrb[19].mxu0  ;;  %v5351_v7 = vld [vmem:[#allocation13 + $0x100] ss:$8 sps:$4 sm:$0xff]  }
 0x300   :  { %v5356_v8 = vld [vmem:[#allocation13 + $0x114] ss:$8 sps:$4 sm:$0xff]  }
 0x391   :  { %v1786_v25 = vpop.f32.mrb[20].mxu0 }
 0x392   :  { %v6362_v26 = vadd.f32 %v1786_v25, %v1185_v21  ;;  %v1788_v27 = vpop.f32.mrb[21].mxu0  ;;  %v5360_v21 = vld [vmem:[#allocation13 + $0x130] ss:$8 sps:$4 sm:$0xff]   ;;  %v5368_v25 = vld [vmem:[#allocation13 + $0x154] ss:$8 sps:$4 sm:$0xff]  }
 0x393   :  { %v6364_v28 = vadd.f32 %v1788_v27, %v1186_v22  ;;  %v1790_v30 = vpop.f32.mrb[22].mxu0  ;;  %v5365_v22 = vld [vmem:[#allocation13 + $0x144] ss:$8 sps:$4 sm:$0xff]   ;;  %v5366_v27 = vld [vmem:[#allocation13 + $0x150] ss:$8 sps:$4 sm:$0xff]  }
 0x394   :  { %v6366_v32 = vadd.f32 %v1790_v30, %v1187_v23  ;;  %v1792_v34 = vpop.f32.mrb[23].mxu0  ;;  %v5350_v23 = vld [vmem:[%s6646_s12 + $0x10] ss:$0 sps:$4 sm:$0x11]   ;;  %v5371_v30 = vld [vmem:[#allocation13 + $0x164] ss:$8 sps:$4 sm:$0xff]  }
 0x395   :  { %v6368_v29 = vadd.f32 %v1792_v34, %v1188_v24  ;;  %v5363_v24 = vld [vmem:[#allocation13 + $0x140] ss:$8 sps:$4 sm:$0xff]   ;;  %v5374_v34 = vld [vmem:[#allocation13 + $0x174] ss:$8 sps:$4 sm:$0xff]  }
 0x3a1   :  { %v1908_v36 = vpop.f32.mrb[28].mxu1 }
 0x3a2   :  { %v5004_v33 = vpop.f32.mrb[29].mxu1 }
 0x3a3   :  { %v1911_v37 = vpop.f32.mrb[30].mxu1  ;;  %v5377_v33 = vld [vmem:[#allocation13 + $0x184] ss:$8 sps:$4 sm:$0xff]  }
 0x3a4   :  { %v5005_v38 = vpop.f32.mrb[31].mxu1 }
 0x3a5   :  { %v5380_v38 = vld [vmem:[#allocation13 + $0x194] ss:$8 sps:$4 sm:$0xff]  }
 0x3b1   :  { %v1976_v39 = vpop.f32.mrb[32].mxu1 }
 0x3b2   :  { %v1977_v35 = vadd.f32 %v1976_v39, %v1908_v36  ;;  %v5016_v40 = vpop.f32.mrb[33].mxu1  ;;  %v5372_v36 = vld [vmem:[#allocation13 + $0x170] ss:$8 sps:$4 sm:$0xff]  }
 0x3b3   :  { %v1979_v41 = vpop.f32.mrb[34].mxu1  ;;  %v5378_v39 = vld [vmem:[#allocation13 + $0x190] ss:$8 sps:$4 sm:$0xff]   ;;  %v5381_v40 = vld [vmem:[#allocation13 + $0x1a0] ss:$8 sps:$4 sm:$0xff]  }
 0x3b4   :  { %v1980_v42 = vadd.f32 %v1979_v41, %v1911_v37  ;;  %v5017_v44 = vpop.f32.mrb[35].mxu1  ;;  %v5375_v37 = vld [vmem:[#allocation13 + $0x180] ss:$8 sps:$4 sm:$0xff]   ;;  %v5386_v41 = vld [vmem:[#allocation13 + $0x1b4] ss:$8 sps:$4 sm:$0xff]  }
 0x3b5   :  { %v5389_v44 = vld [vmem:[#allocation13 + $0x1c4] ss:$8 sps:$4 sm:$0xff]  }
 0x3c1   :  { %v2056_v45 = vpop.f32.mrb[36].mxu1 }
 0x3c2   :  { %v2063_v47 = vadd.f32 %v2056_v45, %v1977_v35  ;;  %v5028_v48 = vpop.f32.mrb[37].mxu1  ;;  %v5383_v35 = vld [vmem:[#allocation13 + $0x1a4] ss:$8 sps:$4 sm:$0xff]   ;;  %v5387_v45 = vld [vmem:[#allocation13 + $0x1c0] ss:$8 sps:$4 sm:$0xff]  }
 0x3c3   :  { %v2059_v49 = vpop.f32.mrb[38].mxu1  ;;  %v5395_v48 = vld [vmem:[#allocation13 + $0x1e4] ss:$8 sps:$4 sm:$0xff]  }
 0x3c4   :  { %v2072_v50 = vadd.f32 %v4629_v46, %v2063_v47  ;;  %v2064_v51 = vadd.f32 %v2059_v49, %v1980_v42  ;;  %v5029_v52 = vpop.f32.mrb[39].mxu1  ;;  %v5384_v42 = vld [vmem:[#allocation13 + $0x1b0] ss:$8 sps:$4 sm:$0xff]   ;;  %v5393_v49 = vld [vmem:[#allocation13 + $0x1e0] ss:$8 sps:$4 sm:$0xff]  }
 0x3c5   :  { %v5390_v47 = vld [vmem:[#allocation13 + $0x1d0] ss:$8 sps:$4 sm:$0xff]   ;;  %v170_v52 = vadd.s32 8, %v6344_v10 }
 0x3c6   :  { %v2073_v53 = vadd.f32 %v4629_v46, %v2064_v51  ;;  %v2074_v54 = vmax.f32 %v2072_v50, 0.0  ;;  %v5392_v46 = vld [vmem:[#allocation13 + $0x1d4] ss:$8 sps:$4 sm:$0xff]   ;;  %v5396_v51 = vld [vmem:[#allocation13 + $0x1f0] ss:$8 sps:$4 sm:$0xff]  }
 0x3c7   :  { %v5398_v50 = vld [vmem:[#allocation13 + $0x1f4] ss:$8 sps:$4 sm:$0xff]  }
 0x3c8   :  { %v2075_v56 = vmax.f32 %v2073_v53, 0.0  ;;  %v174_v53 = vadd.s32 1, %v6344_v10 }
 0x3ca   :  { %v2076_v57 = vpack.c.bf16 %v2075_v56, %v2074_v54  ;;  %v175_v54 = vadd.s32 1, %v170_v52  ;;  %v171_v56 = vadd.s32 16, %v6344_v10 }
 0x3cc   :  { %4638 = vmatmul.mubr.msk.bf16.vlgmr.msra.gmra.mrb[24].mxu0 %vm1870_vm5, %v2076_v57 }
 0x49f   :  { %v2162_v58 = vpop.f32.mrb[24].mxu0 }
 0x4a0   :  { %v2164_v0 = vpop.f32.mrb[25].mxu0 }
 0x4a1   :  { %v2166_v59 = vpop.f32.mrb[26].mxu0 }
 0x4a2   :  { %v2176_v31 = vpack.c.bf16 %v2166_v59, %v2162_v58  ;;  %v2168_v60 = vpop.f32.mrb[27].mxu0  ;;  %v6391_v57 = vmul.u32.u64.low 3817748708, %v174_v53  ;;  %v6392_v58 = vmul.u32.u64.high 3817748708, %v174_v53, %v6391_v57 }
 0x4a3   :  { %v2177_v5 = vpack.c.bf16 %v2168_v60, %v2164_v0  ;;  %v172_v0 = vadd.s32 24, %v6344_v10  ;;  %v176_v60 = vadd.s32 1, %v171_v56  ;;  %v1182_v57 = vadd.f32 %v6356_v15, %v6337_v1 }
 0x4a4   :  { %v2203_v2 = vsel %vm2201_vm6, %v2176_v31, 0  ;;  %v6395_v59 = vmul.u32.u64.low 3817748708, %v175_v54  ;;  %v6396_v31 = vmul.u32.u64.high 3817748708, %v175_v54, %v6395_v59 }
 0x4a5   :  { %4642 = vmatprep.subr.msk.bf16.mxu1 %vm2201_vm6, %v2177_v5  ;;  %v177_v5 = vadd.s32 1, %v172_v0 }
 0x4a6   :  { %2209 = vmatpush1.bf16.msra.mxu1 %v2203_v2 }
 0x4a7   :  { %2647 = vmatprep.subr.bf16.mxu1 %v5353_v61  ;;  %v6398_v61 = vmul.u32.u64.low 3817748708, %v176_v60  ;;  %v6399_v2 = vmul.u32.u64.high 3817748708, %v176_v60, %v6398_v61 }
 0x4a9   :  { %4643 = vmatmul.mubr.msk.bf16.vlgmr.msra.gmra.mrb[40].mxu1 %vm2191_vm7, %v5348_v4  ;;  %v185_v4 = vshrl.u32 %v6392_v58, 4 }
 0x4aa   :  { %2250 = vmatprep.mubr.bf16.mxu1 %v5853_v55  ;;  %2648 = vmatpush1.bf16.msra.mxu1 %v5351_v7 }
 0x4ab   :  { %2649 = vmatprep.subr.bf16.mxu1 %v5356_v8  ;;  %v6402_v7 = vmul.u32.u64.low 3817748708, %v177_v5  ;;  %v6403_v8 = vmul.u32.u64.high 3817748708, %v177_v5, %v6402_v7 }
 0x4ae   :  { %2650 = vmatpush1.bf16.msra.mxu1 %v5354_v12  ;;  %v173_v12 = vadd.s32 32, %v6344_v10 }
 0x4af   :  { %2651 = vmatprep.subr.bf16.mxu1 %v5359_v16  ;;  %v196_v16 = vshrl.u32 %v6396_v31, 4 }
 0x4b1   :  { %4644 = vmatmul.mubr.msk.bf16.gmra.mrb[20].mxu1 %vm2191_vm7, %v5349_v17  ;;  %v186_v17 = vmul.u32 18, %v185_v4 }
 0x4b2   :  { %2260 = vmatprep.mubr.bf16.mxu1 %v5853_v55  ;;  %2652 = vmatpush1.bf16.msra.mxu1 %v5357_v19  ;;  %v5369_v55 = vld [vmem:[#allocation13 + $0x160] ss:$8 sps:$4 sm:$0xff]   ;;  %v178_v19 = vadd.s32 1, %v173_v12  ;;  %v1183_v12 = vadd.f32 %v6353_v14, %v6339_v3  ;;  %v1184_v3 = vadd.f32 %v6356_v15, %v6341_v6 }
 0x4b3   :  { %2653 = vmatprep.subr.bf16.mxu1 %v5362_v20  ;;  %v197_v20 = vmul.u32 18, %v196_v16 }
 0x4b4   :  { %v1194_v6 = vmax.f32 %v1184_v3, 0.0 }
 0x4b6   :  { %2654 = vmatpush1.bf16.msra.mxu1 %v5360_v21  ;;  %v207_v21 = vshrl.u32 %v6399_v2, 4  ;;  %v1192_v2 = vmax.f32 %v1182_v57, 0.0 }
 0x4b7   :  { %2655 = vmatprep.subr.bf16.mxu1 %v5365_v22  ;;  %v187_v22 = vsub.s32 %v174_v53, %v186_v17 }
 0x4b9   :  { %4645 = vmatmul.mubr.msk.bf16.gmra.mrb[24].mxu1 %vm2191_vm7, %v5350_v23  ;;  %v218_v23 = vshrl.u32 %v6403_v8, 4  ;;  %vm234_vm9 = vcmp.ne.s32.totalorder %v187_v22, 0  ;;  %vm239_vm10 = vcmp.lt.s32.totalorder %v187_v22, 0  ;;  %v249_v10 = vadd.s32 18, %v187_v22 }
 0x4ba   :  { %2656 = vmatpush1.bf16.msra.mxu1 %v5363_v24  ;;  %vm244_vm13 = vmand %vm239_vm10, %vm234_vm9 }
 0x4bb   :  { %2657 = vmatprep.subr.bf16.mxu1 %v5368_v25  ;;  %v6409_v24 = vmul.u32.u64.low 3817748708, %v178_v19  ;;  %v6410_v25 = vmul.u32.u64.high 3817748708, %v178_v19, %v6409_v24 }
 0x4be   :  { %2658 = vmatpush1.bf16.msra.mxu1 %v5366_v27  ;;  %v198_v27 = vsub.s32 %v175_v54, %v197_v20 }
 0x4bf   :  { %2659 = vmatprep.subr.bf16.mxu1 %v5371_v30  ;;  %v208_v30 = vmul.u32 18, %v207_v21 }
 0x4c0   :  { %vm235_vm11 = vcmp.ne.s32.totalorder %v198_v27, 0  ;;  %vm240_vm12 = vcmp.lt.s32.totalorder %v198_v27, 0 }
 0x4c1   :  { %vm245_vm14 = vmand %vm240_vm12, %vm235_vm11 }
 0x4c2   :  { %2660 = vmatpush1.bf16.msra.mxu1 %v5369_v55  ;;  %v219_v55 = vmul.u32 18, %v218_v23 }
 0x4c3   :  { %2661 = vmatprep.subr.bf16.mxu1 %v5374_v34  ;;  %v250_v34 = vadd.s32 18, %v198_v27 }
 0x4c6   :  { %2662 = vmatpush1.bf16.msra.mxu1 %v5372_v36  ;;  %v209_v36 = vsub.s32 %v176_v60, %v208_v30 }
 0x4c7   :  { %2663 = vmatprep.subr.bf16.mxu1 %v5377_v33  ;;  %v220_v33 = vsub.s32 %v177_v5, %v219_v55 }
 0x4c8   :  { %vm236_vm15 = vcmp.ne.s32.totalorder %v209_v36, 0  ;;  %vm241_vm3 = vcmp.lt.s32.totalorder %v209_v36, 0 }
 0x4c9   :  { %vm237_vm4 = vcmp.ne.s32.totalorder %v220_v33, 0  ;;  %vm242_vm5 = vcmp.lt.s32.totalorder %v220_v33, 0  ;;  %vm246_vm0 = vmand %vm241_vm3, %vm236_vm15 }
 0x4ca   :  { %2664 = vmatpush1.bf16.msra.mxu1 %v5375_v37  ;;  %v229_v37 = vshrl.u32 %v6410_v25, 4  ;;  %vm247_vm9 = vmand %vm242_vm5, %vm237_vm4 }
 0x4cb   :  { %2665 = vmatprep.subr.bf16.mxu1 %v5380_v38  ;;  %v254_v38 = vsel %vm244_vm13, %v249_v10, %v187_v22 }
 0x4cc   :  { %vm259_vm6 = vcmp.ge.s32.totalorder %v254_v38, 1  ;;  %vm264_vm7 = vcmp.le.s32.totalorder %v254_v38, 16 }
 0x4cd   :  { %vm269_vm10 = vmand %vm259_vm6, %vm264_vm7 }
 0x4ce   :  { %2666 = vmatpush1.bf16.msra.mxu1 %v5378_v39  ;;  %v255_v39 = vsel %vm245_vm14, %v250_v34, %v198_v27 }
 0x4cf   :  { %2667 = vmatprep.subr.bf16.mxu1 %v5383_v35  ;;  %v230_v35 = vmul.u32 18, %v229_v37  ;;  %vm260_vm8 = vcmp.ge.s32.totalorder %v255_v39, 1  ;;  %vm265_vm1 = vcmp.le.s32.totalorder %v255_v39, 16 }
 0x4d0   :  { %vm270_vm11 = vmand %vm260_vm8, %vm265_vm1 }
 0x4d2   :  { %2668 = vmatpush1.bf16.msra.mxu1 %v5381_v40  ;;  %v251_v40 = vadd.s32 18, %v209_v36 }
 0x4d3   :  { %2669 = vmatprep.subr.bf16.mxu1 %v5386_v41  ;;  %v252_v41 = vadd.s32 18, %v220_v33 }
 0x4d6   :  { %2670 = vmatpush1.bf16.msra.mxu1 %v5384_v42  ;;  %v231_v42 = vsub.s32 %v178_v19, %v230_v35 }
 0x4d7   :  { %2671 = vmatprep.subr.bf16.mxu1 %v5389_v44  ;;  %v256_v44 = vsel %vm246_vm0, %v251_v40, %v209_v36 }
 0x4d8   :  { %vm238_vm12 = vcmp.ne.s32.totalorder %v231_v42, 0  ;;  %vm243_vm1 = vcmp.lt.s32.totalorder %v231_v42, 0  ;;  %vm261_vm0 = vcmp.ge.s32.totalorder %v256_v44, 1  ;;  %vm266_vm13 = vcmp.le.s32.totalorder %v256_v44, 16 }
 0x4d9   :  { %v253_v56 = vadd.s32 18, %v231_v42  ;;  %vm248_vm3 = vmand %vm243_vm1, %vm238_vm12  ;;  %vm6674_vm1 = vcmask 1046528  }
 0x4da   :  { %2672 = vmatpush1.bf16.msra.mxu1 %v5387_v45  ;;  %v257_v45 = vsel %vm247_vm9, %v252_v41, %v220_v33  ;;  %vm271_vm4 = vmand %vm261_vm0, %vm266_vm13  ;;  %v1193_v33 = vmax.f32 %v1183_v12, 0.0  ;;  %vm6670_vm9 = vsmask.f32 7424  ;;  %v5404_v12 = vld [vmem:[#allocation13 + $0x14] ss:$8 sps:$4 sm:$0xff]  }
 0x4db   :  { %2673 = vmatprep.subr.bf16.mxu1 %v5392_v46  ;;  %v1179_v46 = vadd.f32 %v6353_v14, %v6331_v62  ;;  %vm262_vm14 = vcmp.ge.s32.totalorder %v257_v45, 1  ;;  %vm267_vm15 = vcmp.le.s32.totalorder %v257_v45, 16  ;;  %v258_v5 = vsel %vm248_vm3, %v253_v56, %v231_v42  ;;  %vm6673_vm12 = vmmov %vm6670_vm9 }
 0x4dc   :  { %vm6439_vm5 = vmand %vm262_vm14, %vm267_vm15  ;;  %v6444_v7 = vsel %vm271_vm4, 1.0, %v5854_v18  ;;  %vm263_vm6 = vcmp.ge.s32.totalorder %v258_v5, 1  ;;  %vm268_vm7 = vcmp.le.s32.totalorder %v258_v5, 16 }
 0x4dd   :  { %v1189_v1 = vmax.f32 %v1179_v46, 0.0  ;;  %v6454_v20 = vsel %vm6439_vm5, 1.0, %v5854_v18  ;;  %vm273_vm8 = vmand %vm263_vm6, %vm268_vm7 }
 0x4de   :  { %2674 = vmatpush1.bf16.msra.mxu1 %v5390_v47  ;;  %v1180_v47 = vadd.f32 %v6356_v15, %v6333_v43  ;;  %v6469_v42 = vsel %vm273_vm8, 1.0, %v5854_v18  ;;  %vm6675_vm0 = vmmov %vm6674_vm1 }
 0x4df   :  { %2675 = vmatprep.subr.bf16.mxu1 %v5395_v48  ;;  %v6418_v48 = vsel %vm269_vm10, 1.0, %v5854_v18  ;;  %vm6671_vm10 = vmmov %vm6670_vm9 }
 0x4e0   :  { %v1190_v60 = vmax.f32 %v1180_v47, 0.0  ;;  %vm6676_vm13 = vmmov %vm6675_vm0 }
 0x4e1   :  { %vm6677_vm14 = vmmov %vm6675_vm0 }
 0x4e2   :  { %2676 = vmatpush1.bf16.msra.mxu1 %v5393_v49  ;;  %vm6678_vm15 = vmmov %vm6670_vm9 }
 0x4e3   :  { %2677 = vmatprep.subr.bf16.mxu1 %v5398_v50  ;;  %vm6679_vm3 = vmmov %vm6670_vm9 }
 0x4e4   :  { %vm6682_vm5 = vmmov %vm6675_vm0 }
 0x4e5   :  { %vm6683_vm6 = vmmov %vm6675_vm0 }
 0x4e6   :  { %2678 = vmatpush1.bf16.msra.mxu1 %v5396_v51  ;;  %vm6684_vm7 = vmmov %vm6675_vm0 }
 0x4e7   :  { %2868 = vmatprep.subr.bf16.mxu1 %v5401_v9  ;;  %v6422_v9 = vsel %vm270_vm11, 1.0, %v5854_v18  ;;  %vm6672_vm11 = vmmov %vm6670_vm9 }
 0x4e8   :  { %vm6685_vm8 = vmmov %vm6675_vm0 }
 0x57c   :  { %v2242_v49 = vpop.f32.mrb[40].mxu1 }
 0x57d   :  { %v2269_v50 = vadd.f32 %v2242_v49, %v6362_v26  ;;  %v2244_v51 = vpop.f32.mrb[41].mxu1  ;;  %v1181_v26 = vadd.f32 %v6353_v14, %v6335_v63 }
 0x57e   :  { %v2270_v52 = vadd.f32 %v2244_v51, %v6364_v28  ;;  %v2246_v53 = vpop.f32.mrb[42].mxu1 }
 0x57f   :  { %v2288_v62 = vmul.f32 %v6418_v48, %v2269_v50  ;;  %v2271_v43 = vadd.f32 %v2246_v53, %v6366_v32  ;;  %v2248_v54 = vpop.f32.mrb[43].mxu1  ;;  %v1191_v61 = vmax.f32 %v1181_v26, 0.0 }
 0x580   :  { %v2289_v58 = vmul.f32 %v6418_v48, %v2270_v52  ;;  %v2272_v28 = vadd.f32 %v2248_v54, %v6368_v29 }
 0x581   :  { %v2308_v0 = vrot.slane %v2288_v62, 7  ;;  %v2290_v59 = vmul.f32 %v6422_v9, %v2271_v43 }
 0x582   :  { %v2309_v32 = vrot.slane %v2289_v58, 7  ;;  %v2291_v31 = vmul.f32 %v6422_v9, %v2272_v28 }
 0x583   :  { %2336 = vst [vmem:[#allocation2] sm:$0xfe] %v2308_v0  ;;  %v2310_v29 = vrot.slane %v2290_v59, 7 }
 0x584   :  { %2337 = vst [vmem:[#allocation2 + $0x8] sm:$0xfe] %v2309_v32  ;;  %v2312_v4 = vrot.slane %v2291_v31, 7  ;;  %v2252_v8 = vpop.f32.mrb[20].mxu1 }
 0x585   :  { %v6449_v16 = vsel %vm1745_vm2, %v2308_v0, %v2310_v29  ;;  %v5042_v17 = vadd.f32 %v2252_v8, %v1189_v1  ;;  %v2254_v19 = vpop.f32.mrb[21].mxu1 }
 0x586   :  { %v6457_v21 = vsel %vm1745_vm2, %v2309_v32, %v2312_v4  ;;  %v5043_v22 = vadd.f32 %v2254_v19, %v1190_v60  ;;  %v2256_v23 = vpop.f32.mrb[22].mxu1  ;;  %v5402_v19 = vld [vmem:[#allocation13 + $0x10] ss:$8 sps:$4 sm:$0xff]  }
 0x587   :  { %v2292_v14 = vmul.f32 %v5042_v17, %v6444_v7  ;;  %v5044_v24 = vadd.f32 %v2256_v23, %v1191_v61  ;;  %v2258_v25 = vpop.f32.mrb[23].mxu1 }
 0x588   :  { %v2293_v27 = vmul.f32 %v5043_v22, %v6444_v7  ;;  %v5045_v30 = vadd.f32 %v2258_v25, %v1192_v2  ;;  %v5407_v22 = vld [vmem:[#allocation13 + $0x24] ss:$8 sps:$4 sm:$0xff]  }
 0x589   :  { %v2314_v55 = vrot.slane %v2292_v14, 7  ;;  %v2294_v10 = vmul.f32 %v5044_v24, %v6454_v20  ;;  %v5405_v14 = vld [vmem:[#allocation13 + $0x20] ss:$8 sps:$4 sm:$0xff]  }
 0x58a   :  { %v2316_v34 = vrot.slane %v2293_v27, 7  ;;  %v2295_v36 = vmul.f32 %v5045_v30, %v6454_v20  ;;  %v2394_v37 = vld [vmem:[#allocation2] sm:$0xfe]  ;;  %v5410_v27 = vld [vmem:[#allocation13 + $0x34] ss:$8 sps:$4 sm:$0xff]  }
 0x58b   :  { %v2315_v38 = vsel %vm1745_vm2, %v2310_v29, %v2314_v55  ;;  %v2318_v39 = vrot.slane %v2294_v10, 7  ;;  %v2395_v15 = vld [vmem:[#allocation2 + $0x8] sm:$0xfe]  ;;  %v2398_v35 = vpack.c.bf16 %v6449_v16, %v2394_v37 }
 0x58c   :  { %v2317_v40 = vsel %vm1745_vm2, %v2312_v4, %v2316_v34  ;;  %v2320_v41 = vrot.slane %v2295_v36, 7  ;;  %v2262_v44 = vpop.f32.mrb[24].mxu1  ;;  %v2399_v45 = vpack.c.bf16 %v6457_v21, %v2395_v15  ;;  %v5399_v4 = vld [vmem:[#allocation13] ss:$8 sps:$4 sm:$0xff]  }
 0x58d   :  { %v2319_v46 = vsel %vm1745_vm2, %v2314_v55, %v2318_v39  ;;  %v5046_v47 = vadd.f32 %v2262_v44, %v1193_v33  ;;  %v2264_v49 = vpop.f32.mrb[25].mxu1  ;;  %v2438_v50 = vshll.u32 %v2398_v35, 16  ;;  %v2436_v0 = vshrl.u32 %v2398_v35, 16  ;;  %v5408_v33 = vld [vmem:[#allocation13 + $0x30] ss:$8 sps:$4 sm:$0xff]  }
 0x58e   :  { %v2321_v51 = vsel %vm1745_vm2, %v2316_v34, %v2320_v41  ;;  %v5047_v52 = vadd.f32 %v2264_v49, %v1194_v6  ;;  %v2266_v53 = vpop.f32.mrb[26].mxu1  ;;  %v2450_v62 = vshll.u32 %v2399_v45, 16  ;;  %v6477_v18 = vpack.c.bf16 %v2319_v46, %v2315_v38  ;;  %v5413_v6 = vld [vmem:[#allocation13 + $0x44] ss:$8 sps:$4 sm:$0xff]   ;;  %v5411_v44 = vld [vmem:[#allocation13 + $0x40] ss:$8 sps:$4 sm:$0xff]  }
 0x58f   :  { %v2296_v43 = vmul.f32 %v5046_v47, %v6469_v42  ;;  %v2267_v54 = vpop.f32.mrb[27].mxu1  ;;  %v6475_v56 = vpack.c.bf16 %v2321_v51, %v2317_v40  ;;  %v2440_v26 = vrot.slane %v2438_v50, 1  ;;  %v2448_v58 = vshrl.u32 %v2399_v45, 16  ;;  %v5416_v45 = vld [vmem:[#allocation13 + $0x54] ss:$8 sps:$4 sm:$0xff]  }
 0x590   :  { %v2297_v57 = vmul.f32 %v5047_v52, %v6469_v42  ;;  %v2452_v28 = vrot.slane %v2450_v62, 1  ;;  %v2443_v31 = vshll.u32 %v6477_v18, 16  ;;  %v2459_v34 = vshrl.u32 %v6477_v18, 16  ;;  %v5414_v46 = vld [vmem:[#allocation13 + $0x50] ss:$8 sps:$4 sm:$0xff]  }
 0x591   :  { %v2322_v59 = vrot.slane %v2296_v43, 7  ;;  %v2455_v32 = vshll.u32 %v6475_v56, 16  ;;  %v2441_v60 = vor.u32 %v2440_v26, %v2436_v0  ;;  %v2467_v55 = vshrl.u32 %v6475_v56, 16  ;;  %v2347_v49 = vld [vmem:[#allocation2 + $0x8] sm:$0xff]  ;;  %v5419_v50 = vld [vmem:[#allocation13 + $0x64] ss:$8 sps:$4 sm:$0xff]  }
 0x592   :  { %v2324_v63 = vrot.slane %v2297_v57, 7  ;;  %v2453_v1 = vor.u32 %v2452_v28, %v2448_v58  ;;  %v2445_v61 = vrot.slane %v2443_v31, 1  ;;  %v2357_v52 = vpack.c.bf16 %v6457_v21, %v2347_v49  ;;  %v5417_v53 = vld [vmem:[#allocation13 + $0x60] ss:$8 sps:$4 sm:$0xff]   ;;  %v5422_v62 = vld [vmem:[#allocation13 + $0x74] ss:$8 sps:$4 sm:$0xff]  }
 0x593   :  { %v2323_v29 = vsel %vm1745_vm2, %v2318_v39, %v2322_v59  ;;  %v2457_v5 = vrot.slane %v2455_v32, 1  ;;  %v5420_v43 = vld [vmem:[#allocation13 + $0x70] ss:$8 sps:$4 sm:$0xff]   ;;  %v5425_v54 = vld [vmem:[#allocation13 + $0x84] ss:$8 sps:$4 sm:$0xff]  }
 0x594   :  { %2344 = vst [vmem:[#allocation2 + $0x40] sm:$0x7] %v2323_v29  ;;  %v2325_v2 = vsel %vm1745_vm2, %v2320_v41, %v2324_v63  ;;  %v2446_v17 = vsel %vm6671_vm10, %v2441_v60, %v2445_v61  ;;  %v2461_v15 = vor.u32 %v2459_v34, %v2445_v61  ;;  %v5423_v26 = vld [vmem:[#allocation13 + $0x80] ss:$8 sps:$4 sm:$0xff]   ;;  %v5428_v57 = vld [vmem:[#allocation13 + $0x94] ss:$8 sps:$4 sm:$0xff]  }
 0x595   :  { %2345 = vst [vmem:[#allocation2 + $0x48] sm:$0x7] %v2325_v2  ;;  %v2458_v8 = vsel %vm6670_vm9, %v2453_v1, %v2457_v5  ;;  %v2469_v37 = vor.u32 %v2467_v55, %v2457_v5  ;;  %v5426_v58 = vld [vmem:[#allocation13 + $0x90] ss:$8 sps:$4 sm:$0xff]   ;;  %v5431_v28 = vld [vmem:[#allocation13 + $0xa4] ss:$8 sps:$4 sm:$0xff]  }
 0x596   :  { %2679 = vmatprep.mubr.bf16.mxu1 %v2458_v8  ;;  %v5429_v0 = vld [vmem:[#allocation13 + $0xa0] ss:$8 sps:$4 sm:$0xff]   ;;  %v5434_v59 = vld [vmem:[#allocation13 + $0xb4] ss:$8 sps:$4 sm:$0xff]   ;;  %v5432_v32 = vld [vmem:[#allocation13 + $0xb0] ss:$8 sps:$4 sm:$0xff]  }
 0x597   :  { %2680 = vmatmul.mubr.bf16.vlgmr.msra.gmra.mrb[44].mxu1 %v2446_v17  ;;  %v5437_v31 = vld [vmem:[#allocation13 + $0xc4] ss:$8 sps:$4 sm:$0xff]   ;;  %v5435_v63 = vld [vmem:[#allocation13 + $0xc0] ss:$8 sps:$4 sm:$0xff]   ;;  %v5440_v1 = vld [vmem:[#allocation13 + $0xd4] ss:$8 sps:$4 sm:$0xff]  }
 0x598   :  { %2869 = vmatpush1.bf16.msra.mxu1 %v5399_v4  ;;  %v5438_v60 = vld [vmem:[#allocation13 + $0xd0] ss:$8 sps:$4 sm:$0xff]   ;;  %v5443_v29 = vld [vmem:[#allocation13 + $0xe4] ss:$8 sps:$4 sm:$0xff]   ;;  %v5441_v5 = vld [vmem:[#allocation13 + $0xe0] ss:$8 sps:$4 sm:$0xff]  }
 0x599   :  { %2870 = vmatprep.subr.bf16.mxu1 %v5404_v12  ;;  %v5446_v61 = vld [vmem:[#allocation13 + $0xf4] ss:$8 sps:$4 sm:$0xff]   ;;  %v5444_v2 = vld [vmem:[#allocation13 + $0xf0] ss:$8 sps:$4 sm:$0xff]   ;;  %v5449_v4 = vld [vmem:[#allocation13 + $0x204] ss:$8 sps:$4 sm:$0xff]  }
 0x59a   :  { %v2346_v8 = vld [vmem:[#allocation2] sm:$0xff]  ;;  %v5447_v12 = vld [vmem:[#allocation13 + $0x200] ss:$8 sps:$4 sm:$0xff]  }
 0x59b   :  { %v2396_v23 = vld [vmem:[#allocation2 + $0x40] sm:$0x7]  ;;  %v2356_v17 = vpack.c.bf16 %v6449_v16, %v2346_v8 }
 0x59c   :  { %2871 = vmatpush1.bf16.msra.mxu1 %v5402_v19  ;;  %v2397_v3 = vld [vmem:[#allocation2 + $0x48] sm:$0x7]  ;;  %v2400_v24 = vpack.c.bf16 %v2396_v23, %v2396_v23  ;;  %v5455_v23 = vld [vmem:[#allocation13 + $0x224] ss:$8 sps:$4 sm:$0xff]  }
 0x59d   :  { %v2401_v25 = vpack.c.bf16 %v2397_v3, %v2397_v3  ;;  %2872 = vmatprep.subr.bf16.mxu1 %v5407_v22  ;;  %v5452_v19 = vld [vmem:[#allocation13 + $0x214] ss:$8 sps:$4 sm:$0xff]   ;;  %v5450_v22 = vld [vmem:[#allocation13 + $0x210] ss:$8 sps:$4 sm:$0xff]   ;;  %v5461_v55 = vld [vmem:[#allocation13 + $0x244] ss:$8 sps:$4 sm:$0xff]  }
 0x59e   :  { %v2463_v30 = vshll.u32 %v2400_v24, 16  ;;  %v2475_v47 = vshrl.u32 %v2400_v24, 16  ;;  %v2355_v3 = vld [vmem:[#allocation2 + $0x48] sm:$0x3]  ;;  %v2354_v34 = vld [vmem:[#allocation2 + $0x40] sm:$0x3] }
 0x59f   :  { %v2471_v10 = vshll.u32 %v2401_v25, 16  ;;  %v2478_v39 = vshrl.u32 %v2401_v25, 16  ;;  %v5458_v24 = vld [vmem:[#allocation13 + $0x234] ss:$8 sps:$4 sm:$0xff]   ;;  %v2361_v25 = vpack.c.bf16 %v2355_v3, %v2355_v3  ;;  %v5479_v49 = vld [vmem:[#allocation13 + $0x2a4] ss:$8 sps:$4 sm:$0xff]  }
 0x5a0   :  { %v2465_v36 = vrot.slane %v2463_v30, 1  ;;  %2873 = vmatpush1.bf16.msra.mxu1 %v5405_v14  ;;  %v5453_v14 = vld [vmem:[#allocation13 + $0x220] ss:$8 sps:$4 sm:$0xff]   ;;  %v5456_v30 = vld [vmem:[#allocation13 + $0x230] ss:$8 sps:$4 sm:$0xff]  }
 0x5a1   :  { %v2473_v38 = vrot.slane %v2471_v10, 1  ;;  %2874 = vmatprep.subr.bf16.mxu1 %v5410_v27  ;;  %v2930_v27 = vld [vmem:[#allocation2 + $0x8] sm:$0xfc]  ;;  %v5509_v3 = vld [vmem:[#allocation14 + $0x144] ss:$8 sps:$4 sm:$0xff]  }
 0x5a2   :  { %v2466_v41 = vsel %vm6673_vm12, %v2461_v15, %v2465_v36  ;;  %v2477_v51 = vor.u32 %v2475_v47, %v2465_v36  ;;  %v2934_v10 = vpack.c.bf16 %v6457_v21, %v2930_v27  ;;  %v2980_v36 = vrot.slane %v6475_v56, 1  ;;  %v5462_v15 = vld [vmem:[#allocation13 + $0x250] ss:$8 sps:$4 sm:$0xff]   ;;  %v5465_v21 = vld [vmem:[#allocation13 + $0x260] ss:$8 sps:$4 sm:$0xff]  }
 0x5a3   :  { %v2474_v35 = vsel %vm6672_vm11, %v2469_v37, %v2473_v38  ;;  %v2480_v40 = vor.u32 %v2478_v39, %v2473_v38  ;;  %v2360_v37 = vpack.c.bf16 %v2354_v34, %v2354_v34  ;;  %v5464_v39 = vld [vmem:[#allocation13 + $0x254] ss:$8 sps:$4 sm:$0xff]   ;;  %v5474_v47 = vld [vmem:[#allocation13 + $0x290] ss:$8 sps:$4 sm:$0xff]   ;;  %v5515_v27 = vld [vmem:[#allocation14 + $0x164] ss:$8 sps:$4 sm:$0xff]  }
 0x5a4   :  { %2689 = vmatprep.mubr.bf16.mxu1 %v2474_v35  ;;  %2875 = vmatpush1.bf16.msra.mxu1 %v5408_v33  ;;  %v5459_v33 = vld [vmem:[#allocation13 + $0x240] ss:$8 sps:$4 sm:$0xff]   ;;  %v2979_v38 = vrot.slane %v2934_v10, 1  ;;  %v5467_v35 = vld [vmem:[#allocation13 + $0x264] ss:$8 sps:$4 sm:$0xff]  }
 0x5a5   :  { %2690 = vmatmul.mubr.bf16.gmra.mrb[48].mxu1 %v2466_v41  ;;  %2876 = vmatprep.subr.bf16.mxu1 %v5413_v6  ;;  %v5468_v41 = vld [vmem:[#allocation13 + $0x270] ss:$8 sps:$4 sm:$0xff]   ;;  %v5521_v34 = vld [vmem:[#allocation14 + $0x184] ss:$8 sps:$4 sm:$0xff]  }
 0x5a6   :  { %2699 = vmatprep.mubr.bf16.mxu1 %v2480_v40  ;;  %v2981_v6 = vsel %vm6674_vm1, %v2979_v38, %v2980_v36  ;;  %v5470_v40 = vld [vmem:[#allocation13 + $0x274] ss:$8 sps:$4 sm:$0xff]   ;;  %v5516_v10 = vld [vmem:[#allocation14 + $0x170] ss:$8 sps:$4 sm:$0xff]   ;;  %v5527_v38 = vld [vmem:[#allocation14 + $0x1a4] ss:$8 sps:$4 sm:$0xff]  }
 0x5a8   :  { %2877 = vmatpush1.bf16.msra.mxu1 %v5411_v44  ;;  %v5473_v44 = vld [vmem:[#allocation13 + $0x284] ss:$8 sps:$4 sm:$0xff]  }
 0x5a9   :  { %2878 = vmatprep.subr.bf16.mxu1 %v5416_v45  ;;  %v5471_v45 = vld [vmem:[#allocation13 + $0x280] ss:$8 sps:$4 sm:$0xff]  }
 0x5ac   :  { %2879 = vmatpush1.bf16.msra.mxu1 %v5414_v46  ;;  %v5476_v46 = vld [vmem:[#allocation13 + $0x294] ss:$8 sps:$4 sm:$0xff]  }
 0x5ad   :  { %2700 = vmatmul.mubr.bf16.gmra.mrb[52].mxu1 %v2477_v51  ;;  %2880 = vmatprep.subr.bf16.mxu1 %v5419_v50  ;;  %v5477_v50 = vld [vmem:[#allocation13 + $0x2a0] ss:$8 sps:$4 sm:$0xff]   ;;  %v5482_v51 = vld [vmem:[#allocation13 + $0x2b4] ss:$8 sps:$4 sm:$0xff]  }
 0x5ae   :  { %2900 = vmatprep.mubr.bf16.mxu1 %v2357_v52  ;;  %v5480_v52 = vld [vmem:[#allocation13 + $0x2b0] ss:$8 sps:$4 sm:$0xff]  }
 0x5b0   :  { %2881 = vmatpush1.bf16.msra.mxu1 %v5417_v53  ;;  %v5485_v53 = vld [vmem:[#allocation13 + $0x2c4] ss:$8 sps:$4 sm:$0xff]  }
 0x5b1   :  { %2882 = vmatprep.subr.bf16.mxu1 %v5422_v62  ;;  %v5483_v62 = vld [vmem:[#allocation13 + $0x2c0] ss:$8 sps:$4 sm:$0xff]  }
 0x5b4   :  { %2883 = vmatpush1.bf16.msra.mxu1 %v5420_v43  ;;  %v5488_v43 = vld [vmem:[#allocation13 + $0x2d4] ss:$8 sps:$4 sm:$0xff]  }
 0x5b5   :  { %2884 = vmatprep.subr.bf16.mxu1 %v5425_v54  ;;  %v5486_v54 = vld [vmem:[#allocation13 + $0x2d0] ss:$8 sps:$4 sm:$0xff]  }
 0x5b8   :  { %2885 = vmatpush1.bf16.msra.mxu1 %v5423_v26  ;;  %v5491_v26 = vld [vmem:[#allocation13 + $0x2e4] ss:$8 sps:$4 sm:$0xff]  }
 0x5b9   :  { %2886 = vmatprep.subr.bf16.mxu1 %v5428_v57  ;;  %v5489_v57 = vld [vmem:[#allocation13 + $0x2e0] ss:$8 sps:$4 sm:$0xff]  }
 0x5bc   :  { %2887 = vmatpush1.bf16.msra.mxu1 %v5426_v58  ;;  %v2932_v58 = vld [vmem:[#allocation2 + $0x48] sm:$0xf] }
 0x5bd   :  { %2888 = vmatprep.subr.bf16.mxu1 %v5431_v28  ;;  %v5494_v28 = vld [vmem:[#allocation13 + $0x2f4] ss:$8 sps:$4 sm:$0xff]  }
 0x5c0   :  { %2889 = vmatpush1.bf16.msra.mxu1 %v5429_v0  ;;  %v2929_v0 = vld [vmem:[#allocation2] sm:$0xfc] }
 0x5c1   :  { %2890 = vmatprep.subr.bf16.mxu1 %v5434_v59  ;;  %v2936_v59 = vpack.c.bf16 %v2932_v58, %v2932_v58 }
 0x5c4   :  { %2891 = vmatpush1.bf16.msra.mxu1 %v5432_v32  ;;  %v5492_v32 = vld [vmem:[#allocation13 + $0x2f0] ss:$8 sps:$4 sm:$0xff]  }
 0x5c5   :  { %2892 = vmatprep.subr.bf16.mxu1 %v5437_v31  ;;  %v2933_v31 = vpack.c.bf16 %v6449_v16, %v2929_v0  ;;  %v5495_v16 = vld [vmem:[#allocation14 + $0x100] ss:$8 sps:$4 sm:$0xff]  }
 0x5c8   :  { %2893 = vmatpush1.bf16.msra.mxu1 %v5435_v63  ;;  %v2977_v63 = vrot.slane %v6477_v18, 1 }
 0x5c9   :  { %2894 = vmatprep.subr.bf16.mxu1 %v5440_v1  ;;  %v2984_v1 = vrot.slane %v2936_v59, 1 }
 0x5cc   :  { %2895 = vmatpush1.bf16.msra.mxu1 %v5438_v60  ;;  %v2931_v60 = vld [vmem:[#allocation2 + $0x40] sm:$0xf] }
 0x5cd   :  { %2896 = vmatprep.subr.bf16.mxu1 %v5443_v29  ;;  %v2976_v29 = vrot.slane %v2933_v31, 1 }
 0x5d0   :  { %2897 = vmatpush1.bf16.msra.mxu1 %v5441_v5  ;;  %v2978_v5 = vsel %vm6675_vm0, %v2976_v29, %v2977_v63 }
 0x5d1   :  { %2898 = vmatprep.subr.bf16.mxu1 %v5446_v61  ;;  %v2935_v61 = vpack.c.bf16 %v2931_v60, %v2931_v60 }
 0x5d4   :  { %2899 = vmatpush1.bf16.msra.mxu1 %v5444_v2  ;;  %v2985_v2 = vsel %vm6676_vm13, %v2980_v36, %v2984_v1  ;;  %v5519_v36 = vld [vmem:[#allocation14 + $0x180] ss:$8 sps:$4 sm:$0xff]  }
 0x5d5   :  { %3152 = vmatprep.subr.bf16.mxu1 %v5449_v4  ;;  %v2982_v4 = vrot.slane %v2935_v61, 1 }
 0x5d7   :  { %2901 = vmatmul.mubr.bf16.vlgmr.msra.gmra.mrb[44].mxu1 %v2356_v17  ;;  %v2983_v8 = vsel %vm6677_vm14, %v2977_v63, %v2982_v4  ;;  %v5498_v17 = vld [vmem:[#allocation14 + $0x110] ss:$8 sps:$4 sm:$0xff]  }
 0x5d8   :  { %2910 = vmatprep.mubr.bf16.mxu1 %v6475_v56  ;;  %3153 = vmatpush1.bf16.msra.mxu1 %v5447_v12  ;;  %v5500_v12 = vld [vmem:[#allocation14 + $0x114] ss:$8 sps:$4 sm:$0xff]  }
 0x5d9   :  { %3154 = vmatprep.subr.bf16.mxu1 %v5452_v19  ;;  %v5503_v19 = vld [vmem:[#allocation14 + $0x124] ss:$8 sps:$4 sm:$0xff]   ;;  %v5506_v56 = vld [vmem:[#allocation14 + $0x134] ss:$8 sps:$4 sm:$0xff]  }
 0x5dc   :  { %3155 = vmatpush1.bf16.msra.mxu1 %v5450_v22  ;;  %v5501_v22 = vld [vmem:[#allocation14 + $0x120] ss:$8 sps:$4 sm:$0xff]  }
 0x5dd   :  { %3156 = vmatprep.subr.bf16.mxu1 %v5455_v23  ;;  %v5504_v23 = vld [vmem:[#allocation14 + $0x130] ss:$8 sps:$4 sm:$0xff]  }
 0x5df   :  { %2911 = vmatmul.mubr.bf16.gmra.mrb[48].mxu1 %v6477_v18  ;;  %v5497_v18 = vld [vmem:[#allocation14 + $0x104] ss:$8 sps:$4 sm:$0xff]  }
 0x5e0   :  { %2920 = vmatprep.mubr.bf16.mxu1 %v2361_v25  ;;  %3157 = vmatpush1.bf16.msra.mxu1 %v5453_v14  ;;  %v5507_v14 = vld [vmem:[#allocation14 + $0x140] ss:$8 sps:$4 sm:$0xff]   ;;  %v5510_v25 = vld [vmem:[#allocation14 + $0x150] ss:$8 sps:$4 sm:$0xff]  }
 0x5e1   :  { %3158 = vmatprep.subr.bf16.mxu1 %v5458_v24  ;;  %3614 = vmatprep.subr.bf16.mxu0 %v5497_v18  ;;  %v5512_v24 = vld [vmem:[#allocation14 + $0x154] ss:$8 sps:$4 sm:$0xff]  }
 0x5e2   :  { %3615 = vmatpush1.bf16.msra.mxu0 %v5495_v16 }
 0x5e3   :  { %3616 = vmatprep.subr.bf16.mxu0 %v5500_v12 }
 0x5e4   :  { %3159 = vmatpush1.bf16.msra.mxu1 %v5456_v30  ;;  %v5513_v30 = vld [vmem:[#allocation14 + $0x160] ss:$8 sps:$4 sm:$0xff]  }
 0x5e5   :  { %3160 = vmatprep.subr.bf16.mxu1 %v5461_v55  ;;  %v5518_v55 = vld [vmem:[#allocation14 + $0x174] ss:$8 sps:$4 sm:$0xff]  }
 0x5e6   :  { %3617 = vmatpush1.bf16.msra.mxu0 %v5498_v17 }
 0x5e7   :  { %2921 = vmatmul.mubr.bf16.gmra.mrb[56].mxu1 %v2360_v37  ;;  %3618 = vmatprep.subr.bf16.mxu0 %v5503_v19  ;;  %v5522_v37 = vld [vmem:[#allocation14 + $0x190] ss:$8 sps:$4 sm:$0xff]  }
 0x5e8   :  { %3161 = vmatpush1.bf16.msra.mxu1 %v5459_v33  ;;  %3184 = vmatprep.mubr.bf16.mxu1 %v2981_v6  ;;  %v5524_v33 = vld [vmem:[#allocation14 + $0x194] ss:$8 sps:$4 sm:$0xff]  }
 0x5e9   :  { %3162 = vmatprep.subr.bf16.mxu1 %v5464_v39  ;;  %v5525_v39 = vld [vmem:[#allocation14 + $0x1a0] ss:$8 sps:$4 sm:$0xff]   ;;  %v5530_v6 = vld [vmem:[#allocation14 + $0x1b4] ss:$8 sps:$4 sm:$0xff]  }
 0x5ea   :  { %3619 = vmatpush1.bf16.msra.mxu0 %v5501_v22 }
 0x5eb   :  { %3620 = vmatprep.subr.bf16.mxu0 %v5506_v56 }
 0x5ec   :  { %3163 = vmatpush1.bf16.msra.mxu1 %v5462_v15  ;;  %v5528_v15 = vld [vmem:[#allocation14 + $0x1b0] ss:$8 sps:$4 sm:$0xff]  }
 0x5ed   :  { %3164 = vmatprep.subr.bf16.mxu1 %v5467_v35  ;;  %v5533_v35 = vld [vmem:[#allocation14 + $0x1c4] ss:$8 sps:$4 sm:$0xff]  }
 0x5ee   :  { %3621 = vmatpush1.bf16.msra.mxu0 %v5504_v23 }
 0x5ef   :  { %3622 = vmatprep.subr.bf16.mxu0 %v5509_v3 }
 0x5f0   :  { %3165 = vmatpush1.bf16.msra.mxu1 %v5465_v21  ;;  %v5531_v21 = vld [vmem:[#allocation14 + $0x1c0] ss:$8 sps:$4 sm:$0xff]  }
 0x5f1   :  { %3166 = vmatprep.subr.bf16.mxu1 %v5470_v40  ;;  %v5536_v40 = vld [vmem:[#allocation14 + $0x1d4] ss:$8 sps:$4 sm:$0xff]  }
 0x5f2   :  { %3623 = vmatpush1.bf16.msra.mxu0 %v5507_v14 }
 0x5f3   :  { %3624 = vmatprep.subr.bf16.mxu0 %v5512_v24 }
 0x5f4   :  { %3167 = vmatpush1.bf16.msra.mxu1 %v5468_v41  ;;  %v5534_v41 = vld [vmem:[#allocation14 + $0x1d0] ss:$8 sps:$4 sm:$0xff]  }
 0x5f5   :  { %3168 = vmatprep.subr.bf16.mxu1 %v5473_v44 }
 0x5f6   :  { %3625 = vmatpush1.bf16.msra.mxu0 %v5510_v25 }
 0x5f7   :  { %3626 = vmatprep.subr.bf16.mxu0 %v5515_v27 }
 0x5f8   :  { %3169 = vmatpush1.bf16.msra.mxu1 %v5471_v45 }
 0x5f9   :  { %3170 = vmatprep.subr.bf16.mxu1 %v5476_v46 }
 0x5fa   :  { %3627 = vmatpush1.bf16.msra.mxu0 %v5513_v30 }
 0x5fb   :  { %3628 = vmatprep.subr.bf16.mxu0 %v5518_v55 }
 0x5fc   :  { %3171 = vmatpush1.bf16.msra.mxu1 %v5474_v47  ;;  %v5539_v47 = vld [vmem:[#allocation14 + $0x1e4] ss:$8 sps:$4 sm:$0xff]  }
 0x5fd   :  { %3172 = vmatprep.subr.bf16.mxu1 %v5479_v49 }
 0x5fe   :  { %3629 = vmatpush1.bf16.msra.mxu0 %v5516_v10 }
 0x5ff   :  { %3630 = vmatprep.subr.bf16.mxu0 %v5521_v34 }
 0x600   :  { %3173 = vmatpush1.bf16.msra.mxu1 %v5477_v50  ;;  %v5537_v50 = vld [vmem:[#allocation14 + $0x1e0] ss:$8 sps:$4 sm:$0xff]  }
 0x601   :  { %3174 = vmatprep.subr.bf16.mxu1 %v5482_v51  ;;  %v5542_v51 = vld [vmem:[#allocation14 + $0x1f4] ss:$8 sps:$4 sm:$0xff]  }
 0x602   :  { %3631 = vmatpush1.bf16.msra.mxu0 %v5519_v36 }
 0x603   :  { %3632 = vmatprep.subr.bf16.mxu0 %v5524_v33 }
 0x604   :  { %3175 = vmatpush1.bf16.msra.mxu1 %v5480_v52  ;;  %v5540_v52 = vld [vmem:[#allocation14 + $0x1f0] ss:$8 sps:$4 sm:$0xff]  }
 0x605   :  { %3176 = vmatprep.subr.bf16.mxu1 %v5485_v53  ;;  %v5545_v53 = vld [vmem:[#allocation14 + $0x4] ss:$8 sps:$4 sm:$0xff]  }
 0x606   :  { %3633 = vmatpush1.bf16.msra.mxu0 %v5522_v37 }
 0x607   :  { %3634 = vmatprep.subr.bf16.mxu0 %v5527_v38 }
 0x608   :  { %3177 = vmatpush1.bf16.msra.mxu1 %v5483_v62 }
 0x609   :  { %3178 = vmatprep.subr.bf16.mxu1 %v5488_v43 }
 0x60a   :  { %3635 = vmatpush1.bf16.msra.mxu0 %v5525_v39 }
 0x60b   :  { %3636 = vmatprep.subr.bf16.mxu0 %v5530_v6 }
 0x60c   :  { %3179 = vmatpush1.bf16.msra.mxu1 %v5486_v54 }
 0x60d   :  { %3180 = vmatprep.subr.bf16.mxu1 %v5491_v26 }
 0x60e   :  { %3637 = vmatpush1.bf16.msra.mxu0 %v5528_v15 }
 0x60f   :  { %3638 = vmatprep.subr.bf16.mxu0 %v5533_v35 }
 0x610   :  { %3181 = vmatpush1.bf16.msra.mxu1 %v5489_v57 }
 0x611   :  { %3182 = vmatprep.subr.bf16.mxu1 %v5494_v28  ;;  %v3223_v28 = vld [vmem:[%s6648_s14] sm:$0x3] }
 0x612   :  { %3639 = vmatpush1.bf16.msra.mxu0 %v5531_v21  ;;  %v3228_v0 = vrot.slane %v3223_v28, %v6347_v11  ;;  %v3232_v59 = vrot.slane %v3223_v28, %v6350_v13 }
 0x613   :  { %3640 = vmatprep.subr.bf16.mxu0 %v5536_v40 }
 0x614   :  { %3183 = vmatpush1.bf16.msra.mxu1 %v5492_v32 }
 0x616   :  { %3641 = vmatpush1.bf16.msra.mxu0 %v5534_v41 }
 0x617   :  { %3185 = vmatmul.mubr.bf16.vlgmr.msra.gmra.mrb[44].mxu1 %v2978_v5  ;;  %3642 = vmatprep.subr.bf16.mxu0 %v5539_v47 }
 0x618   :  { %3194 = vmatprep.mubr.bf16.mxu1 %v2985_v2 }
 0x61a   :  { %3643 = vmatpush1.bf16.msra.mxu0 %v5537_v50 }
 0x61b   :  { %3644 = vmatprep.subr.bf16.mxu0 %v5542_v51 }
 0x61e   :  { %3645 = vmatpush1.bf16.msra.mxu0 %v5540_v52 }
 0x61f   :  { %3195 = vmatmul.mubr.bf16.gmra.mrb[48].mxu1 %v2983_v8  ;;  %3835 = vmatprep.subr.bf16.mxu0 %v5545_v53 }
 0x620   :  { %3204 = vmatprep.mubr.bf16.mxu1 %v2984_v1 }
 0x627   :  { %3205 = vmatmul.mubr.bf16.gmra.mrb[60].mxu1 %v2982_v4 }
 0x680   :  { %v2701_v44 = vpop.f32.mrb[52].mxu1 }
 0x681   :  { %v2703_v45 = vpop.f32.mrb[53].mxu1 }
 0x682   :  { %v2705_v46 = vpop.f32.mrb[54].mxu1 }
 0x683   :  { %v2706_v49 = vpop.f32.mrb[55].mxu1 }
 0x6ba   :  { %v2922_v62 = vpop.f32.mrb[56].mxu1 }
 0x6bb   :  { %v2923_v43 = vadd.f32 %v2922_v62, %v2701_v44  ;;  %v2924_v54 = vpop.f32.mrb[57].mxu1 }
 0x6bc   :  { %v2925_v26 = vadd.f32 %v2924_v54, %v2703_v45  ;;  %v2926_v57 = vpop.f32.mrb[58].mxu1 }
 0x6bd   :  { %v2927_v58 = vpop.f32.mrb[59].mxu1 }
 0x6ea   :  { %v3186_v32 = vpop.f32.mrb[44].mxu1 }
 0x6eb   :  { %v3235_v31 = vadd.f32 %v3228_v0, %v3186_v32  ;;  %v3188_v63 = vpop.f32.mrb[45].mxu1 }
 0x6ec   :  { %v3236_v1 = vadd.f32 %v3232_v59, %v3188_v63  ;;  %v3190_v60 = vpop.f32.mrb[46].mxu1 }
 0x6ed   :  { %v3245_v29 = vmax.f32 %v3235_v31, 0.0  ;;  %v3237_v5 = vadd.f32 %v3228_v0, %v3190_v60  ;;  %v3192_v61 = vpop.f32.mrb[47].mxu1 }
 0x6ee   :  { %v3246_v2 = vmax.f32 %v3236_v1, 0.0  ;;  %v3238_v4 = vadd.f32 %v3232_v59, %v3192_v61 }
 0x6ef   :  { %v3255_v8 = vmul.f32 %v6418_v48, %v3245_v29  ;;  %v3247_v16 = vmax.f32 %v3237_v5, 0.0 }
 0x6f0   :  { %v3256_v18 = vmul.f32 %v6418_v48, %v3246_v2  ;;  %v3248_v12 = vmax.f32 %v3238_v4, 0.0 }
 0x6f1   :  { %v3275_v17 = vrot.slane %v3255_v8, 7  ;;  %v3257_v19 = vmul.f32 %v6422_v9, %v3247_v16 }
 0x6f2   :  { %v3276_v22 = vrot.slane %v3256_v18, 7  ;;  %v3258_v56 = vmul.f32 %v6422_v9, %v3248_v12  ;;  %v3196_v23 = vpop.f32.mrb[48].mxu1 }
 0x6f3   :  { %3303 = vst [vmem:[#allocation2] sm:$0xfe] %v3275_v17  ;;  %v3277_v3 = vrot.slane %v3257_v19, 7  ;;  %v3239_v14 = vadd.f32 %v3228_v0, %v3196_v23  ;;  %v3198_v24 = vpop.f32.mrb[49].mxu1 }
 0x6f4   :  { %3304 = vst [vmem:[#allocation2 + $0x8] sm:$0xfe] %v3276_v22  ;;  %v3279_v25 = vrot.slane %v3258_v56, 7  ;;  %v3240_v27 = vadd.f32 %v3232_v59, %v3198_v24  ;;  %v3200_v30 = vpop.f32.mrb[50].mxu1  ;;  %v5543_v56 = vld [vmem:[#allocation14] ss:$8 sps:$4 sm:$0xff]  }
 0x6f5   :  { %v6516_v55 = vsel %vm1745_vm2, %v3275_v17, %v3277_v3  ;;  %v3249_v48 = vmax.f32 %v3239_v14, 0.0  ;;  %v3241_v10 = vadd.f32 %v3228_v0, %v3200_v30  ;;  %v3202_v34 = vpop.f32.mrb[51].mxu1  ;;  %v5548_v14 = vld [vmem:[#allocation14 + $0x14] ss:$8 sps:$4 sm:$0xff]   ;;  %v5549_v30 = vld [vmem:[#allocation14 + $0x20] ss:$8 sps:$4 sm:$0xff]  }
 0x6f6   :  { %v6519_v36 = vsel %vm1745_vm2, %v3276_v22, %v3279_v25  ;;  %v3250_v33 = vmax.f32 %v3240_v27, 0.0  ;;  %v3242_v9 = vadd.f32 %v3232_v59, %v3202_v34  ;;  %v5551_v27 = vld [vmem:[#allocation14 + $0x24] ss:$8 sps:$4 sm:$0xff]  }
 0x6f7   :  { %v3259_v37 = vmul.f32 %v6444_v7, %v3249_v48  ;;  %v3251_v38 = vmax.f32 %v3241_v10, 0.0  ;;  %v5554_v10 = vld [vmem:[#allocation14 + $0x34] ss:$8 sps:$4 sm:$0xff]  }
 0x6f8   :  { %v3260_v39 = vmul.f32 %v6444_v7, %v3250_v33  ;;  %v3252_v6 = vmax.f32 %v3242_v9, 0.0 }
 0x6f9   :  { %v3281_v15 = vrot.slane %v3259_v37, 7  ;;  %v3261_v35 = vmul.f32 %v6454_v20, %v3251_v38  ;;  %v5552_v38 = vld [vmem:[#allocation14 + $0x30] ss:$8 sps:$4 sm:$0xff]  }
 0x6fa   :  { %v3283_v21 = vrot.slane %v3260_v39, 7  ;;  %v3262_v40 = vmul.f32 %v6454_v20, %v3252_v6  ;;  %v3206_v41 = vpop.f32.mrb[60].mxu1  ;;  %v3361_v44 = vld [vmem:[#allocation2] sm:$0xfe] }
 0x6fb   :  { %v3282_v45 = vsel %vm1745_vm2, %v3277_v3, %v3281_v15  ;;  %v3285_v46 = vrot.slane %v3261_v35, 7  ;;  %v3221_v47 = vadd.f32 %v3206_v41, %v2923_v43  ;;  %v3208_v49 = vpop.f32.mrb[61].mxu1  ;;  %v3362_v50 = vld [vmem:[#allocation2 + $0x8] sm:$0xfe]  ;;  %v3365_v51 = vpack.c.bf16 %v6516_v55, %v3361_v44 }
 0x6fc   :  { %v3284_v52 = vsel %vm1745_vm2, %v3279_v25, %v3283_v21  ;;  %v3287_v7 = vrot.slane %v3262_v40, 7  ;;  %v3222_v53 = vadd.f32 %v3208_v49, %v2925_v26  ;;  %v3210_v62 = vpop.f32.mrb[62].mxu1  ;;  %v3366_v54 = vpack.c.bf16 %v6519_v36, %v3362_v50  ;;  %v5560_v50 = vld [vmem:[#allocation14 + $0x54] ss:$8 sps:$4 sm:$0xff]  }
 0x6fd   :  { %v3286_v57 = vsel %vm1745_vm2, %v3281_v15, %v3285_v46  ;;  %v3243_v20 = vadd.f32 %v3228_v0, %v3221_v47  ;;  %v3211_v58 = vpop.f32.mrb[63].mxu1  ;;  %v3405_v28 = vshll.u32 %v3365_v51, 16  ;;  %v3403_v2 = vshrl.u32 %v3365_v51, 16  ;;  %v5557_v15 = vld [vmem:[#allocation14 + $0x44] ss:$8 sps:$4 sm:$0xff]   ;;  %v3314_v62 = vld [vmem:[#allocation2 + $0x8] sm:$0xff] }
 0x6fe   :  { %v3288_v32 = vsel %vm1745_vm2, %v3283_v21, %v3287_v7  ;;  %v3244_v31 = vadd.f32 %v3232_v59, %v3222_v53  ;;  %v3417_v43 = vshll.u32 %v3366_v54, 16  ;;  %v6533_v60 = vpack.c.bf16 %v3286_v57, %v3282_v45 }
 0x6ff   :  { %v3253_v63 = vmax.f32 %v3243_v20, 0.0  ;;  %v6531_v1 = vpack.c.bf16 %v3288_v32, %v3284_v52  ;;  %v3407_v29 = vrot.slane %v3405_v28, 1  ;;  %v3415_v26 = vshrl.u32 %v3366_v54, 16  ;;  %v5558_v52 = vld [vmem:[#allocation14 + $0x50] ss:$8 sps:$4 sm:$0xff]  }
 0x700   :  { %v3254_v5 = vmax.f32 %v3244_v31, 0.0  ;;  %v3419_v61 = vrot.slane %v3417_v43, 1  ;;  %v3410_v8 = vshll.u32 %v6533_v60, 16  ;;  %v3426_v35 = vshrl.u32 %v6533_v60, 16  ;;  %v5561_v54 = vld [vmem:[#allocation14 + $0x60] ss:$8 sps:$4 sm:$0xff]  }
 0x701   :  { %v3263_v4 = vmul.f32 %v6469_v42, %v3253_v63  ;;  %v3422_v0 = vshll.u32 %v6531_v1, 16  ;;  %v3408_v18 = vor.u32 %v3407_v29, %v3403_v2  ;;  %v3434_v39 = vshrl.u32 %v6531_v1, 16  ;;  %v5566_v20 = vld [vmem:[#allocation14 + $0x74] ss:$8 sps:$4 sm:$0xff]   ;;  %v5564_v28 = vld [vmem:[#allocation14 + $0x70] ss:$8 sps:$4 sm:$0xff]  }
 0x702   :  { %v3264_v16 = vmul.f32 %v6469_v42, %v3254_v5  ;;  %v3420_v59 = vor.u32 %v3419_v61, %v3415_v26  ;;  %v3412_v19 = vrot.slane %v3410_v8, 1  ;;  %v5546_v42 = vld [vmem:[#allocation14 + $0x10] ss:$8 sps:$4 sm:$0xff]   ;;  %v3324_v58 = vpack.c.bf16 %v6519_v36, %v3314_v62  ;;  %v5569_v32 = vld [vmem:[#allocation14 + $0x84] ss:$8 sps:$4 sm:$0xff]  }
 0x703   :  { %v3289_v12 = vrot.slane %v3263_v4, 7  ;;  %v3424_v17 = vrot.slane %v3422_v0, 1  ;;  %v5567_v31 = vld [vmem:[#allocation14 + $0x80] ss:$8 sps:$4 sm:$0xff]   ;;  %v5572_v43 = vld [vmem:[#allocation14 + $0x94] ss:$8 sps:$4 sm:$0xff]  }
 0x704   :  { %v3291_v22 = vrot.slane %v3264_v16, 7  ;;  %v3413_v25 = vsel %vm6679_vm3, %v3408_v18, %v3412_v19  ;;  %v3428_v45 = vor.u32 %v3426_v35, %v3412_v19  ;;  %v5570_v63 = vld [vmem:[#allocation14 + $0x90] ss:$8 sps:$4 sm:$0xff]   ;;  %v5575_v29 = vld [vmem:[#allocation14 + $0xa4] ss:$8 sps:$4 sm:$0xff]  }
 0x705   :  { %v3290_v23 = vsel %vm1745_vm2, %v3285_v46, %v3289_v12  ;;  %v3425_v3 = vsel %vm6678_vm15, %v3420_v59, %v3424_v17  ;;  %v3436_v40 = vor.u32 %v3434_v39, %v3424_v17  ;;  %v5555_v46 = vld [vmem:[#allocation14 + $0x40] ss:$8 sps:$4 sm:$0xff]   ;;  %v5578_v26 = vld [vmem:[#allocation14 + $0xb4] ss:$8 sps:$4 sm:$0xff]   ;;  %v5576_v61 = vld [vmem:[#allocation14 + $0xb0] ss:$8 sps:$4 sm:$0xff]  }
 0x706   :  { %3311 = vst [vmem:[#allocation2 + $0x40] sm:$0x7] %v3290_v23  ;;  %v3292_v24 = vsel %vm1745_vm2, %v3287_v7, %v3291_v22  ;;  %3646 = vmatprep.mubr.bf16.mxu0 %v3425_v3  ;;  %vm6680_vm2 = vmmov %vm6679_vm3  ;;  %v5563_v7 = vld [vmem:[#allocation14 + $0x64] ss:$8 sps:$4 sm:$0xff]   ;;  %v5573_v5 = vld [vmem:[#allocation14 + $0xa0] ss:$8 sps:$4 sm:$0xff]  }
 0x707   :  { %3312 = vst [vmem:[#allocation2 + $0x48] sm:$0x7] %v3292_v24  ;;  %3647 = vmatmul.mubr.bf16.vlgmr.msra.gmra.mrb[28].mxu0 %v3413_v25  ;;  %vm6681_vm4 = vmmov %vm6680_vm2  ;;  %v5581_v2 = vld [vmem:[#allocation14 + $0xc4] ss:$8 sps:$4 sm:$0xff]   ;;  %v5579_v4 = vld [vmem:[#allocation14 + $0xc0] ss:$8 sps:$4 sm:$0xff]  }
 0x708   :  { %3836 = vmatpush1.bf16.msra.mxu0 %v5543_v56  ;;  %v5584_v0 = vld [vmem:[#allocation14 + $0xd4] ss:$8 sps:$4 sm:$0xff]   ;;  %v5582_v8 = vld [vmem:[#allocation14 + $0xd0] ss:$8 sps:$4 sm:$0xff]   ;;  %v5587_v16 = vld [vmem:[#allocation14 + $0xe4] ss:$8 sps:$4 sm:$0xff]  }
 0x709   :  { %3837 = vmatprep.subr.bf16.mxu0 %v5548_v14  ;;  %v5585_v59 = vld [vmem:[#allocation14 + $0xe0] ss:$8 sps:$4 sm:$0xff]   ;;  %v5590_v18 = vld [vmem:[#allocation14 + $0xf4] ss:$8 sps:$4 sm:$0xff]   ;;  %v5588_v12 = vld [vmem:[#allocation14 + $0xf0] ss:$8 sps:$4 sm:$0xff]  }
 0x70a   :  { %v5593_v17 = vld [vmem:[#allocation14 + $0x204] ss:$8 sps:$4 sm:$0xff]   ;;  %v5591_v22 = vld [vmem:[#allocation14 + $0x200] ss:$8 sps:$4 sm:$0xff]   ;;  %v5596_v23 = vld [vmem:[#allocation14 + $0x214] ss:$8 sps:$4 sm:$0xff]  }
 0x70b   :  { %v3313_v19 = vld [vmem:[#allocation2] sm:$0xff]  ;;  %v5597_v25 = vld [vmem:[#allocation14 + $0x220] ss:$8 sps:$4 sm:$0xff]   ;;  %v5632_v62 = vld [vmem:[#allocation14 + $0x2d4] ss:$8 sps:$4 sm:$0xff]  }
 0x70c   :  { %3838 = vmatpush1.bf16.msra.mxu0 %v5546_v42  ;;  %v3323_v56 = vpack.c.bf16 %v6516_v55, %v3313_v19  ;;  %v5594_v3 = vld [vmem:[#allocation14 + $0x210] ss:$8 sps:$4 sm:$0xff]   ;;  %v5599_v14 = vld [vmem:[#allocation14 + $0x224] ss:$8 sps:$4 sm:$0xff]   ;;  %v5602_v42 = vld [vmem:[#allocation14 + $0x234] ss:$8 sps:$4 sm:$0xff]  }
 0x70d   :  { %3839 = vmatprep.subr.bf16.mxu0 %v5551_v27  ;;  %v3363_v48 = vld [vmem:[#allocation2 + $0x40] sm:$0x7]  ;;  %v5606_v35 = vld [vmem:[#allocation14 + $0x250] ss:$8 sps:$4 sm:$0xff]   ;;  %v5646_v19 = vld [vmem:[%s6651_s17 + $0x18] sm:$0xff]  }
 0x70e   :  { %v3364_v34 = vld [vmem:[#allocation2 + $0x48] sm:$0x7]  ;;  %v3367_v33 = vpack.c.bf16 %v3363_v48, %v3363_v48  ;;  %v5600_v48 = vld [vmem:[#allocation14 + $0x230] ss:$8 sps:$4 sm:$0xff]  }
 0x70f   :  { %v3368_v9 = vpack.c.bf16 %v3364_v34, %v3364_v34  ;;  %v3322_v24 = vld [vmem:[#allocation2 + $0x48] sm:$0x3] }
 0x710   :  { %v3430_v37 = vshll.u32 %v3367_v33, 16  ;;  %3840 = vmatpush1.bf16.msra.mxu0 %v5549_v30  ;;  %v3442_v53 = vshrl.u32 %v3367_v33, 16  ;;  %v3328_v27 = vpack.c.bf16 %v3322_v24, %v3322_v24  ;;  %v3897_v30 = vld [vmem:[#allocation2 + $0x8] sm:$0xfc]  ;;  %v3321_v33 = vld [vmem:[#allocation2 + $0x40] sm:$0x3] }
 0x711   :  { %v3438_v6 = vshll.u32 %v3368_v9, 16  ;;  %3841 = vmatprep.subr.bf16.mxu0 %v5554_v10  ;;  %v3445_v44 = vshrl.u32 %v3368_v9, 16  ;;  %v5605_v10 = vld [vmem:[#allocation14 + $0x244] ss:$8 sps:$4 sm:$0xff]   ;;  %v3901_v34 = vpack.c.bf16 %v6519_v36, %v3897_v30  ;;  %v3947_v9 = vrot.slane %v6531_v1, 1  ;;  %v5652_v24 = vld [vmem:[%s6651_s17 + $0x30] sm:$0xff]  }
 0x712   :  { %v3432_v21 = vrot.slane %v3430_v37, 1  ;;  %v5603_v37 = vld [vmem:[#allocation14 + $0x240] ss:$8 sps:$4 sm:$0xff]  }
 0x713   :  { %v3440_v41 = vrot.slane %v3438_v6, 1  ;;  %v3946_v39 = vrot.slane %v3901_v34, 1  ;;  %v5608_v6 = vld [vmem:[#allocation14 + $0x254] ss:$8 sps:$4 sm:$0xff]   ;;  %v5609_v36 = vld [vmem:[#allocation14 + $0x260] ss:$8 sps:$4 sm:$0xff]  }
 0x714   :  { %3842 = vmatpush1.bf16.msra.mxu0 %v5552_v38  ;;  %v3433_v51 = vsel %vm6681_vm4, %v3428_v45, %v3432_v21  ;;  %v3444_v57 = vor.u32 %v3442_v53, %v3432_v21  ;;  %v3327_v38 = vpack.c.bf16 %v3321_v33, %v3321_v33  ;;  %v5611_v21 = vld [vmem:[#allocation14 + $0x264] ss:$8 sps:$4 sm:$0xff]   ;;  %v5615_v45 = vld [vmem:[#allocation14 + $0x280] ss:$8 sps:$4 sm:$0xff]  }
 0x715   :  { %v3441_v47 = vsel %vm6680_vm2, %v3436_v40, %v3440_v41  ;;  %v3447_v49 = vor.u32 %v3445_v44, %v3440_v41  ;;  %3843 = vmatprep.subr.bf16.mxu0 %v5557_v15  ;;  %v3948_v15 = vsel %vm6682_vm5, %v3946_v39, %v3947_v9  ;;  %v5614_v40 = vld [vmem:[#allocation14 + $0x274] ss:$8 sps:$4 sm:$0xff]   ;;  %v5612_v41 = vld [vmem:[#allocation14 + $0x270] ss:$8 sps:$4 sm:$0xff]   ;;  %v5617_v44 = vld [vmem:[#allocation14 + $0x284] ss:$8 sps:$4 sm:$0xff]  }
 0x716   :  { %3656 = vmatprep.mubr.bf16.mxu0 %v3441_v47  ;;  %v5618_v47 = vld [vmem:[#allocation14 + $0x290] ss:$8 sps:$4 sm:$0xff]   ;;  %v5627_v53 = vld [vmem:[#allocation14 + $0x2c0] ss:$8 sps:$4 sm:$0xff]  }
 0x717   :  { %3657 = vmatmul.mubr.bf16.gmra.mrb[32].mxu0 %v3433_v51  ;;  %v5626_v51 = vld [vmem:[#allocation14 + $0x2b4] ss:$8 sps:$4 sm:$0xff]  }
 0x718   :  { %3666 = vmatprep.mubr.bf16.mxu0 %v3447_v49  ;;  %3844 = vmatpush1.bf16.msra.mxu0 %v5555_v46  ;;  %v5620_v46 = vld [vmem:[#allocation14 + $0x294] ss:$8 sps:$4 sm:$0xff]   ;;  %v5623_v49 = vld [vmem:[#allocation14 + $0x2a4] ss:$8 sps:$4 sm:$0xff]  }
 0x719   :  { %3845 = vmatprep.subr.bf16.mxu0 %v5560_v50  ;;  %v5621_v50 = vld [vmem:[#allocation14 + $0x2a0] ss:$8 sps:$4 sm:$0xff]  }
 0x71c   :  { %3846 = vmatpush1.bf16.msra.mxu0 %v5558_v52  ;;  %v5624_v52 = vld [vmem:[#allocation14 + $0x2b0] ss:$8 sps:$4 sm:$0xff]  }
 0x71d   :  { %3847 = vmatprep.subr.bf16.mxu0 %v5563_v7  ;;  %v5629_v7 = vld [vmem:[#allocation14 + $0x2c4] ss:$8 sps:$4 sm:$0xff]  }
 0x71f   :  { %3667 = vmatmul.mubr.bf16.gmra.mrb[36].mxu0 %v3444_v57  ;;  %v5635_v57 = vld [vmem:[#allocation14 + $0x2e4] ss:$8 sps:$4 sm:$0xff]  }
 0x720   :  { %3867 = vmatprep.mubr.bf16.mxu0 %v3324_v58  ;;  %3848 = vmatpush1.bf16.msra.mxu0 %v5561_v54  ;;  %v5630_v54 = vld [vmem:[#allocation14 + $0x2d0] ss:$8 sps:$4 sm:$0xff]   ;;  %v3899_v58 = vld [vmem:[#allocation2 + $0x48] sm:$0xf] }
 0x721   :  { %3849 = vmatprep.subr.bf16.mxu0 %v5566_v20  ;;  %v5633_v20 = vld [vmem:[#allocation14 + $0x2e0] ss:$8 sps:$4 sm:$0xff]  }
 0x724   :  { %3850 = vmatpush1.bf16.msra.mxu0 %v5564_v28  ;;  %v5638_v28 = vld [vmem:[#allocation14 + $0x2f4] ss:$8 sps:$4 sm:$0xff]  }
 0x725   :  { %3851 = vmatprep.subr.bf16.mxu0 %v5569_v32  ;;  %v3896_v32 = vld [vmem:[#allocation2] sm:$0xfc] }
 0x728   :  { %3852 = vmatpush1.bf16.msra.mxu0 %v5567_v31  ;;  %v3903_v31 = vpack.c.bf16 %v3899_v58, %v3899_v58 }
 0x729   :  { %3853 = vmatprep.subr.bf16.mxu0 %v5572_v43  ;;  %v5636_v43 = vld [vmem:[#allocation14 + $0x2f0] ss:$8 sps:$4 sm:$0xff]  }
 0x72c   :  { %3854 = vmatpush1.bf16.msra.mxu0 %v5570_v63  ;;  %v3900_v63 = vpack.c.bf16 %v6516_v55, %v3896_v32  ;;  %v5639_v55 = vld [vmem:[%s6651_s17 + $0x40] sm:$0xff]  }
 0x72d   :  { %3855 = vmatprep.subr.bf16.mxu0 %v5575_v29  ;;  %v3944_v29 = vrot.slane %v6533_v60, 1  ;;  %4900 = vmatprep.subr.bf16.mxu1 %v5639_v55 }
 0x730   :  { %3856 = vmatpush1.bf16.msra.mxu0 %v5573_v5  ;;  %v3951_v5 = vrot.slane %v3903_v31, 1 }
 0x731   :  { %3857 = vmatprep.subr.bf16.mxu0 %v5578_v26  ;;  %v3898_v26 = vld [vmem:[#allocation2 + $0x40] sm:$0xf] }
 0x734   :  { %3858 = vmatpush1.bf16.msra.mxu0 %v5576_v61  ;;  %v3943_v61 = vrot.slane %v3900_v63, 1 }
 0x735   :  { %3859 = vmatprep.subr.bf16.mxu0 %v5581_v2 }
 0x736   :  { %v3945_v2 = vsel %vm6683_vm6, %v3943_v61, %v3944_v29 }
 0x738   :  { %3860 = vmatpush1.bf16.msra.mxu0 %v5579_v4  ;;  %v3902_v4 = vpack.c.bf16 %v3898_v26, %v3898_v26 }
 0x739   :  { %3861 = vmatprep.subr.bf16.mxu0 %v5584_v0  ;;  %v3952_v0 = vsel %vm6684_vm7, %v3947_v9, %v3951_v5 }
 0x73c   :  { %3862 = vmatpush1.bf16.msra.mxu0 %v5582_v8  ;;  %v3949_v8 = vrot.slane %v3902_v4, 1 }
 0x73d   :  { %3863 = vmatprep.subr.bf16.mxu0 %v5587_v16 }
 0x73e   :  { %v3950_v16 = vsel %vm6685_vm8, %v3944_v29, %v3949_v8 }
 0x740   :  { %3864 = vmatpush1.bf16.msra.mxu0 %v5585_v59  ;;  %v5642_v59 = vld [vmem:[%s6651_s17 + $0x8] sm:$0xff]  }
 0x741   :  { %3865 = vmatprep.subr.bf16.mxu0 %v5590_v18  ;;  %v5643_v18 = vld [vmem:[%s6651_s17 + $0x50] sm:$0xff]  }
 0x744   :  { %3866 = vmatpush1.bf16.msra.mxu0 %v5588_v12  ;;  %v5644_v12 = vld [vmem:[%s6651_s17 + $0x10] sm:$0xff]  }
 0x745   :  { %4119 = vmatprep.subr.bf16.mxu0 %v5593_v17  ;;  %v5645_v17 = vld [vmem:[%s6651_s17 + $0x58] sm:$0xff]  }
 0x747   :  { %3868 = vmatmul.mubr.bf16.vlgmr.msra.gmra.mrb[28].mxu0 %v3323_v56  ;;  %v5648_v56 = vld [vmem:[%s6651_s17 + $0x20] sm:$0xff]  }
 0x748   :  { %3877 = vmatprep.mubr.bf16.mxu0 %v6531_v1  ;;  %4120 = vmatpush1.bf16.msra.mxu0 %v5591_v22  ;;  %v5641_v1 = vld [vmem:[%s6651_s17 + $0x48] sm:$0xff]   ;;  %v5647_v22 = vld [vmem:[%s6651_s17 + $0x60] sm:$0xff]  }
 0x749   :  { %4121 = vmatprep.subr.bf16.mxu0 %v5596_v23  ;;  %v5649_v23 = vld [vmem:[%s6651_s17 + $0x68] sm:$0xff]  }
 0x74c   :  { %4122 = vmatpush1.bf16.msra.mxu0 %v5594_v3  ;;  %v5650_v3 = vld [vmem:[%s6651_s17 + $0x28] sm:$0xff]  }
 0x74d   :  { %4123 = vmatprep.subr.bf16.mxu0 %v5599_v14  ;;  %v5651_v14 = vld [vmem:[%s6651_s17 + $0x70] sm:$0xff]  }
 0x74f   :  { %3878 = vmatmul.mubr.bf16.gmra.mrb[32].mxu0 %v6533_v60  ;;  %v5640_v60 = vld [vmem:[%s6651_s17] sm:$0xff]  }
 0x750   :  { %3887 = vmatprep.mubr.bf16.mxu0 %v3328_v27  ;;  %4124 = vmatpush1.bf16.msra.mxu0 %v5597_v25  ;;  %v5653_v25 = vld [vmem:[%s6651_s17 + $0x78] sm:$0xff]  }
 0x751   :  { %4125 = vmatprep.subr.bf16.mxu0 %v5602_v42  ;;  %4901 = vmatpush3.bf16.msra.mxu1 %v5640_v60  ;;  %v5654_v42 = vld [vmem:[%s6651_s17 + $0x38] sm:$0xff]  }
 0x752   :  { %4902 = vmatprep.subr.bf16.mxu1 %v5641_v1 }
 0x754   :  { %4126 = vmatpush1.bf16.msra.mxu0 %v5600_v48 }
 0x755   :  { %4127 = vmatprep.subr.bf16.mxu0 %v5605_v10  ;;  %4903 = vmatpush3.bf16.msra.mxu1 %v5642_v59 }
 0x756   :  { %4904 = vmatprep.subr.bf16.mxu1 %v5643_v18 }
 0x757   :  { %3888 = vmatmul.mubr.bf16.gmra.mrb[40].mxu0 %v3327_v38 }
 0x758   :  { %4128 = vmatpush1.bf16.msra.mxu0 %v5603_v37  ;;  %4151 = vmatprep.mubr.bf16.mxu0 %v3948_v15 }
 0x759   :  { %4129 = vmatprep.subr.bf16.mxu0 %v5608_v6  ;;  %4905 = vmatpush3.bf16.msra.mxu1 %v5644_v12  ;;  %v4190_v6 = vld [vmem:[%s6650_s16] sm:$0x3] }
 0x75a   :  { %4906 = vmatprep.subr.bf16.mxu1 %v5645_v17  ;;  %v4195_v15 = vrot.slane %v4190_v6, %v6347_v11  ;;  %v4838_v17 = vld [vmem:[%s6652_s18] ss:$0 sm:$0xff] }
 0x75c   :  { %4130 = vmatpush1.bf16.msra.mxu0 %v5606_v35  ;;  %v4199_v35 = vrot.slane %v4190_v6, %v6350_v13 }
 0x75d   :  { %4131 = vmatprep.subr.bf16.mxu0 %v5611_v21  ;;  %4907 = vmatpush3.bf16.msra.mxu1 %v5646_v19 }
 0x75e   :  { %4908 = vmatprep.subr.bf16.mxu1 %v5647_v22 }
 0x760   :  { %4132 = vmatpush1.bf16.msra.mxu0 %v5609_v36 }
 0x761   :  { %4133 = vmatprep.subr.bf16.mxu0 %v5614_v40  ;;  %4909 = vmatpush3.bf16.msra.mxu1 %v5648_v56 }
 0x762   :  { %4910 = vmatprep.subr.bf16.mxu1 %v5649_v23 }
 0x764   :  { %4134 = vmatpush1.bf16.msra.mxu0 %v5612_v41 }
 0x765   :  { %4135 = vmatprep.subr.bf16.mxu0 %v5617_v44  ;;  %4911 = vmatpush3.bf16.msra.mxu1 %v5650_v3 }
 0x766   :  { %4912 = vmatprep.subr.bf16.mxu1 %v5651_v14 }
 0x768   :  { %4136 = vmatpush1.bf16.msra.mxu0 %v5615_v45 }
 0x769   :  { %4137 = vmatprep.subr.bf16.mxu0 %v5620_v46  ;;  %4913 = vmatpush3.bf16.msra.mxu1 %v5652_v24 }
 0x76a   :  { %4914 = vmatprep.subr.bf16.mxu1 %v5653_v25 }
 0x76c   :  { %4138 = vmatpush1.bf16.msra.mxu0 %v5618_v47 }
 0x76d   :  { %4139 = vmatprep.subr.bf16.mxu0 %v5623_v49  ;;  %4915 = vmatpush3.bf16.msra.mxu1 %v5654_v42 }
 0x770   :  { %4140 = vmatpush1.bf16.msra.mxu0 %v5621_v50 }
 0x771   :  { %4141 = vmatprep.subr.bf16.mxu0 %v5626_v51 }
 0x774   :  { %4142 = vmatpush1.bf16.msra.mxu0 %v5624_v52 }
 0x775   :  { %4143 = vmatprep.subr.bf16.mxu0 %v5629_v7 }
 0x778   :  { %4144 = vmatpush1.bf16.msra.mxu0 %v5627_v53 }
 0x779   :  { %4145 = vmatprep.subr.bf16.mxu0 %v5632_v62 }
 0x77c   :  { %4146 = vmatpush1.bf16.msra.mxu0 %v5630_v54 }
 0x77d   :  { %4147 = vmatprep.subr.bf16.mxu0 %v5635_v57 }
 0x780   :  { %4148 = vmatpush1.bf16.msra.mxu0 %v5633_v20 }
 0x781   :  { %4149 = vmatprep.subr.bf16.mxu0 %v5638_v28 }
 0x784   :  { %4150 = vmatpush1.bf16.msra.mxu0 %v5636_v43 }
 0x787   :  { %4152 = vmatmul.mubr.bf16.vlgmr.msra.gmra.mrb[28].mxu0 %v3945_v2 }
 0x788   :  { %4161 = vmatprep.mubr.bf16.mxu0 %v3952_v0 }
 0x78f   :  { %4162 = vmatmul.mubr.bf16.gmra.mrb[32].mxu0 %v3950_v16 }
 0x790   :  { %4171 = vmatprep.mubr.bf16.mxu0 %v3951_v5 }
 0x797   :  { %4172 = vmatmul.mubr.bf16.gmra.mrb[44].mxu0 %v3949_v8 }
 0x7f2   :  { %v3668_v27 = vpop.f32.mrb[36].mxu0 }
 0x7f3   :  { %v3670_v30 = vpop.f32.mrb[37].mxu0 }
 0x7f4   :  { %v3672_v48 = vpop.f32.mrb[38].mxu0 }
 0x7f5   :  { %v3673_v10 = vpop.f32.mrb[39].mxu0 }
 0x82a   :  { %v3889_v34 = vpop.f32.mrb[40].mxu0 }
 0x82b   :  { %v3890_v33 = vadd.f32 %v3889_v34, %v3668_v27  ;;  %v3891_v9 = vpop.f32.mrb[41].mxu0 }
 0x82c   :  { %v3892_v37 = vadd.f32 %v3891_v9, %v3670_v30  ;;  %v3893_v38 = vpop.f32.mrb[42].mxu0 }
 0x82d   :  { %v3894_v39 = vpop.f32.mrb[43].mxu0 }
 0x85a   :  { %v4153_v21 = vpop.f32.mrb[28].mxu0 }
 0x85b   :  { %v4202_v36 = vadd.f32 %v4195_v15, %v4153_v21  ;;  %v4155_v40 = vpop.f32.mrb[29].mxu0 }
 0x85c   :  { %v4203_v41 = vadd.f32 %v4199_v35, %v4155_v40  ;;  %v4157_v44 = vpop.f32.mrb[30].mxu0 }
 0x85d   :  { %v4204_v45 = vadd.f32 %v4195_v15, %v4157_v44  ;;  %v4159_v46 = vpop.f32.mrb[31].mxu0  ;;  %v4212_v49 = vmax.f32 %v4202_v36, 0.0 }
 0x85e   :  { %v4205_v47 = vadd.f32 %v4199_v35, %v4159_v46  ;;  %v4213_v51 = vmax.f32 %v4203_v41, 0.0 }
 0x85f   :  { %v4214_v50 = vmax.f32 %v4204_v45, 0.0 }
 0x860   :  { %v4215_v52 = vmax.f32 %v4205_v47, 0.0 }
 0x861   :  { %v4222_v7 = vpack.c.bf16 %v4214_v50, %v4212_v49 }
 0x862   :  { %v4223_v53 = vpack.c.bf16 %v4215_v52, %v4213_v51  ;;  %v4163_v62 = vpop.f32.mrb[32].mxu0 }
 0x863   :  { %v4206_v54 = vadd.f32 %v4195_v15, %v4163_v62  ;;  %v4165_v57 = vpop.f32.mrb[33].mxu0 }
 0x864   :  { %v4207_v11 = vadd.f32 %v4199_v35, %v4165_v57  ;;  %v4167_v20 = vpop.f32.mrb[34].mxu0  ;;  %4395 = vmatprep.mubr.bf16.mxu1 %v4223_v53 }
 0x865   :  { %v4208_v13 = vadd.f32 %v4195_v15, %v4167_v20  ;;  %v4169_v58 = vpop.f32.mrb[35].mxu0  ;;  %4396 = vmatmul.mubr.bf16.vlgmr.msra.gmra.mrb[64].mxu1 %v4222_v7  ;;  %v4216_v32 = vmax.f32 %v4206_v54, 0.0 }
 0x866   :  { %v4209_v28 = vadd.f32 %v4199_v35, %v4169_v58  ;;  %v4217_v43 = vmax.f32 %v4207_v11, 0.0 }
 0x867   :  { %v4218_v31 = vmax.f32 %v4208_v13, 0.0 }
 0x868   :  { %v4219_v63 = vmax.f32 %v4209_v28, 0.0 }
 0x869   :  { %v4224_v29 = vpack.c.bf16 %v4218_v31, %v4216_v32 }
 0x86a   :  { %v4225_v5 = vpack.c.bf16 %v4219_v63, %v4217_v43  ;;  %v4173_v26 = vpop.f32.mrb[44].mxu0 }
 0x86b   :  { %v4188_v61 = vadd.f32 %v4173_v26, %v3890_v33  ;;  %v4175_v2 = vpop.f32.mrb[45].mxu0 }
 0x86c   :  { %v4189_v4 = vadd.f32 %v4175_v2, %v3892_v37  ;;  %v4177_v0 = vpop.f32.mrb[46].mxu0  ;;  %4403 = vmatprep.mubr.bf16.mxu1 %v4225_v5 }
 0x86d   :  { %v4210_v8 = vadd.f32 %v4195_v15, %v4188_v61  ;;  %v4178_v16 = vpop.f32.mrb[47].mxu0  ;;  %4404 = vmatmul.mubr.bf16.gmra.mrb[68].mxu1 %v4224_v29 }
 0x86e   :  { %v4211_v55 = vadd.f32 %v4199_v35, %v4189_v4 }
 0x86f   :  { %v4220_v60 = vmax.f32 %v4210_v8, 0.0 }
 0x870   :  { %v4221_v1 = vmax.f32 %v4211_v55, 0.0 }
 0x871   :  { %v4226_v18 = vpack.c.bf16 %v4220_v60, %v4220_v60 }
 0x872   :  { %v4227_v59 = vpack.c.bf16 %v4221_v1, %v4221_v1 }
 0x874   :  { %4411 = vmatprep.mubr.bf16.mxu1 %v4227_v59 }
 0x875   :  { %4412 = vmatmul.mubr.bf16.gmra.mrb[72].mxu1 %v4226_v18 }
 0x938   :  { %v4916_v12 = vpop.f32.mrb[64].mxu1 }
 0x939   :  { %v4917_v19 = vpop.f32.mrb[65].mxu1 }
 0x93a   :  { %v4918_v22 = vadd.f32 %v4917_v19, %v4916_v12  ;;  %v4919_v56 = vpop.f32.mrb[66].mxu1 }
 0x93b   :  { %v4920_v23 = vpop.f32.mrb[67].mxu1 }
 0x93c   :  { %v4398_v3 = vadd.f32 %v4918_v22, %v4838_v17  ;;  %v4921_v14 = vadd.f32 %v4920_v23, %v4919_v56 }
 0x93e   :  { %4419 = vst [vmem:[%s6653_s19] sm:$0xff] %v4398_v3  ;;  %v4401_v24 = vadd.f32 %v4921_v14, %v4838_v17 }
 0x940   :  { %4420 = vst [vmem:[%s6653_s19 + $0x8] sm:$0xff] %v4401_v24  ;;  %v4922_v25 = vpop.f32.mrb[68].mxu1 }
 0x941   :  { %v4923_v42 = vpop.f32.mrb[69].mxu1 }
 0x942   :  { %v4924_v27 = vadd.f32 %v4923_v42, %v4922_v25  ;;  %v4925_v30 = vpop.f32.mrb[70].mxu1 }
 0x943   :  { %v4926_v48 = vpop.f32.mrb[71].mxu1 }
 0x944   :  { %v4406_v10 = vadd.f32 %v4924_v27, %v4838_v17  ;;  %v4927_v34 = vadd.f32 %v4926_v48, %v4925_v30 }
 0x946   :  { %4421 = vst [vmem:[%s6653_s19 + $0x10] sm:$0xff] %v4406_v10  ;;  %v4409_v33 = vadd.f32 %v4927_v34, %v4838_v17 }
 0x948   :  { %4422 = vst [vmem:[%s6653_s19 + $0x18] sm:$0xff] %v4409_v33  ;;  %v4928_v9 = vpop.f32.mrb[72].mxu1 }
 0x949   :  { %v4929_v37 = vpop.f32.mrb[73].mxu1 }
 0x94a   :  { %v4930_v38 = vadd.f32 %v4929_v37, %v4928_v9  ;;  %v4931_v39 = vpop.f32.mrb[74].mxu1 }
 0x94b   :  { %v4932_v6 = vpop.f32.mrb[75].mxu1 }
 0x94c   :  { %v4414_v15 = vadd.f32 %v4930_v38, %v4838_v17 }
 0x94e   :  { %4423 = vst [vmem:[%s6653_s19 + $0x20] sm:$0x3] %v4414_v15 }
 0x94f   :  { %4428 = vsyncpa [#allocation4], 1 }
 0x950   :  { %4429 = vsyncpa [#allocation6], 1 }
 0x951   :  { %4430 = vsyncpa [#allocation9], 1 }
 0x952   :  { %4431 = vsyncpa [#allocation12], 1 }
 0x953   :  { %4432 = vsyncpa [#allocation15], 1 }

// kernel: tpu_custom_call.1
= control target key start
LH: loop header
LB: loop body
LE: loop exit
PB: predicated region body
PF: predicated region fallthrough
CT: control target
= control target key end

     0   :  { %s6634_s0 = inlined_call_operand.vmem [shape: f32[1,36,256], index: 0, kind: input, shape index: {}]   ;;  %s6635_s1 = inlined_call_operand.vmem [shape: f32[1,20,128], index: 1, kind: input, shape index: {}]   ;;  %s6636_s2 = inlined_call_operand.vmem [shape: f32[1,12,64], index: 2, kind: input, shape index: {}]   ;;  %s6637_s3 = inlined_call_operand.hbm [shape: bf16[3,256,256], index: 3, kind: input, shape index: {}]   ;;  %s6638_s4 = inlined_call_operand.hbm [shape: f32[1,256], index: 4, kind: input, shape index: {}]   ;;  %s6639_s5 = inlined_call_operand.vmem [shape: bf16[3,128,128], index: 5, kind: input, shape index: {}]   ;;  %s6640_s6 = inlined_call_operand.vmem [shape: f32[1,128], index: 6, kind: input, shape index: {}]   ;;  %s6641_s7 = inlined_call_operand.hbm [shape: bf16[3,64,64], index: 7, kind: input, shape index: {}]   ;;  %s6642_s8 = inlined_call_operand.hbm [shape: f32[1,64], index: 8, kind: input, shape index: {}]   ;;  %s6643_s9 = inlined_call_operand.hbm [shape: bf16[128,256], index: 9, kind: input, shape index: {}]   ;;  %s6644_s10 = inlined_call_operand.vmem [shape: bf16[34,18], index: 10, kind: input, shape index: {}]   ;;  %s6645_s11 = inlined_call_operand.hbm [shape: bf16[64,256], index: 11, kind: input, shape index: {}]   ;;  %s6646_s12 = inlined_call_operand.vmem [shape: bf16[34,10], index: 12, kind: input, shape index: {}]   ;;  %s6647_s13 = inlined_call_operand.hbm [shape: bf16[3,256,256], index: 13, kind: input, shape index: {}]   ;;  %s6648_s14 = inlined_call_operand.vmem [shape: f32[1,256], index: 14, kind: input, shape index: {}]   ;;  %s6649_s15 = inlined_call_operand.hbm [shape: bf16[3,256,256], index: 15, kind: input, shape index: {}]   ;;  %s6650_s16 = inlined_call_operand.vmem [shape: f32[1,256], index: 16, kind: input, shape index: {}]   ;;  %s6651_s17 = inlined_call_operand.vmem [shape: bf16[256,128], index: 17, kind: input, shape index: {}]   ;;  %s6652_s18 = inlined_call_operand.vmem [shape: f32[1,128], index: 18, kind: input, shape index: {}]   ;;  %s6653_s19 = inlined_call_operand.vmem [shape: f32[1,34,128], index: 19, kind: output, shape index: {}]  }
   0x1   :  { %6660 = sst [smem:[#allocation21_spill]] %s6634_s0 }
   0x2   :  { %6661 = sst [smem:[#allocation22_spill]] %s6635_s1 }
   0x3   :  { %6662 = sst [smem:[#allocation23_spill]] %s6636_s2 }
   0x4   :  { %6663 = sst [smem:[#allocation24_spill]] %s6637_s3 }
   0x5   :  { %24 = vsyncpa [#allocation4], 0 }
   0x6   :  { %25 = vsyncpa [#allocation6], 0 }
   0x7   :  { %26 = vsyncpa [#allocation9], 0 }
   0x8   :  { %27 = vsyncpa [#allocation12], 0 }
   0x9   :  { %28 = vsyncpa [#allocation15], 0  ;;  %s5841_s0 = smov [#allocation5]   ;;  %s5842_s20 = smov [#allocation8]  }
   0xa   :  { %s53_s30 = sshll.u32 %s5841_s0, 4  ;;  %s79_s21 = sshll.u32 %s5842_s20, 4  ;;  %s54_s30 = int_to_ptr.vmem [resolvable:$true] %s53_s30  ;;  %s80_s21 = int_to_ptr.vmem [resolvable:$true] %s79_s21 }
   0xb   :  { %s5655_s2 = scalar_lea.hbm %s6638_s4, 32 }
   0xc   :  { %p5656_p0 = scmp.ne.s32.totalorder %s6638_s4, %s5655_s2  ;;  %p5659_p1 = scmp.lt.u32.totalorder %s5655_s2, %s6638_s4 }
   0xe   :  { %p5661_p2 = pnand %p5659_p1, %p5656_p0 }
  0x10   :  { %5664 = shalt.err (!%p5661_p2)
}
  0x11   :  { %s5665_s26 = scalar_lea.vmem %s54_s30, 32  ;;  %p5670_p4 = scmp.lt.s32.totalorder %s54_s30, %s54_s30 }
  0x12   :  { %p5666_p3 = scmp.ne.s32.totalorder %s54_s30, %s5665_s26  ;;  %p5671_p5 = scmp.lt.s32.totalorder %s5665_s26, %s5665_s26 }
  0x14   :  { %p5672_p6 = por %p5671_p5, %p5670_p4 }
  0x16   :  { %p5673_p7 = pnand %p5672_p6, %p5666_p3 }
  0x18   :  { %5676 = shalt.err (!%p5673_p7)
}
  0x19   :  { %56 = dma.hbm_to_vmem [thread:$0]  %s6638_s4, 32, %s54_s30, [#allocation6]  }
  0x1a   :  { %s5677_s20 = scalar_lea.hbm %s6642_s8, 16 }
  0x1b   :  { %p5678_p8 = scmp.ne.s32.totalorder %s6642_s8, %s5677_s20  ;;  %p5681_p9 = scmp.lt.u32.totalorder %s5677_s20, %s6642_s8 }
  0x1d   :  { %p5683_p10 = pnand %p5681_p9, %p5678_p8 }
  0x1f   :  { %5686 = shalt.err (!%p5683_p10)
}
  0x20   :  { %s5687_s24 = scalar_lea.vmem %s80_s21, 16  ;;  %s5691_s25 = scalar_lea.vmem %s80_s21, 32 }
  0x21   :  { %p5688_p11 = scmp.ne.s32.totalorder %s80_s21, %s5687_s24  ;;  %p5692_p12 = scmp.lt.s32.totalorder %s80_s21, %s80_s21 }
  0x22   :  { %p5693_p13 = scmp.lt.s32.totalorder %s5691_s25, %s5687_s24 }
  0x24   :  { %p5694_p0 = por %p5693_p13, %p5692_p12 }
  0x26   :  { %p5695_p1 = pnand %p5694_p0, %p5688_p11 }
  0x28   :  { %5698 = shalt.err (!%p5695_p1)
}
  0x29   :  { %82 = dma.hbm_to_vmem [thread:$0]  %s6642_s8, 16, %s80_s21, [#allocation9]  }
  0x2a   :  { %s5843_s3 = smov [#allocation11]   ;;  %s5844_s27 = smov [#allocation3]  }
  0x2b   :  { %s102_s26 = sshll.u32 %s5843_s3, 4  ;;  %s40_s28 = sshll.u32 %s5844_s27, 4  ;;  %s103_s26 = int_to_ptr.vmem [resolvable:$true] %s102_s26  ;;  %s5980_s28 = int_to_ptr.vmem [resolvable:$true] %s40_s28 }
  0x2c   :  { %s5699_s20 = scalar_lea.hbm %s6645_s11, 1024 }
  0x2d   :  { %p5700_p2 = scmp.ne.s32.totalorder %s6645_s11, %s5699_s20  ;;  %p5703_p3 = scmp.lt.u32.totalorder %s5699_s20, %s6645_s11 }
  0x2f   :  { %p5705_p4 = pnand %p5703_p3, %p5700_p2 }
  0x31   :  { %5708 = shalt.err (!%p5705_p4)
}
  0x32   :  { %s5709_s8 = scalar_lea.vmem %s103_s26, 1024  ;;  %p5714_p6 = scmp.lt.s32.totalorder %s103_s26, %s103_s26 }
  0x33   :  { %p5710_p5 = scmp.ne.s32.totalorder %s103_s26, %s5709_s8  ;;  %p5715_p7 = scmp.lt.s32.totalorder %s5709_s8, %s5709_s8 }
  0x35   :  { %p5716_p8 = por %p5715_p7, %p5714_p6 }
  0x37   :  { %p5717_p9 = pnand %p5716_p8, %p5710_p5 }
  0x39   :  { %5720 = shalt.err (!%p5717_p9)
}
  0x3a   :  { %s5845_s21 = smov 128   ;;  %s5846_s24 = smov 8  }
  0x3b   :  { %108 = dma.hbm_to_vmem [thread:$0]  %s6645_s11, 1024, %s103_s26, [#allocation12], %s5845_s21, %s5845_s21, %s5846_s24  }
  0x3c   :  { %s6664_s27 = sld [smem:[#allocation24_spill]] }
  0x42   :  { %s5721_s29 = scalar_lea.hbm %s6664_s27, 12288 }
  0x43   :  { %p5722_p10 = scmp.ne.s32.totalorder %s6664_s27, %s5721_s29  ;;  %p5725_p11 = scmp.lt.u32.totalorder %s5721_s29, %s6664_s27 }
  0x45   :  { %p5727_p12 = pnand %p5725_p11, %p5722_p10 }
  0x47   :  { %5730 = shalt.err (!%p5727_p12)
}
  0x48   :  { %s5731_s2 = scalar_lea.vmem %s5980_s28, 12288  ;;  %p5736_p0 = scmp.lt.s32.totalorder %s5980_s28, %s5980_s28 }
  0x49   :  { %p5732_p13 = scmp.ne.s32.totalorder %s5980_s28, %s5731_s2  ;;  %p5737_p1 = scmp.lt.s32.totalorder %s5731_s2, %s5731_s2 }
  0x4b   :  { %p5738_p2 = por %p5737_p1, %p5736_p0 }
  0x4d   :  { %p5739_p3 = pnand %p5738_p2, %p5732_p13 }
  0x4f   :  { %5742 = shalt.err (!%p5739_p3)
}
  0x50   :  { %46 = dma.hbm_to_vmem [thread:$0]  %s6664_s27, 12288, %s5980_s28, [#allocation4], %s5845_s21, %s5845_s21, %s5846_s24  }
  0x51   :  { %s5847_s23 = smov [#allocation7]   ;;  %s5743_s30 = scalar_lea.hbm %s6641_s7, 1536 }
  0x52   :  { %s66_s8 = sshll.u32 %s5847_s23, 4  ;;  %p5744_p4 = scmp.ne.s32.totalorder %s6641_s7, %s5743_s30  ;;  %s67_s8 = int_to_ptr.vmem [resolvable:$true] %s66_s8 }
  0x53   :  { %p5747_p5 = scmp.lt.u32.totalorder %s5743_s30, %s6641_s7 }
  0x55   :  { %p5749_p6 = pnand %p5747_p5, %p5744_p4 }
  0x57   :  { %5752 = shalt.err (!%p5749_p6)
}
  0x58   :  { %s5753_s1 = scalar_lea.vmem %s67_s8, 1536  ;;  %p5758_p8 = scmp.lt.s32.totalorder %s67_s8, %s67_s8 }
  0x59   :  { %p5754_p7 = scmp.ne.s32.totalorder %s67_s8, %s5753_s1  ;;  %p5759_p9 = scmp.lt.s32.totalorder %s5753_s1, %s5753_s1 }
  0x5b   :  { %p5760_p10 = por %p5759_p9, %p5758_p8 }
  0x5d   :  { %p5761_p11 = pnand %p5760_p10, %p5754_p7 }
  0x5f   :  { %5764 = shalt.err (!%p5761_p11)
}
  0x60   :  { %s5848_s28 = smov 64   ;;  %s5849_s27 = smov 4  }
  0x61   :  { %72 = dma.hbm_to_vmem [thread:$0]  %s6641_s7, 1536, %s67_s8, [#allocation6], %s5848_s28, %s5848_s28, %s5849_s27  }
  0x62   :  { %s5850_s11 = smov [#allocation10]   ;;  %s5851_s23 = smov [#allocation13]  }
  0x63   :  { %s88_s26 = sshll.u32 %s5850_s11, 4  ;;  %s116_s25 = sshll.u32 %s5851_s23, 4  ;;  %s89_s26 = int_to_ptr.vmem [resolvable:$true] %s88_s26  ;;  %s117_s25 = int_to_ptr.vmem [resolvable:$true] %s116_s25 }
  0x64   :  { %s5765_s3 = scalar_lea.hbm %s6643_s9, 2048 }
  0x65   :  { %p5766_p12 = scmp.ne.s32.totalorder %s6643_s9, %s5765_s3  ;;  %p5769_p13 = scmp.lt.u32.totalorder %s5765_s3, %s6643_s9 }
  0x67   :  { %p5771_p0 = pnand %p5769_p13, %p5766_p12 }
  0x69   :  { %5774 = shalt.err (!%p5771_p0)
}
  0x6a   :  { %s5775_s7 = scalar_lea.vmem %s89_s26, 2048  ;;  %p5780_p2 = scmp.lt.s32.totalorder %s89_s26, %s89_s26 }
  0x6b   :  { %p5776_p1 = scmp.ne.s32.totalorder %s89_s26, %s5775_s7  ;;  %p5781_p3 = scmp.lt.s32.totalorder %s5775_s7, %s5775_s7 }
  0x6d   :  { %p5782_p4 = por %p5781_p3, %p5780_p2 }
  0x6f   :  { %p5783_p5 = pnand %p5782_p4, %p5776_p1 }
  0x71   :  { %5786 = shalt.err (!%p5783_p5)
}
  0x72   :  { %94 = dma.hbm_to_vmem [thread:$0]  %s6643_s9, 2048, %s89_s26, [#allocation9], %s5845_s21, %s5845_s21, %s5846_s24  }
  0x73   :  { %s5787_s2 = scalar_lea.hbm %s6647_s13, 12288 }
  0x74   :  { %p5788_p6 = scmp.ne.s32.totalorder %s6647_s13, %s5787_s2  ;;  %p5791_p7 = scmp.lt.u32.totalorder %s5787_s2, %s6647_s13 }
  0x76   :  { %p5793_p8 = pnand %p5791_p7, %p5788_p6 }
  0x78   :  { %5796 = shalt.err (!%p5793_p8)
}
  0x79   :  { %s5797_s3 = scalar_lea.vmem %s117_s25, 12288  ;;  %p5802_p10 = scmp.lt.s32.totalorder %s117_s25, %s117_s25 }
  0x7a   :  { %p5798_p9 = scmp.ne.s32.totalorder %s117_s25, %s5797_s3  ;;  %p5803_p11 = scmp.lt.s32.totalorder %s5797_s3, %s5797_s3 }
  0x7c   :  { %p5804_p12 = por %p5803_p11, %p5802_p10 }
  0x7e   :  { %p5805_p13 = pnand %p5804_p12, %p5798_p9 }
  0x80   :  { %5808 = shalt.err (!%p5805_p13)
}
  0x81   :  { %122 = dma.hbm_to_vmem [thread:$0]  %s6647_s13, 12288, %s117_s25, [#allocation12], %s5845_s21, %s5845_s21, %s5846_s24  }
  0x82   :  { %s5852_s29 = smov [#allocation14]   ;;  %s5809_s7 = scalar_lea.hbm %s6649_s15, 12288 }
  0x83   :  { %s130_s0 = sshll.u32 %s5852_s29, 4  ;;  %p5810_p0 = scmp.ne.s32.totalorder %s6649_s15, %s5809_s7  ;;  %s131_s0 = int_to_ptr.vmem [resolvable:$true] %s130_s0 }
  0x84   :  { %p5813_p1 = scmp.lt.u32.totalorder %s5809_s7, %s6649_s15 }
  0x86   :  { %p5815_p2 = pnand %p5813_p1, %p5810_p0 }
  0x88   :  { %5818 = shalt.err (!%p5815_p2)
}
  0x89   :  { %s5819_s2 = scalar_lea.vmem %s131_s0, 12288  ;;  %p5824_p4 = scmp.lt.s32.totalorder %s131_s0, %s131_s0 }
  0x8a   :  { %p5820_p3 = scmp.ne.s32.totalorder %s131_s0, %s5819_s2  ;;  %p5825_p5 = scmp.lt.s32.totalorder %s5819_s2, %s5819_s2 }
  0x8c   :  { %p5826_p6 = por %p5825_p5, %p5824_p4 }
  0x8e   :  { %p5827_p7 = pnand %p5826_p6, %p5820_p3 }
  0x90   :  { %5830 = shalt.err (!%p5827_p7)
}
  0x91   :  { %136 = dma.hbm_to_vmem [thread:$0]  %s6649_s15, 12288, %s131_s0, [#allocation15], %s5845_s21, %s5845_s21, %s5846_s24  }
  0x92   :  { %5831 = dma.done.wait [#allocation4], 12288  }
  0x93   :  { %5832 = vsyncadd [#allocation4], 4294955008 }
  0x94   :  { %5833 = dma.done.wait [#allocation6], 1568  }
  0x95   :  { %5834 = vsyncadd [#allocation6], 4294965728 }
  0x96   :  { %5835 = dma.done.wait [#allocation9], 2064  }
  0x97   :  { %5836 = vsyncadd [#allocation9], 4294965232 }
  0x98   :  { %5837 = dma.done.wait [#allocation12], 13312  }
  0x99   :  { %5838 = vsyncadd [#allocation12], 4294953984 }
  0x9a   :  { %5839 = dma.done.wait [#allocation15], 12288  }
  0x9b   :  { %5840 = vsyncadd [#allocation15], 4294955008  ;;  %v5129_v0 = vld [vmem:[%s6639_s5 + $0x40] sm:$0xff]   ;;  %v5130_v1 = vld [vmem:[%s6639_s5 + $0x48] sm:$0xff]   ;;  %s6665_s29 = sld [smem:[#allocation22_spill]]  ;;  %v5853_v55 = vmov 0  }
  0x9c   :  { %4934 = vmatprep.subr.bf16.mxu1 %v5129_v0  ;;  %v5131_v2 = vld [vmem:[%s6639_s5 + $0x50] sm:$0xff]   ;;  %v5132_v3 = vld [vmem:[%s6639_s5 + $0x58] sm:$0xff]   ;;  %v5133_v7 = vld [vmem:[%s6639_s5 + $0x60] sm:$0xff]   ;;  %s6666_s30 = sld [smem:[#allocation21_spill]]  ;;  %vm6659_vm0 = vsmask.f32 7424 }
  0x9d   :  { %4935 = vmatpush3.bf16.msra.mxu1 %v5129_v0  ;;  %v5134_v8 = vld [vmem:[%s6639_s5 + $0x68] sm:$0xff]   ;;  %v5135_v9 = vld [vmem:[%s6639_s5 + $0x70] sm:$0xff]   ;;  %v5136_v10 = vld [vmem:[%s6639_s5 + $0x78] sm:$0xff]   ;;  %vm6658_vm1 = vcmask 1046528   ;;  %vm1745_vm2 = vcmask 1040384   ;;  %vm1735_vm3 = vcmask 146432  }
  0x9e   :  { %4936 = vmatprep.subr.bf16.mxu1 %v5130_v1  ;;  %v5137_v12 = vld [vmem:[%s6639_s5] sm:$0xff]   ;;  %v5138_v16 = vld [vmem:[%s6639_s5 + $0x8] sm:$0xff]   ;;  %v5139_v18 = vld [vmem:[%s6639_s5 + $0x10] sm:$0xff]   ;;  %vm5855_vm4 = vmmov 0   ;;  %vm1870_vm5 = vcmask 523264   ;;  %vm2201_vm6 = vcmask 1044480  }
  0x9f   :  { %v5140_v19 = vld [vmem:[%s6639_s5 + $0x18] sm:$0xff]   ;;  %v5141_v20 = vld [vmem:[%s6639_s5 + $0x20] sm:$0xff]   ;;  %v5142_v21 = vld [vmem:[%s6639_s5 + $0x28] sm:$0xff]   ;;  %vm2191_vm7 = vcmask 80896  }
  0xa0   :  { %v5143_v22 = vld [vmem:[%s6639_s5 + $0x30] sm:$0xff]   ;;  %v5144_v23 = vld [vmem:[%s6639_s5 + $0x38] sm:$0xff]   ;;  %v5145_v25 = vld [vmem:[%s6639_s5 + $0x80] sm:$0xff]  }
  0xa1   :  { %4937 = vmatpush3.bf16.msra.mxu1 %v5130_v1  ;;  %v1216_v4 = vld [vmem:[%s6665_s29 + $0x1] sm:$0xff]  ;;  %v1217_v5 = vld [vmem:[%s6665_s29 + $0x9] sm:$0xff]  ;;  %v1218_v11 = vld [vmem:[%s6665_s29 + $0x11] sm:$0x3] }
  0xa2   :  { %4938 = vmatprep.subr.bf16.mxu1 %v5131_v2  ;;  %v1219_v6 = vpack.c.bf16 %v1217_v5, %v1216_v4  ;;  %v1195_v13 = vld [vmem:[%s6665_s29] sm:$0xff]  ;;  %v1196_v14 = vld [vmem:[%s6665_s29 + $0x8] sm:$0xff]  ;;  %v1220_v15 = vpack.c.bf16 %v1218_v11, %v1218_v11  ;;  %v1197_v24 = vld [vmem:[%s6665_s29 + $0x10] sm:$0x3] }
  0xa3   :  { %v1198_v17 = vpack.c.bf16 %v1196_v14, %v1195_v13  ;;  %v1430_v26 = vld [vmem:[%s6665_s29 + $0x2] sm:$0xff]  ;;  %v1431_v27 = vld [vmem:[%s6665_s29 + $0xa] sm:$0xff]  ;;  %v1199_v28 = vpack.c.bf16 %v1197_v24, %v1197_v24  ;;  %v5148_v32 = vld [vmem:[%s6639_s5 + $0x98] sm:$0xff]  }
  0xa4   :  { %4950 = vmatprep.mubr.bf16.mxu1 %v1219_v6  ;;  %v5146_v29 = vld [vmem:[%s6639_s5 + $0x88] sm:$0xff]   ;;  %v1433_v30 = vpack.c.bf16 %v1431_v27, %v1430_v26  ;;  %v5147_v31 = vld [vmem:[%s6639_s5 + $0x90] sm:$0xff]   ;;  %v5149_v33 = vld [vmem:[%s6639_s5 + $0xa0] sm:$0xff]  }
  0xa5   :  { %4939 = vmatpush3.bf16.msra.mxu1 %v5131_v2  ;;  %v5150_v34 = vld [vmem:[%s6639_s5 + $0xa8] sm:$0xff]   ;;  %v5151_v35 = vld [vmem:[%s6639_s5 + $0xb0] sm:$0xff]   ;;  %v5152_v36 = vld [vmem:[%s6639_s5 + $0xb8] sm:$0xff]   ;;  %s6667_s5 = sld [smem:[#allocation23_spill]] }
  0xa6   :  { %4940 = vmatprep.subr.bf16.mxu1 %v5132_v3  ;;  %v1432_v37 = vld [vmem:[%s6665_s29 + $0x12] sm:$0x3]  ;;  %v5153_v39 = vld [vmem:[#allocation10] ss:$8 sps:$4 sm:$0xff]   ;;  %v5155_v40 = vld [vmem:[#allocation10 + $0x4] ss:$8 sps:$4 sm:$0xff]  }
  0xa7   :  { %v1434_v38 = vpack.c.bf16 %v1432_v37, %v1432_v37  ;;  %v5158_v41 = vld [vmem:[#allocation10 + $0x14] ss:$8 sps:$4 sm:$0xff]   ;;  %v5156_v42 = vld [vmem:[#allocation10 + $0x10] ss:$8 sps:$4 sm:$0xff]   ;;  %v5161_v43 = vld [vmem:[#allocation10 + $0x24] ss:$8 sps:$4 sm:$0xff]  }
  0xa8   :  { %v5159_v44 = vld [vmem:[#allocation10 + $0x20] ss:$8 sps:$4 sm:$0xff]   ;;  %v5164_v45 = vld [vmem:[#allocation10 + $0x34] ss:$8 sps:$4 sm:$0xff]   ;;  %v5162_v46 = vld [vmem:[#allocation10 + $0x30] ss:$8 sps:$4 sm:$0xff]  }
  0xa9   :  { %4941 = vmatpush3.bf16.msra.mxu1 %v5132_v3  ;;  %v5167_v47 = vld [vmem:[#allocation10 + $0x44] ss:$8 sps:$4 sm:$0xff]   ;;  %v5165_v48 = vld [vmem:[#allocation10 + $0x40] ss:$8 sps:$4 sm:$0xff]   ;;  %v5170_v49 = vld [vmem:[#allocation10 + $0x54] ss:$8 sps:$4 sm:$0xff]  }
  0xaa   :  { %4942 = vmatprep.subr.bf16.mxu1 %v5133_v7  ;;  %v5168_v50 = vld [vmem:[#allocation10 + $0x50] ss:$8 sps:$4 sm:$0xff]   ;;  %v5173_v51 = vld [vmem:[#allocation10 + $0x64] ss:$8 sps:$4 sm:$0xff]   ;;  %v5171_v52 = vld [vmem:[#allocation10 + $0x60] ss:$8 sps:$4 sm:$0xff]  }
  0xab   :  { %v5176_v53 = vld [vmem:[#allocation10 + $0x74] ss:$8 sps:$4 sm:$0xff]   ;;  %v5174_v54 = vld [vmem:[#allocation10 + $0x70] ss:$8 sps:$4 sm:$0xff]   ;;  %v5177_v56 = vld [vmem:[#allocation3 + $0x104] ss:$8 sps:$4 sm:$0xff]  }
  0xac   :  { %v5179_v57 = vld [vmem:[#allocation3 + $0x100] ss:$8 sps:$4 sm:$0xff]   ;;  %v5180_v58 = vld [vmem:[#allocation3 + $0x114] ss:$8 sps:$4 sm:$0xff]   ;;  %586 = vmatprep.subr.bf16.mxu0 %v5177_v56  ;;  %v5182_v59 = vld [vmem:[#allocation3 + $0x110] ss:$8 sps:$4 sm:$0xff]  }
  0xad   :  { %4943 = vmatpush3.bf16.msra.mxu1 %v5133_v7  ;;  %587 = vmatpush1.bf16.msra.mxu0 %v5179_v57  ;;  %v5183_v60 = vld [vmem:[#allocation3 + $0x124] ss:$8 sps:$4 sm:$0xff]   ;;  %v5185_v61 = vld [vmem:[#allocation3 + $0x120] ss:$8 sps:$4 sm:$0xff]   ;;  %v5186_v62 = vld [vmem:[#allocation3 + $0x134] ss:$8 sps:$4 sm:$0xff]  }
  0xae   :  { %4944 = vmatprep.subr.bf16.mxu1 %v5134_v8  ;;  %588 = vmatprep.subr.bf16.mxu0 %v5180_v58  ;;  %v5188_v63 = vld [vmem:[#allocation3 + $0x130] ss:$8 sps:$4 sm:$0xff]   ;;  %v6177_v0 = vld [vmem:[%s6666_s30 + $0x18] sm:$0xff]  ;;  %v5192_v11 = vld [vmem:[#allocation3 + $0x154] ss:$8 sps:$4 sm:$0xff]  }
  0xaf   :  { %v289_v1 = vld [vmem:[%s6666_s30 + $0x28] sm:$0xff]  ;;  %v291_v2 = vld [vmem:[%s6666_s30 + $0x38] sm:$0xff] }
  0xb0   :  { %v333_v3 = vld [vmem:[%s6666_s30 + $0x8] sm:$0xfe]  ;;  %v5189_v4 = vld [vmem:[#allocation3 + $0x144] ss:$8 sps:$4 sm:$0xff]   ;;  %v6188_v5 = vpack.c.bf16 %v291_v2, %v289_v1  ;;  %v5209_v26 = vld [vmem:[#allocation3 + $0x1a0] ss:$8 sps:$4 sm:$0xff]  }
  0xb1   :  { %4945 = vmatpush3.bf16.msra.mxu1 %v5134_v8  ;;  %589 = vmatpush1.bf16.msra.mxu0 %v5182_v59  ;;  %v337_v6 = vpack.c.bf16 %v6177_v0, %v333_v3  ;;  %v5206_v24 = vld [vmem:[#allocation3 + $0x190] ss:$8 sps:$4 sm:$0xff]   ;;  %v5210_v27 = vld [vmem:[#allocation3 + $0x1b4] ss:$8 sps:$4 sm:$0xff]  }
  0xb2   :  { %4946 = vmatprep.subr.bf16.mxu1 %v5135_v9  ;;  %590 = vmatprep.subr.bf16.mxu0 %v5183_v60  ;;  %v5224_v56 = vld [vmem:[#allocation3 + $0x1f0] ss:$8 sps:$4 sm:$0xff]   ;;  %v5227_v60 = vld [vmem:[#allocation3 + $0x4] ss:$8 sps:$4 sm:$0xff]  }
  0xb3   :  { %v387_v7 = vshrl.u32 %v337_v6, 16  ;;  %v389_v8 = vshll.u32 %v337_v6, 16 }
  0xb5   :  { %4947 = vmatpush3.bf16.msra.mxu1 %v5135_v9  ;;  %591 = vmatpush1.bf16.msra.mxu0 %v5185_v61  ;;  %v394_v9 = vshll.u32 %v6188_v5, 16 }
  0xb6   :  { %4948 = vmatprep.subr.bf16.mxu1 %v5136_v10  ;;  %592 = vmatprep.subr.bf16.mxu0 %v5186_v62 }
  0xb7   :  { %v6192_v13 = vrot.slane %v394_v9, 1 }
  0xb9   :  { %4949 = vmatpush3.bf16.msra.mxu1 %v5136_v10  ;;  %593 = vmatpush1.bf16.msra.mxu0 %v5188_v63  ;;  %v5191_v10 = vld [vmem:[#allocation3 + $0x140] ss:$8 sps:$4 sm:$0xff]  }
  0xba   :  { %4954 = vmatprep.subr.bf16.mxu1 %v5137_v12  ;;  %594 = vmatprep.subr.bf16.mxu0 %v5189_v4  ;;  %v5225_v63 = vld [vmem:[#allocation3] ss:$8 sps:$4 sm:$0xff]   ;;  %v5230_v4 = vld [vmem:[#allocation3 + $0x14] ss:$8 sps:$4 sm:$0xff]  }
  0xbc   :  { %4951 = vmatmul.mubr.bf16.vlgmr.msra.gmra.mrb[0].mxu1 %v1220_v15  ;;  %v5194_v15 = vld [vmem:[#allocation3 + $0x150] ss:$8 sps:$4 sm:$0xff]  }
  0xbd   :  { %4955 = vmatpush3.bf16.msra.mxu1 %v5137_v12  ;;  %4970 = vmatprep.mubr.bf16.mxu1 %v1198_v17  ;;  %v391_v12 = vrot.slane %v389_v8, 1 }
  0xbe   :  { %4956 = vmatprep.subr.bf16.mxu1 %v5138_v16  ;;  %595 = vmatpush1.bf16.msra.mxu0 %v5191_v10 }
  0xbf   :  { %v392_v14 = vor.u32 %v391_v12, %v387_v7  ;;  %596 = vmatprep.subr.bf16.mxu0 %v5192_v11  ;;  %v5228_v7 = vld [vmem:[#allocation3 + $0x10] ss:$8 sps:$4 sm:$0xff]   ;;  %v5233_v11 = vld [vmem:[#allocation3 + $0x24] ss:$8 sps:$4 sm:$0xff]   ;;  %v5231_v12 = vld [vmem:[#allocation3 + $0x20] ss:$8 sps:$4 sm:$0xff]  }
  0xc1   :  { %4957 = vmatpush3.bf16.msra.mxu1 %v5138_v16  ;;  %v5195_v16 = vld [vmem:[#allocation3 + $0x164] ss:$8 sps:$4 sm:$0xff]   ;;  %v397_v17 = vsel %vm6659_vm0, %v392_v14, %v6192_v13 }
  0xc2   :  { %4958 = vmatprep.subr.bf16.mxu1 %v5139_v18  ;;  %618 = vmatprep.mubr.bf16.mxu0 %v397_v17  ;;  %v5234_v17 = vld [vmem:[#allocation3 + $0x30] ss:$8 sps:$4 sm:$0xff]  }
  0xc3   :  { %597 = vmatpush1.bf16.msra.mxu0 %v5194_v15  ;;  %v5236_v15 = vld [vmem:[#allocation3 + $0x34] ss:$8 sps:$4 sm:$0xff]  }
  0xc4   :  { %598 = vmatprep.subr.bf16.mxu0 %v5195_v16 }
  0xc5   :  { %4959 = vmatpush3.bf16.msra.mxu1 %v5139_v18  ;;  %v5197_v18 = vld [vmem:[#allocation3 + $0x160] ss:$8 sps:$4 sm:$0xff]  }
  0xc6   :  { %4960 = vmatprep.subr.bf16.mxu1 %v5140_v19 }
  0xc7   :  { %599 = vmatpush1.bf16.msra.mxu0 %v5197_v18 }
  0xc9   :  { %4961 = vmatpush3.bf16.msra.mxu1 %v5140_v19  ;;  %v5198_v19 = vld [vmem:[#allocation3 + $0x174] ss:$8 sps:$4 sm:$0xff]  }
  0xca   :  { %4962 = vmatprep.subr.bf16.mxu1 %v5141_v20  ;;  %600 = vmatprep.subr.bf16.mxu0 %v5198_v19  ;;  %v5239_v19 = vld [vmem:[#allocation3 + $0x44] ss:$8 sps:$4 sm:$0xff]  }
  0xcd   :  { %4963 = vmatpush3.bf16.msra.mxu1 %v5141_v20  ;;  %v5200_v20 = vld [vmem:[#allocation3 + $0x170] ss:$8 sps:$4 sm:$0xff]  }
  0xce   :  { %4964 = vmatprep.subr.bf16.mxu1 %v5142_v21  ;;  %601 = vmatpush1.bf16.msra.mxu0 %v5200_v20  ;;  %v285_v20 = vld [vmem:[%s6666_s30 + $0x8] sm:$0xff] }
  0xd1   :  { %4965 = vmatpush3.bf16.msra.mxu1 %v5142_v21  ;;  %v5201_v21 = vld [vmem:[#allocation3 + $0x184] ss:$8 sps:$4 sm:$0xff]  }
  0xd2   :  { %4966 = vmatprep.subr.bf16.mxu1 %v5143_v22  ;;  %602 = vmatprep.subr.bf16.mxu0 %v5201_v21 }
  0xd5   :  { %4967 = vmatpush3.bf16.msra.mxu1 %v5143_v22  ;;  %v5203_v22 = vld [vmem:[#allocation3 + $0x180] ss:$8 sps:$4 sm:$0xff]  }
  0xd6   :  { %4968 = vmatprep.subr.bf16.mxu1 %v5144_v23  ;;  %603 = vmatpush1.bf16.msra.mxu0 %v5203_v22 }
  0xd9   :  { %4969 = vmatpush3.bf16.msra.mxu1 %v5144_v23  ;;  %v5204_v23 = vld [vmem:[#allocation3 + $0x194] ss:$8 sps:$4 sm:$0xff]  }
  0xda   :  { %4974 = vmatprep.subr.bf16.mxu1 %v5145_v25  ;;  %604 = vmatprep.subr.bf16.mxu0 %v5204_v23 }
  0xdb   :  { %605 = vmatpush1.bf16.msra.mxu0 %v5206_v24 }
  0xdc   :  { %4971 = vmatmul.mubr.bf16.vlgmr.msra.gmra.mrb[4].mxu1 %v1199_v28  ;;  %v5212_v28 = vld [vmem:[#allocation3 + $0x1b0] ss:$8 sps:$4 sm:$0xff]  }
  0xdd   :  { %4975 = vmatpush3.bf16.msra.mxu1 %v5145_v25  ;;  %4990 = vmatprep.mubr.bf16.mxu1 %v1433_v30  ;;  %v5207_v25 = vld [vmem:[#allocation3 + $0x1a4] ss:$8 sps:$4 sm:$0xff]  }
  0xde   :  { %4976 = vmatprep.subr.bf16.mxu1 %v5146_v29  ;;  %606 = vmatprep.subr.bf16.mxu0 %v5207_v25  ;;  %v5213_v30 = vld [vmem:[#allocation3 + $0x1c4] ss:$8 sps:$4 sm:$0xff]  }
  0xdf   :  { %607 = vmatpush1.bf16.msra.mxu0 %v5209_v26 }
  0xe0   :  { %608 = vmatprep.subr.bf16.mxu0 %v5210_v27  ;;  %v5237_v27 = vld [vmem:[#allocation3 + $0x40] ss:$8 sps:$4 sm:$0xff]  }
  0xe1   :  { %4977 = vmatpush3.bf16.msra.mxu1 %v5146_v29 }
  0xe2   :  { %4978 = vmatprep.subr.bf16.mxu1 %v5147_v31 }
  0xe3   :  { %609 = vmatpush1.bf16.msra.mxu0 %v5212_v28  ;;  %v295_v28 = vpack.c.bf16 %v6177_v0, %v285_v20  ;;  %v5282_v20 = vld [vmem:[#allocation3 + $0x230] ss:$8 sps:$4 sm:$0xff]  }
  0xe4   :  { %610 = vmatprep.subr.bf16.mxu0 %v5213_v30 }
  0xe5   :  { %4979 = vmatpush3.bf16.msra.mxu1 %v5147_v31  ;;  %v6201_v31 = vld [vmem:[%s6666_s30 + $0x10] sm:$0xff] }
  0xe6   :  { %4980 = vmatprep.subr.bf16.mxu1 %v5148_v32 }
  0xe9   :  { %4981 = vmatpush3.bf16.msra.mxu1 %v5148_v32  ;;  %v332_v32 = vld [vmem:[%s6666_s30] sm:$0xfe] }
  0xea   :  { %4982 = vmatprep.subr.bf16.mxu1 %v5149_v33  ;;  %v336_v37 = vpack.c.bf16 %v6201_v31, %v332_v32  ;;  %v5242_v32 = vld [vmem:[#allocation3 + $0x54] ss:$8 sps:$4 sm:$0xff]  }
  0xed   :  { %4983 = vmatpush3.bf16.msra.mxu1 %v5149_v33 }
  0xee   :  { %4984 = vmatprep.subr.bf16.mxu1 %v5150_v34 }
  0xf1   :  { %4985 = vmatpush3.bf16.msra.mxu1 %v5150_v34 }
  0xf2   :  { %4986 = vmatprep.subr.bf16.mxu1 %v5151_v35 }
  0xf5   :  { %4987 = vmatpush3.bf16.msra.mxu1 %v5151_v35 }
  0xf6   :  { %4988 = vmatprep.subr.bf16.mxu1 %v5152_v36 }
  0xf9   :  { %4989 = vmatpush3.bf16.msra.mxu1 %v5152_v36  ;;  %v5215_v36 = vld [vmem:[#allocation3 + $0x1c0] ss:$8 sps:$4 sm:$0xff]  }
  0xfa   :  { %1662 = vmatprep.subr.bf16.mxu1 %v5155_v40  ;;  %v290_v40 = vld [vmem:[%s6666_s30 + $0x30] sm:$0xff]  ;;  %611 = vmatpush1.bf16.msra.mxu0 %v5215_v36 }
  0xfb   :  { %v5243_v36 = vld [vmem:[#allocation3 + $0x60] ss:$8 sps:$4 sm:$0xff]  }
  0xfc   :  { %4991 = vmatmul.mubr.bf16.vlgmr.msra.gmra.mrb[8].mxu1 %v1434_v38  ;;  %v5216_v38 = vld [vmem:[#allocation3 + $0x1d4] ss:$8 sps:$4 sm:$0xff]  }
  0xfd   :  { %1663 = vmatpush1.bf16.msra.mxu1 %v5153_v39  ;;  %1694 = vmatprep.mubr.bf16.mxu1 %v5853_v55  ;;  %v288_v39 = vld [vmem:[%s6666_s30 + $0x20] sm:$0xff] }
  0xfe   :  { %1664 = vmatprep.subr.bf16.mxu1 %v5158_v41  ;;  %v335_v41 = vld [vmem:[%s6666_s30 + $0x48] sm:$0x7]  ;;  %612 = vmatprep.subr.bf16.mxu0 %v5216_v38  ;;  %v5251_v38 = vld [vmem:[#allocation3 + $0x84] ss:$8 sps:$4 sm:$0xff]  }
 0x101   :  { %1665 = vmatpush1.bf16.msra.mxu1 %v5156_v42  ;;  %v5218_v42 = vld [vmem:[#allocation3 + $0x1d0] ss:$8 sps:$4 sm:$0xff]  }
 0x102   :  { %1666 = vmatprep.subr.bf16.mxu1 %v5161_v43  ;;  %v6220_v43 = vpack.c.bf16 %v290_v40, %v288_v39  ;;  %613 = vmatpush1.bf16.msra.mxu0 %v5218_v42  ;;  %v5249_v39 = vld [vmem:[#allocation3 + $0x80] ss:$8 sps:$4 sm:$0xff]   ;;  %v5252_v40 = vld [vmem:[#allocation3 + $0x90] ss:$8 sps:$4 sm:$0xff]  }
 0x103   :  { %v5255_v42 = vld [vmem:[#allocation3 + $0xa0] ss:$8 sps:$4 sm:$0xff]  }
 0x104   :  { %v398_v2 = vshrl.u32 %v6220_v43, 16 }
 0x105   :  { %1667 = vmatpush1.bf16.msra.mxu1 %v5159_v44  ;;  %v377_v44 = vshll.u32 %v336_v37, 16 }
 0x106   :  { %1668 = vmatprep.subr.bf16.mxu1 %v5164_v45  ;;  %v5219_v45 = vld [vmem:[#allocation3 + $0x1e4] ss:$8 sps:$4 sm:$0xff]  }
 0x107   :  { %614 = vmatprep.subr.bf16.mxu0 %v5219_v45  ;;  %v5258_v45 = vld [vmem:[#allocation3 + $0xb0] ss:$8 sps:$4 sm:$0xff]  }
 0x109   :  { %1669 = vmatpush1.bf16.msra.mxu1 %v5162_v46  ;;  %v339_v46 = vpack.c.bf16 %v335_v41, %v335_v41  ;;  %v5257_v41 = vld [vmem:[#allocation3 + $0xa4] ss:$8 sps:$4 sm:$0xff]  }
 0x10a   :  { %1670 = vmatprep.subr.bf16.mxu1 %v5167_v47  ;;  %v5221_v47 = vld [vmem:[#allocation3 + $0x1e0] ss:$8 sps:$4 sm:$0xff]  }
 0x10b   :  { %615 = vmatpush1.bf16.msra.mxu0 %v5221_v47  ;;  %v417_v10 = vshrl.u32 %v339_v46, 16  ;;  %v5263_v47 = vld [vmem:[#allocation3 + $0xc4] ss:$8 sps:$4 sm:$0xff]  }
 0x10d   :  { %1671 = vmatpush1.bf16.msra.mxu1 %v5165_v48  ;;  %v375_v48 = vshrl.u32 %v336_v37, 16  ;;  %v5246_v37 = vld [vmem:[#allocation3 + $0x70] ss:$8 sps:$4 sm:$0xff]  }
 0x10e   :  { %1672 = vmatprep.subr.bf16.mxu1 %v5170_v49  ;;  %v379_v49 = vrot.slane %v377_v44, 1  ;;  %v5260_v44 = vld [vmem:[#allocation3 + $0xb4] ss:$8 sps:$4 sm:$0xff]  }
 0x110   :  { %v380_v57 = vor.u32 %v379_v49, %v375_v48  ;;  %v4590_v49 = vld [vmem:[%s6640_s6] ss:$0 sm:$0xff] }
 0x111   :  { %1673 = vmatpush1.bf16.msra.mxu1 %v5168_v50  ;;  %v382_v50 = vshll.u32 %v6220_v43, 16 }
 0x112   :  { %1674 = vmatprep.subr.bf16.mxu1 %v5173_v51  ;;  %v5222_v51 = vld [vmem:[#allocation3 + $0x1f4] ss:$8 sps:$4 sm:$0xff]  }
 0x113   :  { %v384_v58 = vrot.slane %v382_v50, 1  ;;  %616 = vmatprep.subr.bf16.mxu0 %v5222_v51 }
 0x114   :  { %617 = vmatpush1.bf16.msra.mxu0 %v5224_v56 }
 0x115   :  { %1675 = vmatpush1.bf16.msra.mxu1 %v5171_v52  ;;  %v406_v52 = vshrl.u32 %v6188_v5, 16  ;;  %v385_v1 = vsel %vm6659_vm0, %v380_v57, %v384_v58  ;;  %807 = vmatprep.subr.bf16.mxu0 %v5227_v60  ;;  %v400_v8 = vor.u32 %v398_v2, %v384_v58  ;;  %v5266_v58 = vld [vmem:[#allocation3 + $0xd4] ss:$8 sps:$4 sm:$0xff]   ;;  %v5264_v60 = vld [vmem:[#allocation3 + $0xd0] ss:$8 sps:$4 sm:$0xff]  }
 0x116   :  { %1676 = vmatprep.subr.bf16.mxu1 %v5176_v53  ;;  %v410_v53 = vshll.u32 %v339_v46, 16 }
 0x117   :  { %v408_v61 = vor.u32 %v406_v52, %v6192_v13  ;;  %619 = vmatmul.mubr.bf16.vlgmr.msra.gmra.mrb[0].mxu0 %v385_v1 }
 0x118   :  { %v412_v62 = vrot.slane %v410_v53, 1  ;;  %808 = vmatpush1.bf16.msra.mxu0 %v5225_v63  ;;  %v5269_v63 = vld [vmem:[#allocation3 + $0xe4] ss:$8 sps:$4 sm:$0xff]  }
 0x119   :  { %1677 = vmatpush1.bf16.msra.mxu1 %v5174_v54  ;;  %v334_v54 = vld [vmem:[%s6666_s30 + $0x40] sm:$0x7]  ;;  %809 = vmatprep.subr.bf16.mxu0 %v5230_v4  ;;  %v5272_v4 = vld [vmem:[#allocation3 + $0xf4] ss:$8 sps:$4 sm:$0xff]  }
 0x11a   :  { %v338_v59 = vpack.c.bf16 %v334_v54, %v334_v54  ;;  %v413_v6 = vsel %vm6659_vm0, %v408_v61, %v412_v62  ;;  %v419_v14 = vor.u32 %v417_v10, %v412_v62  ;;  %v5261_v54 = vld [vmem:[#allocation3 + $0xc0] ss:$8 sps:$4 sm:$0xff]  }
 0x11b   :  { %628 = vmatprep.mubr.bf16.mxu0 %v413_v6 }
 0x11c   :  { %v402_v3 = vshll.u32 %v338_v59, 16  ;;  %810 = vmatpush1.bf16.msra.mxu0 %v5228_v7  ;;  %v414_v16 = vshrl.u32 %v338_v59, 16  ;;  %v5270_v7 = vld [vmem:[#allocation3 + $0xf0] ss:$8 sps:$4 sm:$0xff]  }
 0x11d   :  { %811 = vmatprep.subr.bf16.mxu0 %v5233_v11 }
 0x11e   :  { %v404_v9 = vrot.slane %v402_v3, 1  ;;  %v5267_v3 = vld [vmem:[#allocation3 + $0xe0] ss:$8 sps:$4 sm:$0xff]  }
 0x120   :  { %v405_v13 = vsel %vm6659_vm0, %v400_v8, %v404_v9  ;;  %812 = vmatpush1.bf16.msra.mxu0 %v5231_v12  ;;  %v416_v25 = vor.u32 %v414_v16, %v404_v9  ;;  %v284_v8 = vld [vmem:[%s6666_s30] sm:$0xff]  ;;  %v5275_v9 = vld [vmem:[#allocation3 + $0x204] ss:$8 sps:$4 sm:$0xff]   ;;  %v5273_v12 = vld [vmem:[#allocation3 + $0x200] ss:$8 sps:$4 sm:$0xff]  }
 0x121   :  { %629 = vmatmul.mubr.bf16.gmra.mrb[4].mxu0 %v405_v13  ;;  %813 = vmatprep.subr.bf16.mxu0 %v5236_v15  ;;  %v294_v11 = vpack.c.bf16 %v6201_v31, %v284_v8  ;;  %v5278_v13 = vld [vmem:[#allocation3 + $0x214] ss:$8 sps:$4 sm:$0xff]   ;;  %v5281_v15 = vld [vmem:[#allocation3 + $0x224] ss:$8 sps:$4 sm:$0xff]   ;;  %v293_v16 = vld [vmem:[%s6666_s30 + $0x48] sm:$0x3] }
 0x122   :  { %638 = vmatprep.mubr.bf16.mxu0 %v419_v14  ;;  %v5276_v14 = vld [vmem:[#allocation3 + $0x210] ss:$8 sps:$4 sm:$0xff]  }
 0x124   :  { %814 = vmatpush1.bf16.msra.mxu0 %v5234_v17  ;;  %v5279_v17 = vld [vmem:[#allocation3 + $0x220] ss:$8 sps:$4 sm:$0xff]  }
 0x125   :  { %815 = vmatprep.subr.bf16.mxu0 %v5239_v19  ;;  %v5284_v19 = vld [vmem:[#allocation3 + $0x234] ss:$8 sps:$4 sm:$0xff]  }
 0x128   :  { %816 = vmatpush1.bf16.msra.mxu0 %v5237_v27  ;;  %v5293_v27 = vld [vmem:[#allocation3 + $0x264] ss:$8 sps:$4 sm:$0xff]  }
 0x129   :  { %639 = vmatmul.mubr.bf16.gmra.mrb[8].mxu0 %v416_v25  ;;  %817 = vmatprep.subr.bf16.mxu0 %v5242_v32  ;;  %v5290_v25 = vld [vmem:[#allocation3 + $0x254] ss:$8 sps:$4 sm:$0xff]   ;;  %v5294_v32 = vld [vmem:[#allocation3 + $0x270] ss:$8 sps:$4 sm:$0xff]  }
 0x12a   :  { %839 = vmatprep.mubr.bf16.mxu0 %v295_v28  ;;  %v5291_v28 = vld [vmem:[#allocation3 + $0x260] ss:$8 sps:$4 sm:$0xff]  }
 0x18f   :  { %v6196_v29 = vpop.f32.mrb[0].mxu1 }
 0x190   :  { %v6206_v33 = vpop.f32.mrb[1].mxu1 }
 0x191   :  { %v4953_v34 = vpop.f32.mrb[2].mxu1 }
 0x192   :  { %v6208_v35 = vpop.f32.mrb[3].mxu1  ;;  %v5240_v34 = vld [vmem:[#allocation3 + $0x50] ss:$8 sps:$4 sm:$0xff]  }
 0x193   :  { %818 = vmatpush1.bf16.msra.mxu0 %v5240_v34  ;;  %v5299_v34 = vld [vmem:[#allocation3 + $0x284] ss:$8 sps:$4 sm:$0xff]  }
 0x1af   :  { %v4972_v18 = vpop.f32.mrb[4].mxu1 }
 0x1b0   :  { %v1425_v21 = vadd.f32 %v4972_v18, %v6196_v29  ;;  %v1416_v22 = vpop.f32.mrb[5].mxu1  ;;  %v5245_v29 = vld [vmem:[#allocation3 + $0x64] ss:$8 sps:$4 sm:$0xff]   ;;  %v299_v18 = vpack.c.bf16 %v293_v16, %v293_v16  ;;  %v5335_v16 = vld [vmem:[%s6644_s10] sm:$0xff]  }
 0x1b1   :  { %v1417_v23 = vadd.f32 %v1416_v22, %v6206_v33  ;;  %v4973_v24 = vpop.f32.mrb[6].mxu1  ;;  %819 = vmatprep.subr.bf16.mxu0 %v5245_v29  ;;  %v5248_v33 = vld [vmem:[#allocation3 + $0x74] ss:$8 sps:$4 sm:$0xff]   ;;  %v5287_v22 = vld [vmem:[#allocation3 + $0x244] ss:$8 sps:$4 sm:$0xff]  }
 0x1b2   :  { %v1419_v26 = vpop.f32.mrb[7].mxu1  ;;  %820 = vmatpush1.bf16.msra.mxu0 %v5243_v36  ;;  %v5285_v24 = vld [vmem:[#allocation3 + $0x240] ss:$8 sps:$4 sm:$0xff]   ;;  %v5302_v36 = vld [vmem:[#allocation3 + $0x294] ss:$8 sps:$4 sm:$0xff]  }
 0x1b3   :  { %v1420_v30 = vadd.f32 %v1419_v26, %v6208_v35  ;;  %821 = vmatprep.subr.bf16.mxu0 %v5248_v33  ;;  %v5254_v35 = vld [vmem:[#allocation3 + $0x94] ss:$8 sps:$4 sm:$0xff]   ;;  %v5288_v26 = vld [vmem:[#allocation3 + $0x250] ss:$8 sps:$4 sm:$0xff]   ;;  %v5297_v29 = vld [vmem:[#allocation3 + $0x280] ss:$8 sps:$4 sm:$0xff]  }
 0x1b4   :  { %v5300_v33 = vld [vmem:[#allocation3 + $0x290] ss:$8 sps:$4 sm:$0xff]  }
 0x1b6   :  { %822 = vmatpush1.bf16.msra.mxu0 %v5246_v37  ;;  %v5305_v37 = vld [vmem:[#allocation3 + $0x2a4] ss:$8 sps:$4 sm:$0xff]  }
 0x1b7   :  { %823 = vmatprep.subr.bf16.mxu0 %v5251_v38  ;;  %v5303_v38 = vld [vmem:[#allocation3 + $0x2a0] ss:$8 sps:$4 sm:$0xff]  }
 0x1ba   :  { %824 = vmatpush1.bf16.msra.mxu0 %v5249_v39  ;;  %v5308_v39 = vld [vmem:[#allocation3 + $0x2b4] ss:$8 sps:$4 sm:$0xff]  }
 0x1bb   :  { %825 = vmatprep.subr.bf16.mxu0 %v5254_v35  ;;  %v5306_v35 = vld [vmem:[#allocation3 + $0x2b0] ss:$8 sps:$4 sm:$0xff]  }
 0x1be   :  { %826 = vmatpush1.bf16.msra.mxu0 %v5252_v40  ;;  %v5311_v40 = vld [vmem:[#allocation3 + $0x2c4] ss:$8 sps:$4 sm:$0xff]  }
 0x1bf   :  { %827 = vmatprep.subr.bf16.mxu0 %v5257_v41  ;;  %v5309_v41 = vld [vmem:[#allocation3 + $0x2c0] ss:$8 sps:$4 sm:$0xff]  }
 0x1c2   :  { %828 = vmatpush1.bf16.msra.mxu0 %v5255_v42  ;;  %v5314_v42 = vld [vmem:[#allocation3 + $0x2d4] ss:$8 sps:$4 sm:$0xff]  }
 0x1c3   :  { %829 = vmatprep.subr.bf16.mxu0 %v5260_v44  ;;  %v5312_v44 = vld [vmem:[#allocation3 + $0x2d0] ss:$8 sps:$4 sm:$0xff]  }
 0x1c6   :  { %830 = vmatpush1.bf16.msra.mxu0 %v5258_v45  ;;  %v5317_v45 = vld [vmem:[#allocation3 + $0x2e4] ss:$8 sps:$4 sm:$0xff]  }
 0x1c7   :  { %831 = vmatprep.subr.bf16.mxu0 %v5263_v47  ;;  %v5320_v47 = vld [vmem:[#allocation3 + $0x2f4] ss:$8 sps:$4 sm:$0xff]  }
 0x1ca   :  { %832 = vmatpush1.bf16.msra.mxu0 %v5261_v54  ;;  %v920_v54 = vrot.slane %v6188_v5, 1 }
 0x1cb   :  { %833 = vmatprep.subr.bf16.mxu0 %v5266_v58 }
 0x1ce   :  { %834 = vmatpush1.bf16.msra.mxu0 %v5264_v60 }
 0x1cf   :  { %v4992_v46 = vpop.f32.mrb[8].mxu1  ;;  %835 = vmatprep.subr.bf16.mxu0 %v5269_v63 }
 0x1d0   :  { %v1550_v48 = vadd.f32 %v4992_v46, %v1425_v21  ;;  %v1534_v50 = vpop.f32.mrb[9].mxu1  ;;  %v292_v21 = vld [vmem:[%s6666_s30 + $0x40] sm:$0x3]  ;;  %v5315_v46 = vld [vmem:[#allocation3 + $0x2e0] ss:$8 sps:$4 sm:$0xff]  }
 0x1d1   :  { %v1548_v51 = vadd.f32 %v1534_v50, %v1417_v23  ;;  %v4993_v52 = vpop.f32.mrb[10].mxu1  ;;  %v298_v23 = vpack.c.bf16 %v292_v21, %v292_v21  ;;  %v5325_v21 = vld [vmem:[#allocation7 + $0x30] sm:$0xff]  }
 0x1d2   :  { %v1537_v53 = vpop.f32.mrb[11].mxu1  ;;  %v1560_v1 = vadd.f32 %v4590_v49, %v1550_v48  ;;  %836 = vmatpush1.bf16.msra.mxu0 %v5267_v3  ;;  %v869_v48 = vld [vmem:[%s6666_s30 + $0x8] sm:$0xfc] }
 0x1d3   :  { %v1558_v56 = vadd.f32 %v4590_v49, %v1548_v51  ;;  %v1549_v57 = vadd.f32 %v1537_v53, %v1420_v30  ;;  %837 = vmatprep.subr.bf16.mxu0 %v5272_v4  ;;  %v5296_v30 = vld [vmem:[#allocation3 + $0x274] ss:$8 sps:$4 sm:$0xff]   ;;  %v873_v50 = vpack.c.bf16 %v6177_v0, %v869_v48  ;;  %v5347_v48 = vld [vmem:[#allocation11 + $0x34] ss:$8 sps:$4 sm:$0xff]  }
 0x1d4   :  { %v1563_v6 = vmax.f32 %v1560_v1, 0.0  ;;  %v868_v51 = vld [vmem:[%s6666_s30] sm:$0xfc] }
 0x1d5   :  { %v1559_v59 = vadd.f32 %v4590_v49, %v1549_v57  ;;  %v1561_v61 = vmax.f32 %v1558_v56, 0.0  ;;  %v5318_v49 = vld [vmem:[#allocation3 + $0x2f0] ss:$8 sps:$4 sm:$0xff]   ;;  %v872_v52 = vpack.c.bf16 %v6201_v31, %v868_v51  ;;  %v919_v53 = vrot.slane %v873_v50, 1 }
 0x1d6   :  { %v1565_v10 = vpack.c.bf16 %v1563_v6, %v1563_v6  ;;  %838 = vmatpush1.bf16.msra.mxu0 %v5270_v7  ;;  %v917_v57 = vrot.slane %v6220_v43, 1  ;;  %v870_v31 = vld [vmem:[%s6666_s30 + $0x40] sm:$0xf] }
 0x1d7   :  { %v1562_v62 = vmax.f32 %v1559_v59, 0.0  ;;  %1092 = vmatprep.subr.bf16.mxu0 %v5275_v9  ;;  %v916_v56 = vrot.slane %v872_v52, 1  ;;  %v921_v58 = vsel %vm6658_vm1, %v919_v53, %v920_v54  ;;  %v871_v59 = vld [vmem:[%s6666_s30 + $0x48] sm:$0xf] }
 0x1d8   :  { %v875_v60 = vpack.c.bf16 %v871_v59, %v871_v59 }
 0x1d9   :  { %v1564_v2 = vpack.c.bf16 %v1562_v62, %v1561_v61  ;;  %840 = vmatmul.mubr.bf16.vlgmr.msra.gmra.mrb[0].mxu0 %v294_v11  ;;  %v918_v0 = vsel %vm6658_vm1, %v916_v56, %v917_v57 }
 0x1da   :  { %1093 = vmatpush1.bf16.msra.mxu0 %v5273_v12  ;;  %849 = vmatprep.mubr.bf16.mxu0 %v6188_v5  ;;  %v874_v5 = vpack.c.bf16 %v870_v31, %v870_v31  ;;  %v924_v61 = vrot.slane %v875_v60, 1 }
 0x1db   :  { %1695 = vmatmul.mubr.bf16.vlgmr.msra.gmra.mrb[12].mxu1 %v1564_v2  ;;  %1094 = vmatprep.subr.bf16.mxu0 %v5278_v13 }
 0x1dc   :  { %1704 = vmatprep.mubr.bf16.mxu1 %v5853_v55  ;;  %v922_v62 = vrot.slane %v874_v5, 1 }
 0x1de   :  { %1095 = vmatpush1.bf16.msra.mxu0 %v5276_v14  ;;  %v923_v63 = vsel %vm6658_vm1, %v917_v57, %v922_v62 }
 0x1df   :  { %1096 = vmatprep.subr.bf16.mxu0 %v5281_v15  ;;  %v5321_v15 = vld [vmem:[%s6644_s10 + $0x8] sm:$0xff]  }
 0x1e1   :  { %850 = vmatmul.mubr.bf16.gmra.mrb[4].mxu0 %v6220_v43  ;;  %v925_v43 = vsel %vm6658_vm1, %v920_v54, %v924_v61 }
 0x1e2   :  { %1097 = vmatpush1.bf16.msra.mxu0 %v5279_v17  ;;  %859 = vmatprep.mubr.bf16.mxu0 %v299_v18  ;;  %v5322_v17 = vld [vmem:[#allocation7 + $0x20] sm:$0xff]   ;;  %v5854_v18 = vmov 0.0  }
 0x1e3   :  { %1705 = vmatmul.mubr.bf16.gmra.mrb[16].mxu1 %v1565_v10  ;;  %1098 = vmatprep.subr.bf16.mxu0 %v5284_v19  ;;  %v5323_v19 = vld [vmem:[#allocation7 + $0x28] sm:$0xff]  }
 0x1e4   :  { %1794 = vmatprep.mubr.bf16.mxu1 %v5853_v55 }
 0x1e6   :  { %1099 = vmatpush1.bf16.msra.mxu0 %v5282_v20  ;;  %v5324_v20 = vld [vmem:[%s6644_s10 + $0x10] ss:$0 sps:$4 sm:$0x11]  }
 0x1e7   :  { %1100 = vmatprep.subr.bf16.mxu0 %v5287_v22  ;;  %v5326_v22 = vld [vmem:[#allocation7 + $0x38] sm:$0xff]  }
 0x1e9   :  { %860 = vmatmul.mubr.bf16.gmra.mrb[12].mxu0 %v298_v23  ;;  %v1834_v23 = vld [vmem:[%s6667_s5 + $0x1] sm:$0xff] }
 0x1ea   :  { %1101 = vmatpush1.bf16.msra.mxu0 %v5285_v24  ;;  %1124 = vmatprep.mubr.bf16.mxu0 %v921_v58  ;;  %v1835_v24 = vld [vmem:[%s6667_s5 + $0x9] sm:$0x3] }
 0x1eb   :  { %1102 = vmatprep.subr.bf16.mxu0 %v5290_v25  ;;  %v1836_v25 = vpack.c.bf16 %v1835_v24, %v1834_v23 }
 0x1ee   :  { %1103 = vmatpush1.bf16.msra.mxu0 %v5288_v26  ;;  %v5327_v26 = vld [vmem:[#allocation7] sm:$0xff]  }
 0x1ef   :  { %1104 = vmatprep.subr.bf16.mxu0 %v5293_v27  ;;  %v5328_v27 = vld [vmem:[#allocation7 + $0x8] sm:$0xff]  }
 0x1f2   :  { %1105 = vmatpush1.bf16.msra.mxu0 %v5291_v28  ;;  %v5329_v28 = vld [vmem:[#allocation7 + $0x10] sm:$0xff]  }
 0x1f3   :  { %1106 = vmatprep.subr.bf16.mxu0 %v5296_v30  ;;  %v5330_v30 = vld [vmem:[#allocation7 + $0x18] sm:$0xff]  }
 0x1f6   :  { %1107 = vmatpush1.bf16.msra.mxu0 %v5294_v32  ;;  %v1823_v32 = vld [vmem:[%s6667_s5] sm:$0xff] }
 0x1f7   :  { %1108 = vmatprep.subr.bf16.mxu0 %v5299_v34  ;;  %v1824_v34 = vld [vmem:[%s6667_s5 + $0x8] sm:$0x3] }
 0x1fa   :  { %1109 = vmatpush1.bf16.msra.mxu0 %v5297_v29  ;;  %v1825_v29 = vpack.c.bf16 %v1824_v34, %v1823_v32 }
 0x1fb   :  { %1110 = vmatprep.subr.bf16.mxu0 %v5302_v36  ;;  %v5331_v36 = vld [vmem:[#allocation7 + $0x40] sm:$0xff]  }
 0x1fc   :  { %v640_v50 = vpop.f32.mrb[8].mxu0 }
 0x1fd   :  { %v642_v51 = vpop.f32.mrb[9].mxu0 }
 0x1fe   :  { %1111 = vmatpush1.bf16.msra.mxu0 %v5300_v33  ;;  %v5332_v33 = vld [vmem:[#allocation7 + $0x48] sm:$0xff]   ;;  %v644_v52 = vpop.f32.mrb[10].mxu0 }
 0x1ff   :  { %1112 = vmatprep.subr.bf16.mxu0 %v5305_v37  ;;  %v5333_v37 = vld [vmem:[#allocation7 + $0x50] sm:$0xff]   ;;  %v645_v53 = vpop.f32.mrb[11].mxu0 }
 0x202   :  { %1113 = vmatpush1.bf16.msra.mxu0 %v5303_v38  ;;  %v5334_v38 = vld [vmem:[#allocation7 + $0x58] sm:$0xff]  }
 0x203   :  { %1114 = vmatprep.subr.bf16.mxu0 %v5308_v39  ;;  %v1983_v39 = vld [vmem:[%s6667_s5 + $0x2] sm:$0xff] }
 0x206   :  { %1115 = vmatpush1.bf16.msra.mxu0 %v5306_v35  ;;  %v1984_v35 = vld [vmem:[%s6667_s5 + $0xa] sm:$0x3] }
 0x207   :  { %1116 = vmatprep.subr.bf16.mxu0 %v5311_v40  ;;  %v1985_v40 = vpack.c.bf16 %v1984_v35, %v1983_v39 }
 0x20a   :  { %1117 = vmatpush1.bf16.msra.mxu0 %v5309_v41  ;;  %v5336_v41 = vld [vmem:[#allocation11] ss:$8 sps:$4 sm:$0xff]  }
 0x20b   :  { %1118 = vmatprep.subr.bf16.mxu0 %v5314_v42  ;;  %v5338_v42 = vld [vmem:[#allocation11 + $0x4] ss:$8 sps:$4 sm:$0xff]  }
 0x20e   :  { %1119 = vmatpush1.bf16.msra.mxu0 %v5312_v44  ;;  %v5341_v44 = vld [vmem:[#allocation11 + $0x14] ss:$8 sps:$4 sm:$0xff]  }
 0x20f   :  { %1120 = vmatprep.subr.bf16.mxu0 %v5317_v45  ;;  %v5339_v45 = vld [vmem:[#allocation11 + $0x10] ss:$8 sps:$4 sm:$0xff]  }
 0x212   :  { %1121 = vmatpush1.bf16.msra.mxu0 %v5315_v46  ;;  %v5344_v46 = vld [vmem:[#allocation11 + $0x24] ss:$8 sps:$4 sm:$0xff]  }
 0x213   :  { %1122 = vmatprep.subr.bf16.mxu0 %v5320_v47  ;;  %v5342_v47 = vld [vmem:[#allocation11 + $0x20] ss:$8 sps:$4 sm:$0xff]  }
 0x216   :  { %1123 = vmatpush1.bf16.msra.mxu0 %v5318_v49  ;;  %v5345_v49 = vld [vmem:[#allocation11 + $0x30] ss:$8 sps:$4 sm:$0xff]  }
 0x219   :  { %1125 = vmatmul.mubr.bf16.vlgmr.msra.gmra.mrb[0].mxu0 %v918_v0 }
 0x21a   :  { %1134 = vmatprep.mubr.bf16.mxu0 %v925_v43 }
 0x221   :  { %1135 = vmatmul.mubr.bf16.gmra.mrb[4].mxu0 %v923_v63 }
 0x222   :  { %1144 = vmatprep.mubr.bf16.mxu0 %v924_v61 }
 0x229   :  { %1145 = vmatmul.mubr.bf16.gmra.mrb[16].mxu0 %v922_v62 }
 0x22a   :  { %1784 = vmatprep.mubr.bf16.mxu0 %v5853_v55 }
 0x2ae   :  { %v1696_v1 = vpop.f32.mrb[12].mxu1 }
 0x2af   :  { %v1698_v2 = vpop.f32.mrb[13].mxu1 }
 0x2b0   :  { %v1700_v3 = vpop.f32.mrb[14].mxu1 }
 0x2b1   :  { %v1718_v4 = vpack.c.bf16 %v1700_v3, %v1696_v1  ;;  %v1702_v6 = vpop.f32.mrb[15].mxu1 }
 0x2b2   :  { %v1719_v7 = vpack.c.bf16 %v1702_v6, %v1698_v2 }
 0x2b4   :  { %1752 = vmatprep.subr.bf16.mxu0 %v1719_v7  ;;  %5030 = vmatprep.subr.bf16.mxu1 %v1719_v7 }
 0x2b5   :  { %1753 = vmatpush1.bf16.msra.mxu0 %v1718_v4  ;;  %5032 = vmatpush1.bf16.msra.mxu1 %v1718_v4 }
 0x2b6   :  { %v1706_v8 = vpop.f32.mrb[16].mxu1 }
 0x2b7   :  { %v1720_v9 = vpack.c.bf16 %v1706_v8, %v1706_v8  ;;  %v1708_v10 = vpop.f32.mrb[17].mxu1 }
 0x2b8   :  { %v1721_v11 = vpack.c.bf16 %v1708_v10, %v1708_v10  ;;  %v1710_v12 = vpop.f32.mrb[18].mxu1 }
 0x2b9   :  { %v1747_v13 = vsel %vm1745_vm2, %v1720_v9, 0  ;;  %v1711_v14 = vpop.f32.mrb[19].mxu1  ;;  %v168_v9 = vlaneseq  ;;  %v1163_v12 = vld [vmem:[#allocation5] sm:$0x3] }
 0x2ba   :  { %4610 = vmatprep.subr.msk.bf16.mxu0 %vm1745_vm2, %v1721_v11  ;;  %5031 = vmatprep.subr.msk.bf16.mxu1 %vm1745_vm2, %v1721_v11 }
 0x2bb   :  { %1755 = vmatpush1.bf16.msra.mxu0 %v1747_v13  ;;  %5033 = vmatpush1.bf16.msra.mxu1 %v1747_v13  ;;  %v6344_v10 = vshrl.u32 %v168_v9, 7  ;;  %vm2281_vm8 = vcmp.lt.s32.totalorder %v168_v9, 256  ;;  %v5401_v9 = vld [vmem:[#allocation13 + $0x4] ss:$8 sps:$4 sm:$0xff]  }
 0x2bc   :  { %4994 = vmatprep.subr.bf16.mxu1 %v5854_v18  ;;  %2128 = vmatprep.subr.bf16.mxu0 %v5338_v42  ;;  %v861_v54 = vpop.f32.mrb[12].mxu0  ;;  %2283 = vst.msk [vmem:[#allocation2] ss:$8 sm:$0x3] %vm2281_vm8, %v5854_v18 }
 0x2bd   :  { %v862_v56 = vadd.f32 %v861_v54, %v640_v50  ;;  %v863_v57 = vpop.f32.mrb[13].mxu0  ;;  %v6347_v11 = vsub.s32 0, %v6344_v10  ;;  %v6350_v13 = vsub.s32 1, %v6344_v10  ;;  %2286 = vst.msk [vmem:[#allocation2 + $0x43] ss:$8 sm:$0x3] %vm2281_vm8, %v5854_v18 }
 0x2be   :  { %4612 = vmatmul.mubr.msk.bf16.vlgmr.msra.gmra.mrb[20].mxu1 %vm1735_vm3, %v5321_v15  ;;  %4611 = vmatmul.mubr.msk.bf16.vlgmr.msra.gmra.mrb[20].mxu0 %vm1735_vm3, %v5335_v16  ;;  %v864_v58 = vadd.f32 %v863_v57, %v642_v51  ;;  %v865_v0 = vpop.f32.mrb[14].mxu0 }
 0x2bf   :  { %4995 = vmatpush3.bf16.msra.mxu1 %v5322_v17  ;;  %1804 = vmatprep.mubr.bf16.mxu1 %v5853_v55  ;;  %v866_v59 = vpop.f32.mrb[15].mxu0  ;;  %v6353_v14 = vrot.slane %v1163_v12, %v6347_v11  ;;  %v6356_v15 = vrot.slane %v1163_v12, %v6350_v13  ;;  %v5354_v12 = vld [vmem:[#allocation13 + $0x110] ss:$8 sps:$4 sm:$0xff]  }
 0x2c0   :  { %4996 = vmatprep.subr.bf16.mxu1 %v5854_v18  ;;  %2160 = vmatprep.mubr.bf16.mxu0 %v5853_v55 }
 0x2c1   :  { %2129 = vmatpush1.bf16.msra.mxu0 %v5336_v41 }
 0x2c2   :  { %2130 = vmatprep.subr.bf16.mxu0 %v5341_v44 }
 0x2c3   :  { %4997 = vmatpush3.bf16.msra.mxu1 %v5323_v19 }
 0x2c4   :  { %4998 = vmatprep.subr.bf16.mxu1 %v5854_v18 }
 0x2c5   :  { %2131 = vmatpush1.bf16.msra.mxu0 %v5339_v45 }
 0x2c6   :  { %4613 = vmatmul.mubr.msk.bf16.gmra.mrb[24].mxu1 %vm1735_vm3, %v5324_v20  ;;  %2132 = vmatprep.subr.bf16.mxu0 %v5344_v46  ;;  %v4629_v46 = vld [vmem:[#allocation8] ss:$0 sm:$0xff] }
 0x2c7   :  { %4999 = vmatpush3.bf16.msra.mxu1 %v5325_v21  ;;  %5002 = vmatprep.mubr.msk.bf16.mxu1 %vm5855_vm4, %v5854_v18 }
 0x2c8   :  { %5000 = vmatprep.subr.bf16.mxu1 %v5854_v18 }
 0x2c9   :  { %2133 = vmatpush1.bf16.msra.mxu0 %v5342_v47 }
 0x2ca   :  { %2134 = vmatprep.subr.bf16.mxu0 %v5347_v48 }
 0x2cb   :  { %5001 = vmatpush3.bf16.msra.mxu1 %v5326_v22 }
 0x2cc   :  { %5006 = vmatprep.subr.bf16.mxu1 %v5854_v18 }
 0x2cd   :  { %2135 = vmatpush1.bf16.msra.mxu0 %v5345_v49 }
 0x2ce   :  { %5003 = vmatmul.mubr.msk.bf16.vlgmr.msra.gmra.mrb[28].mxu1 %vm1870_vm5, %v1836_v25 }
 0x2cf   :  { %5007 = vmatpush3.bf16.msra.mxu1 %v5327_v26  ;;  %5014 = vmatprep.mubr.msk.bf16.mxu1 %vm5855_vm4, %v5854_v18 }
 0x2d0   :  { %5008 = vmatprep.subr.bf16.mxu1 %v5854_v18 }
 0x2d3   :  { %5009 = vmatpush3.bf16.msra.mxu1 %v5328_v27 }
 0x2d4   :  { %5010 = vmatprep.subr.bf16.mxu1 %v5854_v18 }
 0x2d7   :  { %5011 = vmatpush3.bf16.msra.mxu1 %v5329_v28 }
 0x2d8   :  { %5012 = vmatprep.subr.bf16.mxu1 %v5854_v18 }
 0x2db   :  { %5013 = vmatpush3.bf16.msra.mxu1 %v5330_v30 }
 0x2dc   :  { %5018 = vmatprep.subr.bf16.mxu1 %v5854_v18 }
 0x2de   :  { %5015 = vmatmul.mubr.msk.bf16.vlgmr.msra.gmra.mrb[32].mxu1 %vm1870_vm5, %v1825_v29 }
 0x2df   :  { %5019 = vmatpush3.bf16.msra.mxu1 %v5331_v36  ;;  %5026 = vmatprep.mubr.msk.bf16.mxu1 %vm5855_vm4, %v5854_v18 }
 0x2e0   :  { %5020 = vmatprep.subr.bf16.mxu1 %v5854_v18 }
 0x2e3   :  { %5021 = vmatpush3.bf16.msra.mxu1 %v5332_v33 }
 0x2e4   :  { %5022 = vmatprep.subr.bf16.mxu1 %v5854_v18 }
 0x2e7   :  { %5023 = vmatpush3.bf16.msra.mxu1 %v5333_v37 }
 0x2e8   :  { %5024 = vmatprep.subr.bf16.mxu1 %v5854_v18 }
 0x2eb   :  { %5025 = vmatpush3.bf16.msra.mxu1 %v5334_v38 }
 0x2ec   :  { %v1126_v31 = vpop.f32.mrb[0].mxu0 }
 0x2ed   :  { %v1128_v60 = vpop.f32.mrb[1].mxu0  ;;  %v1175_v16 = vadd.f32 %v6353_v14, %v1126_v31 }
 0x2ee   :  { %5027 = vmatmul.mubr.msk.bf16.vlgmr.msra.gmra.mrb[36].mxu1 %vm1870_vm5, %v1985_v40  ;;  %v1130_v5 = vpop.f32.mrb[2].mxu0  ;;  %v1176_v17 = vadd.f32 %v6356_v15, %v1128_v60 }
 0x2ef   :  { %2240 = vmatprep.mubr.bf16.mxu1 %v5853_v55  ;;  %v1132_v61 = vpop.f32.mrb[3].mxu0  ;;  %v1177_v19 = vadd.f32 %v6353_v14, %v1130_v5  ;;  %v1185_v21 = vmax.f32 %v1175_v16, 0.0  ;;  %v5359_v16 = vld [vmem:[#allocation13 + $0x124] ss:$8 sps:$4 sm:$0xff]  }
 0x2f0   :  { %v1178_v20 = vadd.f32 %v6356_v15, %v1132_v61  ;;  %v1186_v22 = vmax.f32 %v1176_v17, 0.0  ;;  %v5353_v61 = vld [vmem:[#allocation13 + $0x104] ss:$8 sps:$4 sm:$0xff]   ;;  %v5349_v17 = vld [vmem:[%s6646_s12 + $0x8] sm:$0xff]  }
 0x2f1   :  { %v1187_v23 = vmax.f32 %v1177_v19, 0.0  ;;  %v5357_v19 = vld [vmem:[#allocation13 + $0x120] ss:$8 sps:$4 sm:$0xff]  }
 0x2f2   :  { %v1188_v24 = vmax.f32 %v1178_v20, 0.0  ;;  %v5362_v20 = vld [vmem:[#allocation13 + $0x134] ss:$8 sps:$4 sm:$0xff]  }
 0x2f4   :  { %v6331_v62 = vpop.f32.mrb[4].mxu0 }
 0x2f5   :  { %v6333_v43 = vpop.f32.mrb[5].mxu0 }
 0x2f6   :  { %v6335_v63 = vpop.f32.mrb[6].mxu0 }
 0x2f7   :  { %v6337_v1 = vpop.f32.mrb[7].mxu0 }
 0x2fc   :  { %v1146_v2 = vpop.f32.mrb[16].mxu0 }
 0x2fd   :  { %v6339_v3 = vadd.f32 %v1146_v2, %v862_v56  ;;  %v1148_v4 = vpop.f32.mrb[17].mxu0 }
 0x2fe   :  { %v6341_v6 = vadd.f32 %v1148_v4, %v864_v58  ;;  %v1150_v7 = vpop.f32.mrb[18].mxu0  ;;  %v5348_v4 = vld [vmem:[%s6646_s12] sm:$0xff]  }
 0x2ff   :  { %v1151_v8 = vpop.f32.mrb[19].mxu0  ;;  %v5351_v7 = vld [vmem:[#allocation13 + $0x100] ss:$8 sps:$4 sm:$0xff]  }
 0x300   :  { %v5356_v8 = vld [vmem:[#allocation13 + $0x114] ss:$8 sps:$4 sm:$0xff]  }
 0x391   :  { %v1786_v25 = vpop.f32.mrb[20].mxu0 }
 0x392   :  { %v6362_v26 = vadd.f32 %v1786_v25, %v1185_v21  ;;  %v1788_v27 = vpop.f32.mrb[21].mxu0  ;;  %v5360_v21 = vld [vmem:[#allocation13 + $0x130] ss:$8 sps:$4 sm:$0xff]   ;;  %v5368_v25 = vld [vmem:[#allocation13 + $0x154] ss:$8 sps:$4 sm:$0xff]  }
 0x393   :  { %v6364_v28 = vadd.f32 %v1788_v27, %v1186_v22  ;;  %v1790_v30 = vpop.f32.mrb[22].mxu0  ;;  %v5365_v22 = vld [vmem:[#allocation13 + $0x144] ss:$8 sps:$4 sm:$0xff]   ;;  %v5366_v27 = vld [vmem:[#allocation13 + $0x150] ss:$8 sps:$4 sm:$0xff]  }
 0x394   :  { %v6366_v32 = vadd.f32 %v1790_v30, %v1187_v23  ;;  %v1792_v34 = vpop.f32.mrb[23].mxu0  ;;  %v5350_v23 = vld [vmem:[%s6646_s12 + $0x10] ss:$0 sps:$4 sm:$0x11]   ;;  %v5371_v30 = vld [vmem:[#allocation13 + $0x164] ss:$8 sps:$4 sm:$0xff]  }
 0x395   :  { %v6368_v29 = vadd.f32 %v1792_v34, %v1188_v24  ;;  %v5363_v24 = vld [vmem:[#allocation13 + $0x140] ss:$8 sps:$4 sm:$0xff]   ;;  %v5374_v34 = vld [vmem:[#allocation13 + $0x174] ss:$8 sps:$4 sm:$0xff]  }
 0x3a1   :  { %v1908_v36 = vpop.f32.mrb[28].mxu1 }
 0x3a2   :  { %v5004_v33 = vpop.f32.mrb[29].mxu1 }
 0x3a3   :  { %v1911_v37 = vpop.f32.mrb[30].mxu1  ;;  %v5377_v33 = vld [vmem:[#allocation13 + $0x184] ss:$8 sps:$4 sm:$0xff]  }
 0x3a4   :  { %v5005_v38 = vpop.f32.mrb[31].mxu1 }
 0x3a5   :  { %v5380_v38 = vld [vmem:[#allocation13 + $0x194] ss:$8 sps:$4 sm:$0xff]  }
 0x3b1   :  { %v1976_v39 = vpop.f32.mrb[32].mxu1 }
 0x3b2   :  { %v1977_v35 = vadd.f32 %v1976_v39, %v1908_v36  ;;  %v5016_v40 = vpop.f32.mrb[33].mxu1  ;;  %v5372_v36 = vld [vmem:[#allocation13 + $0x170] ss:$8 sps:$4 sm:$0xff]  }
 0x3b3   :  { %v1979_v41 = vpop.f32.mrb[34].mxu1  ;;  %v5378_v39 = vld [vmem:[#allocation13 + $0x190] ss:$8 sps:$4 sm:$0xff]   ;;  %v5381_v40 = vld [vmem:[#allocation13 + $0x1a0] ss:$8 sps:$4 sm:$0xff]  }
 0x3b4   :  { %v1980_v42 = vadd.f32 %v1979_v41, %v1911_v37  ;;  %v5017_v44 = vpop.f32.mrb[35].mxu1  ;;  %v5375_v37 = vld [vmem:[#allocation13 + $0x180] ss:$8 sps:$4 sm:$0xff]   ;;  %v5386_v41 = vld [vmem:[#allocation13 + $0x1b4] ss:$8 sps:$4 sm:$0xff]  }
 0x3b5   :  { %v5389_v44 = vld [vmem:[#allocation13 + $0x1c4] ss:$8 sps:$4 sm:$0xff]  }
 0x3c1   :  { %v2056_v45 = vpop.f32.mrb[36].mxu1 }
 0x3c2   :  { %v2063_v47 = vadd.f32 %v2056_v45, %v1977_v35  ;;  %v5028_v48 = vpop.f32.mrb[37].mxu1  ;;  %v5383_v35 = vld [vmem:[#allocation13 + $0x1a4] ss:$8 sps:$4 sm:$0xff]   ;;  %v5387_v45 = vld [vmem:[#allocation13 + $0x1c0] ss:$8 sps:$4 sm:$0xff]  }
 0x3c3   :  { %v2059_v49 = vpop.f32.mrb[38].mxu1  ;;  %v5395_v48 = vld [vmem:[#allocation13 + $0x1e4] ss:$8 sps:$4 sm:$0xff]  }
 0x3c4   :  { %v2072_v50 = vadd.f32 %v4629_v46, %v2063_v47  ;;  %v2064_v51 = vadd.f32 %v2059_v49, %v1980_v42  ;;  %v5029_v52 = vpop.f32.mrb[39].mxu1  ;;  %v5384_v42 = vld [vmem:[#allocation13 + $0x1b0] ss:$8 sps:$4 sm:$0xff]   ;;  %v5393_v49 = vld [vmem:[#allocation13 + $0x1e0] ss:$8 sps:$4 sm:$0xff]  }
 0x3c5   :  { %v5390_v47 = vld [vmem:[#allocation13 + $0x1d0] ss:$8 sps:$4 sm:$0xff]   ;;  %v170_v52 = vadd.s32 8, %v6344_v10 }
 0x3c6   :  { %v2073_v53 = vadd.f32 %v4629_v46, %v2064_v51  ;;  %v2074_v54 = vmax.f32 %v2072_v50, 0.0  ;;  %v5392_v46 = vld [vmem:[#allocation13 + $0x1d4] ss:$8 sps:$4 sm:$0xff]   ;;  %v5396_v51 = vld [vmem:[#allocation13 + $0x1f0] ss:$8 sps:$4 sm:$0xff]  }
 0x3c7   :  { %v5398_v50 = vld [vmem:[#allocation13 + $0x1f4] ss:$8 sps:$4 sm:$0xff]  }
 0x3c8   :  { %v2075_v56 = vmax.f32 %v2073_v53, 0.0  ;;  %v174_v53 = vadd.s32 1, %v6344_v10 }
 0x3ca   :  { %v2076_v57 = vpack.c.bf16 %v2075_v56, %v2074_v54  ;;  %v175_v54 = vadd.s32 1, %v170_v52  ;;  %v171_v56 = vadd.s32 16, %v6344_v10 }
 0x3cc   :  { %4638 = vmatmul.mubr.msk.bf16.vlgmr.msra.gmra.mrb[24].mxu0 %vm1870_vm5, %v2076_v57 }
 0x49f   :  { %v2162_v58 = vpop.f32.mrb[24].mxu0 }
 0x4a0   :  { %v2164_v0 = vpop.f32.mrb[25].mxu0 }
 0x4a1   :  { %v2166_v59 = vpop.f32.mrb[26].mxu0 }
 0x4a2   :  { %v2176_v31 = vpack.c.bf16 %v2166_v59, %v2162_v58  ;;  %v2168_v60 = vpop.f32.mrb[27].mxu0  ;;  %v6391_v57 = vmul.u32.u64.low 3817748708, %v174_v53  ;;  %v6392_v58 = vmul.u32.u64.high 3817748708, %v174_v53, %v6391_v57 }
 0x4a3   :  { %v2177_v5 = vpack.c.bf16 %v2168_v60, %v2164_v0  ;;  %v172_v0 = vadd.s32 24, %v6344_v10  ;;  %v176_v60 = vadd.s32 1, %v171_v56  ;;  %v1182_v57 = vadd.f32 %v6356_v15, %v6337_v1 }
 0x4a4   :  { %v2203_v2 = vsel %vm2201_vm6, %v2176_v31, 0  ;;  %v6395_v59 = vmul.u32.u64.low 3817748708, %v175_v54  ;;  %v6396_v31 = vmul.u32.u64.high 3817748708, %v175_v54, %v6395_v59 }
 0x4a5   :  { %4642 = vmatprep.subr.msk.bf16.mxu1 %vm2201_vm6, %v2177_v5  ;;  %v177_v5 = vadd.s32 1, %v172_v0 }
 0x4a6   :  { %2209 = vmatpush1.bf16.msra.mxu1 %v2203_v2 }
 0x4a7   :  { %2647 = vmatprep.subr.bf16.mxu1 %v5353_v61  ;;  %v6398_v61 = vmul.u32.u64.low 3817748708, %v176_v60  ;;  %v6399_v2 = vmul.u32.u64.high 3817748708, %v176_v60, %v6398_v61 }
 0x4a9   :  { %4643 = vmatmul.mubr.msk.bf16.vlgmr.msra.gmra.mrb[40].mxu1 %vm2191_vm7, %v5348_v4  ;;  %v185_v4 = vshrl.u32 %v6392_v58, 4 }
 0x4aa   :  { %2250 = vmatprep.mubr.bf16.mxu1 %v5853_v55  ;;  %2648 = vmatpush1.bf16.msra.mxu1 %v5351_v7 }
 0x4ab   :  { %2649 = vmatprep.subr.bf16.mxu1 %v5356_v8  ;;  %v6402_v7 = vmul.u32.u64.low 3817748708, %v177_v5  ;;  %v6403_v8 = vmul.u32.u64.high 3817748708, %v177_v5, %v6402_v7 }
 0x4ae   :  { %2650 = vmatpush1.bf16.msra.mxu1 %v5354_v12  ;;  %v173_v12 = vadd.s32 32, %v6344_v10 }
 0x4af   :  { %2651 = vmatprep.subr.bf16.mxu1 %v5359_v16  ;;  %v196_v16 = vshrl.u32 %v6396_v31, 4 }
 0x4b1   :  { %4644 = vmatmul.mubr.msk.bf16.gmra.mrb[20].mxu1 %vm2191_vm7, %v5349_v17  ;;  %v186_v17 = vmul.u32 18, %v185_v4 }
 0x4b2   :  { %2260 = vmatprep.mubr.bf16.mxu1 %v5853_v55  ;;  %2652 = vmatpush1.bf16.msra.mxu1 %v5357_v19  ;;  %v5369_v55 = vld [vmem:[#allocation13 + $0x160] ss:$8 sps:$4 sm:$0xff]   ;;  %v178_v19 = vadd.s32 1, %v173_v12  ;;  %v1183_v12 = vadd.f32 %v6353_v14, %v6339_v3  ;;  %v1184_v3 = vadd.f32 %v6356_v15, %v6341_v6 }
 0x4b3   :  { %2653 = vmatprep.subr.bf16.mxu1 %v5362_v20  ;;  %v197_v20 = vmul.u32 18, %v196_v16 }
 0x4b4   :  { %v1194_v6 = vmax.f32 %v1184_v3, 0.0 }
 0x4b6   :  { %2654 = vmatpush1.bf16.msra.mxu1 %v5360_v21  ;;  %v207_v21 = vshrl.u32 %v6399_v2, 4  ;;  %v1192_v2 = vmax.f32 %v1182_v57, 0.0 }
 0x4b7   :  { %2655 = vmatprep.subr.bf16.mxu1 %v5365_v22  ;;  %v187_v22 = vsub.s32 %v174_v53, %v186_v17 }
 0x4b9   :  { %4645 = vmatmul.mubr.msk.bf16.gmra.mrb[24].mxu1 %vm2191_vm7, %v5350_v23  ;;  %v218_v23 = vshrl.u32 %v6403_v8, 4  ;;  %vm234_vm9 = vcmp.ne.s32.totalorder %v187_v22, 0  ;;  %vm239_vm10 = vcmp.lt.s32.totalorder %v187_v22, 0  ;;  %v249_v10 = vadd.s32 18, %v187_v22 }
 0x4ba   :  { %2656 = vmatpush1.bf16.msra.mxu1 %v5363_v24  ;;  %vm244_vm13 = vmand %vm239_vm10, %vm234_vm9 }
 0x4bb   :  { %2657 = vmatprep.subr.bf16.mxu1 %v5368_v25  ;;  %v6409_v24 = vmul.u32.u64.low 3817748708, %v178_v19  ;;  %v6410_v25 = vmul.u32.u64.high 3817748708, %v178_v19, %v6409_v24 }
 0x4be   :  { %2658 = vmatpush1.bf16.msra.mxu1 %v5366_v27  ;;  %v198_v27 = vsub.s32 %v175_v54, %v197_v20 }
 0x4bf   :  { %2659 = vmatprep.subr.bf16.mxu1 %v5371_v30  ;;  %v208_v30 = vmul.u32 18, %v207_v21 }
 0x4c0   :  { %vm235_vm11 = vcmp.ne.s32.totalorder %v198_v27, 0  ;;  %vm240_vm12 = vcmp.lt.s32.totalorder %v198_v27, 0 }
 0x4c1   :  { %vm245_vm14 = vmand %vm240_vm12, %vm235_vm11 }
 0x4c2   :  { %2660 = vmatpush1.bf16.msra.mxu1 %v5369_v55  ;;  %v219_v55 = vmul.u32 18, %v218_v23 }
 0x4c3   :  { %2661 = vmatprep.subr.bf16.mxu1 %v5374_v34  ;;  %v250_v34 = vadd.s32 18, %v198_v27 }
 0x4c6   :  { %2662 = vmatpush1.bf16.msra.mxu1 %v5372_v36  ;;  %v209_v36 = vsub.s32 %v176_v60, %v208_v30 }
 0x4c7   :  { %2663 = vmatprep.subr.bf16.mxu1 %v5377_v33  ;;  %v220_v33 = vsub.s32 %v177_v5, %v219_v55 }
 0x4c8   :  { %vm236_vm15 = vcmp.ne.s32.totalorder %v209_v36, 0  ;;  %vm241_vm3 = vcmp.lt.s32.totalorder %v209_v36, 0 }
 0x4c9   :  { %vm237_vm4 = vcmp.ne.s32.totalorder %v220_v33, 0  ;;  %vm242_vm5 = vcmp.lt.s32.totalorder %v220_v33, 0  ;;  %vm246_vm0 = vmand %vm241_vm3, %vm236_vm15 }
 0x4ca   :  { %2664 = vmatpush1.bf16.msra.mxu1 %v5375_v37  ;;  %v229_v37 = vshrl.u32 %v6410_v25, 4  ;;  %vm247_vm9 = vmand %vm242_vm5, %vm237_vm4 }
 0x4cb   :  { %2665 = vmatprep.subr.bf16.mxu1 %v5380_v38  ;;  %v254_v38 = vsel %vm244_vm13, %v249_v10, %v187_v22 }
 0x4cc   :  { %vm259_vm6 = vcmp.ge.s32.totalorder %v254_v38, 1  ;;  %vm264_vm7 = vcmp.le.s32.totalorder %v254_v38, 16 }
 0x4cd   :  { %vm269_vm10 = vmand %vm259_vm6, %vm264_vm7 }
 0x4ce   :  { %2666 = vmatpush1.bf16.msra.mxu1 %v5378_v39  ;;  %v255_v39 = vsel %vm245_vm14, %v250_v34, %v198_v27 }
 0x4cf   :  { %2667 = vmatprep.subr.bf16.mxu1 %v5383_v35  ;;  %v230_v35 = vmul.u32 18, %v229_v37  ;;  %vm260_vm8 = vcmp.ge.s32.totalorder %v255_v39, 1  ;;  %vm265_vm1 = vcmp.le.s32.totalorder %v255_v39, 16 }
 0x4d0   :  { %vm270_vm11 = vmand %vm260_vm8, %vm265_vm1 }
 0x4d2   :  { %2668 = vmatpush1.bf16.msra.mxu1 %v5381_v40  ;;  %v251_v40 = vadd.s32 18, %v209_v36 }
 0x4d3   :  { %2669 = vmatprep.subr.bf16.mxu1 %v5386_v41  ;;  %v252_v41 = vadd.s32 18, %v220_v33 }
 0x4d6   :  { %2670 = vmatpush1.bf16.msra.mxu1 %v5384_v42  ;;  %v231_v42 = vsub.s32 %v178_v19, %v230_v35 }
 0x4d7   :  { %2671 = vmatprep.subr.bf16.mxu1 %v5389_v44  ;;  %v256_v44 = vsel %vm246_vm0, %v251_v40, %v209_v36 }
 0x4d8   :  { %vm238_vm12 = vcmp.ne.s32.totalorder %v231_v42, 0  ;;  %vm243_vm1 = vcmp.lt.s32.totalorder %v231_v42, 0  ;;  %vm261_vm0 = vcmp.ge.s32.totalorder %v256_v44, 1  ;;  %vm266_vm13 = vcmp.le.s32.totalorder %v256_v44, 16 }
 0x4d9   :  { %v253_v56 = vadd.s32 18, %v231_v42  ;;  %vm248_vm3 = vmand %vm243_vm1, %vm238_vm12  ;;  %vm6674_vm1 = vcmask 1046528  }
 0x4da   :  { %2672 = vmatpush1.bf16.msra.mxu1 %v5387_v45  ;;  %v257_v45 = vsel %vm247_vm9, %v252_v41, %v220_v33  ;;  %vm271_vm4 = vmand %vm261_vm0, %vm266_vm13  ;;  %v1193_v33 = vmax.f32 %v1183_v12, 0.0  ;;  %vm6670_vm9 = vsmask.f32 7424  ;;  %v5404_v12 = vld [vmem:[#allocation13 + $0x14] ss:$8 sps:$4 sm:$0xff]  }
 0x4db   :  { %2673 = vmatprep.subr.bf16.mxu1 %v5392_v46  ;;  %v1179_v46 = vadd.f32 %v6353_v14, %v6331_v62  ;;  %vm262_vm14 = vcmp.ge.s32.totalorder %v257_v45, 1  ;;  %vm267_vm15 = vcmp.le.s32.totalorder %v257_v45, 16  ;;  %v258_v5 = vsel %vm248_vm3, %v253_v56, %v231_v42  ;;  %vm6673_vm12 = vmmov %vm6670_vm9 }
 0x4dc   :  { %vm6439_vm5 = vmand %vm262_vm14, %vm267_vm15  ;;  %v6444_v7 = vsel %vm271_vm4, 1.0, %v5854_v18  ;;  %vm263_vm6 = vcmp.ge.s32.totalorder %v258_v5, 1  ;;  %vm268_vm7 = vcmp.le.s32.totalorder %v258_v5, 16 }
 0x4dd   :  { %v1189_v1 = vmax.f32 %v1179_v46, 0.0  ;;  %v6454_v20 = vsel %vm6439_vm5, 1.0, %v5854_v18  ;;  %vm273_vm8 = vmand %vm263_vm6, %vm268_vm7 }
 0x4de   :  { %2674 = vmatpush1.bf16.msra.mxu1 %v5390_v47  ;;  %v1180_v47 = vadd.f32 %v6356_v15, %v6333_v43  ;;  %v6469_v42 = vsel %vm273_vm8, 1.0, %v5854_v18  ;;  %vm6675_vm0 = vmmov %vm6674_vm1 }
 0x4df   :  { %2675 = vmatprep.subr.bf16.mxu1 %v5395_v48  ;;  %v6418_v48 = vsel %vm269_vm10, 1.0, %v5854_v18  ;;  %vm6671_vm10 = vmmov %vm6670_vm9 }
 0x4e0   :  { %v1190_v60 = vmax.f32 %v1180_v47, 0.0  ;;  %vm6676_vm13 = vmmov %vm6675_vm0 }
 0x4e1   :  { %vm6677_vm14 = vmmov %vm6675_vm0 }
 0x4e2   :  { %2676 = vmatpush1.bf16.msra.mxu1 %v5393_v49  ;;  %vm6678_vm15 = vmmov %vm6670_vm9 }
 0x4e3   :  { %2677 = vmatprep.subr.bf16.mxu1 %v5398_v50  ;;  %vm6679_vm3 = vmmov %vm6670_vm9 }
 0x4e4   :  { %vm6682_vm5 = vmmov %vm6675_vm0 }
 0x4e5   :  { %vm6683_vm6 = vmmov %vm6675_vm0 }
 0x4e6   :  { %2678 = vmatpush1.bf16.msra.mxu1 %v5396_v51  ;;  %vm6684_vm7 = vmmov %vm6675_vm0 }
 0x4e7   :  { %2868 = vmatprep.subr.bf16.mxu1 %v5401_v9  ;;  %v6422_v9 = vsel %vm270_vm11, 1.0, %v5854_v18  ;;  %vm6672_vm11 = vmmov %vm6670_vm9 }
 0x4e8   :  { %vm6685_vm8 = vmmov %vm6675_vm0 }
 0x57c   :  { %v2242_v49 = vpop.f32.mrb[40].mxu1 }
 0x57d   :  { %v2269_v50 = vadd.f32 %v2242_v49, %v6362_v26  ;;  %v2244_v51 = vpop.f32.mrb[41].mxu1  ;;  %v1181_v26 = vadd.f32 %v6353_v14, %v6335_v63 }
 0x57e   :  { %v2270_v52 = vadd.f32 %v2244_v51, %v6364_v28  ;;  %v2246_v53 = vpop.f32.mrb[42].mxu1 }
 0x57f   :  { %v2288_v62 = vmul.f32 %v6418_v48, %v2269_v50  ;;  %v2271_v43 = vadd.f32 %v2246_v53, %v6366_v32  ;;  %v2248_v54 = vpop.f32.mrb[43].mxu1  ;;  %v1191_v61 = vmax.f32 %v1181_v26, 0.0 }
 0x580   :  { %v2289_v58 = vmul.f32 %v6418_v48, %v2270_v52  ;;  %v2272_v28 = vadd.f32 %v2248_v54, %v6368_v29 }
 0x581   :  { %v2308_v0 = vrot.slane %v2288_v62, 7  ;;  %v2290_v59 = vmul.f32 %v6422_v9, %v2271_v43 }
 0x582   :  { %v2309_v32 = vrot.slane %v2289_v58, 7  ;;  %v2291_v31 = vmul.f32 %v6422_v9, %v2272_v28 }
 0x583   :  { %2336 = vst [vmem:[#allocation2] sm:$0xfe] %v2308_v0  ;;  %v2310_v29 = vrot.slane %v2290_v59, 7 }
 0x584   :  { %2337 = vst [vmem:[#allocation2 + $0x8] sm:$0xfe] %v2309_v32  ;;  %v2312_v4 = vrot.slane %v2291_v31, 7  ;;  %v2252_v8 = vpop.f32.mrb[20].mxu1 }
 0x585   :  { %v6449_v16 = vsel %vm1745_vm2, %v2308_v0, %v2310_v29  ;;  %v5042_v17 = vadd.f32 %v2252_v8, %v1189_v1  ;;  %v2254_v19 = vpop.f32.mrb[21].mxu1 }
 0x586   :  { %v6457_v21 = vsel %vm1745_vm2, %v2309_v32, %v2312_v4  ;;  %v5043_v22 = vadd.f32 %v2254_v19, %v1190_v60  ;;  %v2256_v23 = vpop.f32.mrb[22].mxu1  ;;  %v5402_v19 = vld [vmem:[#allocation13 + $0x10] ss:$8 sps:$4 sm:$0xff]  }
 0x587   :  { %v2292_v14 = vmul.f32 %v5042_v17, %v6444_v7  ;;  %v5044_v24 = vadd.f32 %v2256_v23, %v1191_v61  ;;  %v2258_v25 = vpop.f32.mrb[23].mxu1 }
 0x588   :  { %v2293_v27 = vmul.f32 %v5043_v22, %v6444_v7  ;;  %v5045_v30 = vadd.f32 %v2258_v25, %v1192_v2  ;;  %v5407_v22 = vld [vmem:[#allocation13 + $0x24] ss:$8 sps:$4 sm:$0xff]  }
 0x589   :  { %v2314_v55 = vrot.slane %v2292_v14, 7  ;;  %v2294_v10 = vmul.f32 %v5044_v24, %v6454_v20  ;;  %v5405_v14 = vld [vmem:[#allocation13 + $0x20] ss:$8 sps:$4 sm:$0xff]  }
 0x58a   :  { %v2316_v34 = vrot.slane %v2293_v27, 7  ;;  %v2295_v36 = vmul.f32 %v5045_v30, %v6454_v20  ;;  %v2394_v37 = vld [vmem:[#allocation2] sm:$0xfe]  ;;  %v5410_v27 = vld [vmem:[#allocation13 + $0x34] ss:$8 sps:$4 sm:$0xff]  }
 0x58b   :  { %v2315_v38 = vsel %vm1745_vm2, %v2310_v29, %v2314_v55  ;;  %v2318_v39 = vrot.slane %v2294_v10, 7  ;;  %v2395_v15 = vld [vmem:[#allocation2 + $0x8] sm:$0xfe]  ;;  %v2398_v35 = vpack.c.bf16 %v6449_v16, %v2394_v37 }
 0x58c   :  { %v2317_v40 = vsel %vm1745_vm2, %v2312_v4, %v2316_v34  ;;  %v2320_v41 = vrot.slane %v2295_v36, 7  ;;  %v2262_v44 = vpop.f32.mrb[24].mxu1  ;;  %v2399_v45 = vpack.c.bf16 %v6457_v21, %v2395_v15  ;;  %v5399_v4 = vld [vmem:[#allocation13] ss:$8 sps:$4 sm:$0xff]  }
 0x58d   :  { %v2319_v46 = vsel %vm1745_vm2, %v2314_v55, %v2318_v39  ;;  %v5046_v47 = vadd.f32 %v2262_v44, %v1193_v33  ;;  %v2264_v49 = vpop.f32.mrb[25].mxu1  ;;  %v2438_v50 = vshll.u32 %v2398_v35, 16  ;;  %v2436_v0 = vshrl.u32 %v2398_v35, 16  ;;  %v5408_v33 = vld [vmem:[#allocation13 + $0x30] ss:$8 sps:$4 sm:$0xff]  }
 0x58e   :  { %v2321_v51 = vsel %vm1745_vm2, %v2316_v34, %v2320_v41  ;;  %v5047_v52 = vadd.f32 %v2264_v49, %v1194_v6  ;;  %v2266_v53 = vpop.f32.mrb[26].mxu1  ;;  %v2450_v62 = vshll.u32 %v2399_v45, 16  ;;  %v6477_v18 = vpack.c.bf16 %v2319_v46, %v2315_v38  ;;  %v5413_v6 = vld [vmem:[#allocation13 + $0x44] ss:$8 sps:$4 sm:$0xff]   ;;  %v5411_v44 = vld [vmem:[#allocation13 + $0x40] ss:$8 sps:$4 sm:$0xff]  }
 0x58f   :  { %v2296_v43 = vmul.f32 %v5046_v47, %v6469_v42  ;;  %v2267_v54 = vpop.f32.mrb[27].mxu1  ;;  %v6475_v56 = vpack.c.bf16 %v2321_v51, %v2317_v40  ;;  %v2440_v26 = vrot.slane %v2438_v50, 1  ;;  %v2448_v58 = vshrl.u32 %v2399_v45, 16  ;;  %v5416_v45 = vld [vmem:[#allocation13 + $0x54] ss:$8 sps:$4 sm:$0xff]  }
 0x590   :  { %v2297_v57 = vmul.f32 %v5047_v52, %v6469_v42  ;;  %v2452_v28 = vrot.slane %v2450_v62, 1  ;;  %v2443_v31 = vshll.u32 %v6477_v18, 16  ;;  %v2459_v34 = vshrl.u32 %v6477_v18, 16  ;;  %v5414_v46 = vld [vmem:[#allocation13 + $0x50] ss:$8 sps:$4 sm:$0xff]  }
 0x591   :  { %v2322_v59 = vrot.slane %v2296_v43, 7  ;;  %v2455_v32 = vshll.u32 %v6475_v56, 16  ;;  %v2441_v60 = vor.u32 %v2440_v26, %v2436_v0  ;;  %v2467_v55 = vshrl.u32 %v6475_v56, 16  ;;  %v2347_v49 = vld [vmem:[#allocation2 + $0x8] sm:$0xff]  ;;  %v5419_v50 = vld [vmem:[#allocation13 + $0x64] ss:$8 sps:$4 sm:$0xff]  }
 0x592   :  { %v2324_v63 = vrot.slane %v2297_v57, 7  ;;  %v2453_v1 = vor.u32 %v2452_v28, %v2448_v58  ;;  %v2445_v61 = vrot.slane %v2443_v31, 1  ;;  %v2357_v52 = vpack.c.bf16 %v6457_v21, %v2347_v49  ;;  %v5417_v53 = vld [vmem:[#allocation13 + $0x60] ss:$8 sps:$4 sm:$0xff]   ;;  %v5422_v62 = vld [vmem:[#allocation13 + $0x74] ss:$8 sps:$4 sm:$0xff]  }
 0x593   :  { %v2323_v29 = vsel %vm1745_vm2, %v2318_v39, %v2322_v59  ;;  %v2457_v5 = vrot.slane %v2455_v32, 1  ;;  %v5420_v43 = vld [vmem:[#allocation13 + $0x70] ss:$8 sps:$4 sm:$0xff]   ;;  %v5425_v54 = vld [vmem:[#allocation13 + $0x84] ss:$8 sps:$4 sm:$0xff]  }
 0x594   :  { %2344 = vst [vmem:[#allocation2 + $0x40] sm:$0x7] %v2323_v29  ;;  %v2325_v2 = vsel %vm1745_vm2, %v2320_v41, %v2324_v63  ;;  %v2446_v17 = vsel %vm6671_vm10, %v2441_v60, %v2445_v61  ;;  %v2461_v15 = vor.u32 %v2459_v34, %v2445_v61  ;;  %v5423_v26 = vld [vmem:[#allocation13 + $0x80] ss:$8 sps:$4 sm:$0xff]   ;;  %v5428_v57 = vld [vmem:[#allocation13 + $0x94] ss:$8 sps:$4 sm:$0xff]  }
 0x595   :  { %2345 = vst [vmem:[#allocation2 + $0x48] sm:$0x7] %v2325_v2  ;;  %v2458_v8 = vsel %vm6670_vm9, %v2453_v1, %v2457_v5  ;;  %v2469_v37 = vor.u32 %v2467_v55, %v2457_v5  ;;  %v5426_v58 = vld [vmem:[#allocation13 + $0x90] ss:$8 sps:$4 sm:$0xff]   ;;  %v5431_v28 = vld [vmem:[#allocation13 + $0xa4] ss:$8 sps:$4 sm:$0xff]  }
 0x596   :  { %2679 = vmatprep.mubr.bf16.mxu1 %v2458_v8  ;;  %v5429_v0 = vld [vmem:[#allocation13 + $0xa0] ss:$8 sps:$4 sm:$0xff]   ;;  %v5434_v59 = vld [vmem:[#allocation13 + $0xb4] ss:$8 sps:$4 sm:$0xff]   ;;  %v5432_v32 = vld [vmem:[#allocation13 + $0xb0] ss:$8 sps:$4 sm:$0xff]  }
 0x597   :  { %2680 = vmatmul.mubr.bf16.vlgmr.msra.gmra.mrb[44].mxu1 %v2446_v17  ;;  %v5437_v31 = vld [vmem:[#allocation13 + $0xc4] ss:$8 sps:$4 sm:$0xff]   ;;  %v5435_v63 = vld [vmem:[#allocation13 + $0xc0] ss:$8 sps:$4 sm:$0xff]   ;;  %v5440_v1 = vld [vmem:[#allocation13 + $0xd4] ss:$8 sps:$4 sm:$0xff]  }
 0x598   :  { %2869 = vmatpush1.bf16.msra.mxu1 %v5399_v4  ;;  %v5438_v60 = vld [vmem:[#allocation13 + $0xd0] ss:$8 sps:$4 sm:$0xff]   ;;  %v5443_v29 = vld [vmem:[#allocation13 + $0xe4] ss:$8 sps:$4 sm:$0xff]   ;;  %v5441_v5 = vld [vmem:[#allocation13 + $0xe0] ss:$8 sps:$4 sm:$0xff]  }
 0x599   :  { %2870 = vmatprep.subr.bf16.mxu1 %v5404_v12  ;;  %v5446_v61 = vld [vmem:[#allocation13 + $0xf4] ss:$8 sps:$4 sm:$0xff]   ;;  %v5444_v2 = vld [vmem:[#allocation13 + $0xf0] ss:$8 sps:$4 sm:$0xff]   ;;  %v5449_v4 = vld [vmem:[#allocation13 + $0x204] ss:$8 sps:$4 sm:$0xff]  }
 0x59a   :  { %v2346_v8 = vld [vmem:[#allocation2] sm:$0xff]  ;;  %v5447_v12 = vld [vmem:[#allocation13 + $0x200] ss:$8 sps:$4 sm:$0xff]  }
 0x59b   :  { %v2396_v23 = vld [vmem:[#allocation2 + $0x40] sm:$0x7]  ;;  %v2356_v17 = vpack.c.bf16 %v6449_v16, %v2346_v8 }
 0x59c   :  { %2871 = vmatpush1.bf16.msra.mxu1 %v5402_v19  ;;  %v2397_v3 = vld [vmem:[#allocation2 + $0x48] sm:$0x7]  ;;  %v2400_v24 = vpack.c.bf16 %v2396_v23, %v2396_v23  ;;  %v5455_v23 = vld [vmem:[#allocation13 + $0x224] ss:$8 sps:$4 sm:$0xff]  }
 0x59d   :  { %v2401_v25 = vpack.c.bf16 %v2397_v3, %v2397_v3  ;;  %2872 = vmatprep.subr.bf16.mxu1 %v5407_v22  ;;  %v5452_v19 = vld [vmem:[#allocation13 + $0x214] ss:$8 sps:$4 sm:$0xff]   ;;  %v5450_v22 = vld [vmem:[#allocation13 + $0x210] ss:$8 sps:$4 sm:$0xff]   ;;  %v5461_v55 = vld [vmem:[#allocation13 + $0x244] ss:$8 sps:$4 sm:$0xff]  }
 0x59e   :  { %v2463_v30 = vshll.u32 %v2400_v24, 16  ;;  %v2475_v47 = vshrl.u32 %v2400_v24, 16  ;;  %v2355_v3 = vld [vmem:[#allocation2 + $0x48] sm:$0x3]  ;;  %v2354_v34 = vld [vmem:[#allocation2 + $0x40] sm:$0x3] }
 0x59f   :  { %v2471_v10 = vshll.u32 %v2401_v25, 16  ;;  %v2478_v39 = vshrl.u32 %v2401_v25, 16  ;;  %v5458_v24 = vld [vmem:[#allocation13 + $0x234] ss:$8 sps:$4 sm:$0xff]   ;;  %v2361_v25 = vpack.c.bf16 %v2355_v3, %v2355_v3  ;;  %v5479_v49 = vld [vmem:[#allocation13 + $0x2a4] ss:$8 sps:$4 sm:$0xff]  }
 0x5a0   :  { %v2465_v36 = vrot.slane %v2463_v30, 1  ;;  %2873 = vmatpush1.bf16.msra.mxu1 %v5405_v14  ;;  %v5453_v14 = vld [vmem:[#allocation13 + $0x220] ss:$8 sps:$4 sm:$0xff]   ;;  %v5456_v30 = vld [vmem:[#allocation13 + $0x230] ss:$8 sps:$4 sm:$0xff]  }
 0x5a1   :  { %v2473_v38 = vrot.slane %v2471_v10, 1  ;;  %2874 = vmatprep.subr.bf16.mxu1 %v5410_v27  ;;  %v2930_v27 = vld [vmem:[#allocation2 + $0x8] sm:$0xfc]  ;;  %v5509_v3 = vld [vmem:[#allocation14 + $0x144] ss:$8 sps:$4 sm:$0xff]  }
 0x5a2   :  { %v2466_v41 = vsel %vm6673_vm12, %v2461_v15, %v2465_v36  ;;  %v2477_v51 = vor.u32 %v2475_v47, %v2465_v36  ;;  %v2934_v10 = vpack.c.bf16 %v6457_v21, %v2930_v27  ;;  %v2980_v36 = vrot.slane %v6475_v56, 1  ;;  %v5462_v15 = vld [vmem:[#allocation13 + $0x250] ss:$8 sps:$4 sm:$0xff]   ;;  %v5465_v21 = vld [vmem:[#allocation13 + $0x260] ss:$8 sps:$4 sm:$0xff]  }
 0x5a3   :  { %v2474_v35 = vsel %vm6672_vm11, %v2469_v37, %v2473_v38  ;;  %v2480_v40 = vor.u32 %v2478_v39, %v2473_v38  ;;  %v2360_v37 = vpack.c.bf16 %v2354_v34, %v2354_v34  ;;  %v5464_v39 = vld [vmem:[#allocation13 + $0x254] ss:$8 sps:$4 sm:$0xff]   ;;  %v5474_v47 = vld [vmem:[#allocation13 + $0x290] ss:$8 sps:$4 sm:$0xff]   ;;  %v5515_v27 = vld [vmem:[#allocation14 + $0x164] ss:$8 sps:$4 sm:$0xff]  }
 0x5a4   :  { %2689 = vmatprep.mubr.bf16.mxu1 %v2474_v35  ;;  %2875 = vmatpush1.bf16.msra.mxu1 %v5408_v33  ;;  %v5459_v33 = vld [vmem:[#allocation13 + $0x240] ss:$8 sps:$4 sm:$0xff]   ;;  %v2979_v38 = vrot.slane %v2934_v10, 1  ;;  %v5467_v35 = vld [vmem:[#allocation13 + $0x264] ss:$8 sps:$4 sm:$0xff]  }
 0x5a5   :  { %2690 = vmatmul.mubr.bf16.gmra.mrb[48].mxu1 %v2466_v41  ;;  %2876 = vmatprep.subr.bf16.mxu1 %v5413_v6  ;;  %v5468_v41 = vld [vmem:[#allocation13 + $0x270] ss:$8 sps:$4 sm:$0xff]   ;;  %v5521_v34 = vld [vmem:[#allocation14 + $0x184] ss:$8 sps:$4 sm:$0xff]  }
 0x5a6   :  { %2699 = vmatprep.mubr.bf16.mxu1 %v2480_v40  ;;  %v2981_v6 = vsel %vm6674_vm1, %v2979_v38, %v2980_v36  ;;  %v5470_v40 = vld [vmem:[#allocation13 + $0x274] ss:$8 sps:$4 sm:$0xff]   ;;  %v5516_v10 = vld [vmem:[#allocation14 + $0x170] ss:$8 sps:$4 sm:$0xff]   ;;  %v5527_v38 = vld [vmem:[#allocation14 + $0x1a4] ss:$8 sps:$4 sm:$0xff]  }
 0x5a8   :  { %2877 = vmatpush1.bf16.msra.mxu1 %v5411_v44  ;;  %v5473_v44 = vld [vmem:[#allocation13 + $0x284] ss:$8 sps:$4 sm:$0xff]  }
 0x5a9   :  { %2878 = vmatprep.subr.bf16.mxu1 %v5416_v45  ;;  %v5471_v45 = vld [vmem:[#allocation13 + $0x280] ss:$8 sps:$4 sm:$0xff]  }
 0x5ac   :  { %2879 = vmatpush1.bf16.msra.mxu1 %v5414_v46  ;;  %v5476_v46 = vld [vmem:[#allocation13 + $0x294] ss:$8 sps:$4 sm:$0xff]  }
 0x5ad   :  { %2700 = vmatmul.mubr.bf16.gmra.mrb[52].mxu1 %v2477_v51  ;;  %2880 = vmatprep.subr.bf16.mxu1 %v5419_v50  ;;  %v5477_v50 = vld [vmem:[#allocation13 + $0x2a0] ss:$8 sps:$4 sm:$0xff]   ;;  %v5482_v51 = vld [vmem:[#allocation13 + $0x2b4] ss:$8 sps:$4 sm:$0xff]  }
 0x5ae   :  { %2900 = vmatprep.mubr.bf16.mxu1 %v2357_v52  ;;  %v5480_v52 = vld [vmem:[#allocation13 + $0x2b0] ss:$8 sps:$4 sm:$0xff]  }
 0x5b0   :  { %2881 = vmatpush1.bf16.msra.mxu1 %v5417_v53  ;;  %v5485_v53 = vld [vmem:[#allocation13 + $0x2c4] ss:$8 sps:$4 sm:$0xff]  }
 0x5b1   :  { %2882 = vmatprep.subr.bf16.mxu1 %v5422_v62  ;;  %v5483_v62 = vld [vmem:[#allocation13 + $0x2c0] ss:$8 sps:$4 sm:$0xff]  }
 0x5b4   :  { %2883 = vmatpush1.bf16.msra.mxu1 %v5420_v43  ;;  %v5488_v43 = vld [vmem:[#allocation13 + $0x2d4] ss:$8 sps:$4 sm:$0xff]  }
 0x5b5   :  { %2884 = vmatprep.subr.bf16.mxu1 %v5425_v54  ;;  %v5486_v54 = vld [vmem:[#allocation13 + $0x2d0] ss:$8 sps:$4 sm:$0xff]  }
 0x5b8   :  { %2885 = vmatpush1.bf16.msra.mxu1 %v5423_v26  ;;  %v5491_v26 = vld [vmem:[#allocation13 + $0x2e4] ss:$8 sps:$4 sm:$0xff]  }
 0x5b9   :  { %2886 = vmatprep.subr.bf16.mxu1 %v5428_v57  ;;  %v5489_v57 = vld [vmem:[#allocation13 + $0x2e0] ss:$8 sps:$4 sm:$0xff]  }
 0x5bc   :  { %2887 = vmatpush1.bf16.msra.mxu1 %v5426_v58  ;;  %v2932_v58 = vld [vmem:[#allocation2 + $0x48] sm:$0xf] }
 0x5bd   :  { %2888 = vmatprep.subr.bf16.mxu1 %v5431_v28  ;;  %v5494_v28 = vld [vmem:[#allocation13 + $0x2f4] ss:$8 sps:$4 sm:$0xff]  }
 0x5c0   :  { %2889 = vmatpush1.bf16.msra.mxu1 %v5429_v0  ;;  %v2929_v0 = vld [vmem:[#allocation2] sm:$0xfc] }
 0x5c1   :  { %2890 = vmatprep.subr.bf16.mxu1 %v5434_v59  ;;  %v2936_v59 = vpack.c.bf16 %v2932_v58, %v2932_v58 }
 0x5c4   :  { %2891 = vmatpush1.bf16.msra.mxu1 %v5432_v32  ;;  %v5492_v32 = vld [vmem:[#allocation13 + $0x2f0] ss:$8 sps:$4 sm:$0xff]  }
 0x5c5   :  { %2892 = vmatprep.subr.bf16.mxu1 %v5437_v31  ;;  %v2933_v31 = vpack.c.bf16 %v6449_v16, %v2929_v0  ;;  %v5495_v16 = vld [vmem:[#allocation14 + $0x100] ss:$8 sps:$4 sm:$0xff]  }
 0x5c8   :  { %2893 = vmatpush1.bf16.msra.mxu1 %v5435_v63  ;;  %v2977_v63 = vrot.slane %v6477_v18, 1 }
 0x5c9   :  { %2894 = vmatprep.subr.bf16.mxu1 %v5440_v1  ;;  %v2984_v1 = vrot.slane %v2936_v59, 1 }
 0x5cc   :  { %2895 = vmatpush1.bf16.msra.mxu1 %v5438_v60  ;;  %v2931_v60 = vld [vmem:[#allocation2 + $0x40] sm:$0xf] }
 0x5cd   :  { %2896 = vmatprep.subr.bf16.mxu1 %v5443_v29  ;;  %v2976_v29 = vrot.slane %v2933_v31, 1 }
 0x5d0   :  { %2897 = vmatpush1.bf16.msra.mxu1 %v5441_v5  ;;  %v2978_v5 = vsel %vm6675_vm0, %v2976_v29, %v2977_v63 }
 0x5d1   :  { %2898 = vmatprep.subr.bf16.mxu1 %v5446_v61  ;;  %v2935_v61 = vpack.c.bf16 %v2931_v60, %v2931_v60 }
 0x5d4   :  { %2899 = vmatpush1.bf16.msra.mxu1 %v5444_v2  ;;  %v2985_v2 = vsel %vm6676_vm13, %v2980_v36, %v2984_v1  ;;  %v5519_v36 = vld [vmem:[#allocation14 + $0x180] ss:$8 sps:$4 sm:$0xff]  }
 0x5d5   :  { %3152 = vmatprep.subr.bf16.mxu1 %v5449_v4  ;;  %v2982_v4 = vrot.slane %v2935_v61, 1 }
 0x5d7   :  { %2901 = vmatmul.mubr.bf16.vlgmr.msra.gmra.mrb[44].mxu1 %v2356_v17  ;;  %v2983_v8 = vsel %vm6677_vm14, %v2977_v63, %v2982_v4  ;;  %v5498_v17 = vld [vmem:[#allocation14 + $0x110] ss:$8 sps:$4 sm:$0xff]  }
 0x5d8   :  { %2910 = vmatprep.mubr.bf16.mxu1 %v6475_v56  ;;  %3153 = vmatpush1.bf16.msra.mxu1 %v5447_v12  ;;  %v5500_v12 = vld [vmem:[#allocation14 + $0x114] ss:$8 sps:$4 sm:$0xff]  }
 0x5d9   :  { %3154 = vmatprep.subr.bf16.mxu1 %v5452_v19  ;;  %v5503_v19 = vld [vmem:[#allocation14 + $0x124] ss:$8 sps:$4 sm:$0xff]   ;;  %v5506_v56 = vld [vmem:[#allocation14 + $0x134] ss:$8 sps:$4 sm:$0xff]  }
 0x5dc   :  { %3155 = vmatpush1.bf16.msra.mxu1 %v5450_v22  ;;  %v5501_v22 = vld [vmem:[#allocation14 + $0x120] ss:$8 sps:$4 sm:$0xff]  }
 0x5dd   :  { %3156 = vmatprep.subr.bf16.mxu1 %v5455_v23  ;;  %v5504_v23 = vld [vmem:[#allocation14 + $0x130] ss:$8 sps:$4 sm:$0xff]  }
 0x5df   :  { %2911 = vmatmul.mubr.bf16.gmra.mrb[48].mxu1 %v6477_v18  ;;  %v5497_v18 = vld [vmem:[#allocation14 + $0x104] ss:$8 sps:$4 sm:$0xff]  }
 0x5e0   :  { %2920 = vmatprep.mubr.bf16.mxu1 %v2361_v25  ;;  %3157 = vmatpush1.bf16.msra.mxu1 %v5453_v14  ;;  %v5507_v14 = vld [vmem:[#allocation14 + $0x140] ss:$8 sps:$4 sm:$0xff]   ;;  %v5510_v25 = vld [vmem:[#allocation14 + $0x150] ss:$8 sps:$4 sm:$0xff]  }
 0x5e1   :  { %3158 = vmatprep.subr.bf16.mxu1 %v5458_v24  ;;  %3614 = vmatprep.subr.bf16.mxu0 %v5497_v18  ;;  %v5512_v24 = vld [vmem:[#allocation14 + $0x154] ss:$8 sps:$4 sm:$0xff]  }
 0x5e2   :  { %3615 = vmatpush1.bf16.msra.mxu0 %v5495_v16 }
 0x5e3   :  { %3616 = vmatprep.subr.bf16.mxu0 %v5500_v12 }
 0x5e4   :  { %3159 = vmatpush1.bf16.msra.mxu1 %v5456_v30  ;;  %v5513_v30 = vld [vmem:[#allocation14 + $0x160] ss:$8 sps:$4 sm:$0xff]  }
 0x5e5   :  { %3160 = vmatprep.subr.bf16.mxu1 %v5461_v55  ;;  %v5518_v55 = vld [vmem:[#allocation14 + $0x174] ss:$8 sps:$4 sm:$0xff]  }
 0x5e6   :  { %3617 = vmatpush1.bf16.msra.mxu0 %v5498_v17 }
 0x5e7   :  { %2921 = vmatmul.mubr.bf16.gmra.mrb[56].mxu1 %v2360_v37  ;;  %3618 = vmatprep.subr.bf16.mxu0 %v5503_v19  ;;  %v5522_v37 = vld [vmem:[#allocation14 + $0x190] ss:$8 sps:$4 sm:$0xff]  }
 0x5e8   :  { %3161 = vmatpush1.bf16.msra.mxu1 %v5459_v33  ;;  %3184 = vmatprep.mubr.bf16.mxu1 %v2981_v6  ;;  %v5524_v33 = vld [vmem:[#allocation14 + $0x194] ss:$8 sps:$4 sm:$0xff]  }
 0x5e9   :  { %3162 = vmatprep.subr.bf16.mxu1 %v5464_v39  ;;  %v5525_v39 = vld [vmem:[#allocation14 + $0x1a0] ss:$8 sps:$4 sm:$0xff]   ;;  %v5530_v6 = vld [vmem:[#allocation14 + $0x1b4] ss:$8 sps:$4 sm:$0xff]  }
 0x5ea   :  { %3619 = vmatpush1.bf16.msra.mxu0 %v5501_v22 }
 0x5eb   :  { %3620 = vmatprep.subr.bf16.mxu0 %v5506_v56 }
 0x5ec   :  { %3163 = vmatpush1.bf16.msra.mxu1 %v5462_v15  ;;  %v5528_v15 = vld [vmem:[#allocation14 + $0x1b0] ss:$8 sps:$4 sm:$0xff]  }
 0x5ed   :  { %3164 = vmatprep.subr.bf16.mxu1 %v5467_v35  ;;  %v5533_v35 = vld [vmem:[#allocation14 + $0x1c4] ss:$8 sps:$4 sm:$0xff]  }
 0x5ee   :  { %3621 = vmatpush1.bf16.msra.mxu0 %v5504_v23 }
 0x5ef   :  { %3622 = vmatprep.subr.bf16.mxu0 %v5509_v3 }
 0x5f0   :  { %3165 = vmatpush1.bf16.msra.mxu1 %v5465_v21  ;;  %v5531_v21 = vld [vmem:[#allocation14 + $0x1c0] ss:$8 sps:$4 sm:$0xff]  }
 0x5f1   :  { %3166 = vmatprep.subr.bf16.mxu1 %v5470_v40  ;;  %v5536_v40 = vld [vmem:[#allocation14 + $0x1d4] ss:$8 sps:$4 sm:$0xff]  }
 0x5f2   :  { %3623 = vmatpush1.bf16.msra.mxu0 %v5507_v14 }
 0x5f3   :  { %3624 = vmatprep.subr.bf16.mxu0 %v5512_v24 }
 0x5f4   :  { %3167 = vmatpush1.bf16.msra.mxu1 %v5468_v41  ;;  %v5534_v41 = vld [vmem:[#allocation14 + $0x1d0] ss:$8 sps:$4 sm:$0xff]  }
 0x5f5   :  { %3168 = vmatprep.subr.bf16.mxu1 %v5473_v44 }
 0x5f6   :  { %3625 = vmatpush1.bf16.msra.mxu0 %v5510_v25 }
 0x5f7   :  { %3626 = vmatprep.subr.bf16.mxu0 %v5515_v27 }
 0x5f8   :  { %3169 = vmatpush1.bf16.msra.mxu1 %v5471_v45 }
 0x5f9   :  { %3170 = vmatprep.subr.bf16.mxu1 %v5476_v46 }
 0x5fa   :  { %3627 = vmatpush1.bf16.msra.mxu0 %v5513_v30 }
 0x5fb   :  { %3628 = vmatprep.subr.bf16.mxu0 %v5518_v55 }
 0x5fc   :  { %3171 = vmatpush1.bf16.msra.mxu1 %v5474_v47  ;;  %v5539_v47 = vld [vmem:[#allocation14 + $0x1e4] ss:$8 sps:$4 sm:$0xff]  }
 0x5fd   :  { %3172 = vmatprep.subr.bf16.mxu1 %v5479_v49 }
 0x5fe   :  { %3629 = vmatpush1.bf16.msra.mxu0 %v5516_v10 }
 0x5ff   :  { %3630 = vmatprep.subr.bf16.mxu0 %v5521_v34 }
 0x600   :  { %3173 = vmatpush1.bf16.msra.mxu1 %v5477_v50  ;;  %v5537_v50 = vld [vmem:[#allocation14 + $0x1e0] ss:$8 sps:$4 sm:$0xff]  }
 0x601   :  { %3174 = vmatprep.subr.bf16.mxu1 %v5482_v51  ;;  %v5542_v51 = vld [vmem:[#allocation14 + $0x1f4] ss:$8 sps:$4 sm:$0xff]  }
 0x602   :  { %3631 = vmatpush1.bf16.msra.mxu0 %v5519_v36 }
 0x603   :  { %3632 = vmatprep.subr.bf16.mxu0 %v5524_v33 }
 0x604   :  { %3175 = vmatpush1.bf16.msra.mxu1 %v5480_v52  ;;  %v5540_v52 = vld [vmem:[#allocation14 + $0x1f0] ss:$8 sps:$4 sm:$0xff]  }
 0x605   :  { %3176 = vmatprep.subr.bf16.mxu1 %v5485_v53  ;;  %v5545_v53 = vld [vmem:[#allocation14 + $0x4] ss:$8 sps:$4 sm:$0xff]  }
 0x606   :  { %3633 = vmatpush1.bf16.msra.mxu0 %v5522_v37 }
 0x607   :  { %3634 = vmatprep.subr.bf16.mxu0 %v5527_v38 }
 0x608   :  { %3177 = vmatpush1.bf16.msra.mxu1 %v5483_v62 }
 0x609   :  { %3178 = vmatprep.subr.bf16.mxu1 %v5488_v43 }
 0x60a   :  { %3635 = vmatpush1.bf16.msra.mxu0 %v5525_v39 }
 0x60b   :  { %3636 = vmatprep.subr.bf16.mxu0 %v5530_v6 }
 0x60c   :  { %3179 = vmatpush1.bf16.msra.mxu1 %v5486_v54 }
 0x60d   :  { %3180 = vmatprep.subr.bf16.mxu1 %v5491_v26 }
 0x60e   :  { %3637 = vmatpush1.bf16.msra.mxu0 %v5528_v15 }
 0x60f   :  { %3638 = vmatprep.subr.bf16.mxu0 %v5533_v35 }
 0x610   :  { %3181 = vmatpush1.bf16.msra.mxu1 %v5489_v57 }
 0x611   :  { %3182 = vmatprep.subr.bf16.mxu1 %v5494_v28  ;;  %v3223_v28 = vld [vmem:[%s6648_s14] sm:$0x3] }
 0x612   :  { %3639 = vmatpush1.bf16.msra.mxu0 %v5531_v21  ;;  %v3228_v0 = vrot.slane %v3223_v28, %v6347_v11  ;;  %v3232_v59 = vrot.slane %v3223_v28, %v6350_v13 }
 0x613   :  { %3640 = vmatprep.subr.bf16.mxu0 %v5536_v40 }
 0x614   :  { %3183 = vmatpush1.bf16.msra.mxu1 %v5492_v32 }
 0x616   :  { %3641 = vmatpush1.bf16.msra.mxu0 %v5534_v41 }
 0x617   :  { %3185 = vmatmul.mubr.bf16.vlgmr.msra.gmra.mrb[44].mxu1 %v2978_v5  ;;  %3642 = vmatprep.subr.bf16.mxu0 %v5539_v47 }
 0x618   :  { %3194 = vmatprep.mubr.bf16.mxu1 %v2985_v2 }
 0x61a   :  { %3643 = vmatpush1.bf16.msra.mxu0 %v5537_v50 }
 0x61b   :  { %3644 = vmatprep.subr.bf16.mxu0 %v5542_v51 }
 0x61e   :  { %3645 = vmatpush1.bf16.msra.mxu0 %v5540_v52 }
 0x61f   :  { %3195 = vmatmul.mubr.bf16.gmra.mrb[48].mxu1 %v2983_v8  ;;  %3835 = vmatprep.subr.bf16.mxu0 %v5545_v53 }
 0x620   :  { %3204 = vmatprep.mubr.bf16.mxu1 %v2984_v1 }
 0x627   :  { %3205 = vmatmul.mubr.bf16.gmra.mrb[60].mxu1 %v2982_v4 }
 0x680   :  { %v2701_v44 = vpop.f32.mrb[52].mxu1 }
 0x681   :  { %v2703_v45 = vpop.f32.mrb[53].mxu1 }
 0x682   :  { %v2705_v46 = vpop.f32.mrb[54].mxu1 }
 0x683   :  { %v2706_v49 = vpop.f32.mrb[55].mxu1 }
 0x6ba   :  { %v2922_v62 = vpop.f32.mrb[56].mxu1 }
 0x6bb   :  { %v2923_v43 = vadd.f32 %v2922_v62, %v2701_v44  ;;  %v2924_v54 = vpop.f32.mrb[57].mxu1 }
 0x6bc   :  { %v2925_v26 = vadd.f32 %v2924_v54, %v2703_v45  ;;  %v2926_v57 = vpop.f32.mrb[58].mxu1 }
 0x6bd   :  { %v2927_v58 = vpop.f32.mrb[59].mxu1 }
 0x6ea   :  { %v3186_v32 = vpop.f32.mrb[44].mxu1 }
 0x6eb   :  { %v3235_v31 = vadd.f32 %v3228_v0, %v3186_v32  ;;  %v3188_v63 = vpop.f32.mrb[45].mxu1 }
 0x6ec   :  { %v3236_v1 = vadd.f32 %v3232_v59, %v3188_v63  ;;  %v3190_v60 = vpop.f32.mrb[46].mxu1 }
 0x6ed   :  { %v3245_v29 = vmax.f32 %v3235_v31, 0.0  ;;  %v3237_v5 = vadd.f32 %v3228_v0, %v3190_v60  ;;  %v3192_v61 = vpop.f32.mrb[47].mxu1 }
 0x6ee   :  { %v3246_v2 = vmax.f32 %v3236_v1, 0.0  ;;  %v3238_v4 = vadd.f32 %v3232_v59, %v3192_v61 }
 0x6ef   :  { %v3255_v8 = vmul.f32 %v6418_v48, %v3245_v29  ;;  %v3247_v16 = vmax.f32 %v3237_v5, 0.0 }
 0x6f0   :  { %v3256_v18 = vmul.f32 %v6418_v48, %v3246_v2  ;;  %v3248_v12 = vmax.f32 %v3238_v4, 0.0 }
 0x6f1   :  { %v3275_v17 = vrot.slane %v3255_v8, 7  ;;  %v3257_v19 = vmul.f32 %v6422_v9, %v3247_v16 }
 0x6f2   :  { %v3276_v22 = vrot.slane %v3256_v18, 7  ;;  %v3258_v56 = vmul.f32 %v6422_v9, %v3248_v12  ;;  %v3196_v23 = vpop.f32.mrb[48].mxu1 }
 0x6f3   :  { %3303 = vst [vmem:[#allocation2] sm:$0xfe] %v3275_v17  ;;  %v3277_v3 = vrot.slane %v3257_v19, 7  ;;  %v3239_v14 = vadd.f32 %v3228_v0, %v3196_v23  ;;  %v3198_v24 = vpop.f32.mrb[49].mxu1 }
 0x6f4   :  { %3304 = vst [vmem:[#allocation2 + $0x8] sm:$0xfe] %v3276_v22  ;;  %v3279_v25 = vrot.slane %v3258_v56, 7  ;;  %v3240_v27 = vadd.f32 %v3232_v59, %v3198_v24  ;;  %v3200_v30 = vpop.f32.mrb[50].mxu1  ;;  %v5543_v56 = vld [vmem:[#allocation14] ss:$8 sps:$4 sm:$0xff]  }
 0x6f5   :  { %v6516_v55 = vsel %vm1745_vm2, %v3275_v17, %v3277_v3  ;;  %v3249_v48 = vmax.f32 %v3239_v14, 0.0  ;;  %v3241_v10 = vadd.f32 %v3228_v0, %v3200_v30  ;;  %v3202_v34 = vpop.f32.mrb[51].mxu1  ;;  %v5548_v14 = vld [vmem:[#allocation14 + $0x14] ss:$8 sps:$4 sm:$0xff]   ;;  %v5549_v30 = vld [vmem:[#allocation14 + $0x20] ss:$8 sps:$4 sm:$0xff]  }
 0x6f6   :  { %v6519_v36 = vsel %vm1745_vm2, %v3276_v22, %v3279_v25  ;;  %v3250_v33 = vmax.f32 %v3240_v27, 0.0  ;;  %v3242_v9 = vadd.f32 %v3232_v59, %v3202_v34  ;;  %v5551_v27 = vld [vmem:[#allocation14 + $0x24] ss:$8 sps:$4 sm:$0xff]  }
 0x6f7   :  { %v3259_v37 = vmul.f32 %v6444_v7, %v3249_v48  ;;  %v3251_v38 = vmax.f32 %v3241_v10, 0.0  ;;  %v5554_v10 = vld [vmem:[#allocation14 + $0x34] ss:$8 sps:$4 sm:$0xff]  }
 0x6f8   :  { %v3260_v39 = vmul.f32 %v6444_v7, %v3250_v33  ;;  %v3252_v6 = vmax.f32 %v3242_v9, 0.0 }
 0x6f9   :  { %v3281_v15 = vrot.slane %v3259_v37, 7  ;;  %v3261_v35 = vmul.f32 %v6454_v20, %v3251_v38  ;;  %v5552_v38 = vld [vmem:[#allocation14 + $0x30] ss:$8 sps:$4 sm:$0xff]  }
 0x6fa   :  { %v3283_v21 = vrot.slane %v3260_v39, 7  ;;  %v3262_v40 = vmul.f32 %v6454_v20, %v3252_v6  ;;  %v3206_v41 = vpop.f32.mrb[60].mxu1  ;;  %v3361_v44 = vld [vmem:[#allocation2] sm:$0xfe] }
 0x6fb   :  { %v3282_v45 = vsel %vm1745_vm2, %v3277_v3, %v3281_v15  ;;  %v3285_v46 = vrot.slane %v3261_v35, 7  ;;  %v3221_v47 = vadd.f32 %v3206_v41, %v2923_v43  ;;  %v3208_v49 = vpop.f32.mrb[61].mxu1  ;;  %v3362_v50 = vld [vmem:[#allocation2 + $0x8] sm:$0xfe]  ;;  %v3365_v51 = vpack.c.bf16 %v6516_v55, %v3361_v44 }
 0x6fc   :  { %v3284_v52 = vsel %vm1745_vm2, %v3279_v25, %v3283_v21  ;;  %v3287_v7 = vrot.slane %v3262_v40, 7  ;;  %v3222_v53 = vadd.f32 %v3208_v49, %v2925_v26  ;;  %v3210_v62 = vpop.f32.mrb[62].mxu1  ;;  %v3366_v54 = vpack.c.bf16 %v6519_v36, %v3362_v50  ;;  %v5560_v50 = vld [vmem:[#allocation14 + $0x54] ss:$8 sps:$4 sm:$0xff]  }
 0x6fd   :  { %v3286_v57 = vsel %vm1745_vm2, %v3281_v15, %v3285_v46  ;;  %v3243_v20 = vadd.f32 %v3228_v0, %v3221_v47  ;;  %v3211_v58 = vpop.f32.mrb[63].mxu1  ;;  %v3405_v28 = vshll.u32 %v3365_v51, 16  ;;  %v3403_v2 = vshrl.u32 %v3365_v51, 16  ;;  %v5557_v15 = vld [vmem:[#allocation14 + $0x44] ss:$8 sps:$4 sm:$0xff]   ;;  %v3314_v62 = vld [vmem:[#allocation2 + $0x8] sm:$0xff] }
 0x6fe   :  { %v3288_v32 = vsel %vm1745_vm2, %v3283_v21, %v3287_v7  ;;  %v3244_v31 = vadd.f32 %v3232_v59, %v3222_v53  ;;  %v3417_v43 = vshll.u32 %v3366_v54, 16  ;;  %v6533_v60 = vpack.c.bf16 %v3286_v57, %v3282_v45 }
 0x6ff   :  { %v3253_v63 = vmax.f32 %v3243_v20, 0.0  ;;  %v6531_v1 = vpack.c.bf16 %v3288_v32, %v3284_v52  ;;  %v3407_v29 = vrot.slane %v3405_v28, 1  ;;  %v3415_v26 = vshrl.u32 %v3366_v54, 16  ;;  %v5558_v52 = vld [vmem:[#allocation14 + $0x50] ss:$8 sps:$4 sm:$0xff]  }
 0x700   :  { %v3254_v5 = vmax.f32 %v3244_v31, 0.0  ;;  %v3419_v61 = vrot.slane %v3417_v43, 1  ;;  %v3410_v8 = vshll.u32 %v6533_v60, 16  ;;  %v3426_v35 = vshrl.u32 %v6533_v60, 16  ;;  %v5561_v54 = vld [vmem:[#allocation14 + $0x60] ss:$8 sps:$4 sm:$0xff]  }
 0x701   :  { %v3263_v4 = vmul.f32 %v6469_v42, %v3253_v63  ;;  %v3422_v0 = vshll.u32 %v6531_v1, 16  ;;  %v3408_v18 = vor.u32 %v3407_v29, %v3403_v2  ;;  %v3434_v39 = vshrl.u32 %v6531_v1, 16  ;;  %v5566_v20 = vld [vmem:[#allocation14 + $0x74] ss:$8 sps:$4 sm:$0xff]   ;;  %v5564_v28 = vld [vmem:[#allocation14 + $0x70] ss:$8 sps:$4 sm:$0xff]  }
 0x702   :  { %v3264_v16 = vmul.f32 %v6469_v42, %v3254_v5  ;;  %v3420_v59 = vor.u32 %v3419_v61, %v3415_v26  ;;  %v3412_v19 = vrot.slane %v3410_v8, 1  ;;  %v5546_v42 = vld [vmem:[#allocation14 + $0x10] ss:$8 sps:$4 sm:$0xff]   ;;  %v3324_v58 = vpack.c.bf16 %v6519_v36, %v3314_v62  ;;  %v5569_v32 = vld [vmem:[#allocation14 + $0x84] ss:$8 sps:$4 sm:$0xff]  }
 0x703   :  { %v3289_v12 = vrot.slane %v3263_v4, 7  ;;  %v3424_v17 = vrot.slane %v3422_v0, 1  ;;  %v5567_v31 = vld [vmem:[#allocation14 + $0x80] ss:$8 sps:$4 sm:$0xff]   ;;  %v5572_v43 = vld [vmem:[#allocation14 + $0x94] ss:$8 sps:$4 sm:$0xff]  }
 0x704   :  { %v3291_v22 = vrot.slane %v3264_v16, 7  ;;  %v3413_v25 = vsel %vm6679_vm3, %v3408_v18, %v3412_v19  ;;  %v3428_v45 = vor.u32 %v3426_v35, %v3412_v19  ;;  %v5570_v63 = vld [vmem:[#allocation14 + $0x90] ss:$8 sps:$4 sm:$0xff]   ;;  %v5575_v29 = vld [vmem:[#allocation14 + $0xa4] ss:$8 sps:$4 sm:$0xff]  }
 0x705   :  { %v3290_v23 = vsel %vm1745_vm2, %v3285_v46, %v3289_v12  ;;  %v3425_v3 = vsel %vm6678_vm15, %v3420_v59, %v3424_v17  ;;  %v3436_v40 = vor.u32 %v3434_v39, %v3424_v17  ;;  %v5555_v46 = vld [vmem:[#allocation14 + $0x40] ss:$8 sps:$4 sm:$0xff]   ;;  %v5578_v26 = vld [vmem:[#allocation14 + $0xb4] ss:$8 sps:$4 sm:$0xff]   ;;  %v5576_v61 = vld [vmem:[#allocation14 + $0xb0] ss:$8 sps:$4 sm:$0xff]  }
 0x706   :  { %3311 = vst [vmem:[#allocation2 + $0x40] sm:$0x7] %v3290_v23  ;;  %v3292_v24 = vsel %vm1745_vm2, %v3287_v7, %v3291_v22  ;;  %3646 = vmatprep.mubr.bf16.mxu0 %v3425_v3  ;;  %vm6680_vm2 = vmmov %vm6679_vm3  ;;  %v5563_v7 = vld [vmem:[#allocation14 + $0x64] ss:$8 sps:$4 sm:$0xff]   ;;  %v5573_v5 = vld [vmem:[#allocation14 + $0xa0] ss:$8 sps:$4 sm:$0xff]  }
 0x707   :  { %3312 = vst [vmem:[#allocation2 + $0x48] sm:$0x7] %v3292_v24  ;;  %3647 = vmatmul.mubr.bf16.vlgmr.msra.gmra.mrb[28].mxu0 %v3413_v25  ;;  %vm6681_vm4 = vmmov %vm6680_vm2  ;;  %v5581_v2 = vld [vmem:[#allocation14 + $0xc4] ss:$8 sps:$4 sm:$0xff]   ;;  %v5579_v4 = vld [vmem:[#allocation14 + $0xc0] ss:$8 sps:$4 sm:$0xff]  }
 0x708   :  { %3836 = vmatpush1.bf16.msra.mxu0 %v5543_v56  ;;  %v5584_v0 = vld [vmem:[#allocation14 + $0xd4] ss:$8 sps:$4 sm:$0xff]   ;;  %v5582_v8 = vld [vmem:[#allocation14 + $0xd0] ss:$8 sps:$4 sm:$0xff]   ;;  %v5587_v16 = vld [vmem:[#allocation14 + $0xe4] ss:$8 sps:$4 sm:$0xff]  }
 0x709   :  { %3837 = vmatprep.subr.bf16.mxu0 %v5548_v14  ;;  %v5585_v59 = vld [vmem:[#allocation14 + $0xe0] ss:$8 sps:$4 sm:$0xff]   ;;  %v5590_v18 = vld [vmem:[#allocation14 + $0xf4] ss:$8 sps:$4 sm:$0xff]   ;;  %v5588_v12 = vld [vmem:[#allocation14 + $0xf0] ss:$8 sps:$4 sm:$0xff]  }
 0x70a   :  { %v5593_v17 = vld [vmem:[#allocation14 + $0x204] ss:$8 sps:$4 sm:$0xff]   ;;  %v5591_v22 = vld [vmem:[#allocation14 + $0x200] ss:$8 sps:$4 sm:$0xff]   ;;  %v5596_v23 = vld [vmem:[#allocation14 + $0x214] ss:$8 sps:$4 sm:$0xff]  }
 0x70b   :  { %v3313_v19 = vld [vmem:[#allocation2] sm:$0xff]  ;;  %v5597_v25 = vld [vmem:[#allocation14 + $0x220] ss:$8 sps:$4 sm:$0xff]   ;;  %v5632_v62 = vld [vmem:[#allocation14 + $0x2d4] ss:$8 sps:$4 sm:$0xff]  }
 0x70c   :  { %3838 = vmatpush1.bf16.msra.mxu0 %v5546_v42  ;;  %v3323_v56 = vpack.c.bf16 %v6516_v55, %v3313_v19  ;;  %v5594_v3 = vld [vmem:[#allocation14 + $0x210] ss:$8 sps:$4 sm:$0xff]   ;;  %v5599_v14 = vld [vmem:[#allocation14 + $0x224] ss:$8 sps:$4 sm:$0xff]   ;;  %v5602_v42 = vld [vmem:[#allocation14 + $0x234] ss:$8 sps:$4 sm:$0xff]  }
 0x70d   :  { %3839 = vmatprep.subr.bf16.mxu0 %v5551_v27  ;;  %v3363_v48 = vld [vmem:[#allocation2 + $0x40] sm:$0x7]  ;;  %v5606_v35 = vld [vmem:[#allocation14 + $0x250] ss:$8 sps:$4 sm:$0xff]   ;;  %v5646_v19 = vld [vmem:[%s6651_s17 + $0x18] sm:$0xff]  }
 0x70e   :  { %v3364_v34 = vld [vmem:[#allocation2 + $0x48] sm:$0x7]  ;;  %v3367_v33 = vpack.c.bf16 %v3363_v48, %v3363_v48  ;;  %v5600_v48 = vld [vmem:[#allocation14 + $0x230] ss:$8 sps:$4 sm:$0xff]  }
 0x70f   :  { %v3368_v9 = vpack.c.bf16 %v3364_v34, %v3364_v34  ;;  %v3322_v24 = vld [vmem:[#allocation2 + $0x48] sm:$0x3] }
 0x710   :  { %v3430_v37 = vshll.u32 %v3367_v33, 16  ;;  %3840 = vmatpush1.bf16.msra.mxu0 %v5549_v30  ;;  %v3442_v53 = vshrl.u32 %v3367_v33, 16  ;;  %v3328_v27 = vpack.c.bf16 %v3322_v24, %v3322_v24  ;;  %v3897_v30 = vld [vmem:[#allocation2 + $0x8] sm:$0xfc]  ;;  %v3321_v33 = vld [vmem:[#allocation2 + $0x40] sm:$0x3] }
 0x711   :  { %v3438_v6 = vshll.u32 %v3368_v9, 16  ;;  %3841 = vmatprep.subr.bf16.mxu0 %v5554_v10  ;;  %v3445_v44 = vshrl.u32 %v3368_v9, 16  ;;  %v5605_v10 = vld [vmem:[#allocation14 + $0x244] ss:$8 sps:$4 sm:$0xff]   ;;  %v3901_v34 = vpack.c.bf16 %v6519_v36, %v3897_v30  ;;  %v3947_v9 = vrot.slane %v6531_v1, 1  ;;  %v5652_v24 = vld [vmem:[%s6651_s17 + $0x30] sm:$0xff]  }
 0x712   :  { %v3432_v21 = vrot.slane %v3430_v37, 1  ;;  %v5603_v37 = vld [vmem:[#allocation14 + $0x240] ss:$8 sps:$4 sm:$0xff]  }
 0x713   :  { %v3440_v41 = vrot.slane %v3438_v6, 1  ;;  %v3946_v39 = vrot.slane %v3901_v34, 1  ;;  %v5608_v6 = vld [vmem:[#allocation14 + $0x254] ss:$8 sps:$4 sm:$0xff]   ;;  %v5609_v36 = vld [vmem:[#allocation14 + $0x260] ss:$8 sps:$4 sm:$0xff]  }
 0x714   :  { %3842 = vmatpush1.bf16.msra.mxu0 %v5552_v38  ;;  %v3433_v51 = vsel %vm6681_vm4, %v3428_v45, %v3432_v21  ;;  %v3444_v57 = vor.u32 %v3442_v53, %v3432_v21  ;;  %v3327_v38 = vpack.c.bf16 %v3321_v33, %v3321_v33  ;;  %v5611_v21 = vld [vmem:[#allocation14 + $0x264] ss:$8 sps:$4 sm:$0xff]   ;;  %v5615_v45 = vld [vmem:[#allocation14 + $0x280] ss:$8 sps:$4 sm:$0xff]  }
 0x715   :  { %v3441_v47 = vsel %vm6680_vm2, %v3436_v40, %v3440_v41  ;;  %v3447_v49 = vor.u32 %v3445_v44, %v3440_v41  ;;  %3843 = vmatprep.subr.bf16.mxu0 %v5557_v15  ;;  %v3948_v15 = vsel %vm6682_vm5, %v3946_v39, %v3947_v9  ;;  %v5614_v40 = vld [vmem:[#allocation14 + $0x274] ss:$8 sps:$4 sm:$0xff]   ;;  %v5612_v41 = vld [vmem:[#allocation14 + $0x270] ss:$8 sps:$4 sm:$0xff]   ;;  %v5617_v44 = vld [vmem:[#allocation14 + $0x284] ss:$8 sps:$4 sm:$0xff]  }
 0x716   :  { %3656 = vmatprep.mubr.bf16.mxu0 %v3441_v47  ;;  %v5618_v47 = vld [vmem:[#allocation14 + $0x290] ss:$8 sps:$4 sm:$0xff]   ;;  %v5627_v53 = vld [vmem:[#allocation14 + $0x2c0] ss:$8 sps:$4 sm:$0xff]  }
 0x717   :  { %3657 = vmatmul.mubr.bf16.gmra.mrb[32].mxu0 %v3433_v51  ;;  %v5626_v51 = vld [vmem:[#allocation14 + $0x2b4] ss:$8 sps:$4 sm:$0xff]  }
 0x718   :  { %3666 = vmatprep.mubr.bf16.mxu0 %v3447_v49  ;;  %3844 = vmatpush1.bf16.msra.mxu0 %v5555_v46  ;;  %v5620_v46 = vld [vmem:[#allocation14 + $0x294] ss:$8 sps:$4 sm:$0xff]   ;;  %v5623_v49 = vld [vmem:[#allocation14 + $0x2a4] ss:$8 sps:$4 sm:$0xff]  }
 0x719   :  { %3845 = vmatprep.subr.bf16.mxu0 %v5560_v50  ;;  %v5621_v50 = vld [vmem:[#allocation14 + $0x2a0] ss:$8 sps:$4 sm:$0xff]  }
 0x71c   :  { %3846 = vmatpush1.bf16.msra.mxu0 %v5558_v52  ;;  %v5624_v52 = vld [vmem:[#allocation14 + $0x2b0] ss:$8 sps:$4 sm:$0xff]  }
 0x71d   :  { %3847 = vmatprep.subr.bf16.mxu0 %v5563_v7  ;;  %v5629_v7 = vld [vmem:[#allocation14 + $0x2c4] ss:$8 sps:$4 sm:$0xff]  }
 0x71f   :  { %3667 = vmatmul.mubr.bf16.gmra.mrb[36].mxu0 %v3444_v57  ;;  %v5635_v57 = vld [vmem:[#allocation14 + $0x2e4] ss:$8 sps:$4 sm:$0xff]  }
 0x720   :  { %3867 = vmatprep.mubr.bf16.mxu0 %v3324_v58  ;;  %3848 = vmatpush1.bf16.msra.mxu0 %v5561_v54  ;;  %v5630_v54 = vld [vmem:[#allocation14 + $0x2d0] ss:$8 sps:$4 sm:$0xff]   ;;  %v3899_v58 = vld [vmem:[#allocation2 + $0x48] sm:$0xf] }
 0x721   :  { %3849 = vmatprep.subr.bf16.mxu0 %v5566_v20  ;;  %v5633_v20 = vld [vmem:[#allocation14 + $0x2e0] ss:$8 sps:$4 sm:$0xff]  }
 0x724   :  { %3850 = vmatpush1.bf16.msra.mxu0 %v5564_v28  ;;  %v5638_v28 = vld [vmem:[#allocation14 + $0x2f4] ss:$8 sps:$4 sm:$0xff]  }
 0x725   :  { %3851 = vmatprep.subr.bf16.mxu0 %v5569_v32  ;;  %v3896_v32 = vld [vmem:[#allocation2] sm:$0xfc] }
 0x728   :  { %3852 = vmatpush1.bf16.msra.mxu0 %v5567_v31  ;;  %v3903_v31 = vpack.c.bf16 %v3899_v58, %v3899_v58 }
 0x729   :  { %3853 = vmatprep.subr.bf16.mxu0 %v5572_v43  ;;  %v5636_v43 = vld [vmem:[#allocation14 + $0x2f0] ss:$8 sps:$4 sm:$0xff]  }
 0x72c   :  { %3854 = vmatpush1.bf16.msra.mxu0 %v5570_v63  ;;  %v3900_v63 = vpack.c.bf16 %v6516_v55, %v3896_v32  ;;  %v5639_v55 = vld [vmem:[%s6651_s17 + $0x40] sm:$0xff]  }
 0x72d   :  { %3855 = vmatprep.subr.bf16.mxu0 %v5575_v29  ;;  %v3944_v29 = vrot.slane %v6533_v60, 1  ;;  %4900 = vmatprep.subr.bf16.mxu1 %v5639_v55 }
 0x730   :  { %3856 = vmatpush1.bf16.msra.mxu0 %v5573_v5  ;;  %v3951_v5 = vrot.slane %v3903_v31, 1 }
 0x731   :  { %3857 = vmatprep.subr.bf16.mxu0 %v5578_v26  ;;  %v3898_v26 = vld [vmem:[#allocation2 + $0x40] sm:$0xf] }
 0x734   :  { %3858 = vmatpush1.bf16.msra.mxu0 %v5576_v61  ;;  %v3943_v61 = vrot.slane %v3900_v63, 1 }
 0x735   :  { %3859 = vmatprep.subr.bf16.mxu0 %v5581_v2 }
 0x736   :  { %v3945_v2 = vsel %vm6683_vm6, %v3943_v61, %v3944_v29 }
 0x738   :  { %3860 = vmatpush1.bf16.msra.mxu0 %v5579_v4  ;;  %v3902_v4 = vpack.c.bf16 %v3898_v26, %v3898_v26 }
 0x739   :  { %3861 = vmatprep.subr.bf16.mxu0 %v5584_v0  ;;  %v3952_v0 = vsel %vm6684_vm7, %v3947_v9, %v3951_v5 }
 0x73c   :  { %3862 = vmatpush1.bf16.msra.mxu0 %v5582_v8  ;;  %v3949_v8 = vrot.slane %v3902_v4, 1 }
 0x73d   :  { %3863 = vmatprep.subr.bf16.mxu0 %v5587_v16 }
 0x73e   :  { %v3950_v16 = vsel %vm6685_vm8, %v3944_v29, %v3949_v8 }
 0x740   :  { %3864 = vmatpush1.bf16.msra.mxu0 %v5585_v59  ;;  %v5642_v59 = vld [vmem:[%s6651_s17 + $0x8] sm:$0xff]  }
 0x741   :  { %3865 = vmatprep.subr.bf16.mxu0 %v5590_v18  ;;  %v5643_v18 = vld [vmem:[%s6651_s17 + $0x50] sm:$0xff]  }
 0x744   :  { %3866 = vmatpush1.bf16.msra.mxu0 %v5588_v12  ;;  %v5644_v12 = vld [vmem:[%s6651_s17 + $0x10] sm:$0xff]  }
 0x745   :  { %4119 = vmatprep.subr.bf16.mxu0 %v5593_v17  ;;  %v5645_v17 = vld [vmem:[%s6651_s17 + $0x58] sm:$0xff]  }
 0x747   :  { %3868 = vmatmul.mubr.bf16.vlgmr.msra.gmra.mrb[28].mxu0 %v3323_v56  ;;  %v5648_v56 = vld [vmem:[%s6651_s17 + $0x20] sm:$0xff]  }
 0x748   :  { %3877 = vmatprep.mubr.bf16.mxu0 %v6531_v1  ;;  %4120 = vmatpush1.bf16.msra.mxu0 %v5591_v22  ;;  %v5641_v1 = vld [vmem:[%s6651_s17 + $0x48] sm:$0xff]   ;;  %v5647_v22 = vld [vmem:[%s6651_s17 + $0x60] sm:$0xff]  }
 0x749   :  { %4121 = vmatprep.subr.bf16.mxu0 %v5596_v23  ;;  %v5649_v23 = vld [vmem:[%s6651_s17 + $0x68] sm:$0xff]  }
 0x74c   :  { %4122 = vmatpush1.bf16.msra.mxu0 %v5594_v3  ;;  %v5650_v3 = vld [vmem:[%s6651_s17 + $0x28] sm:$0xff]  }
 0x74d   :  { %4123 = vmatprep.subr.bf16.mxu0 %v5599_v14  ;;  %v5651_v14 = vld [vmem:[%s6651_s17 + $0x70] sm:$0xff]  }
 0x74f   :  { %3878 = vmatmul.mubr.bf16.gmra.mrb[32].mxu0 %v6533_v60  ;;  %v5640_v60 = vld [vmem:[%s6651_s17] sm:$0xff]  }
 0x750   :  { %3887 = vmatprep.mubr.bf16.mxu0 %v3328_v27  ;;  %4124 = vmatpush1.bf16.msra.mxu0 %v5597_v25  ;;  %v5653_v25 = vld [vmem:[%s6651_s17 + $0x78] sm:$0xff]  }
 0x751   :  { %4125 = vmatprep.subr.bf16.mxu0 %v5602_v42  ;;  %4901 = vmatpush3.bf16.msra.mxu1 %v5640_v60  ;;  %v5654_v42 = vld [vmem:[%s6651_s17 + $0x38] sm:$0xff]  }
 0x752   :  { %4902 = vmatprep.subr.bf16.mxu1 %v5641_v1 }
 0x754   :  { %4126 = vmatpush1.bf16.msra.mxu0 %v5600_v48 }
 0x755   :  { %4127 = vmatprep.subr.bf16.mxu0 %v5605_v10  ;;  %4903 = vmatpush3.bf16.msra.mxu1 %v5642_v59 }
 0x756   :  { %4904 = vmatprep.subr.bf16.mxu1 %v5643_v18 }
 0x757   :  { %3888 = vmatmul.mubr.bf16.gmra.mrb[40].mxu0 %v3327_v38 }
 0x758   :  { %4128 = vmatpush1.bf16.msra.mxu0 %v5603_v37  ;;  %4151 = vmatprep.mubr.bf16.mxu0 %v3948_v15 }
 0x759   :  { %4129 = vmatprep.subr.bf16.mxu0 %v5608_v6  ;;  %4905 = vmatpush3.bf16.msra.mxu1 %v5644_v12  ;;  %v4190_v6 = vld [vmem:[%s6650_s16] sm:$0x3] }
 0x75a   :  { %4906 = vmatprep.subr.bf16.mxu1 %v5645_v17  ;;  %v4195_v15 = vrot.slane %v4190_v6, %v6347_v11  ;;  %v4838_v17 = vld [vmem:[%s6652_s18] ss:$0 sm:$0xff] }
 0x75c   :  { %4130 = vmatpush1.bf16.msra.mxu0 %v5606_v35  ;;  %v4199_v35 = vrot.slane %v4190_v6, %v6350_v13 }
 0x75d   :  { %4131 = vmatprep.subr.bf16.mxu0 %v5611_v21  ;;  %4907 = vmatpush3.bf16.msra.mxu1 %v5646_v19 }
 0x75e   :  { %4908 = vmatprep.subr.bf16.mxu1 %v5647_v22 }
 0x760   :  { %4132 = vmatpush1.bf16.msra.mxu0 %v5609_v36 }
 0x761   :  { %4133 = vmatprep.subr.bf16.mxu0 %v5614_v40  ;;  %4909 = vmatpush3.bf16.msra.mxu1 %v5648_v56 }
 0x762   :  { %4910 = vmatprep.subr.bf16.mxu1 %v5649_v23 }
 0x764   :  { %4134 = vmatpush1.bf16.msra.mxu0 %v5612_v41 }
 0x765   :  { %4135 = vmatprep.subr.bf16.mxu0 %v5617_v44  ;;  %4911 = vmatpush3.bf16.msra.mxu1 %v5650_v3 }
 0x766   :  { %4912 = vmatprep.subr.bf16.mxu1 %v5651_v14 }
 0x768   :  { %4136 = vmatpush1.bf16.msra.mxu0 %v5615_v45 }
 0x769   :  { %4137 = vmatprep.subr.bf16.mxu0 %v5620_v46  ;;  %4913 = vmatpush3.bf16.msra.mxu1 %v5652_v24 }
 0x76a   :  { %4914 = vmatprep.subr.bf16.mxu1 %v5653_v25 }
 0x76c   :  { %4138 = vmatpush1.bf16.msra.mxu0 %v5618_v47 }
 0x76d   :  { %4139 = vmatprep.subr.bf16.mxu0 %v5623_v49  ;;  %4915 = vmatpush3.bf16.msra.mxu1 %v5654_v42 }
 0x770   :  { %4140 = vmatpush1.bf16.msra.mxu0 %v5621_v50 }
 0x771   :  { %4141 = vmatprep.subr.bf16.mxu0 %v5626_v51 }
 0x774   :  { %4142 = vmatpush1.bf16.msra.mxu0 %v5624_v52 }
 0x775   :  { %4143 = vmatprep.subr.bf16.mxu0 %v5629_v7 }
 0x778   :  { %4144 = vmatpush1.bf16.msra.mxu0 %v5627_v53 }
 0x779   :  { %4145 = vmatprep.subr.bf16.mxu0 %v5632_v62 }
 0x77c   :  { %4146 = vmatpush1.bf16.msra.mxu0 %v5630_v54 }
 0x77d   :  { %4147 = vmatprep.subr.bf16.mxu0 %v5635_v57 }
 0x780   :  { %4148 = vmatpush1.bf16.msra.mxu0 %v5633_v20 }
 0x781   :  { %4149 = vmatprep.subr.bf16.mxu0 %v5638_v28 }
 0x784   :  { %4150 = vmatpush1.bf16.msra.mxu0 %v5636_v43 }
 0x787   :  { %4152 = vmatmul.mubr.bf16.vlgmr.msra.gmra.mrb[28].mxu0 %v3945_v2 }
 0x788   :  { %4161 = vmatprep.mubr.bf16.mxu0 %v3952_v0 }
 0x78f   :  { %4162 = vmatmul.mubr.bf16.gmra.mrb[32].mxu0 %v3950_v16 }
 0x790   :  { %4171 = vmatprep.mubr.bf16.mxu0 %v3951_v5 }
 0x797   :  { %4172 = vmatmul.mubr.bf16.gmra.mrb[44].mxu0 %v3949_v8 }
 0x7f2   :  { %v3668_v27 = vpop.f32.mrb[36].mxu0 }
 0x7f3   :  { %v3670_v30 = vpop.f32.mrb[37].mxu0 }
 0x7f4   :  { %v3672_v48 = vpop.f32.mrb[38].mxu0 }
 0x7f5   :  { %v3673_v10 = vpop.f32.mrb[39].mxu0 }
 0x82a   :  { %v3889_v34 = vpop.f32.mrb[40].mxu0 }
 0x82b   :  { %v3890_v33 = vadd.f32 %v3889_v34, %v3668_v27  ;;  %v3891_v9 = vpop.f32.mrb[41].mxu0 }
 0x82c   :  { %v3892_v37 = vadd.f32 %v3891_v9, %v3670_v30  ;;  %v3893_v38 = vpop.f32.mrb[42].mxu0 }
 0x82d   :  { %v3894_v39 = vpop.f32.mrb[43].mxu0 }
 0x85a   :  { %v4153_v21 = vpop.f32.mrb[28].mxu0 }
 0x85b   :  { %v4202_v36 = vadd.f32 %v4195_v15, %v4153_v21  ;;  %v4155_v40 = vpop.f32.mrb[29].mxu0 }
 0x85c   :  { %v4203_v41 = vadd.f32 %v4199_v35, %v4155_v40  ;;  %v4157_v44 = vpop.f32.mrb[30].mxu0 }
 0x85d   :  { %v4204_v45 = vadd.f32 %v4195_v15, %v4157_v44  ;;  %v4159_v46 = vpop.f32.mrb[31].mxu0  ;;  %v4212_v49 = vmax.f32 %v4202_v36, 0.0 }
 0x85e   :  { %v4205_v47 = vadd.f32 %v4199_v35, %v4159_v46  ;;  %v4213_v51 = vmax.f32 %v4203_v41, 0.0 }
 0x85f   :  { %v4214_v50 = vmax.f32 %v4204_v45, 0.0 }
 0x860   :  { %v4215_v52 = vmax.f32 %v4205_v47, 0.0 }
 0x861   :  { %v4222_v7 = vpack.c.bf16 %v4214_v50, %v4212_v49 }
 0x862   :  { %v4223_v53 = vpack.c.bf16 %v4215_v52, %v4213_v51  ;;  %v4163_v62 = vpop.f32.mrb[32].mxu0 }
 0x863   :  { %v4206_v54 = vadd.f32 %v4195_v15, %v4163_v62  ;;  %v4165_v57 = vpop.f32.mrb[33].mxu0 }
 0x864   :  { %v4207_v11 = vadd.f32 %v4199_v35, %v4165_v57  ;;  %v4167_v20 = vpop.f32.mrb[34].mxu0  ;;  %4395 = vmatprep.mubr.bf16.mxu1 %v4223_v53 }
 0x865   :  { %v4208_v13 = vadd.f32 %v4195_v15, %v4167_v20  ;;  %v4169_v58 = vpop.f32.mrb[35].mxu0  ;;  %4396 = vmatmul.mubr.bf16.vlgmr.msra.gmra.mrb[64].mxu1 %v4222_v7  ;;  %v4216_v32 = vmax.f32 %v4206_v54, 0.0 }
 0x866   :  { %v4209_v28 = vadd.f32 %v4199_v35, %v4169_v58  ;;  %v4217_v43 = vmax.f32 %v4207_v11, 0.0 }
 0x867   :  { %v4218_v31 = vmax.f32 %v4208_v13, 0.0 }
 0x868   :  { %v4219_v63 = vmax.f32 %v4209_v28, 0.0 }
 0x869   :  { %v4224_v29 = vpack.c.bf16 %v4218_v31, %v4216_v32 }
 0x86a   :  { %v4225_v5 = vpack.c.bf16 %v4219_v63, %v4217_v43  ;;  %v4173_v26 = vpop.f32.mrb[44].mxu0 }
 0x86b   :  { %v4188_v61 = vadd.f32 %v4173_v26, %v3890_v33  ;;  %v4175_v2 = vpop.f32.mrb[45].mxu0 }
 0x86c   :  { %v4189_v4 = vadd.f32 %v4175_v2, %v3892_v37  ;;  %v4177_v0 = vpop.f32.mrb[46].mxu0  ;;  %4403 = vmatprep.mubr.bf16.mxu1 %v4225_v5 }
 0x86d   :  { %v4210_v8 = vadd.f32 %v4195_v15, %v4188_v61  ;;  %v4178_v16 = vpop.f32.mrb[47].mxu0  ;;  %4404 = vmatmul.mubr.bf16.gmra.mrb[68].mxu1 %v4224_v29 }
 0x86e   :  { %v4211_v55 = vadd.f32 %v4199_v35, %v4189_v4 }
 0x86f   :  { %v4220_v60 = vmax.f32 %v4210_v8, 0.0 }
 0x870   :  { %v4221_v1 = vmax.f32 %v4211_v55, 0.0 }
 0x871   :  { %v4226_v18 = vpack.c.bf16 %v4220_v60, %v4220_v60 }
 0x872   :  { %v4227_v59 = vpack.c.bf16 %v4221_v1, %v4221_v1 }
 0x874   :  { %4411 = vmatprep.mubr.bf16.mxu1 %v4227_v59 }
 0x875   :  { %4412 = vmatmul.mubr.bf16.gmra.mrb[72].mxu1 %v4226_v18 }
 0x938   :  { %v4916_v12 = vpop.f32.mrb[64].mxu1 }
 0x939   :  { %v4917_v19 = vpop.f32.mrb[65].mxu1 }
 0x93a   :  { %v4918_v22 = vadd.f32 %v4917_v19, %v4916_v12  ;;  %v4919_v56 = vpop.f32.mrb[66].mxu1 }
 0x93b   :  { %v4920_v23 = vpop.f32.mrb[67].mxu1 }
 0x93c   :  { %v4398_v3 = vadd.f32 %v4918_v22, %v4838_v17  ;;  %v4921_v14 = vadd.f32 %v4920_v23, %v4919_v56 }
 0x93e   :  { %4419 = vst [vmem:[%s6653_s19] sm:$0xff] %v4398_v3  ;;  %v4401_v24 = vadd.f32 %v4921_v14, %v4838_v17 }
 0x940   :  { %4420 = vst [vmem:[%s6653_s19 + $0x8] sm:$0xff] %v4401_v24  ;;  %v4922_v25 = vpop.f32.mrb[68].mxu1 }
 0x941   :  { %v4923_v42 = vpop.f32.mrb[69].mxu1 }
 0x942   :  { %v4924_v27 = vadd.f32 %v4923_v42, %v4922_v25  ;;  %v4925_v30 = vpop.f32.mrb[70].mxu1 }
 0x943   :  { %v4926_v48 = vpop.f32.mrb[71].mxu1 }
 0x944   :  { %v4406_v10 = vadd.f32 %v4924_v27, %v4838_v17  ;;  %v4927_v34 = vadd.f32 %v4926_v48, %v4925_v30 }
 0x946   :  { %4421 = vst [vmem:[%s6653_s19 + $0x10] sm:$0xff] %v4406_v10  ;;  %v4409_v33 = vadd.f32 %v4927_v34, %v4838_v17 }
 0x948   :  { %4422 = vst [vmem:[%s6653_s19 + $0x18] sm:$0xff] %v4409_v33  ;;  %v4928_v9 = vpop.f32.mrb[72].mxu1 }
 0x949   :  { %v4929_v37 = vpop.f32.mrb[73].mxu1 }
 0x94a   :  { %v4930_v38 = vadd.f32 %v4929_v37, %v4928_v9  ;;  %v4931_v39 = vpop.f32.mrb[74].mxu1 }
 0x94b   :  { %v4932_v6 = vpop.f32.mrb[75].mxu1 }
 0x94c   :  { %v4414_v15 = vadd.f32 %v4930_v38, %v4838_v17 }
 0x94e   :  { %4423 = vst [vmem:[%s6653_s19 + $0x20] sm:$0x3] %v4414_v15 }
 0x94f   :  { %4428 = vsyncpa [#allocation4], 1 }
 0x950   :  { %4429 = vsyncpa [#allocation6], 1 }
 0x951   :  { %4430 = vsyncpa [#allocation9], 1 }
 0x952   :  { %4431 = vsyncpa [#allocation12], 1 }
 0x953   :  { %4432 = vsyncpa [#allocation15], 1 }

</bundles_post_ra>
